<compile_context>
chip_gen: v5e
topology: v5e:2x2
jax: 0.10.0
libtpu: 0.0.40
codegen_flags: <defaults>
</compile_context>

<pallas_src>
import functools

import jax
import jax.numpy as jnp
from jax.experimental import pallas as pl
from jax.experimental.pallas import tpu as pltpu


def _cdiv(a, b):
    return -(-a // b)


def _upsample_rows_kernel(x_ref, o_ref, *, h, w, scale):
    """x_ref: (TR, H*W) flat image rows.  o_ref: (TR, S*S*H*W) flat upsampled rows."""
    x = x_ref[...]
    tr = x.shape[0]
    hw = h * w
    ws = w * scale

    # Column (width) duplication: lane-innermost repeat.
    #   xd[r, (hh*W + ww)*S + dj] = x[r, hh*W + ww]     -> flat (H, W, S) layout
    xd = jnp.broadcast_to(x[:, :, None], (tr, hw, scale)).reshape(tr, hw * scale)

    # Row (height) duplication: each W*S-wide chunk (one upsampled image row) is
    # emitted `scale` times consecutively, giving the flat (H, S, W, S) layout,
    # i.e. the row-major flattening of the (S*H, S*W) nearest-upsampled image.
    pieces = []
    for hh in range(h):
        chunk = xd[:, hh * ws:(hh + 1) * ws]
        pieces.extend([chunk] * scale)
    o_ref[...] = jnp.concatenate(pieces, axis=-1)   # single full-lane-width store


def _choose_rows_per_block(rows, hw, scale, itemsize, granularity,
                           vmem_budget_bytes=24 << 20):
    """Rows of the flat (rows, H*W) view processed per grid step.

    The budget counts the double-buffered in+out pipeline blocks PLUS the
    in-kernel temporaries (column-dup intermediate ~ S*HW/row, assembled output
    ~ S^2*HW/row) so the footprint stays inside the explicit 32 MiB VMEM limit
    on every generation (v5e/v6e: 128 MiB physical, v7x: 64 MiB physical).
    """
    s2 = scale * scale
    per_row = itemsize * hw * (2 * (1 + s2) + scale + s2)
    cap = max(1, vmem_budget_bytes // per_row)
    if rows <= cap:
        return rows                      # single block: no pointless grid steps
    tr = max(granularity, (cap // granularity) * granularity)
    steps = _cdiv(rows, tr)
    if steps > 1 and steps % 2 == 1:
        # Best-effort: even step count so v7x's two TensorCores get balanced
        # work on the "parallel" axis (harmless on single-TC v5e/v6e).
        tr_even = _cdiv(_cdiv(rows, steps + 1), granularity) * granularity
        if tr_even >= granularity:
            tr = tr_even
    return min(tr, rows)


def upsample_nearest(x, scale=2):
    """Integer-factor nearest-neighbor upsample of an NCHW tensor via Pallas."""
    n, c, h, w = x.shape
    rows = n * c
    hw = h * w
    out_w = scale * scale * hw
    itemsize = jnp.dtype(x.dtype).itemsize
    granularity = max(8, 32 // itemsize)          # 8 rows f32, 16 bf16, 32 int8
    tr = _choose_rows_per_block(rows, hw, scale, itemsize, granularity)
    grid = (_cdiv(rows, tr),)                     # partial tail block is masked

    x_rows = x.reshape(rows, hw)                  # free view
    kernel = functools.partial(_upsample_rows_kernel, h=h, w=w, scale=scale)
    out_rows = pl.pallas_call(
        kernel,
        out_shape=jax.ShapeDtypeStruct((rows, out_w), x.dtype),
        grid=grid,
        in_specs=[pl.BlockSpec((tr, hw), lambda g: (g, 0))],
        out_specs=pl.BlockSpec((tr, out_w), lambda g: (g, 0)),
        compiler_params=pltpu.CompilerParams(
            dimension_semantics=("parallel",),
            vmem_limit_bytes=32 * 1024 * 1024),
        cost_estimate=pl.CostEstimate(
            flops=0,
            transcendentals=0,
            bytes_accessed=int(x.size * itemsize * (1 + scale * scale))),
    )(x_rows)
    # Free view back to NCHW: each flat row is the (S*H, S*W) image row-major.
    return out_rows.reshape(n, c, scale * h, scale * w)


# Below this output size the pallas_call launch overhead exceeds the whole copy;
# XLA's fused repeat wins on every generation.
_PALLAS_MIN_OUT_BYTES = 256 * 1024


def _upsample_nearest_xla(x, scale):
    return jnp.repeat(jnp.repeat(x, scale, axis=2), scale, axis=3)


def _upsample(x, scale, min_pallas_out_bytes):
    out_bytes = x.size * scale * scale * jnp.dtype(x.dtype).itemsize
    if out_bytes < min_pallas_out_bytes:
        return _upsample_nearest_xla(x, scale)
    return upsample_nearest(x, scale)


def upsample_forward(zl, size, *, min_pallas_out_bytes=_PALLAS_MIN_OUT_BYTES):
    """Mirrors upsample.forward(zl, size) from the PyTorch module (no params)."""
    if size == '16_32':
        zl = _upsample(zl, 2, min_pallas_out_bytes)
    if size == '16_64':
        # Fused: one 4x nearest kernel == two chained 2x nearest upsamples
        # (identical result), avoiding the HBM round trip of the intermediate.
        zl = _upsample(zl, 4, min_pallas_out_bytes)
    if size == '32_64':
        zl = _upsample(zl, 2, min_pallas_out_bytes)
    return zl


def _ref_upsample2x(x):
    return jnp.repeat(jnp.repeat(x, 2, axis=2), 2, axis=3)


if __name__ == "__main__":
    key = jax.random.PRNGKey(0)
    x = jax.random.normal(key, (2, 4, 16, 16), dtype=jnp.float32)

    # Force the Pallas path at these demo shapes (the size gate would otherwise
    # route such tiny tensors to the XLA fallback).
    FORCE = dict(min_pallas_out_bytes=0)

    # size == '16_32' : one 2x upsample -> (2, 4, 32, 32)
    y32 = upsample_forward(x, "16_32", **FORCE)
    jax.block_until_ready(y32)
    ref32 = _ref_upsample2x(x)
    assert y32.shape == (2, 4, 32, 32)
    assert jnp.allclose(y32, ref32), "16_32 mismatch"

    # size == '16_64' : fused 4x upsample -> (2, 4, 64, 64)
    y64 = upsample_forward(x, "16_64", **FORCE)
    jax.block_until_ready(y64)
    ref64 = _ref_upsample2x(ref32)
    assert y64.shape == (2, 4, 64, 64)
    assert jnp.allclose(y64, ref64), "16_64 mismatch"

    # size == '32_64' : one 2x upsample of a 32x32 input -> (2, 4, 64, 64)
    y3264 = upsample_forward(ref32, "32_64", **FORCE)
    jax.block_until_ready(y3264)
    assert y3264.shape == (2, 4, 64, 64)
    assert jnp.allclose(y3264, ref64), "32_64 mismatch"

    # Default gate: tiny tensors take the XLA fallback (same numerics).
    y32_fallback = upsample_forward(x, "16_32")
    jax.block_until_ready(y32_fallback)
    assert jnp.allclose(y32_fallback, ref32), "fallback mismatch"

    print("KERNEL_OK")
</pallas_src>

<mosaic_0001>
module attributes {stable_mosaic.version = 11 : i64} {
  func.func @_upsample_rows_kernel(%arg0: i32, %arg1: memref<8x256xf32, #tpu.memory_space<vmem>>, %arg2: memref<8x1024xf32, #tpu.memory_space<vmem>>) attributes {dimension_semantics = [#tpu.dimension_semantics<parallel>], iteration_bounds = array<i64: 1>, scalar_prefetch = 0 : i64, scratch_operands = 0 : i64, tpu.core_type = #tpu.core_type<tc>, window_params = [{transform_indices = @transform_0, window_bounds = array<i64: 8, 256>}, {transform_indices = @transform_1, window_bounds = array<i64: 8, 1024>}]} {
    %c0 = arith.constant 0 : index
    %c0_0 = arith.constant 0 : index
    %0 = vector.load %arg1[%c0, %c0_0] : memref<8x256xf32, #tpu.memory_space<vmem>>, vector<8x256xf32>
    %1 = vector.shape_cast %0 : vector<8x256xf32> to vector<8x256x1xf32>
    %2 = vector.shape_cast %1 : vector<8x256x1xf32> to vector<8x256x1xf32>
    %3 = vector.broadcast %2 : vector<8x256x1xf32> to vector<8x256x2xf32>
    %4 = vector.shape_cast %3 : vector<8x256x2xf32> to vector<8x512xf32>
    %5 = vector.extract_strided_slice %4 {offsets = [0, 0], sizes = [8, 32], strides = [1, 1]} : vector<8x512xf32> to vector<8x32xf32>
    %6 = vector.extract_strided_slice %4 {offsets = [0, 32], sizes = [8, 32], strides = [1, 1]} : vector<8x512xf32> to vector<8x32xf32>
    %7 = vector.extract_strided_slice %4 {offsets = [0, 64], sizes = [8, 32], strides = [1, 1]} : vector<8x512xf32> to vector<8x32xf32>
    %8 = vector.extract_strided_slice %4 {offsets = [0, 96], sizes = [8, 32], strides = [1, 1]} : vector<8x512xf32> to vector<8x32xf32>
    %9 = vector.extract_strided_slice %4 {offsets = [0, 128], sizes = [8, 32], strides = [1, 1]} : vector<8x512xf32> to vector<8x32xf32>
    %10 = vector.extract_strided_slice %4 {offsets = [0, 160], sizes = [8, 32], strides = [1, 1]} : vector<8x512xf32> to vector<8x32xf32>
    %11 = vector.extract_strided_slice %4 {offsets = [0, 192], sizes = [8, 32], strides = [1, 1]} : vector<8x512xf32> to vector<8x32xf32>
    %12 = vector.extract_strided_slice %4 {offsets = [0, 224], sizes = [8, 32], strides = [1, 1]} : vector<8x512xf32> to vector<8x32xf32>
    %13 = vector.extract_strided_slice %4 {offsets = [0, 256], sizes = [8, 32], strides = [1, 1]} : vector<8x512xf32> to vector<8x32xf32>
    %14 = vector.extract_strided_slice %4 {offsets = [0, 288], sizes = [8, 32], strides = [1, 1]} : vector<8x512xf32> to vector<8x32xf32>
    %15 = vector.extract_strided_slice %4 {offsets = [0, 320], sizes = [8, 32], strides = [1, 1]} : vector<8x512xf32> to vector<8x32xf32>
    %16 = vector.extract_strided_slice %4 {offsets = [0, 352], sizes = [8, 32], strides = [1, 1]} : vector<8x512xf32> to vector<8x32xf32>
    %17 = vector.extract_strided_slice %4 {offsets = [0, 384], sizes = [8, 32], strides = [1, 1]} : vector<8x512xf32> to vector<8x32xf32>
    %18 = vector.extract_strided_slice %4 {offsets = [0, 416], sizes = [8, 32], strides = [1, 1]} : vector<8x512xf32> to vector<8x32xf32>
    %19 = vector.extract_strided_slice %4 {offsets = [0, 448], sizes = [8, 32], strides = [1, 1]} : vector<8x512xf32> to vector<8x32xf32>
    %20 = vector.extract_strided_slice %4 {offsets = [0, 480], sizes = [8, 32], strides = [1, 1]} : vector<8x512xf32> to vector<8x32xf32>
    %21 = tpu.concatenate %5, %5, %6, %6, %7, %7, %8, %8, %9, %9, %10, %10, %11, %11, %12, %12 in 1 : vector<8x32xf32>, vector<8x32xf32>, vector<8x32xf32>, vector<8x32xf32>, vector<8x32xf32>, vector<8x32xf32>, vector<8x32xf32>, vector<8x32xf32>, vector<8x32xf32>, vector<8x32xf32>, vector<8x32xf32>, vector<8x32xf32>, vector<8x32xf32>, vector<8x32xf32>, vector<8x32xf32>, vector<8x32xf32> -> vector<8x512xf32>
    %22 = tpu.concatenate %13, %13, %14, %14, %15, %15, %16, %16, %17, %17, %18, %18, %19, %19, %20, %20 in 1 : vector<8x32xf32>, vector<8x32xf32>, vector<8x32xf32>, vector<8x32xf32>, vector<8x32xf32>, vector<8x32xf32>, vector<8x32xf32>, vector<8x32xf32>, vector<8x32xf32>, vector<8x32xf32>, vector<8x32xf32>, vector<8x32xf32>, vector<8x32xf32>, vector<8x32xf32>, vector<8x32xf32>, vector<8x32xf32> -> vector<8x512xf32>
    %23 = tpu.concatenate %21, %22 in 1 : vector<8x512xf32>, vector<8x512xf32> -> vector<8x1024xf32>
    %c0_1 = arith.constant 0 : index
    %c0_2 = arith.constant 0 : index
    %24 = vector.load %arg2[%c0_1, %c0_2] : memref<8x1024xf32, #tpu.memory_space<vmem>>, vector<8x1024xf32>
    tpu.vector_store %arg2[%c0_1, %c0_2], %23 {strides = array<i32>} : memref<8x1024xf32, #tpu.memory_space<vmem>>, vector<8x1024xf32>,
    return
  }
  func.func @transform_0(%arg0: i32) -> (i32, i32) {
    %c0_i32 = arith.constant 0 : i32
    %c0_i32_0 = arith.constant 0 : i32
    return %arg0, %c0_i32 : i32, i32
  }
  func.func @transform_1(%arg0: i32) -> (i32, i32) {
    %c0_i32 = arith.constant 0 : i32
    %c0_i32_0 = arith.constant 0 : i32
    return %arg0, %c0_i32 : i32, i32
  }
}

</mosaic_0001>

<bundles_post_ra>
// kernel: tpu_custom_call.1
= control target key start
LH: loop header
LB: loop body
LE: loop exit
PB: predicated region body
PF: predicated region fallthrough
CT: control target
= control target key end

     0   :  { %s12810_s0 = inlined_call_operand.hbm [shape: f32[8,256], index: 0, kind: input, shape index: {}]   ;;  %s12811_s1 = inlined_call_operand.hbm [shape: f32[8,1024], index: 1, kind: output, shape index: {}]  }
   0x1   :  { %13397 = sst [smem:[#allocation319_spill]] %s12811_s1 }
   0x2   :  { %6 = vsyncpa [#allocation3], 0 }
   0x3   :  { %7 = vsyncpa [#allocation4], 0  ;;  %s13_s8 = sshll.u32 %s12810_s0, 4  ;;  %s6914_s9 = smov [#allocation2]   ;;  %s14_s8 = int_to_ptr.hbm [resolvable:$true] %s13_s8 }
   0x4   :  { %s15_s10 = sshll.u32 %s6914_s9, 4  ;;  %s16_s10 = int_to_ptr.vmem [resolvable:$true] %s15_s10 }
   0x5   :  { %18 = dma.hbm_to_vmem [thread:$0]  %s14_s8, 256, %s16_s10, [#allocation3]  }
   0x6   :  { %6910 = dma.done.wait [#allocation3], 256  }
   0x7   :  { %6911 = vsyncadd [#allocation3], 4294967040  ;;  %v26_v0 = vlaneseq  ;;  %v7005_v4 = vld [vmem:[#allocation2 + $0x8] sm:$0xff]  ;;  %v7007_v5 = vld [vmem:[#allocation2] sm:$0xff]  ;;  %vm1578_vm0 = vcmask 1047556   ;;  %s13238_s0 = smov 6  }
   0x8   :  { %v7010_v6 = vperm.slane %v7005_v4, 0  ;;  %v7013_v7 = vperm.slane %v7007_v5, 0  ;;  %v7019_v8 = vperm.slane %v7007_v5, 3  ;;  %v7031_v11 = vperm.slane %v7005_v4, 5  ;;  %s13243_s11 = smov 12   ;;  %s13251_s12 = smov 18  }
   0x9   :  { %v6994_v1 = vshrl.u32 %v26_v0, 7  ;;  %v7094_v21 = vperm.slane %v7007_v5, 1  ;;  %v7100_v22 = vperm.slane %v7005_v4, 3  ;;  %v7106_v23 = vperm.slane %v7007_v5, 6  ;;  %s13256_s13 = smov 24   ;;  %s13260_s14 = smov 30  }
   0xa   :  { %v7148_v26 = vperm.slane %v7005_v4, 1  ;;  %v7154_v27 = vperm.slane %v7007_v5, 4  ;;  %v7160_v28 = vperm.slane %v7005_v4, 6  ;;  %v7205_v29 = vperm.slane %v7007_v5, 2  ;;  %s13266_s15 = smov 36   ;;  %s13341_s16 = smov 42  }
   0xb   :  { %v6997_v2 = vadd.s32 32, %v6994_v1  ;;  %v7000_v3 = vadd.s32 16, %v6994_v1  ;;  %v7022_v9 = vadd.s32 40, %v6994_v1  ;;  %v7025_v10 = vadd.s32 24, %v6994_v1  ;;  %s13274_s17 = smov 48   ;;  %s13276_s18 = smov 54  }
   0xc   :  { %v7037_v12 = vadd.s32 56, %v6994_v1  ;;  %v7040_v13 = vadd.s32 48, %v6994_v1  ;;  %v7049_v14 = vadd.s32 80, %v6994_v1  ;;  %v7052_v15 = vadd.s32 72, %v6994_v1  ;;  %s13323_s19 = smov 60   ;;  %s13319_s20 = smov 4  }
   0xd   :  { %13398 = vst [vmem:[#allocation8_spill] sm:$0xff] %v6997_v2  ;;  %6643 = vset.pattern.permute.xlu2 %v6997_v2  ;;  %6655 = vset.pattern.permute.xlu0 %v7000_v3  ;;  %v7061_v16 = vadd.s32 96, %v6994_v1  ;;  %v7064_v17 = vadd.s32 88, %v6994_v1  ;;  %v7073_v18 = vadd.s32 120, %v6994_v1  ;;  %v7076_v19 = vadd.s32 112, %v6994_v1  ;;  %s13315_s21 = smov 2  }
   0xe   :  { %13399 = vst [vmem:[#allocation9_spill] sm:$0xff] %v7000_v3  ;;  %6641 = vset.pattern.permute.xlu1 %v7000_v3  ;;  %v7085_v20 = vadd.s32 8, %v6994_v1  ;;  %v7115_v24 = vadd.s32 64, %v6994_v1  ;;  %v7130_v25 = vadd.s32 104, %v6994_v1  ;;  %v7211_v30 = vperm.slane %v7005_v4, 4  ;;  %s13311_s22 = smov 66  }
   0xf   :  { %13400 = vst [vmem:[#allocation10_spill] sm:$0xff] %v7022_v9  ;;  %v7217_v31 = vperm.slane %v7007_v5, 7  ;;  %v510_v32 = vperm.slane %v7005_v4, 2  ;;  %v7253_v33 = vperm.slane %v7007_v5, 5  ;;  %v7259_v34 = vperm.slane %v7005_v4, 7  ;;  %s13309_s23 = smov 10  }
  0x10   :  { %13401 = vst [vmem:[#allocation11_spill] sm:$0xff] %v7037_v12  ;;  %s13307_s24 = smov 8   ;;  %s13305_s25 = smov 72   ;;  %vm6170_vm1 = vcmask 15360   ;;  %vm6172_vm2 = vcmask 31744   ;;  %vm6174_vm3 = vcmask 48128  }
  0x11   :  { %13402 = vst [vmem:[#allocation12_spill] sm:$0xff] %v7040_v13  ;;  %s13303_s26 = smov 16   ;;  %s13300_s27 = smov 14   ;;  %vm6176_vm4 = vcmask 64512   ;;  %vm6178_vm5 = vcmask 80896   ;;  %vm6180_vm6 = vcmask 97280  }
  0x12   :  { %13403 = vst [vmem:[#allocation13_spill] sm:$0xff] %v7049_v14  ;;  %s13298_s28 = smov 78   ;;  %s13296_s29 = smov 22   ;;  %vm6182_vm7 = vcmask 113664   ;;  %vm13394_vm8 = vcmask 130048   ;;  %vm13391_vm9 = vcmask 146432  }
  0x13   :  { %13404 = vst [vmem:[#allocation14_spill] sm:$0xff] %v7052_v15  ;;  %s13294_s30 = smov 20   ;;  %s13292_s2 = smov 84   ;;  %vm13393_vm10 = vcmask 162816   ;;  %vm13392_vm11 = vcmask 179200   ;;  %vm13395_vm12 = vcmask 195584  }
  0x14   :  { %13405 = vst [vmem:[#allocation15_spill] sm:$0xff] %v7061_v16  ;;  %s13290_s3 = smov 28   ;;  %s13288_s4 = smov 26   ;;  %vm13345_vm13 = vcmask 211968   ;;  %vm13342_vm14 = vcmask 228352   ;;  %vm13343_vm15 = vcmask 244736  }
  0x15   :  { %139 = vperm.xlu0 %6655, %v7010_v6   ;;  %54 = vperm.xlu2 %6643, %v7013_v7   ;;  %13406 = vst [vmem:[#allocation16_spill] sm:$0xff] %v7064_v17  ;;  %s13286_s5 = smov 90   ;;  %s13284_s6 = smov 34  }
  0x16   :  { %42 = vperm.xlu1 %6641, %v7013_v7   ;;  %13407 = vst [vmem:[#allocation17_spill] sm:$0xff] %v7073_v18  ;;  %s13280_s7 = smov 32   ;;  %s13282_s8 = smov 96  }
  0x17   :  { %13408 = vst [vmem:[#allocation18_spill] sm:$0xff] %v7076_v19  ;;  %s13187_s9 = smov 40   ;;  %s13181_s10 = smov 38  }
  0x18   :  { %13409 = vst [vmem:[#allocation19_spill] sm:$0xff] %v7085_v20  ;;  %s14455_s1 = smov 112  }
  0x19   :  { %13410 = vst [vmem:[#allocation20_spill] sm:$0xff] %v7259_v34 }
  0x1d   :  { %624 = vperm.xlu0 %6655, %v7019_v8   ;;  %6644 = vset.pattern.permute.xlu2 %v7022_v9 }
  0x1e   :  { %6642 = vset.pattern.permute.xlu1 %v7025_v10 }
  0x25   :  { %1109 = vperm.xlu0 %6655, %v7031_v11   ;;  %60 = vperm.xlu2 %6644, %v7013_v7  }
  0x26   :  { %48 = vperm.xlu1 %6642, %v7013_v7  }
  0x2d   :  { %6784 = vset.pattern.permute.xlu0 %v7037_v12  ;;  %6646 = vset.pattern.permute.xlu2 %v7037_v12 }
  0x2e   :  { %6645 = vset.pattern.permute.xlu1 %v7040_v13 }
  0x35   :  { %169 = vperm.xlu0 %6784, %v7010_v6   ;;  %72 = vperm.xlu2 %6646, %v7013_v7  }
  0x36   :  { %66 = vperm.xlu1 %6645, %v7013_v7  }
  0x3d   :  { %654 = vperm.xlu0 %6784, %v7019_v8   ;;  %6648 = vset.pattern.permute.xlu2 %v7049_v14 }
  0x3e   :  { %6647 = vset.pattern.permute.xlu1 %v7052_v15 }
  0x45   :  { %1139 = vperm.xlu0 %6784, %v7031_v11   ;;  %90 = vperm.xlu2 %6648, %v7013_v7  }
  0x46   :  { %84 = vperm.xlu1 %6647, %v7013_v7  }
  0x4d   :  { %6789 = vset.pattern.permute.xlu0 %v7061_v16  ;;  %6650 = vset.pattern.permute.xlu2 %v7061_v16 }
  0x4e   :  { %6649 = vset.pattern.permute.xlu1 %v7064_v17 }
  0x55   :  { %199 = vperm.xlu0 %6789, %v7010_v6   ;;  %102 = vperm.xlu2 %6650, %v7013_v7  }
  0x56   :  { %96 = vperm.xlu1 %6649, %v7013_v7  }
  0x5d   :  { %684 = vperm.xlu0 %6789, %v7019_v8   ;;  %6652 = vset.pattern.permute.xlu2 %v7073_v18 }
  0x5e   :  { %6651 = vset.pattern.permute.xlu1 %v7076_v19 }
  0x65   :  { %1169 = vperm.xlu0 %6789, %v7031_v11   ;;  %120 = vperm.xlu2 %6652, %v7013_v7  }
  0x66   :  { %114 = vperm.xlu1 %6651, %v7013_v7  }
  0x6d   :  { %6794 = vset.pattern.permute.xlu0 %v7085_v20  ;;  %6654 = vset.pattern.permute.xlu2 %v7085_v20 }
  0x6e   :  { %6653 = vset.pattern.permute.xlu1 %v6994_v1 }
  0x6f   :  { %v7352_v42 = vpop.permute.xlu2 %54 }
  0x75   :  { %36 = vperm.xlu0 %6794, %v7013_v7   ;;  %133 = vperm.xlu2 %6654, %v7010_v6  }
  0x76   :  { %127 = vperm.xlu1 %6653, %v7010_v6  }
  0x7d   :  { %230 = vperm.xlu0 %6794, %v7094_v21   ;;  %6657 = vset.pattern.permute.xlu2 %v6997_v2 }
  0x7e   :  { %6656 = vset.pattern.permute.xlu1 %v7025_v10 }
  0x7f   :  { %v7358_v44 = vpop.permute.xlu2 %60 }
  0x85   :  { %715 = vperm.xlu0 %6794, %v7100_v22   ;;  %151 = vperm.xlu2 %6657, %v7010_v6  }
  0x86   :  { %145 = vperm.xlu1 %6656, %v7010_v6  }
  0x87   :  { %v7283_v35 = vpop.permute.xlu0 %139 }
  0x88   :  { %v7338_v38 = vpop.permute.xlu1 %42 }
  0x8d   :  { %1200 = vperm.xlu0 %6794, %v7106_v23   ;;  %6659 = vset.pattern.permute.xlu2 %v7040_v13 }
  0x8e   :  { %6658 = vset.pattern.permute.xlu1 %v7022_v9 }
  0x8f   :  { %v7285_v36 = vpop.permute.xlu0 %624  ;;  %v7364_v46 = vpop.permute.xlu2 %72 }
  0x95   :  { %6799 = vset.pattern.permute.xlu0 %v7040_v13  ;;  %163 = vperm.xlu2 %6659, %v7010_v6  }
  0x96   :  { %157 = vperm.xlu1 %6658, %v7010_v6  }
  0x97   :  { %v7290_v37 = vpop.permute.xlu0 %1109 }
  0x98   :  { %13411 = vst [vmem:[#allocation21_spill] sm:$0xff] %v7290_v37  ;;  %v7342_v39 = vpop.permute.xlu1 %48 }
  0x9d   :  { %260 = vperm.xlu0 %6799, %v7094_v21   ;;  %6661 = vset.pattern.permute.xlu2 %v7052_v15 }
  0x9e   :  { %6660 = vset.pattern.permute.xlu1 %v7115_v24 }
  0x9f   :  { %v7370_v48 = vpop.permute.xlu2 %90 }
  0xa5   :  { %745 = vperm.xlu0 %6799, %v7100_v22   ;;  %181 = vperm.xlu2 %6661, %v7010_v6  }
  0xa6   :  { %175 = vperm.xlu1 %6660, %v7010_v6  }
  0xa8   :  { %v7346_v40 = vpop.permute.xlu1 %66 }
  0xad   :  { %1230 = vperm.xlu0 %6799, %v7106_v23   ;;  %6663 = vset.pattern.permute.xlu2 %v7064_v17 }
  0xae   :  { %6662 = vset.pattern.permute.xlu1 %v7049_v14 }
  0xaf   :  { %v7376_v50 = vpop.permute.xlu2 %102 }
  0xb0   :  { %13417 = vst [vmem:[#allocation27_spill] sm:$0xff] %v7376_v50 }
  0xb5   :  { %6804 = vset.pattern.permute.xlu0 %v7064_v17  ;;  %193 = vperm.xlu2 %6663, %v7010_v6  }
  0xb6   :  { %187 = vperm.xlu1 %6662, %v7010_v6  }
  0xb8   :  { %v7350_v41 = vpop.permute.xlu1 %84 }
  0xb9   :  { %13412 = vst [vmem:[#allocation22_spill] sm:$0xff] %v7350_v41 }
  0xbd   :  { %290 = vperm.xlu0 %6804, %v7094_v21   ;;  %6665 = vset.pattern.permute.xlu2 %v7076_v19 }
  0xbe   :  { %6664 = vset.pattern.permute.xlu1 %v7130_v25 }
  0xbf   :  { %v7382_v52 = vpop.permute.xlu2 %120 }
  0xc0   :  { %13419 = vst [vmem:[#allocation29_spill] sm:$0xff] %v7382_v52 }
  0xc5   :  { %775 = vperm.xlu0 %6804, %v7100_v22   ;;  %211 = vperm.xlu2 %6665, %v7010_v6  }
  0xc6   :  { %205 = vperm.xlu1 %6664, %v7010_v6  }
  0xc8   :  { %v7356_v43 = vpop.permute.xlu1 %96 }
  0xc9   :  { %13413 = vst [vmem:[#allocation23_spill] sm:$0xff] %v7356_v43 }
  0xcd   :  { %1260 = vperm.xlu0 %6804, %v7106_v23   ;;  %6667 = vset.pattern.permute.xlu2 %v6994_v1 }
  0xce   :  { %6666 = vset.pattern.permute.xlu1 %v7073_v18 }
  0xcf   :  { %v7388_v54 = vpop.permute.xlu2 %133 }
  0xd0   :  { %13421 = vst [vmem:[#allocation31_spill] sm:$0xff] %v7388_v54 }
  0xd5   :  { %6809 = vset.pattern.permute.xlu0 %v6994_v1  ;;  %224 = vperm.xlu2 %6667, %v7094_v21  }
  0xd6   :  { %217 = vperm.xlu1 %6666, %v7010_v6  }
  0xd8   :  { %v7362_v45 = vpop.permute.xlu1 %114 }
  0xd9   :  { %13414 = vst [vmem:[#allocation24_spill] sm:$0xff] %v7362_v45 }
  0xdd   :  { %30 = vperm.xlu0 %6809, %v7013_v7   ;;  %6669 = vset.pattern.permute.xlu2 %v7025_v10 }
  0xde   :  { %6668 = vset.pattern.permute.xlu1 %v7000_v3 }
  0xdf   :  { %v7394_v56 = vpop.permute.xlu2 %151 }
  0xe0   :  { %13423 = vst [vmem:[#allocation33_spill] sm:$0xff] %v7394_v56 }
  0xe5   :  { %321 = vperm.xlu0 %6809, %v7148_v26   ;;  %242 = vperm.xlu2 %6669, %v7094_v21  }
  0xe6   :  { %236 = vperm.xlu1 %6668, %v7094_v21  }
  0xe8   :  { %v7368_v47 = vpop.permute.xlu1 %127 }
  0xe9   :  { %13415 = vst [vmem:[#allocation25_spill] sm:$0xff] %v7368_v47 }
  0xed   :  { %806 = vperm.xlu0 %6809, %v7154_v27   ;;  %6671 = vset.pattern.permute.xlu2 %v7022_v9 }
  0xee   :  { %6670 = vset.pattern.permute.xlu1 %v6997_v2 }
  0xef   :  { %v7400_v58 = vpop.permute.xlu2 %163 }
  0xf0   :  { %13425 = vst [vmem:[#allocation35_spill] sm:$0xff] %v7400_v58 }
  0xf5   :  { %1291 = vperm.xlu0 %6809, %v7160_v28   ;;  %254 = vperm.xlu2 %6671, %v7094_v21  }
  0xf6   :  { %248 = vperm.xlu1 %6670, %v7094_v21  }
  0xf8   :  { %v7374_v49 = vpop.permute.xlu1 %145 }
  0xf9   :  { %13416 = vst [vmem:[#allocation26_spill] sm:$0xff] %v7374_v49 }
  0xfd   :  { %6814 = vset.pattern.permute.xlu0 %v7022_v9  ;;  %6673 = vset.pattern.permute.xlu2 %v7115_v24 }
  0xfe   :  { %6672 = vset.pattern.permute.xlu1 %v7037_v12 }
  0xff   :  { %v7406_v60 = vpop.permute.xlu2 %181 }
 0x100   :  { %13427 = vst [vmem:[#allocation37_spill] sm:$0xff] %v7406_v60 }
 0x105   :  { %351 = vperm.xlu0 %6814, %v7148_v26   ;;  %272 = vperm.xlu2 %6673, %v7094_v21  }
 0x106   :  { %266 = vperm.xlu1 %6672, %v7094_v21  }
 0x108   :  { %v7380_v51 = vpop.permute.xlu1 %157 }
 0x109   :  { %13418 = vst [vmem:[#allocation28_spill] sm:$0xff] %v7380_v51 }
 0x10d   :  { %836 = vperm.xlu0 %6814, %v7154_v27   ;;  %6675 = vset.pattern.permute.xlu2 %v7049_v14 }
 0x10e   :  { %6674 = vset.pattern.permute.xlu1 %v7052_v15 }
 0x10f   :  { %v7412_v62 = vpop.permute.xlu2 %193 }
 0x110   :  { %13428 = vst [vmem:[#allocation38_spill] sm:$0xff] %v7412_v62 }
 0x115   :  { %1321 = vperm.xlu0 %6814, %v7160_v28   ;;  %284 = vperm.xlu2 %6675, %v7094_v21  }
 0x116   :  { %278 = vperm.xlu1 %6674, %v7094_v21  }
 0x118   :  { %v7386_v53 = vpop.permute.xlu1 %175 }
 0x119   :  { %13420 = vst [vmem:[#allocation30_spill] sm:$0xff] %v7386_v53 }
 0x11d   :  { %6819 = vset.pattern.permute.xlu0 %v7049_v14  ;;  %6677 = vset.pattern.permute.xlu2 %v7130_v25 }
 0x11e   :  { %6676 = vset.pattern.permute.xlu1 %v7061_v16 }
 0x11f   :  { %v7418_v0 = vpop.permute.xlu2 %211 }
 0x120   :  { %13430 = vst [vmem:[#allocation40_spill] sm:$0xff] %v7418_v0 }
 0x125   :  { %381 = vperm.xlu0 %6819, %v7148_v26   ;;  %302 = vperm.xlu2 %6677, %v7094_v21  }
 0x126   :  { %296 = vperm.xlu1 %6676, %v7094_v21  }
 0x128   :  { %v7392_v55 = vpop.permute.xlu1 %187 }
 0x129   :  { %13422 = vst [vmem:[#allocation32_spill] sm:$0xff] %v7392_v55 }
 0x12d   :  { %866 = vperm.xlu0 %6819, %v7154_v27   ;;  %6679 = vset.pattern.permute.xlu2 %v7073_v18 }
 0x12e   :  { %6678 = vset.pattern.permute.xlu1 %v7076_v19 }
 0x12f   :  { %v7424_v5 = vpop.permute.xlu2 %224 }
 0x130   :  { %13432 = vst [vmem:[#allocation42_spill] sm:$0xff] %v7424_v5 }
 0x135   :  { %1351 = vperm.xlu0 %6819, %v7160_v28   ;;  %314 = vperm.xlu2 %6679, %v7094_v21  }
 0x136   :  { %308 = vperm.xlu1 %6678, %v7094_v21  }
 0x138   :  { %v7398_v57 = vpop.permute.xlu1 %205 }
 0x139   :  { %13424 = vst [vmem:[#allocation34_spill] sm:$0xff] %v7398_v57 }
 0x13d   :  { %6824 = vset.pattern.permute.xlu0 %v7073_v18  ;;  %6681 = vset.pattern.permute.xlu2 %v7000_v3 }
 0x13e   :  { %6680 = vset.pattern.permute.xlu1 %v7085_v20 }
 0x145   :  { %411 = vperm.xlu0 %6824, %v7148_v26   ;;  %333 = vperm.xlu2 %6681, %v7148_v26  }
 0x146   :  { %327 = vperm.xlu1 %6680, %v7148_v26  }
 0x148   :  { %v7404_v59 = vpop.permute.xlu1 %217 }
 0x149   :  { %13426 = vst [vmem:[#allocation36_spill] sm:$0xff] %v7404_v59 }
 0x14d   :  { %896 = vperm.xlu0 %6824, %v7154_v27   ;;  %6683 = vset.pattern.permute.xlu2 %v6997_v2 }
 0x14e   :  { %6682 = vset.pattern.permute.xlu1 %v7025_v10 }
 0x155   :  { %1381 = vperm.xlu0 %6824, %v7160_v28   ;;  %345 = vperm.xlu2 %6683, %v7148_v26  }
 0x156   :  { %339 = vperm.xlu1 %6682, %v7148_v26  }
 0x158   :  { %v7410_v61 = vpop.permute.xlu1 %236 }
 0x15d   :  { %6829 = vset.pattern.permute.xlu0 %v6997_v2  ;;  %6685 = vset.pattern.permute.xlu2 %v7037_v12 }
 0x15e   :  { %6684 = vset.pattern.permute.xlu1 %v7040_v13 }
 0x165   :  { %442 = vperm.xlu0 %6829, %v7205_v29   ;;  %363 = vperm.xlu2 %6685, %v7148_v26  }
 0x166   :  { %357 = vperm.xlu1 %6684, %v7148_v26  }
 0x168   :  { %v7416_v63 = vpop.permute.xlu1 %248 }
 0x169   :  { %13429 = vst [vmem:[#allocation39_spill] sm:$0xff] %v7416_v63 }
 0x16d   :  { %927 = vperm.xlu0 %6829, %v7211_v30   ;;  %6687 = vset.pattern.permute.xlu2 %v7052_v15 }
 0x16e   :  { %6686 = vset.pattern.permute.xlu1 %v7115_v24 }
 0x175   :  { %1412 = vperm.xlu0 %6829, %v7217_v31   ;;  %375 = vperm.xlu2 %6687, %v7148_v26  }
 0x176   :  { %369 = vperm.xlu1 %6686, %v7148_v26  }
 0x178   :  { %v7422_v4 = vpop.permute.xlu1 %266 }
 0x179   :  { %13431 = vst [vmem:[#allocation41_spill] sm:$0xff] %v7422_v4 }
 0x17d   :  { %6834 = vset.pattern.permute.xlu0 %v7052_v15  ;;  %6689 = vset.pattern.permute.xlu2 %v7061_v16 }
 0x17e   :  { %6688 = vset.pattern.permute.xlu1 %v7064_v17 }
 0x185   :  { %472 = vperm.xlu0 %6834, %v7205_v29   ;;  %393 = vperm.xlu2 %6689, %v7148_v26  }
 0x186   :  { %387 = vperm.xlu1 %6688, %v7148_v26  }
 0x188   :  { %v7428_v6 = vpop.permute.xlu1 %278 }
 0x189   :  { %13433 = vst [vmem:[#allocation43_spill] sm:$0xff] %v7428_v6 }
 0x18d   :  { %957 = vperm.xlu0 %6834, %v7211_v30   ;;  %6691 = vset.pattern.permute.xlu2 %v7076_v19 }
 0x18e   :  { %6690 = vset.pattern.permute.xlu1 %v7130_v25 }
 0x195   :  { %1442 = vperm.xlu0 %6834, %v7217_v31   ;;  %405 = vperm.xlu2 %6691, %v7148_v26  }
 0x196   :  { %399 = vperm.xlu1 %6690, %v7148_v26  }
 0x19d   :  { %6839 = vset.pattern.permute.xlu0 %v7076_v19  ;;  %6693 = vset.pattern.permute.xlu2 %v7085_v20 }
 0x19e   :  { %6692 = vset.pattern.permute.xlu1 %v6994_v1 }
 0x1a5   :  { %502 = vperm.xlu0 %6839, %v7205_v29   ;;  %424 = vperm.xlu2 %6693, %v7205_v29  }
 0x1a6   :  { %418 = vperm.xlu1 %6692, %v7205_v29  }
 0x1ad   :  { %987 = vperm.xlu0 %6839, %v7211_v30   ;;  %6695 = vset.pattern.permute.xlu2 %v7025_v10 }
 0x1ae   :  { %6694 = vset.pattern.permute.xlu1 %v7000_v3 }
 0x1b5   :  { %1472 = vperm.xlu0 %6839, %v7217_v31   ;;  %436 = vperm.xlu2 %6695, %v7205_v29  }
 0x1b6   :  { %430 = vperm.xlu1 %6694, %v7205_v29  }
 0x1bd   :  { %6844 = vset.pattern.permute.xlu0 %v7025_v10  ;;  %6697 = vset.pattern.permute.xlu2 %v7040_v13 }
 0x1be   :  { %6696 = vset.pattern.permute.xlu1 %v7022_v9 }
 0x1c5   :  { %533 = vperm.xlu0 %6844, %v510_v32   ;;  %454 = vperm.xlu2 %6697, %v7205_v29  }
 0x1c6   :  { %448 = vperm.xlu1 %6696, %v7205_v29  }
 0x1cd   :  { %1018 = vperm.xlu0 %6844, %v7253_v33   ;;  %6699 = vset.pattern.permute.xlu2 %v7115_v24 }
 0x1ce   :  { %6698 = vset.pattern.permute.xlu1 %v7037_v12 }
 0x1d5   :  { %1503 = vperm.xlu0 %6844, %v7259_v34   ;;  %466 = vperm.xlu2 %6699, %v7205_v29  }
 0x1d6   :  { %460 = vperm.xlu1 %6698, %v7205_v29  }
 0x1dd   :  { %6849 = vset.pattern.permute.xlu0 %v7115_v24  ;;  %6701 = vset.pattern.permute.xlu2 %v7064_v17 }
 0x1de   :  { %6700 = vset.pattern.permute.xlu1 %v7049_v14 }
 0x1e5   :  { %78 = vperm.xlu0 %6849, %v7013_v7   ;;  %484 = vperm.xlu2 %6701, %v7205_v29  }
 0x1e6   :  { %478 = vperm.xlu1 %6700, %v7205_v29  }
 0x1ed   :  { %563 = vperm.xlu0 %6849, %v510_v32   ;;  %6703 = vset.pattern.permute.xlu2 %v7130_v25 }
 0x1ee   :  { %6702 = vset.pattern.permute.xlu1 %v7061_v16 }
 0x1f5   :  { %1048 = vperm.xlu0 %6849, %v7253_v33   ;;  %496 = vperm.xlu2 %6703, %v7205_v29  }
 0x1f6   :  { %490 = vperm.xlu1 %6702, %v7205_v29  }
 0x1fd   :  { %1533 = vperm.xlu0 %6849, %v7259_v34   ;;  %6705 = vset.pattern.permute.xlu2 %v6994_v1 }
 0x1fe   :  { %6704 = vset.pattern.permute.xlu1 %v7073_v18 }
 0x205   :  { %6854 = vset.pattern.permute.xlu0 %v7130_v25  ;;  %515 = vperm.xlu2 %6705, %v510_v32  }
 0x206   :  { %508 = vperm.xlu1 %6704, %v7205_v29  }
 0x20d   :  { %108 = vperm.xlu0 %6854, %v7013_v7   ;;  %6707 = vset.pattern.permute.xlu2 %v7000_v3  ;;  %v7430_v7 = vpop.permute.xlu2 %242 }
 0x20e   :  { %6706 = vset.pattern.permute.xlu1 %v7085_v20  ;;  %13434 = vst [vmem:[#allocation44_spill] sm:$0xff] %v7430_v7 }
 0x215   :  { %593 = vperm.xlu0 %6854, %v510_v32   ;;  %527 = vperm.xlu2 %6707, %v510_v32   ;;  %v7436_v21 = vpop.permute.xlu2 %254 }
 0x216   :  { %521 = vperm.xlu1 %6706, %v510_v32   ;;  %13436 = vst [vmem:[#allocation46_spill] sm:$0xff] %v7436_v21 }
 0x21d   :  { %6709 = vset.pattern.permute.xlu2 %v7022_v9  ;;  %1078 = vperm.xlu0 %6854, %v7253_v33   ;;  %v7442_v26 = vpop.permute.xlu2 %272 }
 0x21e   :  { %6708 = vset.pattern.permute.xlu1 %v6997_v2  ;;  %13438 = vst [vmem:[#allocation48_spill] sm:$0xff] %v7442_v26 }
 0x225   :  { %545 = vperm.xlu2 %6709, %v510_v32   ;;  %1563 = vperm.xlu0 %6854, %v7259_v34  }
 0x226   :  { %539 = vperm.xlu1 %6708, %v510_v32  }
 0x22d   :  { %6711 = vset.pattern.permute.xlu2 %v7037_v12  ;;  %6861 = vset.pattern.permute.xlu0 %v7073_v18 }
 0x22e   :  { %6710 = vset.pattern.permute.xlu1 %v7040_v13 }
 0x235   :  { %557 = vperm.xlu2 %6711, %v510_v32  }
 0x236   :  { %551 = vperm.xlu1 %6710, %v510_v32  }
 0x23d   :  { %6713 = vset.pattern.permute.xlu2 %v7049_v14 }
 0x23e   :  { %6712 = vset.pattern.permute.xlu1 %v7052_v15 }
 0x245   :  { %575 = vperm.xlu2 %6713, %v510_v32  }
 0x246   :  { %569 = vperm.xlu1 %6712, %v510_v32  }
 0x24d   :  { %6715 = vset.pattern.permute.xlu2 %v7061_v16 }
 0x24e   :  { %6714 = vset.pattern.permute.xlu1 %v7064_v17 }
 0x255   :  { %587 = vperm.xlu2 %6715, %v510_v32  }
 0x256   :  { %581 = vperm.xlu1 %6714, %v510_v32  }
 0x25d   :  { %6717 = vset.pattern.permute.xlu2 %v7073_v18 }
 0x25e   :  { %6716 = vset.pattern.permute.xlu1 %v7076_v19 }
 0x265   :  { %605 = vperm.xlu2 %6717, %v510_v32  }
 0x266   :  { %599 = vperm.xlu1 %6716, %v510_v32   ;;  %v7448_v32 = vpop.permute.xlu2 %284 }
 0x267   :  { %13440 = vst [vmem:[#allocation50_spill] sm:$0xff] %v7448_v32 }
 0x26d   :  { %6719 = vset.pattern.permute.xlu2 %v7085_v20 }
 0x26e   :  { %6718 = vset.pattern.permute.xlu1 %v6994_v1  ;;  %v7454_v62 = vpop.permute.xlu2 %302 }
 0x26f   :  { %13442 = vst [vmem:[#allocation52_spill] sm:$0xff] %v7454_v62 }
 0x275   :  { %618 = vperm.xlu2 %6719, %v7019_v8  }
 0x276   :  { %612 = vperm.xlu1 %6718, %v7019_v8   ;;  %v7460_v60 = vpop.permute.xlu2 %314 }
 0x277   :  { %13444 = vst [vmem:[#allocation54_spill] sm:$0xff] %v7460_v60 }
 0x27d   :  { %6721 = vset.pattern.permute.xlu2 %v6997_v2 }
 0x27e   :  { %6720 = vset.pattern.permute.xlu1 %v7025_v10  ;;  %v7466_v56 = vpop.permute.xlu2 %333 }
 0x27f   :  { %13446 = vst [vmem:[#allocation56_spill] sm:$0xff] %v7466_v56 }
 0x285   :  { %636 = vperm.xlu2 %6721, %v7019_v8  }
 0x286   :  { %630 = vperm.xlu1 %6720, %v7019_v8   ;;  %v7472_v52 = vpop.permute.xlu2 %345 }
 0x287   :  { %13448 = vst [vmem:[#allocation58_spill] sm:$0xff] %v7472_v52 }
 0x28d   :  { %6723 = vset.pattern.permute.xlu2 %v7040_v13 }
 0x28e   :  { %6722 = vset.pattern.permute.xlu1 %v7022_v9  ;;  %v7478_v54 = vpop.permute.xlu2 %363 }
 0x28f   :  { %13450 = vst [vmem:[#allocation60_spill] sm:$0xff] %v7478_v54 }
 0x295   :  { %648 = vperm.xlu2 %6723, %v7019_v8  }
 0x296   :  { %642 = vperm.xlu1 %6722, %v7019_v8  }
 0x29d   :  { %6725 = vset.pattern.permute.xlu2 %v7052_v15 }
 0x29e   :  { %6724 = vset.pattern.permute.xlu1 %v7115_v24 }
 0x2a5   :  { %666 = vperm.xlu2 %6725, %v7019_v8  }
 0x2a6   :  { %660 = vperm.xlu1 %6724, %v7019_v8  }
 0x2ad   :  { %6727 = vset.pattern.permute.xlu2 %v7064_v17 }
 0x2ae   :  { %6726 = vset.pattern.permute.xlu1 %v7049_v14 }
 0x2b5   :  { %678 = vperm.xlu2 %6727, %v7019_v8  }
 0x2b6   :  { %672 = vperm.xlu1 %6726, %v7019_v8  }
 0x2bd   :  { %6729 = vset.pattern.permute.xlu2 %v7076_v19 }
 0x2be   :  { %6728 = vset.pattern.permute.xlu1 %v7130_v25 }
 0x2c5   :  { %696 = vperm.xlu2 %6729, %v7019_v8  }
 0x2c6   :  { %690 = vperm.xlu1 %6728, %v7019_v8  }
 0x2cd   :  { %6731 = vset.pattern.permute.xlu2 %v6994_v1 }
 0x2ce   :  { %6730 = vset.pattern.permute.xlu1 %v7073_v18 }
 0x2d5   :  { %709 = vperm.xlu2 %6731, %v7100_v22  }
 0x2d6   :  { %702 = vperm.xlu1 %6730, %v7019_v8   ;;  %v7434_v8 = vpop.permute.xlu1 %296 }
 0x2d7   :  { %13435 = vst [vmem:[#allocation45_spill] sm:$0xff] %v7434_v8 }
 0x2dd   :  { %6733 = vset.pattern.permute.xlu2 %v7025_v10 }
 0x2de   :  { %6732 = vset.pattern.permute.xlu1 %v7000_v3 }
 0x2e5   :  { %727 = vperm.xlu2 %6733, %v7100_v22  }
 0x2e6   :  { %721 = vperm.xlu1 %6732, %v7100_v22  }
 0x2ed   :  { %6735 = vset.pattern.permute.xlu2 %v7022_v9 }
 0x2ee   :  { %6734 = vset.pattern.permute.xlu1 %v6997_v2 }
 0x2f5   :  { %739 = vperm.xlu2 %6735, %v7100_v22  }
 0x2f6   :  { %733 = vperm.xlu1 %6734, %v7100_v22  }
 0x2fd   :  { %6737 = vset.pattern.permute.xlu2 %v7115_v24 }
 0x2fe   :  { %6736 = vset.pattern.permute.xlu1 %v7037_v12 }
 0x305   :  { %757 = vperm.xlu2 %6737, %v7100_v22  }
 0x306   :  { %751 = vperm.xlu1 %6736, %v7100_v22  }
 0x30d   :  { %6739 = vset.pattern.permute.xlu2 %v7049_v14 }
 0x30e   :  { %6738 = vset.pattern.permute.xlu1 %v7052_v15 }
 0x315   :  { %769 = vperm.xlu2 %6739, %v7100_v22  }
 0x316   :  { %763 = vperm.xlu1 %6738, %v7100_v22  }
 0x31d   :  { %6741 = vset.pattern.permute.xlu2 %v7130_v25 }
 0x31e   :  { %6740 = vset.pattern.permute.xlu1 %v7061_v16 }
 0x325   :  { %787 = vperm.xlu2 %6741, %v7100_v22  }
 0x326   :  { %781 = vperm.xlu1 %6740, %v7100_v22  }
 0x32d   :  { %6743 = vset.pattern.permute.xlu2 %v7073_v18 }
 0x32e   :  { %6742 = vset.pattern.permute.xlu1 %v7076_v19 }
 0x335   :  { %799 = vperm.xlu2 %6743, %v7100_v22  }
 0x336   :  { %793 = vperm.xlu1 %6742, %v7100_v22   ;;  %v7440_v22 = vpop.permute.xlu1 %308 }
 0x337   :  { %13437 = vst [vmem:[#allocation47_spill] sm:$0xff] %v7440_v22 }
 0x33d   :  { %6745 = vset.pattern.permute.xlu2 %v7000_v3 }
 0x33e   :  { %6744 = vset.pattern.permute.xlu1 %v7085_v20  ;;  %v7446_v29 = vpop.permute.xlu1 %327 }
 0x33f   :  { %13439 = vst [vmem:[#allocation49_spill] sm:$0xff] %v7446_v29 }
 0x345   :  { %818 = vperm.xlu2 %6745, %v7154_v27  }
 0x346   :  { %812 = vperm.xlu1 %6744, %v7154_v27   ;;  %v7452_v0 = vpop.permute.xlu1 %339 }
 0x347   :  { %13441 = vst [vmem:[#allocation51_spill] sm:$0xff] %v7452_v0 }
 0x34d   :  { %6747 = vset.pattern.permute.xlu2 %v6997_v2 }
 0x34e   :  { %6746 = vset.pattern.permute.xlu1 %v7025_v10  ;;  %v7458_v59 = vpop.permute.xlu1 %357 }
 0x34f   :  { %13443 = vst [vmem:[#allocation53_spill] sm:$0xff] %v7458_v59 }
 0x355   :  { %830 = vperm.xlu2 %6747, %v7154_v27  }
 0x356   :  { %824 = vperm.xlu1 %6746, %v7154_v27   ;;  %v7464_v34 = vpop.permute.xlu1 %369 }
 0x357   :  { %13445 = vst [vmem:[#allocation55_spill] sm:$0xff] %v7464_v34  ;;  %v7484_v34 = vpop.permute.xlu2 %375 }
 0x358   :  { %13452 = vst [vmem:[#allocation62_spill] sm:$0xff] %v7484_v34 }
 0x35d   :  { %6749 = vset.pattern.permute.xlu2 %v7037_v12 }
 0x35e   :  { %6748 = vset.pattern.permute.xlu1 %v7040_v13 }
 0x365   :  { %848 = vperm.xlu2 %6749, %v7154_v27  }
 0x366   :  { %842 = vperm.xlu1 %6748, %v7154_v27  }
 0x36d   :  { %6751 = vset.pattern.permute.xlu2 %v7052_v15 }
 0x36e   :  { %6750 = vset.pattern.permute.xlu1 %v7115_v24 }
 0x375   :  { %860 = vperm.xlu2 %6751, %v7154_v27  }
 0x376   :  { %854 = vperm.xlu1 %6750, %v7154_v27  }
 0x37d   :  { %6753 = vset.pattern.permute.xlu2 %v7061_v16 }
 0x37e   :  { %6752 = vset.pattern.permute.xlu1 %v7064_v17 }
 0x385   :  { %878 = vperm.xlu2 %6753, %v7154_v27  }
 0x386   :  { %872 = vperm.xlu1 %6752, %v7154_v27  }
 0x38d   :  { %6755 = vset.pattern.permute.xlu2 %v7076_v19 }
 0x38e   :  { %6754 = vset.pattern.permute.xlu1 %v7130_v25 }
 0x395   :  { %890 = vperm.xlu2 %6755, %v7154_v27  }
 0x396   :  { %884 = vperm.xlu1 %6754, %v7154_v27   ;;  %v7470_v27 = vpop.permute.xlu1 %387 }
 0x397   :  { %13447 = vst [vmem:[#allocation57_spill] sm:$0xff] %v7470_v27  ;;  %v7490_v27 = vpop.permute.xlu2 %393 }
 0x398   :  { %13454 = vst [vmem:[#allocation64_spill] sm:$0xff] %v7490_v27 }
 0x39d   :  { %6757 = vset.pattern.permute.xlu2 %v7085_v20 }
 0x39e   :  { %6756 = vset.pattern.permute.xlu1 %v6994_v1  ;;  %v7476_v60 = vpop.permute.xlu1 %399 }
 0x39f   :  { %13449 = vst [vmem:[#allocation59_spill] sm:$0xff] %v7476_v60  ;;  %v7498_v60 = vpop.permute.xlu2 %405 }
 0x3a0   :  { %13456 = vst [vmem:[#allocation66_spill] sm:$0xff] %v7498_v60 }
 0x3a5   :  { %909 = vperm.xlu2 %6757, %v7211_v30  }
 0x3a6   :  { %903 = vperm.xlu1 %6756, %v7211_v30   ;;  %v7482_v50 = vpop.permute.xlu1 %418 }
 0x3a7   :  { %13451 = vst [vmem:[#allocation61_spill] sm:$0xff] %v7482_v50  ;;  %v7506_v27 = vpop.permute.xlu2 %424 }
 0x3a8   :  { %13459 = vst [vmem:[#allocation69_spill] sm:$0xff] %v7506_v27 }
 0x3ad   :  { %6759 = vset.pattern.permute.xlu2 %v7025_v10 }
 0x3ae   :  { %6758 = vset.pattern.permute.xlu1 %v7000_v3  ;;  %v7488_v52 = vpop.permute.xlu1 %430 }
 0x3af   :  { %13453 = vst [vmem:[#allocation63_spill] sm:$0xff] %v7488_v52  ;;  %v7512_v56 = vpop.permute.xlu2 %436 }
 0x3b0   :  { %13461 = vst [vmem:[#allocation71_spill] sm:$0xff] %v7512_v56 }
 0x3b5   :  { %921 = vperm.xlu2 %6759, %v7211_v30  }
 0x3b6   :  { %915 = vperm.xlu1 %6758, %v7211_v30   ;;  %v7494_v54 = vpop.permute.xlu1 %448 }
 0x3b7   :  { %13455 = vst [vmem:[#allocation65_spill] sm:$0xff] %v7494_v54 }
 0x3bd   :  { %6761 = vset.pattern.permute.xlu2 %v7040_v13 }
 0x3be   :  { %6760 = vset.pattern.permute.xlu1 %v7022_v9  ;;  %v7500_v34 = vpop.permute.xlu1 %460 }
 0x3bf   :  { %13457 = vst [vmem:[#allocation67_spill] sm:$0xff] %v7500_v34  ;;  %v7518_v34 = vpop.permute.xlu2 %454 }
 0x3c0   :  { %13463 = vst [vmem:[#allocation73_spill] sm:$0xff] %v7518_v34 }
 0x3c5   :  { %939 = vperm.xlu2 %6761, %v7211_v30  }
 0x3c6   :  { %933 = vperm.xlu1 %6760, %v7211_v30   ;;  %v7504_v50 = vpop.permute.xlu1 %478 }
 0x3c7   :  { %13458 = vst [vmem:[#allocation68_spill] sm:$0xff] %v7504_v50  ;;  %v7524_v29 = vpop.permute.xlu2 %466 }
 0x3c8   :  { %13465 = vst [vmem:[#allocation75_spill] sm:$0xff] %v7524_v29  ;;  %v7560_v29 = vpop.permute.xlu0 %169 }
 0x3c9   :  { %13477 = vst [vmem:[#allocation87_spill] sm:$0xff] %v7560_v29 }
 0x3cd   :  { %6763 = vset.pattern.permute.xlu2 %v7115_v24 }
 0x3ce   :  { %6762 = vset.pattern.permute.xlu1 %v7037_v12  ;;  %v7510_v54 = vpop.permute.xlu1 %490 }
 0x3cf   :  { %13460 = vst [vmem:[#allocation70_spill] sm:$0xff] %v7510_v54  ;;  %v7530_v56 = vpop.permute.xlu2 %484 }
 0x3d0   :  { %13467 = vst [vmem:[#allocation77_spill] sm:$0xff] %v7530_v56 }
 0x3d5   :  { %951 = vperm.xlu2 %6763, %v7211_v30  }
 0x3d6   :  { %945 = vperm.xlu1 %6762, %v7211_v30   ;;  %v7516_v60 = vpop.permute.xlu1 %508 }
 0x3d7   :  { %13462 = vst [vmem:[#allocation72_spill] sm:$0xff] %v7516_v60  ;;  %v7536_v34 = vpop.permute.xlu2 %496 }
 0x3d8   :  { %13469 = vst [vmem:[#allocation79_spill] sm:$0xff] %v7536_v34 }
 0x3dd   :  { %6765 = vset.pattern.permute.xlu2 %v7064_v17 }
 0x3de   :  { %6764 = vset.pattern.permute.xlu1 %v7049_v14  ;;  %v7522_v50 = vpop.permute.xlu1 %521 }
 0x3df   :  { %13464 = vst [vmem:[#allocation74_spill] sm:$0xff] %v7522_v50 }
 0x3e5   :  { %969 = vperm.xlu2 %6765, %v7211_v30  }
 0x3e6   :  { %963 = vperm.xlu1 %6764, %v7211_v30   ;;  %v7528_v54 = vpop.permute.xlu1 %539 }
 0x3e7   :  { %13466 = vst [vmem:[#allocation76_spill] sm:$0xff] %v7528_v54  ;;  %v7544_v54 = vpop.permute.xlu2 %515 }
 0x3e8   :  { %13471 = vst [vmem:[#allocation81_spill] sm:$0xff] %v7544_v54 }
 0x3ed   :  { %6767 = vset.pattern.permute.xlu2 %v7130_v25 }
 0x3ee   :  { %6766 = vset.pattern.permute.xlu1 %v7061_v16  ;;  %v7534_v60 = vpop.permute.xlu1 %551 }
 0x3ef   :  { %13468 = vst [vmem:[#allocation78_spill] sm:$0xff] %v7534_v60 }
 0x3f5   :  { %981 = vperm.xlu2 %6767, %v7211_v30  }
 0x3f6   :  { %975 = vperm.xlu1 %6766, %v7211_v30   ;;  %v7540_v50 = vpop.permute.xlu1 %569 }
 0x3f7   :  { %13470 = vst [vmem:[#allocation80_spill] sm:$0xff] %v7540_v50 }
 0x3fd   :  { %6769 = vset.pattern.permute.xlu2 %v6994_v1 }
 0x3fe   :  { %6768 = vset.pattern.permute.xlu1 %v7073_v18  ;;  %v7546_v56 = vpop.permute.xlu1 %581 }
 0x3ff   :  { %13472 = vst [vmem:[#allocation82_spill] sm:$0xff] %v7546_v56 }
 0x405   :  { %1000 = vperm.xlu2 %6769, %v7253_v33  }
 0x406   :  { %993 = vperm.xlu1 %6768, %v7211_v30   ;;  %v7550_v30 = vpop.permute.xlu2 %527  ;;  %v7552_v60 = vpop.permute.xlu1 %599 }
 0x407   :  { %13473 = vst [vmem:[#allocation83_spill] sm:$0xff] %v7550_v30  ;;  %v7568_v30 = vpop.permute.xlu0 %654 }
 0x408   :  { %13474 = vst [vmem:[#allocation84_spill] sm:$0xff] %v7552_v60 }
 0x40d   :  { %6771 = vset.pattern.permute.xlu2 %v7000_v3 }
 0x40e   :  { %6770 = vset.pattern.permute.xlu1 %v7085_v20  ;;  %v7556_v50 = vpop.permute.xlu1 %612  ;;  %v7558_v34 = vpop.permute.xlu2 %545 }
 0x40f   :  { %13475 = vst [vmem:[#allocation85_spill] sm:$0xff] %v7556_v50  ;;  %v7577_v29 = vpop.permute.xlu0 %1139 }
 0x410   :  { %13476 = vst [vmem:[#allocation86_spill] sm:$0xff] %v7558_v34 }
 0x411   :  { %13482 = vst [vmem:[#allocation92_spill] sm:$0xff] %v7577_v29 }
 0x415   :  { %1012 = vperm.xlu2 %6771, %v7253_v33  }
 0x416   :  { %1006 = vperm.xlu1 %6770, %v7253_v33   ;;  %v7564_v56 = vpop.permute.xlu1 %630  ;;  %v7566_v54 = vpop.permute.xlu2 %557 }
 0x417   :  { %13478 = vst [vmem:[#allocation88_spill] sm:$0xff] %v7564_v56 }
 0x418   :  { %13479 = vst [vmem:[#allocation89_spill] sm:$0xff] %v7566_v54  ;;  %v7586_v54 = vpop.permute.xlu0 %199 }
 0x419   :  { %13485 = vst [vmem:[#allocation95_spill] sm:$0xff] %v7586_v54 }
 0x41d   :  { %6773 = vset.pattern.permute.xlu2 %v7022_v9 }
 0x41e   :  { %6772 = vset.pattern.permute.xlu1 %v6997_v2  ;;  %v7572_v60 = vpop.permute.xlu1 %642  ;;  %v7574_v50 = vpop.permute.xlu2 %575 }
 0x41f   :  { %13480 = vst [vmem:[#allocation90_spill] sm:$0xff] %v7572_v60 }
 0x420   :  { %13481 = vst [vmem:[#allocation91_spill] sm:$0xff] %v7574_v50  ;;  %v7596_v50 = vpop.permute.xlu0 %684 }
 0x421   :  { %13489 = vst [vmem:[#allocation99_spill] sm:$0xff] %v7596_v50 }
 0x425   :  { %1030 = vperm.xlu2 %6773, %v7253_v33  }
 0x426   :  { %1024 = vperm.xlu1 %6772, %v7253_v33   ;;  %v7580_v34 = vpop.permute.xlu1 %660  ;;  %v7582_v56 = vpop.permute.xlu2 %587 }
 0x427   :  { %13483 = vst [vmem:[#allocation93_spill] sm:$0xff] %v7580_v34 }
 0x428   :  { %13484 = vst [vmem:[#allocation94_spill] sm:$0xff] %v7582_v56  ;;  %v7604_v54 = vpop.permute.xlu0 %1169 }
 0x429   :  { %13492 = vst [vmem:[#allocation102_spill] sm:$0xff] %v7604_v54 }
 0x42d   :  { %6775 = vset.pattern.permute.xlu2 %v7037_v12 }
 0x42e   :  { %6774 = vset.pattern.permute.xlu1 %v7040_v13  ;;  %v7588_v62 = vpop.permute.xlu1 %672  ;;  %v7590_v60 = vpop.permute.xlu2 %605 }
 0x42f   :  { %13486 = vst [vmem:[#allocation96_spill] sm:$0xff] %v7588_v62 }
 0x430   :  { %13487 = vst [vmem:[#allocation97_spill] sm:$0xff] %v7590_v60 }
 0x435   :  { %1042 = vperm.xlu2 %6775, %v7253_v33  }
 0x436   :  { %1036 = vperm.xlu1 %6774, %v7253_v33   ;;  %v7594_v29 = vpop.permute.xlu1 %690  ;;  %v7598_v34 = vpop.permute.xlu2 %618 }
 0x437   :  { %13488 = vst [vmem:[#allocation98_spill] sm:$0xff] %v7594_v29 }
 0x438   :  { %13490 = vst [vmem:[#allocation100_spill] sm:$0xff] %v7598_v34  ;;  %v7615_v34 = vpop.permute.xlu0 %36 }
 0x43d   :  { %6777 = vset.pattern.permute.xlu2 %v7049_v14 }
 0x43e   :  { %6776 = vset.pattern.permute.xlu1 %v7052_v15  ;;  %v7602_v56 = vpop.permute.xlu1 %702  ;;  %v7606_v62 = vpop.permute.xlu2 %636 }
 0x43f   :  { %13491 = vst [vmem:[#allocation101_spill] sm:$0xff] %v7602_v56 }
 0x440   :  { %13493 = vst [vmem:[#allocation103_spill] sm:$0xff] %v7606_v62  ;;  %v7624_v54 = vpop.permute.xlu0 %230 }
 0x445   :  { %1060 = vperm.xlu2 %6777, %v7253_v33  }
 0x446   :  { %1054 = vperm.xlu1 %6776, %v7253_v33   ;;  %v7610_v60 = vpop.permute.xlu1 %721  ;;  %v7612_v29 = vpop.permute.xlu2 %648 }
 0x447   :  { %13494 = vst [vmem:[#allocation104_spill] sm:$0xff] %v7610_v60 }
 0x448   :  { %13495 = vst [vmem:[#allocation105_spill] sm:$0xff] %v7612_v29 }
 0x44d   :  { %6779 = vset.pattern.permute.xlu2 %v7061_v16 }
 0x44e   :  { %6778 = vset.pattern.permute.xlu1 %v7064_v17  ;;  %v7618_v52 = vpop.permute.xlu1 %733  ;;  %v7620_v56 = vpop.permute.xlu2 %666 }
 0x44f   :  { %13496 = vst [vmem:[#allocation106_spill] sm:$0xff] %v7618_v52 }
 0x450   :  { %13497 = vst [vmem:[#allocation107_spill] sm:$0xff] %v7620_v56 }
 0x455   :  { %1072 = vperm.xlu2 %6779, %v7253_v33  }
 0x456   :  { %1066 = vperm.xlu1 %6778, %v7253_v33   ;;  %v7626_v27 = vpop.permute.xlu1 %751  ;;  %v7628_v60 = vpop.permute.xlu2 %678 }
 0x457   :  { %13498 = vst [vmem:[#allocation108_spill] sm:$0xff] %v7626_v27 }
 0x458   :  { %13499 = vst [vmem:[#allocation109_spill] sm:$0xff] %v7628_v60 }
 0x45d   :  { %6781 = vset.pattern.permute.xlu2 %v7073_v18 }
 0x45e   :  { %6780 = vset.pattern.permute.xlu1 %v7076_v19  ;;  %v7632_v29 = vpop.permute.xlu1 %763  ;;  %v7636_v52 = vpop.permute.xlu2 %696 }
 0x45f   :  { %13500 = vst [vmem:[#allocation110_spill] sm:$0xff] %v7632_v29 }
 0x460   :  { %13502 = vst [vmem:[#allocation112_spill] sm:$0xff] %v7636_v52 }
 0x465   :  { %1090 = vperm.xlu2 %6781, %v7253_v33  }
 0x466   :  { %1084 = vperm.xlu1 %6780, %v7253_v33   ;;  %v7634_v33 = vpop.permute.xlu0 %715  ;;  %v7640_v8 = vpop.permute.xlu1 %781 }
 0x467   :  { %13501 = vst [vmem:[#allocation111_spill] sm:$0xff] %v7634_v33  ;;  %v7644_v27 = vpop.permute.xlu2 %709 }
 0x468   :  { %13503 = vst [vmem:[#allocation113_spill] sm:$0xff] %v7640_v8 }
 0x469   :  { %13505 = vst [vmem:[#allocation115_spill] sm:$0xff] %v7644_v27 }
 0x46d   :  { %6783 = vset.pattern.permute.xlu2 %v7085_v20 }
 0x46e   :  { %6782 = vset.pattern.permute.xlu1 %v6994_v1  ;;  %v7642_v32 = vpop.permute.xlu0 %1200  ;;  %v7648_v60 = vpop.permute.xlu1 %793  ;;  %v13629_v37 = vld [vmem:[#allocation111_spill] sm:$0xff] }
 0x46f   :  { %13504 = vst [vmem:[#allocation114_spill] sm:$0xff] %v7642_v32  ;;  %v7650_v29 = vpop.permute.xlu2 %727 }
 0x470   :  { %13506 = vst [vmem:[#allocation116_spill] sm:$0xff] %v7648_v60 }
 0x471   :  { %13507 = vst [vmem:[#allocation117_spill] sm:$0xff] %v7650_v29 }
 0x475   :  { %1103 = vperm.xlu2 %6783, %v7031_v11  }
 0x476   :  { %1097 = vperm.xlu1 %6782, %v7031_v11   ;;  %v7653_v59 = vpop.permute.xlu0 %260  ;;  %v7656_v26 = vpop.permute.xlu1 %812 }
 0x477   :  { %13508 = vst [vmem:[#allocation118_spill] sm:$0xff] %v7653_v59  ;;  %v7658_v8 = vpop.permute.xlu2 %739 }
 0x478   :  { %13509 = vst [vmem:[#allocation119_spill] sm:$0xff] %v7656_v26 }
 0x479   :  { %13510 = vst [vmem:[#allocation120_spill] sm:$0xff] %v7658_v8 }
 0x47d   :  { %6786 = vset.pattern.permute.xlu2 %v6997_v2 }
 0x47e   :  { %6785 = vset.pattern.permute.xlu1 %v7025_v10  ;;  %v7662_v27 = vpop.permute.xlu0 %745  ;;  %v7664_v21 = vpop.permute.xlu1 %824 }
 0x47f   :  { %13511 = vst [vmem:[#allocation121_spill] sm:$0xff] %v7662_v27  ;;  %v7666_v60 = vpop.permute.xlu2 %757 }
 0x480   :  { %13512 = vst [vmem:[#allocation122_spill] sm:$0xff] %v7664_v21 }
 0x481   :  { %13513 = vst [vmem:[#allocation123_spill] sm:$0xff] %v7666_v60 }
 0x485   :  { %1121 = vperm.xlu2 %6786, %v7031_v11  }
 0x486   :  { %1115 = vperm.xlu1 %6785, %v7031_v11   ;;  %v7670_v7 = vpop.permute.xlu1 %842  ;;  %v7672_v57 = vpop.permute.xlu0 %1230 }
 0x487   :  { %13514 = vst [vmem:[#allocation124_spill] sm:$0xff] %v7670_v7  ;;  %v7674_v26 = vpop.permute.xlu2 %769 }
 0x488   :  { %13515 = vst [vmem:[#allocation125_spill] sm:$0xff] %v7672_v57 }
 0x489   :  { %13516 = vst [vmem:[#allocation126_spill] sm:$0xff] %v7674_v26 }
 0x48d   :  { %6788 = vset.pattern.permute.xlu2 %v7040_v13 }
 0x48e   :  { %6787 = vset.pattern.permute.xlu1 %v7022_v9  ;;  %v7678_v8 = vpop.permute.xlu1 %854  ;;  %v7680_v27 = vpop.permute.xlu0 %290 }
 0x48f   :  { %13517 = vst [vmem:[#allocation127_spill] sm:$0xff] %v7678_v8  ;;  %v7682_v21 = vpop.permute.xlu2 %787 }
 0x490   :  { %13518 = vst [vmem:[#allocation128_spill] sm:$0xff] %v7680_v27 }
 0x491   :  { %13519 = vst [vmem:[#allocation129_spill] sm:$0xff] %v7682_v21 }
 0x495   :  { %1133 = vperm.xlu2 %6788, %v7031_v11  }
 0x496   :  { %1127 = vperm.xlu1 %6787, %v7031_v11   ;;  %v7686_v60 = vpop.permute.xlu1 %872  ;;  %v7691_v26 = vpop.permute.xlu0 %775 }
 0x497   :  { %13520 = vst [vmem:[#allocation130_spill] sm:$0xff] %v7686_v60  ;;  %v7688_v7 = vpop.permute.xlu2 %799 }
 0x498   :  { %13521 = vst [vmem:[#allocation131_spill] sm:$0xff] %v7688_v7 }
 0x499   :  { %13522 = vst [vmem:[#allocation132_spill] sm:$0xff] %v7691_v26 }
 0x49d   :  { %6791 = vset.pattern.permute.xlu2 %v7052_v15 }
 0x49e   :  { %6790 = vset.pattern.permute.xlu1 %v7115_v24  ;;  %v7694_v57 = vpop.permute.xlu1 %884  ;;  %v7700_v21 = vpop.permute.xlu0 %1260 }
 0x49f   :  { %13523 = vst [vmem:[#allocation133_spill] sm:$0xff] %v7694_v57  ;;  %v7696_v8 = vpop.permute.xlu2 %818 }
 0x4a0   :  { %13524 = vst [vmem:[#allocation134_spill] sm:$0xff] %v7696_v8 }
 0x4a1   :  { %13525 = vst [vmem:[#allocation135_spill] sm:$0xff] %v7700_v21 }
 0x4a5   :  { %1151 = vperm.xlu2 %6791, %v7031_v11  }
 0x4a6   :  { %1145 = vperm.xlu1 %6790, %v7031_v11   ;;  %v7702_v27 = vpop.permute.xlu1 %903  ;;  %v7710_v7 = vpop.permute.xlu0 %30 }
 0x4a7   :  { %13526 = vst [vmem:[#allocation136_spill] sm:$0xff] %v7702_v27  ;;  %v7704_v60 = vpop.permute.xlu2 %830 }
 0x4a8   :  { %13527 = vst [vmem:[#allocation137_spill] sm:$0xff] %v7704_v60 }
 0x4a9   :  { %13529 = vst [vmem:[#allocation139_spill] sm:$0xff] %v7710_v7 }
 0x4ad   :  { %6793 = vset.pattern.permute.xlu2 %v7064_v17 }
 0x4ae   :  { %6792 = vset.pattern.permute.xlu1 %v7049_v14  ;;  %v7708_v26 = vpop.permute.xlu1 %915  ;;  %v7718_v21 = vpop.permute.xlu0 %321 }
 0x4af   :  { %13528 = vst [vmem:[#allocation138_spill] sm:$0xff] %v7708_v26  ;;  %v7712_v57 = vpop.permute.xlu2 %848 }
 0x4b0   :  { %13530 = vst [vmem:[#allocation140_spill] sm:$0xff] %v7712_v57 }
 0x4b1   :  { %13532 = vst [vmem:[#allocation142_spill] sm:$0xff] %v7718_v21 }
 0x4b5   :  { %1163 = vperm.xlu2 %6793, %v7031_v11  }
 0x4b6   :  { %1157 = vperm.xlu1 %6792, %v7031_v11   ;;  %v7716_v8 = vpop.permute.xlu1 %933  ;;  %v7729_v57 = vpop.permute.xlu0 %806 }
 0x4b7   :  { %13531 = vst [vmem:[#allocation141_spill] sm:$0xff] %v7716_v8  ;;  %v7720_v27 = vpop.permute.xlu2 %860 }
 0x4b8   :  { %13533 = vst [vmem:[#allocation143_spill] sm:$0xff] %v7720_v27 }
 0x4b9   :  { %13536 = vst [vmem:[#allocation146_spill] sm:$0xff] %v7729_v57 }
 0x4bd   :  { %6796 = vset.pattern.permute.xlu2 %v7076_v19 }
 0x4be   :  { %6795 = vset.pattern.permute.xlu1 %v7130_v25  ;;  %v7724_v5 = vpop.permute.xlu1 %945  ;;  %v7738_v21 = vpop.permute.xlu0 %1291 }
 0x4bf   :  { %13534 = vst [vmem:[#allocation144_spill] sm:$0xff] %v7724_v5  ;;  %v7726_v26 = vpop.permute.xlu2 %878 }
 0x4c0   :  { %13535 = vst [vmem:[#allocation145_spill] sm:$0xff] %v7726_v26 }
 0x4c1   :  { %13539 = vst [vmem:[#allocation149_spill] sm:$0xff] %v7738_v21 }
 0x4c5   :  { %1181 = vperm.xlu2 %6796, %v7031_v11  }
 0x4c6   :  { %1175 = vperm.xlu1 %6795, %v7031_v11   ;;  %v7732_v7 = vpop.permute.xlu1 %963  ;;  %v7748_v57 = vpop.permute.xlu0 %351 }
 0x4c7   :  { %13537 = vst [vmem:[#allocation147_spill] sm:$0xff] %v7732_v7  ;;  %v7734_v8 = vpop.permute.xlu2 %890 }
 0x4c8   :  { %13538 = vst [vmem:[#allocation148_spill] sm:$0xff] %v7734_v8 }
 0x4c9   :  { %13543 = vst [vmem:[#allocation153_spill] sm:$0xff] %v7748_v57 }
 0x4cd   :  { %6798 = vset.pattern.permute.xlu2 %v6994_v1 }
 0x4ce   :  { %6797 = vset.pattern.permute.xlu1 %v7073_v18  ;;  %v7756_v21 = vpop.permute.xlu0 %836 }
 0x4cf   :  { %v7742_v5 = vpop.permute.xlu2 %909  ;;  %13546 = vst [vmem:[#allocation156_spill] sm:$0xff] %v7756_v21 }
 0x4d0   :  { %13541 = vst [vmem:[#allocation151_spill] sm:$0xff] %v7742_v5 }
 0x4d5   :  { %1194 = vperm.xlu2 %6798, %v7106_v23  }
 0x4d6   :  { %1187 = vperm.xlu1 %6797, %v7031_v11   ;;  %v7740_v11 = vpop.permute.xlu1 %975  ;;  %v7767_v57 = vpop.permute.xlu0 %1321 }
 0x4d7   :  { %13540 = vst [vmem:[#allocation150_spill] sm:$0xff] %v7740_v11  ;;  %v7750_v7 = vpop.permute.xlu2 %921 }
 0x4d8   :  { %13544 = vst [vmem:[#allocation154_spill] sm:$0xff] %v7750_v7 }
 0x4d9   :  { %13550 = vst [vmem:[#allocation160_spill] sm:$0xff] %v7767_v57 }
 0x4dd   :  { %6801 = vset.pattern.permute.xlu2 %v7025_v10 }
 0x4de   :  { %6800 = vset.pattern.permute.xlu1 %v7000_v3  ;;  %v7746_v26 = vpop.permute.xlu1 %993 }
 0x4df   :  { %13542 = vst [vmem:[#allocation152_spill] sm:$0xff] %v7746_v26  ;;  %v7758_v11 = vpop.permute.xlu2 %939 }
 0x4e0   :  { %13547 = vst [vmem:[#allocation157_spill] sm:$0xff] %v7758_v11  ;;  %v7776_v11 = vpop.permute.xlu0 %381 }
 0x4e1   :  { %13553 = vst [vmem:[#allocation163_spill] sm:$0xff] %v7776_v11 }
 0x4e5   :  { %1212 = vperm.xlu2 %6801, %v7106_v23  }
 0x4e6   :  { %1206 = vperm.xlu1 %6800, %v7106_v23   ;;  %v7754_v59 = vpop.permute.xlu1 %1006 }
 0x4e7   :  { %13545 = vst [vmem:[#allocation155_spill] sm:$0xff] %v7754_v59  ;;  %v7764_v26 = vpop.permute.xlu2 %951 }
 0x4e8   :  { %13549 = vst [vmem:[#allocation159_spill] sm:$0xff] %v7764_v26  ;;  %v7786_v57 = vpop.permute.xlu0 %866 }
 0x4e9   :  { %13557 = vst [vmem:[#allocation167_spill] sm:$0xff] %v7786_v57 }
 0x4ed   :  { %6803 = vset.pattern.permute.xlu2 %v7022_v9 }
 0x4ee   :  { %6802 = vset.pattern.permute.xlu1 %v6997_v2  ;;  %v7762_v5 = vpop.permute.xlu1 %1024 }
 0x4ef   :  { %13548 = vst [vmem:[#allocation158_spill] sm:$0xff] %v7762_v5  ;;  %v7772_v59 = vpop.permute.xlu2 %969 }
 0x4f0   :  { %13552 = vst [vmem:[#allocation162_spill] sm:$0xff] %v7772_v59 }
 0x4f5   :  { %1224 = vperm.xlu2 %6803, %v7106_v23  }
 0x4f6   :  { %1218 = vperm.xlu1 %6802, %v7106_v23   ;;  %v7770_v7 = vpop.permute.xlu1 %1036 }
 0x4f7   :  { %13551 = vst [vmem:[#allocation161_spill] sm:$0xff] %v7770_v7  ;;  %v7780_v55 = vpop.permute.xlu2 %981 }
 0x4f8   :  { %13555 = vst [vmem:[#allocation165_spill] sm:$0xff] %v7780_v55 }
 0x4fd   :  { %6806 = vset.pattern.permute.xlu2 %v7115_v24 }
 0x4fe   :  { %6805 = vset.pattern.permute.xlu1 %v7037_v12  ;;  %v7778_v21 = vpop.permute.xlu1 %1054 }
 0x4ff   :  { %13554 = vst [vmem:[#allocation164_spill] sm:$0xff] %v7778_v21  ;;  %v7788_v7 = vpop.permute.xlu2 %1000 }
 0x500   :  { %13558 = vst [vmem:[#allocation168_spill] sm:$0xff] %v7788_v7 }
 0x505   :  { %1242 = vperm.xlu2 %6806, %v7106_v23  }
 0x506   :  { %1236 = vperm.xlu1 %6805, %v7106_v23   ;;  %v7784_v26 = vpop.permute.xlu1 %1066 }
 0x507   :  { %13556 = vst [vmem:[#allocation166_spill] sm:$0xff] %v7784_v26  ;;  %v7796_v11 = vpop.permute.xlu2 %1012 }
 0x508   :  { %13561 = vst [vmem:[#allocation171_spill] sm:$0xff] %v7796_v11 }
 0x50d   :  { %6808 = vset.pattern.permute.xlu2 %v7049_v14  ;;  %v7794_v14 = vpop.permute.xlu0 %1351 }
 0x50e   :  { %6807 = vset.pattern.permute.xlu1 %v7052_v15  ;;  %v7792_v59 = vpop.permute.xlu1 %1084  ;;  %13560 = vst [vmem:[#allocation170_spill] sm:$0xff] %v7794_v14 }
 0x50f   :  { %13559 = vst [vmem:[#allocation169_spill] sm:$0xff] %v7792_v59  ;;  %v7802_v26 = vpop.permute.xlu2 %1030 }
 0x510   :  { %13563 = vst [vmem:[#allocation173_spill] sm:$0xff] %v7802_v26 }
 0x515   :  { %1254 = vperm.xlu2 %6808, %v7106_v23   ;;  %v7805_v7 = vpop.permute.xlu0 %411 }
 0x516   :  { %1248 = vperm.xlu1 %6807, %v7106_v23   ;;  %v7800_v55 = vpop.permute.xlu1 %1097  ;;  %13564 = vst [vmem:[#allocation174_spill] sm:$0xff] %v7805_v7 }
 0x517   :  { %13562 = vst [vmem:[#allocation172_spill] sm:$0xff] %v7800_v55  ;;  %v7810_v4 = vpop.permute.xlu2 %1042 }
 0x518   :  { %13566 = vst [vmem:[#allocation176_spill] sm:$0xff] %v7810_v4 }
 0x51d   :  { %6811 = vset.pattern.permute.xlu2 %v7130_v25  ;;  %v7814_v11 = vpop.permute.xlu0 %896 }
 0x51e   :  { %6810 = vset.pattern.permute.xlu1 %v7061_v16  ;;  %v7808_v57 = vpop.permute.xlu1 %1115  ;;  %13567 = vst [vmem:[#allocation177_spill] sm:$0xff] %v7814_v11 }
 0x51f   :  { %13565 = vst [vmem:[#allocation175_spill] sm:$0xff] %v7808_v57  ;;  %v7818_v55 = vpop.permute.xlu2 %1060 }
 0x520   :  { %13569 = vst [vmem:[#allocation179_spill] sm:$0xff] %v7818_v55 }
 0x525   :  { %1272 = vperm.xlu2 %6811, %v7106_v23   ;;  %v7824_v26 = vpop.permute.xlu0 %1381 }
 0x526   :  { %1266 = vperm.xlu1 %6810, %v7106_v23   ;;  %v7816_v14 = vpop.permute.xlu1 %1127  ;;  %13571 = vst [vmem:[#allocation181_spill] sm:$0xff] %v7824_v26 }
 0x527   :  { %13568 = vst [vmem:[#allocation178_spill] sm:$0xff] %v7816_v14 }
 0x52d   :  { %6813 = vset.pattern.permute.xlu2 %v7073_v18  ;;  %v7826_v18 = vpop.permute.xlu2 %1072  ;;  %v7832_v11 = vpop.permute.xlu0 %442 }
 0x52e   :  { %6812 = vset.pattern.permute.xlu1 %v7076_v19  ;;  %v7822_v7 = vpop.permute.xlu1 %1145  ;;  %13572 = vst [vmem:[#allocation182_spill] sm:$0xff] %v7826_v18 }
 0x52f   :  { %13570 = vst [vmem:[#allocation180_spill] sm:$0xff] %v7822_v7 }
 0x530   :  { %13574 = vst [vmem:[#allocation184_spill] sm:$0xff] %v7832_v11 }
 0x535   :  { %1284 = vperm.xlu2 %6813, %v7106_v23   ;;  %v7834_v14 = vpop.permute.xlu2 %1090  ;;  %v7840_v4 = vpop.permute.xlu0 %927 }
 0x536   :  { %1278 = vperm.xlu1 %6812, %v7106_v23   ;;  %v7830_v23 = vpop.permute.xlu1 %1157  ;;  %13575 = vst [vmem:[#allocation185_spill] sm:$0xff] %v7834_v14  ;;  %v2026_v14 = vrot.slane %v7832_v11, 4 }
 0x537   :  { %13573 = vst [vmem:[#allocation183_spill] sm:$0xff] %v7830_v23 }
 0x538   :  { %13577 = vst [vmem:[#allocation187_spill] sm:$0xff] %v7840_v4 }
 0x53d   :  { %6816 = vset.pattern.permute.xlu2 %v7000_v3  ;;  %v7842_v7 = vpop.permute.xlu2 %1103 }
 0x53e   :  { %6815 = vset.pattern.permute.xlu1 %v7085_v20  ;;  %v7838_v55 = vpop.permute.xlu1 %1175  ;;  %13578 = vst [vmem:[#allocation188_spill] sm:$0xff] %v7842_v7  ;;  %v2038_v7 = vrot.slane %v7606_v62, 4  ;;  %v6916_v62 = vmov 1934713408  }
 0x53f   :  { %13576 = vst [vmem:[#allocation186_spill] sm:$0xff] %v7838_v55  ;;  %v6915_v55 = vmov 1983009808  }
 0x540   :  { %v1583_v4 = vunpack.c.l.s4 %v6915_v55 }
 0x542   :  { %v7860_v32 = vunpack.c.0.s8 %v1583_v4 }
 0x545   :  { %1303 = vperm.xlu2 %6816, %v7160_v28   ;;  %v7848_v23 = vpop.permute.xlu2 %1121 }
 0x546   :  { %1297 = vperm.xlu1 %6815, %v7160_v28   ;;  %13580 = vst [vmem:[#allocation190_spill] sm:$0xff] %v7848_v23  ;;  %v2039_v23 = vsel %vm1578_vm0, %v2038_v7, %v7416_v63  ;;  %v1631_v7 = vunpack.c.l.s4 %v6916_v62 }
 0x548   :  { %v7846_v18 = vpop.permute.xlu1 %1187  ;;  %v7890_v33 = vunpack.c.0.s8 %v1631_v7 }
 0x549   :  { %13579 = vst [vmem:[#allocation189_spill] sm:$0xff] %v7846_v18  ;;  %v2027_v18 = vsel %vm1578_vm0, %v2026_v14, %v7352_v42 }
 0x54d   :  { %6818 = vset.pattern.permute.xlu2 %v6997_v2  ;;  %v7852_v2 = vpop.permute.xlu0 %1412  ;;  %v7867_v11 = vpop.permute.xlu2 %1133 }
 0x54e   :  { %6817 = vset.pattern.permute.xlu1 %v7025_v10  ;;  %13581 = vst [vmem:[#allocation191_spill] sm:$0xff] %v7852_v2  ;;  %v2062_v55 = vrot.slane %v7852_v2, 4 }
 0x54f   :  { %13584 = vst [vmem:[#allocation194_spill] sm:$0xff] %v7867_v11 }
 0x550   :  { %v2063_v11 = vsel %vm1578_vm0, %v2062_v55, %v7762_v5 }
 0x551   :  { %v7896_v62 = vperm.slane %v2063_v11, %v7860_v32 }
 0x553   :  { %13590 = vst [vmem:[#allocation200_spill] sm:$0xff] %v7896_v62 }
 0x555   :  { %1315 = vperm.xlu2 %6818, %v7160_v28   ;;  %v7875_v14 = vpop.permute.xlu0 %472  ;;  %v7892_v51 = vpop.permute.xlu2 %1151 }
 0x556   :  { %1309 = vperm.xlu1 %6817, %v7160_v28   ;;  %13586 = vst [vmem:[#allocation196_spill] sm:$0xff] %v7875_v14 }
 0x557   :  { %13589 = vst [vmem:[#allocation199_spill] sm:$0xff] %v7892_v51 }
 0x558   :  { %v7856_v26 = vpop.permute.xlu1 %1206 }
 0x559   :  { %13582 = vst [vmem:[#allocation192_spill] sm:$0xff] %v7856_v26  ;;  %v7873_v26 = vperm.slane %v2039_v23, %v7860_v32 }
 0x55b   :  { %13585 = vst [vmem:[#allocation195_spill] sm:$0xff] %v7873_v26 }
 0x55d   :  { %6821 = vset.pattern.permute.xlu2 %v7037_v12  ;;  %v7865_v12 = vperm.slane %v2027_v18, %v7860_v32  ;;  %v7909_v11 = vpop.permute.xlu2 %1163 }
 0x55e   :  { %6820 = vset.pattern.permute.xlu1 %v7040_v13  ;;  %13593 = vst [vmem:[#allocation203_spill] sm:$0xff] %v7909_v11 }
 0x55f   :  { %13583 = vst [vmem:[#allocation193_spill] sm:$0xff] %v7865_v12  ;;  %v2076_v18 = vrot.slane %v7865_v12, 4 }
 0x561   :  { %v2077_v23 = vsel %vm1578_vm0, %v7873_v26, %v2076_v18 }
 0x565   :  { %1333 = vperm.xlu2 %6821, %v7160_v28  }
 0x566   :  { %1327 = vperm.xlu1 %6820, %v7160_v28  }
 0x568   :  { %v7877_v4 = vpop.permute.xlu1 %1218 }
 0x569   :  { %13587 = vst [vmem:[#allocation197_spill] sm:$0xff] %v7877_v4  ;;  %v2050_v63 = vrot.slane %v7877_v4, 4  ;;  %v7901_v4 = vpop.permute.xlu0 %957 }
 0x56a   :  { %13591 = vst [vmem:[#allocation201_spill] sm:$0xff] %v7901_v4 }
 0x56b   :  { %v2051_v53 = vsel %vm1578_vm0, %v2050_v63, %v7704_v60  ;;  %v2085_v63 = vperm.slane %v2077_v23, %v7890_v33 }
 0x56c   :  { %v7888_v2 = vperm.slane %v2051_v53, %v7860_v32 }
 0x56d   :  { %6823 = vset.pattern.permute.xlu2 %v7052_v15  ;;  %v2128_v18 = vrot.slane %v2085_v63, 4  ;;  %v13645_v15 = vld [vmem:[#allocation139_spill] sm:$0xff] }
 0x56e   :  { %13588 = vst [vmem:[#allocation198_spill] sm:$0xff] %v7888_v2  ;;  %v2100_v55 = vrot.slane %v7888_v2, 4  ;;  %6822 = vset.pattern.permute.xlu1 %v7115_v24 }
 0x570   :  { %v2101_v53 = vsel %vm1578_vm0, %v7896_v62, %v2100_v55  ;;  %v2586_v55 = vrot.slane %v7875_v14, 4 }
 0x571   :  { %v2109_v7 = vperm.slane %v2101_v53, %v7890_v33  ;;  %v7916_v4 = vpop.permute.xlu0 %1442  ;;  %v7921_v53 = vpop.permute.xlu2 %1181 }
 0x572   :  { %13595 = vst [vmem:[#allocation205_spill] sm:$0xff] %v7916_v4  ;;  %v2587_v11 = vsel %vm1578_vm0, %v2586_v55, %v7350_v41 }
 0x573   :  { %v7907_v51 = vsel %vm1578_vm0, %v2109_v7, %v2128_v18  ;;  %v2126_v60 = vrot.slane %v2109_v7, 4  ;;  %13596 = vst [vmem:[#allocation206_spill] sm:$0xff] %v7921_v53  ;;  %v2598_v7 = vrot.slane %v7620_v56, 4  ;;  %v2622_v53 = vrot.slane %v7916_v4, 4 }
 0x574   :  { %13592 = vst [vmem:[#allocation202_spill] sm:$0xff] %v7907_v51 }
 0x575   :  { %1345 = vperm.xlu2 %6823, %v7160_v28   ;;  %v7914_v23 = vsel %vm1578_vm0, %v2126_v60, %v2085_v63  ;;  %v2599_v60 = vsel %vm1578_vm0, %v2598_v7, %v7428_v6  ;;  %v7933_v63 = vperm.slane %v2587_v11, %v7860_v32  ;;  %v2623_v11 = vsel %vm1578_vm0, %v2622_v53, %v7778_v21 }
 0x576   :  { %1339 = vperm.xlu1 %6822, %v7160_v28   ;;  %13594 = vst [vmem:[#allocation204_spill] sm:$0xff] %v7914_v23  ;;  %v7939_v14 = vperm.slane %v2599_v60, %v7860_v32 }
 0x577   :  { %13599 = vst [vmem:[#allocation209_spill] sm:$0xff] %v7933_v63  ;;  %v2636_v55 = vrot.slane %v7933_v63, 4  ;;  %v7960_v63 = vperm.slane %v2623_v11, %v7860_v32 }
 0x578   :  { %v7924_v18 = vpop.permute.xlu1 %1236  ;;  %13600 = vst [vmem:[#allocation210_spill] sm:$0xff] %v7939_v14 }
 0x579   :  { %13597 = vst [vmem:[#allocation207_spill] sm:$0xff] %v7924_v18  ;;  %v7928_v51 = vpop.permute.xlu0 %502  ;;  %v7944_v41 = vpop.permute.xlu2 %1194  ;;  %v2637_v4 = vsel %vm1578_vm0, %v7939_v14, %v2636_v55 }
 0x57a   :  { %13598 = vst [vmem:[#allocation208_spill] sm:$0xff] %v7928_v51  ;;  %v2645_v53 = vperm.slane %v2637_v4, %v7890_v33 }
 0x57b   :  { %13602 = vst [vmem:[#allocation212_spill] sm:$0xff] %v7944_v41 }
 0x57c   :  { %13605 = vst [vmem:[#allocation215_spill] sm:$0xff] %v7960_v63 }
 0x57d   :  { %6826 = vset.pattern.permute.xlu2 %v7061_v16 }
 0x57e   :  { %6825 = vset.pattern.permute.xlu1 %v7064_v17 }
 0x581   :  { %v7953_v23 = vpop.permute.xlu0 %987 }
 0x582   :  { %13603 = vst [vmem:[#allocation213_spill] sm:$0xff] %v7953_v23  ;;  %v2688_v23 = vrot.slane %v2645_v53, 4 }
 0x585   :  { %1363 = vperm.xlu2 %6826, %v7160_v28  }
 0x586   :  { %1357 = vperm.xlu1 %6825, %v7160_v28  }
 0x588   :  { %v7941_v56 = vpop.permute.xlu1 %1248 }
 0x589   :  { %13601 = vst [vmem:[#allocation211_spill] sm:$0xff] %v7941_v56  ;;  %v2610_v7 = vrot.slane %v7941_v56, 4  ;;  %v7974_v11 = vpop.permute.xlu0 %1472 }
 0x58a   :  { %13608 = vst [vmem:[#allocation218_spill] sm:$0xff] %v7974_v11 }
 0x58b   :  { %v2611_v6 = vsel %vm1578_vm0, %v2610_v7, %v7720_v27  ;;  %v7968_v27 = vpop.permute.xlu2 %1212 }
 0x58c   :  { %v7956_v60 = vperm.slane %v2611_v6, %v7860_v32  ;;  %13606 = vst [vmem:[#allocation216_spill] sm:$0xff] %v7968_v27  ;;  %v13667_v27 = vld [vmem:[#allocation71_spill] sm:$0xff] }
 0x58d   :  { %6828 = vset.pattern.permute.xlu2 %v7076_v19  ;;  %v13642_v19 = vld [vmem:[#allocation44_spill] sm:$0xff] }
 0x58e   :  { %13604 = vst [vmem:[#allocation214_spill] sm:$0xff] %v7956_v60  ;;  %v2660_v56 = vrot.slane %v7956_v60, 4  ;;  %6827 = vset.pattern.permute.xlu1 %v7130_v25 }
 0x590   :  { %v2661_v7 = vsel %vm1578_vm0, %v7960_v63, %v2660_v56  ;;  %v3160_v56 = vrot.slane %v7440_v22, 4 }
 0x591   :  { %v2669_v55 = vperm.slane %v2661_v7, %v7890_v33 }
 0x592   :  { %v3161_v7 = vsel %vm1578_vm0, %v7636_v52, %v3160_v56 }
 0x593   :  { %v2686_v6 = vrot.slane %v2669_v55, 4  ;;  %v7971_v14 = vsel %vm1578_vm0, %v2669_v55, %v2688_v23  ;;  %v7983_v60 = vpop.permute.xlu2 %1224  ;;  %v7987_v23 = vperm.slane %v3161_v7, %v7860_v32  ;;  %v3148_v55 = vrot.slane %v7362_v45, 4 }
 0x594   :  { %13607 = vst [vmem:[#allocation217_spill] sm:$0xff] %v7971_v14 }
 0x595   :  { %1375 = vperm.xlu2 %6828, %v7160_v28   ;;  %v7978_v4 = vsel %vm1578_vm0, %v2686_v6, %v2645_v53  ;;  %13610 = vst [vmem:[#allocation220_spill] sm:$0xff] %v7983_v60  ;;  %v7992_v53 = vpop.permute.xlu0 %533  ;;  %v3149_v56 = vsel %vm1578_vm0, %v7928_v51, %v3148_v55  ;;  %v3206_v22 = vrot.slane %v7987_v23, 4 }
 0x596   :  { %1369 = vperm.xlu1 %6827, %v7160_v28   ;;  %13609 = vst [vmem:[#allocation219_spill] sm:$0xff] %v7978_v4  ;;  %v3184_v28 = vrot.slane %v7792_v59, 4  ;;  %v8002_v7 = vperm.slane %v3149_v56, %v7860_v32 }
 0x597   :  { %13611 = vst [vmem:[#allocation221_spill] sm:$0xff] %v7987_v23  ;;  %v3172_v23 = vrot.slane %v7734_v8, 4 }
 0x598   :  { %13612 = vst [vmem:[#allocation222_spill] sm:$0xff] %v7992_v53  ;;  %v7994_v6 = vpop.permute.xlu1 %1266  ;;  %v3185_v4 = vsel %vm1578_vm0, %v7974_v11, %v3184_v28  ;;  %v3207_v55 = vsel %vm1578_vm0, %v3206_v22, %v8002_v7 }
 0x599   :  { %13613 = vst [vmem:[#allocation223_spill] sm:$0xff] %v7994_v6  ;;  %v8008_v45 = vperm.slane %v3185_v4, %v7860_v32  ;;  %v3213_v59 = vperm.slane %v3207_v55, %v7890_v33 }
 0x59a   :  { %13614 = vst [vmem:[#allocation224_spill] sm:$0xff] %v8002_v7 }
 0x59b   :  { %v8004_v14 = vpop.permute.xlu2 %1242  ;;  %13616 = vst [vmem:[#allocation226_spill] sm:$0xff] %v8008_v45  ;;  %v3230_v52 = vrot.slane %v8008_v45, 4  ;;  %v3252_v8 = vrot.slane %v3213_v59, 4 }
 0x59c   :  { %13615 = vst [vmem:[#allocation225_spill] sm:$0xff] %v8004_v14  ;;  %v13650_v14 = vld [vmem:[#allocation53_spill] sm:$0xff] }
 0x59d   :  { %6831 = vset.pattern.permute.xlu2 %v7085_v20  ;;  %v8014_v51 = vpop.permute.xlu0 %1018  ;;  %v4056_v60 = vrot.slane %v13650_v14, 4  ;;  %v13657_v14 = vrot.slane %v7352_v42, 4 }
 0x59e   :  { %6830 = vset.pattern.permute.xlu1 %v6994_v1 }
 0x5a3   :  { %v8027_v22 = vpop.permute.xlu2 %1254 }
 0x5a4   :  { %13619 = vst [vmem:[#allocation229_spill] sm:$0xff] %v8027_v22 }
 0x5a5   :  { %1394 = vperm.xlu2 %6831, %v7217_v31   ;;  %v8035_v45 = vpop.permute.xlu0 %1503 }
 0x5a6   :  { %1388 = vperm.xlu1 %6830, %v7217_v31   ;;  %13621 = vst [vmem:[#allocation231_spill] sm:$0xff] %v8035_v45 }
 0x5a8   :  { %v8016_v28 = vpop.permute.xlu1 %1278 }
 0x5a9   :  { %13617 = vst [vmem:[#allocation227_spill] sm:$0xff] %v8016_v28  ;;  %v3173_v56 = vsel %vm1578_vm0, %v8016_v28, %v3172_v23  ;;  %v1814_v28 = vrot.slane %v7285_v36, 4 }
 0x5aa   :  { %v8023_v4 = vperm.slane %v3173_v56, %v7860_v32 }
 0x5ac   :  { %13618 = vst [vmem:[#allocation228_spill] sm:$0xff] %v8023_v4  ;;  %v3231_v11 = vsel %vm1578_vm0, %v3230_v52, %v8023_v4  ;;  %v8042_v52 = vpop.permute.xlu2 %1272  ;;  %v2374_v4 = vrot.slane %v7568_v30, 4 }
 0x5ad   :  { %6833 = vset.pattern.permute.xlu2 %v7025_v10  ;;  %v3237_v7 = vperm.slane %v3231_v11, %v7890_v33  ;;  %13623 = vst [vmem:[#allocation233_spill] sm:$0xff] %v8042_v52  ;;  %v3720_v10 = vrot.slane %v7452_v0, 4  ;;  %v3744_v0 = vrot.slane %v7808_v57, 4  ;;  %v13660_v52 = vld [vmem:[#allocation63_spill] sm:$0xff] }
 0x5ae   :  { %6832 = vset.pattern.permute.xlu1 %v7000_v3 }
 0x5af   :  { %v3250_v23 = vrot.slane %v3237_v7, 4  ;;  %v8033_v55 = vsel %vm1578_vm0, %v3237_v7, %v3252_v8  ;;  %v3721_v11 = vsel %vm1578_vm0, %v7650_v29, %v3720_v10  ;;  %v1816_v8 = vrot.slane %v7410_v61, 4  ;;  %v13644_v10 = vld [vmem:[#allocation154_spill] sm:$0xff] }
 0x5b0   :  { %13620 = vst [vmem:[#allocation230_spill] sm:$0xff] %v8033_v55  ;;  %v8050_v55 = vpop.permute.xlu0 %78  ;;  %v8061_v7 = vperm.slane %v3721_v11, %v7860_v32  ;;  %v2934_v11 = vrot.slane %v7596_v50, 4  ;;  %v3732_v18 = vrot.slane %v13644_v10, 4 }
 0x5b1   :  { %v8038_v56 = vsel %vm1578_vm0, %v3250_v23, %v3213_v59  ;;  %13624 = vst [vmem:[#allocation234_spill] sm:$0xff] %v8050_v55  ;;  %v1817_v63 = vsel %vm1578_vm0, %v7285_v36, %v1816_v8  ;;  %v13631_v59 = vld [vmem:[#allocation114_spill] sm:$0xff]  ;;  %v13632_v23 = vld [vmem:[#allocation41_spill] sm:$0xff] }
 0x5b2   :  { %13622 = vst [vmem:[#allocation232_spill] sm:$0xff] %v8038_v56  ;;  %v3708_v56 = vrot.slane %v7374_v49, 4  ;;  %v1815_v49 = vsel %vm1578_vm0, %v1814_v28, %v7410_v61  ;;  %v3766_v50 = vrot.slane %v8061_v7, 4  ;;  %v2376_v5 = vrot.slane %v13632_v23, 4  ;;  %v13633_v28 = vld [vmem:[#allocation32_spill] sm:$0xff]  ;;  %v13636_v8 = vld [vmem:[#allocation42_spill] sm:$0xff] }
 0x5b3   :  { %13625 = vst [vmem:[#allocation235_spill] sm:$0xff] %v8061_v7  ;;  %v3745_v61 = vsel %vm1578_vm0, %v8035_v45, %v3744_v0  ;;  %v8095_v2 = vperm.slane %v1815_v49, %v7860_v32  ;;  %v8103_v6 = vperm.slane %v1817_v63, %v7860_v32  ;;  %v2375_v0 = vsel %vm1578_vm0, %v2374_v4, %v13632_v23 }
 0x5b4   :  { %v8068_v29 = vpop.permute.xlu2 %1284  ;;  %v3709_v57 = vsel %vm1578_vm0, %v7992_v53, %v3708_v56  ;;  %v13638_v56 = vld [vmem:[#allocation34_spill] sm:$0xff]  ;;  %v2377_v23 = vsel %vm1578_vm0, %v7568_v30, %v2376_v5  ;;  %v8127_v45 = vperm.slane %v2375_v0, %v7860_v32  ;;  %v1802_v4 = vrot.slane %v13660_v52, 4 }
 0x5b5   :  { %1406 = vperm.xlu2 %6833, %v7217_v31   ;;  %13626 = vst [vmem:[#allocation236_spill] sm:$0xff] %v8068_v29  ;;  %v13628_v29 = vld [vmem:[#allocation28_spill] sm:$0xff]  ;;  %v8098_v36 = vperm.slane %v3709_v57, %v7860_v32  ;;  %v8113_v57 = vperm.slane %v3745_v61, %v7860_v32  ;;  %v8139_v49 = vperm.slane %v2377_v23, %v7860_v32  ;;  %v13659_v61 = vld [vmem:[#allocation69_spill] sm:$0xff]  ;;  %v13695_v3 = vrot.slane %v8103_v6, 4 }
 0x5b6   :  { %1400 = vperm.xlu1 %6832, %v7217_v31   ;;  %v1690_v12 = vrot.slane %v13659_v61, 4 }
 0x5b7   :  { %13635 = vst [vmem:[#allocation28_spill] sm:$0xff] %v8098_v36  ;;  %v3767_v63 = vsel %vm1578_vm0, %v3766_v50, %v8098_v36  ;;  %v3790_v0 = vrot.slane %v8113_v57, 4  ;;  %v13652_v50 = vld [vmem:[#allocation39_spill] sm:$0xff] }
 0x5b8   :  { %v8074_v21 = vpop.permute.xlu1 %1297  ;;  %v8110_v22 = vpop.permute.xlu0 %563  ;;  %13641 = vst [vmem:[#allocation41_spill] sm:$0xff] %v8113_v57  ;;  %v3773_v30 = vperm.slane %v3767_v63, %v7890_v33 }
 0x5b9   :  { %13627 = vst [vmem:[#allocation237_spill] sm:$0xff] %v8074_v21  ;;  %v13630_v21 = vld [vmem:[#allocation30_spill] sm:$0xff] }
 0x5ba   :  { %13640 = vst [vmem:[#allocation114_spill] sm:$0xff] %v8110_v22  ;;  %v3812_v7 = vrot.slane %v3773_v30, 4 }
 0x5bc   :  { %v8133_v36 = vpop.permute.xlu2 %1303 }
 0x5bd   :  { %6836 = vset.pattern.permute.xlu2 %v7040_v13  ;;  %13649 = vst [vmem:[#allocation42_spill] sm:$0xff] %v8133_v36  ;;  %v13663_v36 = vld [vmem:[#allocation121_spill] sm:$0xff] }
 0x5be   :  { %6835 = vset.pattern.permute.xlu1 %v7022_v9  ;;  %v13658_v9 = vld [vmem:[#allocation184_spill] sm:$0xff] }
 0x5bf   :  { %v2029_v57 = vsel %vm1578_vm0, %v13658_v9, %v13657_v14  ;;  %v4057_v9 = vsel %vm1578_vm0, %v13663_v36, %v4056_v60  ;;  %v13672_v60 = vrot.slane %v7615_v34, 4 }
 0x5c0   :  { %v8168_v14 = vpop.permute.xlu0 %1048  ;;  %v8181_v42 = vperm.slane %v2029_v57, %v7860_v32  ;;  %v8188_v41 = vperm.slane %v4057_v9, %v7860_v32 }
 0x5c1   :  { %13664 = vst [vmem:[#allocation44_spill] sm:$0xff] %v8168_v14  ;;  %v1693_v36 = vsel %vm1578_vm0, %v13659_v61, %v13672_v60  ;;  %v13678_v61 = vrot.slane %v13629_v37, 4 }
 0x5c2   :  { %13671 = vst [vmem:[#allocation184_spill] sm:$0xff] %v8181_v42 }
 0x5c3   :  { %13673 = vst [vmem:[#allocation69_spill] sm:$0xff] %v8188_v41 }
 0x5c4   :  { %v8198_v62 = vpop.permute.xlu2 %1315 }
 0x5c5   :  { %1424 = vperm.xlu2 %6836, %v7217_v31   ;;  %13675 = vst [vmem:[#allocation63_spill] sm:$0xff] %v8198_v62 }
 0x5c6   :  { %1418 = vperm.xlu1 %6835, %v7217_v31  }
 0x5c8   :  { %v8129_v13 = vpop.permute.xlu1 %1309 }
 0x5c9   :  { %13647 = vst [vmem:[#allocation32_spill] sm:$0xff] %v8129_v13  ;;  %v3733_v5 = vsel %vm1578_vm0, %v8129_v13, %v3732_v18  ;;  %v13656_v13 = vld [vmem:[#allocation45_spill] sm:$0xff] }
 0x5ca   :  { %v8144_v10 = vperm.slane %v3733_v5, %v7860_v32  ;;  %v2935_v23 = vsel %vm1578_vm0, %v2934_v11, %v13656_v13  ;;  %v13683_v11 = vld [vmem:[#allocation61_spill] sm:$0xff] }
 0x5cb   :  { %v8177_v63 = vperm.slane %v2935_v23, %v7860_v32  ;;  %v13674_v23 = vrot.slane %v7338_v38, 4  ;;  %v1577_v37 = vrot.slane %v13683_v11, 4 }
 0x5cc   :  { %13651 = vst [vmem:[#allocation34_spill] sm:$0xff] %v8144_v10  ;;  %v3791_v5 = vsel %vm1578_vm0, %v3790_v0, %v8144_v10  ;;  %v13665_v0 = vld [vmem:[#allocation11_spill] sm:$0xff]  ;;  %v13677_v10 = vld [vmem:[#allocation49_spill] sm:$0xff]  ;;  %v8276_v42 = vpop.permute.xlu2 %1333 }
 0x5cd   :  { %6838 = vset.pattern.permute.xlu2 %v7115_v24  ;;  %v3797_v18 = vperm.slane %v3791_v5, %v7890_v33  ;;  %v1914_v24 = vrot.slane %v13667_v27, 4  ;;  %13669 = vst [vmem:[#allocation39_spill] sm:$0xff] %v8177_v63  ;;  %v1805_v57 = vsel %vm1578_vm0, %v13660_v52, %v13674_v23  ;;  %v3495_v9 = vsel %vm1578_vm0, %v13678_v61, %v13677_v10 }
 0x5ce   :  { %6837 = vset.pattern.permute.xlu1 %v13665_v0  ;;  %v13682_v23 = vrot.slane %v7342_v39, 4  ;;  %v1579_v62 = vsel %vm1578_vm0, %v1577_v37, %v13645_v15  ;;  %v13693_v10 = vrot.slane %v7346_v40, 4 }
 0x5cf   :  { %v8174_v5 = vsel %vm1578_vm0, %v3797_v18, %v3812_v7  ;;  %v3810_v53 = vrot.slane %v3797_v18, 4  ;;  %v1691_v7 = vsel %vm1578_vm0, %v1690_v12, %v7615_v34  ;;  %v1803_v18 = vsel %vm1578_vm0, %v1802_v4, %v7338_v38 }
 0x5d0   :  { %13668 = vst [vmem:[#allocation139_spill] sm:$0xff] %v8174_v5  ;;  %v8211_v38 = vperm.slane %v1693_v36, %v7860_v32  ;;  %v1915_v52 = vsel %vm1578_vm0, %v1914_v24, %v7342_v39  ;;  %v1917_v13 = vsel %vm1578_vm0, %v13667_v27, %v13682_v23  ;;  %v8220_v61 = vperm.slane %v1691_v7, %v7860_v32 }
 0x5d1   :  { %v8207_v12 = vsel %vm1578_vm0, %v3810_v53, %v3773_v30  ;;  %v1809_v53 = vperm.slane %v1803_v18, %v7860_v32  ;;  %v1813_v30 = vperm.slane %v1805_v57, %v7860_v32  ;;  %v8226_v36 = vperm.slane %v3495_v9, %v7860_v32  ;;  %v13687_v9 = vld [vmem:[#allocation73_spill] sm:$0xff] }
 0x5d2   :  { %13680 = vst [vmem:[#allocation71_spill] sm:$0xff] %v8207_v12  ;;  %v8233_v27 = vperm.slane %v1915_v52, %v7860_v32  ;;  %v8236_v7 = vperm.slane %v1917_v13, %v7860_v32  ;;  %v13686_v18 = vrot.slane %v13645_v15, 4  ;;  %v2250_v23 = vrot.slane %v13687_v9, 4  ;;  %v13688_v12 = vld [vmem:[#allocation55_spill] sm:$0xff] }
 0x5d3   :  { %13684 = vst [vmem:[#allocation61_spill] sm:$0xff] %v8226_v36  ;;  %v4280_v24 = vrot.slane %v13688_v12, 4  ;;  %v13690_v52 = vld [vmem:[#allocation67_spill] sm:$0xff]  ;;  %v1852_v60 = vrot.slane %v1809_v53, 4  ;;  %v1864_v5 = vrot.slane %v1813_v30, 4  ;;  %v2253_v4 = vsel %vm1578_vm0, %v13687_v9, %v13693_v10  ;;  %v13694_v12 = vld [vmem:[#allocation65_spill] sm:$0xff] }
 0x5d4   :  { %v1581_v57 = vsel %vm1578_vm0, %v13683_v11, %v13686_v18  ;;  %v2362_v34 = vrot.slane %v13690_v52, 4  ;;  %v8251_v11 = vpop.permute.xlu0 %1533  ;;  %v13692_v18 = vld [vmem:[#allocation59_spill] sm:$0xff]  ;;  %v2138_v39 = vrot.slane %v13694_v12, 4  ;;  %v2251_v37 = vsel %vm1578_vm0, %v2250_v23, %v7346_v40  ;;  %13697 = vst [vmem:[#allocation67_spill] sm:$0xff] %v8276_v42 }
 0x5d5   :  { %1436 = vperm.xlu2 %6838, %v7217_v31   ;;  %13691 = vst [vmem:[#allocation73_spill] sm:$0xff] %v8251_v11  ;;  %v8255_v20 = vperm.slane %v1581_v57, %v7860_v32  ;;  %v1863_v0 = vsel %vm1578_vm0, %v13695_v3, %v1813_v30  ;;  %v8270_v57 = vperm.slane %v1579_v62, %v7860_v32  ;;  %v13696_v10 = vld [vmem:[#allocation123_spill] sm:$0xff]  ;;  %v13698_v13 = vrot.slane %v8095_v2, 4 }
 0x5d6   :  { %1430 = vperm.xlu1 %6837, %v7217_v31   ;;  %v2363_v26 = vsel %vm1578_vm0, %v2362_v34, %v7364_v46  ;;  %v4281_v9 = vsel %vm1578_vm0, %v13696_v10, %v4280_v24  ;;  %v8282_v40 = vperm.slane %v2253_v4, %v7860_v32  ;;  %v13700_v3 = vrot.slane %v7358_v44, 4 }
 0x5d7   :  { %v1851_v15 = vsel %vm1578_vm0, %v13698_v13, %v1809_v53  ;;  %v1853_v34 = vsel %vm1578_vm0, %v8095_v2, %v1852_v60  ;;  %v1865_v30 = vsel %vm1578_vm0, %v8103_v6, %v1864_v5  ;;  %v8294_v23 = vperm.slane %v2251_v37, %v7860_v32  ;;  %v13705_v60 = vld [vmem:[#allocation13_spill] sm:$0xff] }
 0x5d8   :  { %13699 = vst [vmem:[#allocation59_spill] sm:$0xff] %v8282_v40  ;;  %v2141_v62 = vsel %vm1578_vm0, %v13694_v12, %v13700_v3  ;;  %v2139_v4 = vsel %vm1578_vm0, %v2138_v39, %v7358_v44  ;;  %v8300_v53 = vperm.slane %v1863_v0, %v7890_v33  ;;  %v13703_v12 = vrot.slane %v7364_v46, 4  ;;  %v13706_v0 = vld [vmem:[#allocation180_spill] sm:$0xff] }
 0x5d9   :  { %13701 = vst [vmem:[#allocation65_spill] sm:$0xff] %v8294_v23  ;;  %v2369_v6 = vperm.slane %v2363_v26, %v7860_v32  ;;  %v8308_v5 = vperm.slane %v4281_v9, %v7860_v32  ;;  %v8312_v13 = vperm.slane %v1851_v15, %v7890_v33  ;;  %v8315_v44 = vperm.slane %v2141_v62, %v7860_v32  ;;  %v13707_v15 = vld [vmem:[#allocation70_spill] sm:$0xff]  ;;  %v13713_v23 = vld [vmem:[#allocation77_spill] sm:$0xff]  ;;  %v13715_v62 = vld [vmem:[#allocation27_spill] sm:$0xff] }
 0x5da   :  { %13702 = vst [vmem:[#allocation238_spill] sm:$0xff] %v8300_v53  ;;  %v2365_v2 = vsel %vm1578_vm0, %v13690_v52, %v13703_v12  ;;  %v4304_v39 = vrot.slane %v13706_v0, 4  ;;  %v8319_v46 = vperm.slane %v1853_v34, %v7890_v33  ;;  %v8322_v52 = vperm.slane %v1865_v30, %v7890_v33  ;;  %v8330_v12 = vpop.permute.xlu1 %1327  ;;  %v13710_v0 = vld [vmem:[#allocation75_spill] sm:$0xff] }
 0x5db   :  { %13704 = vst [vmem:[#allocation239_spill] sm:$0xff] %v8308_v5  ;;  %v8327_v9 = vperm.slane %v2139_v4, %v7860_v32  ;;  %v2922_v3 = vrot.slane %v13707_v15, 4  ;;  %v2373_v24 = vperm.slane %v2365_v2, %v7860_v32  ;;  %v13709_v34 = vrot.slane %v13630_v21, 4  ;;  %v8347_v21 = vpop.permute.xlu2 %1345 }
 0x5dc   :  { %13708 = vst [vmem:[#allocation13_spill] sm:$0xff] %v8330_v12  ;;  %v2412_v10 = vrot.slane %v2369_v6, 4  ;;  %v8340_v4 = vpop.permute.xlu0 %108  ;;  %v4326_v15 = vrot.slane %v8308_v5, 4  ;;  %v4305_v2 = vsel %vm1578_vm0, %v8251_v11, %v4304_v39  ;;  %v13717_v26 = vrot.slane %v8139_v49, 4 }
 0x5dd   :  { %6841 = vset.pattern.permute.xlu2 %v7064_v17  ;;  %v4269_v30 = vsel %vm1578_vm0, %v8110_v22, %v13709_v34  ;;  %13711 = vst [vmem:[#allocation240_spill] sm:$0xff] %v8347_v21  ;;  %v13712_v22 = vrot.slane %v7356_v43, 4  ;;  %v2923_v42 = vsel %vm1578_vm0, %v2922_v3, %v13715_v62  ;;  %v2424_v11 = vrot.slane %v2373_v24, 4 }
 0x5de   :  { %6840 = vset.pattern.permute.xlu1 %v13705_v60  ;;  %v8357_v12 = vperm.slane %v4269_v30, %v7860_v32  ;;  %v13716_v34 = vrot.slane %v8127_v45, 4  ;;  %v2423_v43 = vsel %vm1578_vm0, %v13717_v26, %v2373_v24  ;;  %v8371_v30 = vperm.slane %v4305_v2, %v7860_v32  ;;  %v13722_v24 = vld [vmem:[#allocation159_spill] sm:$0xff] }
 0x5df   :  { %v2813_v5 = vsel %vm1578_vm0, %v13713_v23, %v13712_v22  ;;  %v13718_v22 = vld [vmem:[#allocation74_spill] sm:$0xff]  ;;  %v2413_v3 = vsel %vm1578_vm0, %v8127_v45, %v2412_v10  ;;  %v2476_v62 = vrot.slane %v8050_v55, 4  ;;  %v8381_v21 = vperm.slane %v2923_v42, %v7860_v32  ;;  %v13728_v42 = vld [vmem:[#allocation79_spill] sm:$0xff] }
 0x5e0   :  { %13714 = vst [vmem:[#allocation241_spill] sm:$0xff] %v8357_v12  ;;  %v2411_v37 = vsel %vm1578_vm0, %v13716_v34, %v2369_v6  ;;  %v3482_v23 = vrot.slane %v13718_v22, 4  ;;  %v4327_v39 = vsel %vm1578_vm0, %v4326_v15, %v8357_v12  ;;  %v13720_v6 = vld [vmem:[#allocation68_spill] sm:$0xff]  ;;  %v4292_v26 = vrot.slane %v13722_v24, 4 }
 0x5e1   :  { %13719 = vst [vmem:[#allocation242_spill] sm:$0xff] %v8371_v30  ;;  %v2698_v34 = vrot.slane %v13720_v6, 4  ;;  %v8385_v2 = vperm.slane %v2813_v5, %v7860_v32  ;;  %v13724_v22 = vrot.slane %v7370_v48, 4  ;;  %v8394_v15 = vperm.slane %v2411_v37, %v7890_v33 }
 0x5e2   :  { %13721 = vst [vmem:[#allocation68_spill] sm:$0xff] %v8381_v21  ;;  %v8397_v12 = vperm.slane %v2423_v43, %v7890_v33  ;;  %v3034_v55 = vrot.slane %v13728_v42, 4  ;;  %v8404_v5 = vsel %vm1578_vm0, %v8139_v49, %v2424_v11  ;;  %v4333_v53 = vperm.slane %v4327_v39, %v7890_v33 }
 0x5e3   :  { %13723 = vst [vmem:[#allocation243_spill] sm:$0xff] %v8385_v2  ;;  %v2701_v45 = vsel %vm1578_vm0, %v13720_v6, %v13724_v22  ;;  %v13730_v22 = vld [vmem:[#allocation31_spill] sm:$0xff]  ;;  %v4350_v37 = vrot.slane %v8371_v30, 4  ;;  %v8414_v43 = vperm.slane %v2413_v3, %v7890_v33  ;;  %v2699_v49 = vsel %vm1578_vm0, %v2698_v34, %v7370_v48  ;;  %v13735_v30 = vld [vmem:[#allocation81_spill] sm:$0xff] }
 0x5e4   :  { %13726 = vst [vmem:[#allocation245_spill] sm:$0xff] %v8394_v15  ;;  %v3483_v6 = vsel %vm1578_vm0, %v3482_v23, %v13730_v22  ;;  %v8421_v11 = vperm.slane %v2701_v45, %v7860_v32  ;;  %v2972_v39 = vrot.slane %v8381_v21, 4  ;;  %v13734_v23 = vrot.slane %v7368_v47, 4  ;;  %v594_v3 = vpop.permute.xlu0 %593  ;;  %v8436_v45 = vpop.permute.xlu2 %1363 }
 0x5e5   :  { %1454 = vperm.xlu2 %6841, %v7217_v31   ;;  %13727 = vst [vmem:[#allocation246_spill] sm:$0xff] %v8397_v12  ;;  %v8434_v34 = vperm.slane %v3483_v6, %v7860_v32  ;;  %v8444_v12 = vperm.slane %v2699_v49, %v7860_v32 }
 0x5e6   :  { %1448 = vperm.xlu1 %6840, %v7217_v31   ;;  %13729 = vst [vmem:[#allocation79_spill] sm:$0xff] %v8404_v5  ;;  %v13737_v5 = vld [vmem:[#allocation72_spill] sm:$0xff] }
 0x5e7   :  { %13732 = vst [vmem:[#allocation248_spill] sm:$0xff] %v8414_v43  ;;  %v3258_v48 = vrot.slane %v13737_v5, 4 }
 0x5e8   :  { %v8391_v10 = vpop.permute.xlu1 %1339  ;;  %13733 = vst [vmem:[#allocation249_spill] sm:$0xff] %v8421_v11  ;;  %v13822_v11 = vld [vmem:[#allocation193_spill] sm:$0xff] }
 0x5e9   :  { %13725 = vst [vmem:[#allocation244_spill] sm:$0xff] %v8391_v10  ;;  %v4293_v24 = vsel %vm1578_vm0, %v8391_v10, %v4292_v26  ;;  %v2477_v26 = vsel %vm1578_vm0, %v13710_v0, %v2476_v62  ;;  %v13736_v10 = vld [vmem:[#allocation83_spill] sm:$0xff] }
 0x5ea   :  { %v8411_v17 = vperm.slane %v4293_v24, %v7860_v32  ;;  %v3373_v24 = vsel %vm1578_vm0, %v13735_v30, %v13734_v23  ;;  %v3594_v22 = vrot.slane %v13736_v10, 4  ;;  %13738 = vst [vmem:[#allocation83_spill] sm:$0xff] %v8434_v34  ;;  %v4372_v23 = vrot.slane %v4333_v53, 4 }
 0x5eb   :  { %13739 = vst [vmem:[#allocation250_spill] sm:$0xff] %v8436_v45  ;;  %v8441_v30 = vperm.slane %v2477_v26, %v7860_v32  ;;  %v8459_v49 = vperm.slane %v3373_v24, %v7860_v32 }
 0x5ec   :  { %13731 = vst [vmem:[#allocation247_spill] sm:$0xff] %v8411_v17  ;;  %v4351_v62 = vsel %vm1578_vm0, %v4350_v37, %v8411_v17  ;;  %v13742_v37 = vrot.slane %v7283_v35, 4  ;;  %v3595_v21 = vsel %vm1578_vm0, %v3594_v22, %v7283_v35 }
 0x5ed   :  { %6843 = vset.pattern.permute.xlu2 %v7130_v25  ;;  %v4357_v47 = vperm.slane %v4351_v62, %v7890_v33  ;;  %13740 = vst [vmem:[#allocation251_spill] sm:$0xff] %v8441_v30  ;;  %v2973_v62 = vsel %vm1578_vm0, %v8177_v63, %v2972_v39  ;;  %v13747_v39 = vld [vmem:[#allocation29_spill] sm:$0xff]  ;;  %v13749_v63 = vld [vmem:[#allocation76_spill] sm:$0xff]  ;;  %v8481_v6 = vperm.slane %v3595_v21, %v7860_v32  ;;  %v4826_v21 = vrot.slane %v594_v3, 4 }
 0x5ee   :  { %13741 = vst [vmem:[#allocation252_spill] sm:$0xff] %v8444_v12  ;;  %v3597_v17 = vsel %vm1578_vm0, %v13736_v10, %v13742_v37  ;;  %6842 = vset.pattern.permute.xlu1 %v7061_v16  ;;  %v3036_v10 = vrot.slane %v8340_v4, 4  ;;  %v13745_v37 = vld [vmem:[#allocation100_spill] sm:$0xff]  ;;  %v3818_v0 = vrot.slane %v13749_v63, 4  ;;  %v8475_v35 = vperm.slane %v2973_v62, %v7890_v33 }
 0x5ef   :  { %v8456_v26 = vsel %vm1578_vm0, %v4357_v47, %v4372_v23  ;;  %v4370_v5 = vrot.slane %v4357_v47, 4  ;;  %13744 = vst [vmem:[#allocation254_spill] sm:$0xff] %v8459_v49  ;;  %v1702_v15 = vrot.slane %v13745_v37, 4  ;;  %v8467_v25 = vperm.slane %v3597_v17, %v7860_v32  ;;  %v13753_v17 = vld [vmem:[#allocation86_spill] sm:$0xff] }
 0x5f0   :  { %13743 = vst [vmem:[#allocation253_spill] sm:$0xff] %v8456_v26  ;;  %v3259_v23 = vsel %vm1578_vm0, %v3258_v48, %v13747_v39  ;;  %v3532_v47 = vrot.slane %v8434_v34, 4  ;;  %v13748_v26 = vld [vmem:[#allocation89_spill] sm:$0xff]  ;;  %v3930_v45 = vrot.slane %v13753_v17, 4  ;;  %v13754_v49 = vrot.slane %v13628_v29, 4 }
 0x5f1   :  { %13746 = vst [vmem:[#allocation100_spill] sm:$0xff] %v8467_v25  ;;  %v4154_v24 = vrot.slane %v13748_v26, 4  ;;  %v8478_v22 = vsel %vm1578_vm0, %v4370_v5, %v4333_v53  ;;  %v13755_v26 = vrot.slane %v7624_v54, 4  ;;  %v8493_v62 = vperm.slane %v3259_v23, %v7860_v32  ;;  %v13762_v23 = vld [vmem:[#allocation33_spill] sm:$0xff]  ;;  %v13804_v25 = vld [vmem:[#allocation184_spill] sm:$0xff] }
 0x5f2   :  { %13750 = vst [vmem:[#allocation255_spill] sm:$0xff] %v8475_v35  ;;  %v3933_v48 = vsel %vm1578_vm0, %v13753_v17, %v13754_v49  ;;  %v3037_v53 = vsel %vm1578_vm0, %v13728_v42, %v3036_v10  ;;  %v1703_v5 = vsel %vm1578_vm0, %v1702_v15, %v7624_v54  ;;  %v3035_v49 = vsel %vm1578_vm0, %v3034_v55, %v8340_v4  ;;  %v13761_v15 = vld [vmem:[#allocation87_spill] sm:$0xff] }
 0x5f3   :  { %13751 = vst [vmem:[#allocation256_spill] sm:$0xff] %v8478_v22  ;;  %v1705_v63 = vsel %vm1578_vm0, %v13745_v37, %v13755_v26  ;;  %v8499_v22 = vpop.permute.xlu0 %1078  ;;  %v13758_v17 = vrot.slane %v13638_v56, 4  ;;  %v8508_v37 = vpop.permute.xlu2 %1375  ;;  %v3533_v42 = vsel %vm1578_vm0, %v8226_v36, %v3532_v47  ;;  %v8513_v54 = vperm.slane %v3933_v48, %v7860_v32 }
 0x5f4   :  { %13752 = vst [vmem:[#allocation257_spill] sm:$0xff] %v8481_v6  ;;  %v4155_v10 = vsel %vm1578_vm0, %v4154_v24, %v13761_v15  ;;  %v3819_v55 = vsel %vm1578_vm0, %v3818_v0, %v13762_v23  ;;  %v1713_v4 = vperm.slane %v1705_v63, %v7860_v32  ;;  %v1709_v47 = vperm.slane %v1703_v5, %v7860_v32  ;;  %v13769_v5 = vld [vmem:[#allocation129_spill] sm:$0xff]  ;;  %v13774_v23 = vld [vmem:[#allocation78_spill] sm:$0xff] }
 0x5f5   :  { %13756 = vst [vmem:[#allocation86_spill] sm:$0xff] %v8493_v62  ;;  %v4829_v26 = vsel %vm1578_vm0, %v594_v3, %v13758_v17  ;;  %1466 = vperm.xlu2 %6843, %v7217_v31   ;;  %v8522_v3 = vperm.slane %v3037_v53, %v7860_v32  ;;  %v3931_v17 = vsel %vm1578_vm0, %v3930_v45, %v13628_v29  ;;  %v4838_v34 = vrot.slane %v13769_v5, 4 }
 0x5f6   :  { %13757 = vst [vmem:[#allocation258_spill] sm:$0xff] %v8499_v22  ;;  %1460 = vperm.xlu1 %6842, %v7217_v31   ;;  %v4827_v24 = vsel %vm1578_vm0, %v4826_v21, %v13638_v56  ;;  %v8532_v0 = vperm.slane %v4829_v26, %v7860_v32  ;;  %v8535_v63 = vperm.slane %v3533_v42, %v7890_v33  ;;  %v13771_v21 = vld [vmem:[#allocation91_spill] sm:$0xff]  ;;  %v1750_v42 = vrot.slane %v1713_v4, 4 }
 0x5f7   :  { %13759 = vst [vmem:[#allocation259_spill] sm:$0xff] %v8508_v37  ;;  %v8538_v53 = vperm.slane %v3035_v49, %v7860_v32  ;;  %v8541_v29 = vperm.slane %v4155_v10, %v7860_v32  ;;  %v8544_v45 = vperm.slane %v3819_v55, %v7860_v32  ;;  %v8548_v48 = vperm.slane %v3931_v17, %v7860_v32  ;;  %v13776_v37 = vld [vmem:[#allocation119_spill] sm:$0xff] }
 0x5f8   :  { %13760 = vst [vmem:[#allocation260_spill] sm:$0xff] %v8513_v54  ;;  %v4490_v26 = vrot.slane %v13771_v21, 4  ;;  %v8554_v49 = vperm.slane %v4827_v24, %v7860_v32  ;;  %v13773_v10 = vrot.slane %v7400_v58, 4  ;;  %v1738_v36 = vrot.slane %v1709_v47, 4 }
 0x5f9   :  { %13763 = vst [vmem:[#allocation261_spill] sm:$0xff] %v8522_v3  ;;  %v4888_v39 = vrot.slane %v8532_v0, 4  ;;  %v13775_v17 = vrot.slane %v8211_v38, 4  ;;  %v13824_v22 = vrot.slane %v8255_v20, 4 }
 0x5fa   :  { %13764 = vst [vmem:[#allocation262_spill] sm:$0xff] %v8532_v0  ;;  %v4045_v55 = vsel %vm1578_vm0, %v13774_v23, %v13773_v10  ;;  %v4839_v10 = vsel %vm1578_vm0, %v4838_v34, %v13692_v18  ;;  %v13778_v0 = vrot.slane %v8220_v61, 4  ;;  %v13781_v23 = vld [vmem:[#allocation17_spill] sm:$0xff]  ;;  %v13782_v34 = vrot.slane %v13652_v50, 4 }
 0x5fb   :  { %13765 = vst [vmem:[#allocation263_spill] sm:$0xff] %v8535_v63  ;;  %v1753_v56 = vsel %vm1578_vm0, %v1713_v4, %v13775_v17  ;;  %v4491_v17 = vsel %vm1578_vm0, %v4490_v26, %v13633_v28  ;;  %v8584_v54 = vperm.slane %v4045_v55, %v7860_v32  ;;  %v1564_v58 = vpop.permute.xlu0 %1563  ;;  %v8608_v50 = vperm.slane %v4839_v10, %v7860_v32  ;;  %v13797_v63 = vld [vmem:[#allocation186_spill] sm:$0xff] }
 0x5fc   :  { %13766 = vst [vmem:[#allocation264_spill] sm:$0xff] %v8538_v53  ;;  %v1741_v4 = vsel %vm1578_vm0, %v1709_v47, %v13778_v0  ;;  %v13783_v47 = vld [vmem:[#allocation103_spill] sm:$0xff]  ;;  %v8601_v55 = vperm.slane %v1753_v56, %v7890_v33 }
 0x5fd   :  { %13767 = vst [vmem:[#allocation265_spill] sm:$0xff] %v8541_v29  ;;  %6846 = vset.pattern.permute.xlu2 %v6994_v1  ;;  %v1751_v1 = vsel %vm1578_vm0, %v1750_v42, %v8211_v38  ;;  %v2041_v0 = vsel %vm1578_vm0, %v13783_v47, %v13782_v34  ;;  %v8610_v42 = vpop.permute.xlu1 %1357  ;;  %v1749_v34 = vperm.slane %v1741_v4, %v7890_v33 }
 0x5fe   :  { %13768 = vst [vmem:[#allocation266_spill] sm:$0xff] %v8544_v45  ;;  %6845 = vset.pattern.permute.xlu1 %v13781_v23  ;;  %v8615_v47 = vperm.slane %v4491_v17, %v7860_v32  ;;  %v2049_v10 = vperm.slane %v2041_v0, %v7860_v32  ;;  %v13805_v23 = vrot.slane %v13804_v25, 4 }
 0x5ff   :  { %13770 = vst [vmem:[#allocation129_spill] sm:$0xff] %v8548_v48  ;;  %v13777_v48 = vrot.slane %v13631_v59, 4  ;;  %v1792_v45 = vrot.slane %v1749_v34, 4 }
 0x600   :  { %13772 = vst [vmem:[#allocation91_spill] sm:$0xff] %v8554_v49 }
 0x601   :  { %v1715_v15 = vsel %vm1578_vm0, %v13777_v48, %v13776_v37  ;;  %v13779_v48 = vrot.slane %v13633_v28, 4  ;;  %13780 = vst [vmem:[#allocation119_spill] sm:$0xff] %v8584_v54  ;;  %v8596_v28 = vpop.permute.xlu2 %1394 }
 0x602   :  { %v8594_v26 = vperm.slane %v1715_v15, %v7860_v32  ;;  %13785 = vst [vmem:[#allocation103_spill] sm:$0xff] %v8608_v50  ;;  %v1726_v15 = vrot.slane %v8596_v28, 4 }
 0x603   :  { %v4493_v24 = vsel %vm1578_vm0, %v13771_v21, %v13779_v48  ;;  %v1739_v21 = vsel %vm1578_vm0, %v1738_v36, %v8220_v61  ;;  %v13784_v48 = vrot.slane %v13692_v18, 4  ;;  %13786 = vst [vmem:[#allocation267_spill] sm:$0xff] %v8610_v42  ;;  %v4862_v36 = vrot.slane %v1564_v58, 4  ;;  %v13794_v42 = vld [vmem:[#allocation88_spill] sm:$0xff] }
 0x604   :  { %13787 = vst [vmem:[#allocation268_spill] sm:$0xff] %v8615_v47  ;;  %v8618_v61 = vperm.slane %v4493_v24, %v7860_v32  ;;  %v8621_v18 = vperm.slane %v1751_v1, %v7890_v33  ;;  %v8633_v17 = vperm.slane %v1739_v21, %v7890_v33  ;;  %v13793_v24 = vrot.slane %v13642_v19, 4 }
 0x605   :  { %v4841_v38 = vsel %vm1578_vm0, %v13769_v5, %v13784_v48  ;;  %v13790_v5 = vrot.slane %v8188_v41, 4  ;;  %v13792_v48 = vld [vmem:[#allocation155_spill] sm:$0xff]  ;;  %v1764_v41 = vrot.slane %v8594_v26, 4  ;;  %v4863_v29 = vsel %vm1578_vm0, %v4862_v36, %v13797_v63 }
 0x606   :  { %13788 = vst [vmem:[#allocation269_spill] sm:$0xff] %v8618_v61  ;;  %v1727_v4 = vsel %vm1578_vm0, %v1726_v15, %v13792_v48  ;;  %v1929_v1 = vsel %vm1578_vm0, %v13794_v42, %v13793_v24  ;;  %v8640_v47 = vperm.slane %v4841_v38, %v7860_v32  ;;  %v4874_v15 = vrot.slane %v8608_v50, 4  ;;  %v13799_v61 = vld [vmem:[#allocation85_spill] sm:$0xff]  ;;  %1478 = vperm.xlu1 %6845, %v7217_v31  }
 0x607   :  { %13789 = vst [vmem:[#allocation270_spill] sm:$0xff] %v8621_v18  ;;  %v8627_v56 = vsel %vm1578_vm0, %v13790_v5, %v8584_v54  ;;  %v8644_v5 = vperm.slane %v1727_v4, %v7860_v32  ;;  %v4864_v24 = vrot.slane %v13797_v63, 4  ;;  %v1590_v62 = vrot.slane %v13799_v61, 4  ;;  %v13801_v4 = vld [vmem:[#allocation165_spill] sm:$0xff] }
 0x608   :  { %13791 = vst [vmem:[#allocation271_spill] sm:$0xff] %v8627_v56  ;;  %v13798_v56 = vld [vmem:[#allocation20_spill] sm:$0xff]  ;;  %v8658_v54 = vperm.slane %v1929_v1, %v7860_v32  ;;  %v2086_v50 = vrot.slane %v2049_v10, 4  ;;  %v13800_v63 = vrot.slane %v13636_v8, 4  ;;  %v4852_v35 = vrot.slane %v13801_v4, 4  ;;  %v1370_v6 = vpop.permute.xlu1 %1369 }
 0x609   :  { %13795 = vst [vmem:[#allocation155_spill] sm:$0xff] %v8640_v47  ;;  %1485 = vperm.xlu2 %6846, %v13798_v56   ;;  %v1765_v38 = vsel %vm1578_vm0, %v8644_v5, %v1764_v41  ;;  %v4889_v41 = vsel %vm1578_vm0, %v8640_v47, %v4888_v39  ;;  %v8671_v1 = vperm.slane %v4863_v29, %v7860_v32  ;;  %v4850_v39 = vrot.slane %v1370_v6, 4 }
 0x60a   :  { %v1773_v36 = vperm.slane %v1765_v38, %v7890_v33  ;;  %v1593_v0 = vsel %vm1578_vm0, %v13799_v61, %v13800_v63  ;;  %v4875_v38 = vsel %vm1578_vm0, %v4874_v15, %v8554_v49  ;;  %v2089_v61 = vsel %vm1578_vm0, %v2049_v10, %v13805_v23  ;;  %v13810_v10 = vld [vmem:[#allocation195_spill] sm:$0xff] }
 0x60b   :  { %13802 = vst [vmem:[#allocation88_spill] sm:$0xff] %v8671_v1  ;;  %v4865_v63 = vsel %vm1578_vm0, %v1564_v58, %v4864_v24  ;;  %v4853_v47 = vsel %vm1578_vm0, %v1370_v6, %v4852_v35  ;;  %v1591_v29 = vsel %vm1578_vm0, %v1590_v62, %v13636_v8  ;;  %v1601_v12 = vperm.slane %v1593_v0, %v7860_v32 }
 0x60c   :  { %v8674_v31 = vsel %vm1578_vm0, %v1773_v36, %v1792_v45  ;;  %v1790_v21 = vrot.slane %v1773_v36, 4  ;;  %v1974_v45 = vrot.slane %v8658_v54, 4  ;;  %v8688_v36 = vperm.slane %v4853_v47, %v7860_v32 }
 0x60d   :  { %13803 = vst [vmem:[#allocation186_spill] sm:$0xff] %v8674_v31  ;;  %v4851_v15 = vsel %vm1578_vm0, %v4850_v39, %v13801_v4  ;;  %v4881_v58 = vperm.slane %v4875_v38, %v7890_v33  ;;  %v4897_v6 = vperm.slane %v4889_v41, %v7890_v33  ;;  %v8698_v35 = vperm.slane %v4865_v63, %v7860_v32  ;;  %v13813_v38 = vld [vmem:[#allocation122_spill] sm:$0xff]  ;;  %v13814_v39 = vld [vmem:[#allocation19_spill] sm:$0xff] }
 0x60e   :  { %13806 = vst [vmem:[#allocation20_spill] sm:$0xff] %v8688_v36  ;;  %v8693_v23 = vsel %vm1578_vm0, %v1790_v21, %v1749_v34  ;;  %v4898_v8 = vrot.slane %v8671_v1, 4  ;;  %v8702_v62 = vperm.slane %v4851_v15, %v7860_v32  ;;  %v4912_v47 = vrot.slane %v8688_v36, 4  ;;  %v13811_v34 = vld [vmem:[#allocation9_spill] sm:$0xff]  ;;  %6847 = vset.pattern.permute.xlu1 %v13814_v39 }
 0x60f   :  { %13807 = vst [vmem:[#allocation85_spill] sm:$0xff] %v8693_v23  ;;  %v2074_v0 = vrot.slane %v13810_v10, 4  ;;  %v8707_v24 = vperm.slane %v1591_v29, %v7860_v32  ;;  %v2087_v21 = vsel %vm1578_vm0, %v2086_v50, %v13804_v25  ;;  %v8713_v4 = vperm.slane %v2089_v61, %v7890_v33  ;;  %v13815_v10 = vld [vmem:[#allocation118_spill] sm:$0xff]  ;;  %v8725_v25 = vpop.permute.xlu2 %1406  ;;  %v13818_v23 = vld [vmem:[#allocation216_spill] sm:$0xff] }
 0x610   :  { %13808 = vst [vmem:[#allocation165_spill] sm:$0xff] %v8698_v35  ;;  %v1638_v41 = vrot.slane %v1601_v12, 4  ;;  %v1940_v63 = vrot.slane %v13813_v38, 4  ;;  %v4899_v15 = vsel %vm1578_vm0, %v4898_v8, %v8702_v62  ;;  %v4913_v29 = vsel %vm1578_vm0, %v8698_v35, %v4912_v47 }
 0x611   :  { %13809 = vst [vmem:[#allocation184_spill] sm:$0xff] %v8702_v62  ;;  %6848 = vset.pattern.permute.xlu2 %v13811_v34  ;;  %v13816_v36 = vrot.slane %v13815_v10, 4  ;;  %v13817_v34 = vld [vmem:[#allocation105_spill] sm:$0xff]  ;;  %v4905_v50 = vperm.slane %v4899_v15, %v7890_v33  ;;  %v4924_v61 = vrot.slane %v4881_v58, 4  ;;  %v4921_v1 = vperm.slane %v4913_v29, %v7890_v33 }
 0x612   :  { %13812 = vst [vmem:[#allocation195_spill] sm:$0xff] %v8713_v4  ;;  %v1941_v39 = vsel %vm1578_vm0, %v13818_v23, %v1940_v63  ;;  %v13819_v8 = vrot.slane %v8014_v51, 4  ;;  %v1975_v35 = vsel %vm1578_vm0, %v1974_v45, %v8236_v7  ;;  %v4936_v62 = vrot.slane %v4897_v6, 4 }
 0x613   :  { %v2265_v49 = vsel %vm1578_vm0, %v13817_v34, %v13816_v36  ;;  %v13820_v36 = vld [vmem:[#allocation212_spill] sm:$0xff]  ;;  %v8742_v15 = vsel %vm1578_vm0, %v4905_v50, %v4924_v61  ;;  %v4922_v29 = vrot.slane %v4905_v50, 4  ;;  %v2075_v63 = vsel %vm1578_vm0, %v2074_v0, %v13822_v11  ;;  %v13826_v0 = vld [vmem:[#allocation146_spill] sm:$0xff] }
 0x614   :  { %v1953_v47 = vsel %vm1578_vm0, %v8725_v25, %v13819_v8  ;;  %v1602_v31 = vrot.slane %v13820_v36, 4  ;;  %13821 = vst [vmem:[#allocation9_spill] sm:$0xff] %v8742_v15  ;;  %v8747_v53 = vperm.slane %v2087_v21, %v7890_v33  ;;  %v8750_v8 = vsel %vm1578_vm0, %v4921_v1, %v4936_v62 }
 0x615   :  { %v8739_v43 = vperm.slane %v1953_v47, %v7860_v32  ;;  %13823 = vst [vmem:[#allocation122_spill] sm:$0xff] %v8750_v8  ;;  %v4934_v45 = vrot.slane %v4921_v1, 4  ;;  %v8753_v16 = vperm.slane %v1941_v39, %v7860_v32  ;;  %v1641_v61 = vsel %vm1578_vm0, %v1601_v12, %v13824_v22 }
 0x616   :  { %v1981_v50 = vperm.slane %v1975_v35, %v7890_v33  ;;  %v8761_v11 = vperm.slane %v2265_v49, %v7860_v32  ;;  %v13827_v21 = vrot.slane %v13826_v0, 4  ;;  %v8768_v1 = vsel %vm1578_vm0, %v4922_v29, %v4881_v58  ;;  %1491 = vperm.xlu1 %6847, %v13798_v56  }
 0x617   :  { %v1998_v47 = vrot.slane %v8739_v43, 4  ;;  %13828 = vst [vmem:[#allocation118_spill] sm:$0xff] %v8768_v1  ;;  %v8771_v39 = vsel %vm1578_vm0, %v4934_v45, %v4897_v6  ;;  %v1603_v8 = vsel %vm1578_vm0, %v1602_v31, %v13826_v0  ;;  %v13830_v12 = vrot.slane %v8270_v57, 4  ;;  %v13831_v45 = vld [vmem:[#allocation168_spill] sm:$0xff] }
 0x618   :  { %13825 = vst [vmem:[#allocation19_spill] sm:$0xff] %v8761_v11  ;;  %v1605_v62 = vsel %vm1578_vm0, %v13820_v36, %v13827_v21  ;;  %v1639_v49 = vsel %vm1578_vm0, %v1638_v41, %v8255_v20  ;;  %v8786_v6 = vperm.slane %v1641_v61, %v7890_v33  ;;  %v8789_v31 = vperm.slane %v2075_v63, %v7890_v33  ;;  %v1389_v61 = vpop.permute.xlu1 %1388 }
 0x619   :  { %13829 = vst [vmem:[#allocation105_spill] sm:$0xff] %v8771_v39  ;;  %1497 = vperm.xlu2 %6848, %v13798_v56   ;;  %v1629_v22 = vsel %vm1578_vm0, %v8707_v24, %v13830_v12  ;;  %v1999_v58 = vsel %vm1578_vm0, %v1998_v47, %v8753_v16  ;;  %v1626_v29 = vrot.slane %v8707_v24, 4  ;;  %v1616_v0 = vrot.slane %v13831_v45, 4 }
 0x61a   :  { %v2005_v36 = vperm.slane %v1999_v58, %v7890_v33  ;;  %v1613_v20 = vperm.slane %v1605_v62, %v7860_v32  ;;  %v2020_v41 = vrot.slane %v1981_v50, 4  ;;  %v2310_v47 = vrot.slane %v8761_v11, 4 }
 0x61b   :  { %v8798_v21 = vperm.slane %v1603_v8, %v7860_v32  ;;  %v8801_v63 = vperm.slane %v1629_v22, %v7890_v33  ;;  %v1645_v12 = vperm.slane %v1639_v49, %v7890_v33  ;;  %v1614_v35 = vrot.slane %v1389_v61, 4  ;;  %v13835_v8 = vld [vmem:[#allocation10_spill] sm:$0xff] }
 0x61c   :  { %v1617_v58 = vsel %vm1578_vm0, %v1389_v61, %v1616_v0  ;;  %v8806_v24 = vsel %vm1578_vm0, %v2005_v36, %v2020_v41  ;;  %v2018_v39 = vrot.slane %v2005_v36, 4  ;;  %v2262_v62 = vrot.slane %v13817_v34, 4  ;;  %v13834_v41 = vld [vmem:[#allocation124_spill] sm:$0xff] }
 0x61d   :  { %13832 = vst [vmem:[#allocation216_spill] sm:$0xff] %v8806_v24  ;;  %v1625_v1 = vperm.slane %v1617_v58, %v7860_v32  ;;  %v1664_v11 = vrot.slane %v1613_v20, 4  ;;  %v1615_v22 = vsel %vm1578_vm0, %v1614_v35, %v13831_v45  ;;  %v1627_v49 = vsel %vm1578_vm0, %v1626_v29, %v8270_v57 }
 0x61e   :  { %v8817_v0 = vsel %vm1578_vm0, %v2018_v39, %v1981_v50  ;;  %v2276_v36 = vrot.slane %v13834_v41, 4  ;;  %v1652_v34 = vrot.slane %v8798_v21, 4  ;;  %v8822_v61 = vperm.slane %v1615_v22, %v7860_v32  ;;  %v13836_v39 = vld [vmem:[#allocation161_spill] sm:$0xff]  ;;  %v13844_v41 = vld [vmem:[#allocation48_spill] sm:$0xff] }
 0x61f   :  { %13833 = vst [vmem:[#allocation212_spill] sm:$0xff] %v8817_v0  ;;  %v1662_v58 = vrot.slane %v1625_v1, 4  ;;  %v1665_v15 = vsel %vm1578_vm0, %v1625_v1, %v1664_v11  ;;  %v1680_v35 = vrot.slane %v8801_v63, 4  ;;  %v1684_v45 = vrot.slane %v1645_v12, 4  ;;  %v13837_v0 = vld [vmem:[#allocation8_spill] sm:$0xff] }
 0x620   :  { %v2311_v57 = vsel %vm1578_vm0, %v2310_v47, %v8282_v40  ;;  %v1926_v50 = vrot.slane %v13794_v42, 4  ;;  %v2288_v29 = vrot.slane %v13836_v39, 4  ;;  %6850 = vset.pattern.permute.xlu1 %v13837_v0  ;;  %v1653_v22 = vsel %vm1578_vm0, %v8822_v61, %v1652_v34  ;;  %v13839_v40 = vld [vmem:[#allocation125_spill] sm:$0xff] }
 0x621   :  { %6851 = vset.pattern.permute.xlu2 %v13835_v8  ;;  %v1663_v24 = vsel %vm1578_vm0, %v1662_v58, %v1613_v20  ;;  %v2263_v11 = vsel %vm1578_vm0, %v2262_v62, %v13815_v10  ;;  %v1728_v1 = vrot.slane %v13792_v48, 4  ;;  %v8838_v8 = vpop.permute.xlu2 %1424  ;;  %v8841_v47 = vperm.slane %v1653_v22, %v7890_v33  ;;  %v13841_v62 = vld [vmem:[#allocation134_spill] sm:$0xff] }
 0x622   :  { %13838 = vst [vmem:[#allocation193_spill] sm:$0xff] %v8838_v8  ;;  %v1669_v42 = vperm.slane %v1663_v24, %v7890_v33  ;;  %v2277_v0 = vsel %vm1578_vm0, %v13839_v40, %v2276_v36  ;;  %v2289_v34 = vsel %vm1578_vm0, %v8838_v8, %v2288_v29  ;;  %v8849_v20 = vperm.slane %v1665_v15, %v7890_v33  ;;  %v13843_v29 = vld [vmem:[#allocation90_spill] sm:$0xff] }
 0x623   :  { %v2317_v10 = vperm.slane %v2311_v57, %v7890_v33  ;;  %v1828_v48 = vrot.slane %v13841_v62, 4  ;;  %v1729_v58 = vsel %vm1578_vm0, %v8596_v28, %v1728_v1  ;;  %v8856_v22 = vperm.slane %v2289_v34, %v7860_v32  ;;  %v13846_v1 = vld [vmem:[#allocation93_spill] sm:$0xff] }
 0x624   :  { %13840 = vst [vmem:[#allocation146_spill] sm:$0xff] %v8849_v20  ;;  %v1681_v24 = vsel %vm1578_vm0, %v8841_v47, %v1680_v35  ;;  %v1927_v36 = vsel %vm1578_vm0, %v1926_v50, %v13642_v19  ;;  %v2150_v40 = vrot.slane %v13843_v29, 4  ;;  %v8865_v15 = vsel %vm1578_vm0, %v1669_v42, %v1684_v45  ;;  %v13848_v35 = vld [vmem:[#allocation192_spill] sm:$0xff] }
 0x625   :  { %13842 = vst [vmem:[#allocation168_spill] sm:$0xff] %v8856_v22  ;;  %5171 = vrot.lane.b32.xlu0 %v1681_v24, %s13238_s0  ;;  %v1682_v57 = vrot.slane %v1669_v42, 4  ;;  %v13845_v28 = vrot.slane %v13844_v41, 4  ;;  %v8872_v39 = vperm.slane %v2277_v0, %v7860_v32  ;;  %v1829_v19 = vsel %vm1578_vm0, %v13848_v35, %v1828_v48 }
 0x626   :  { %v2334_v50 = vrot.slane %v8856_v22, 4  ;;  %v1716_v4 = vrot.slane %v13776_v37, 4  ;;  %v8879_v24 = vperm.slane %v1729_v58, %v7860_v32  ;;  %v1686_v45 = vrot.slane %v8849_v20, 4  ;;  %v13854_v22 = vld [vmem:[#allocation171_spill] sm:$0xff] }
 0x627   :  { %v2489_v34 = vsel %vm1578_vm0, %v13846_v1, %v13845_v28  ;;  %13847 = vst [vmem:[#allocation10_spill] sm:$0xff] %v8872_v39  ;;  %v8883_v42 = vsel %vm1578_vm0, %v1682_v57, %v1645_v12  ;;  %v8886_v28 = vperm.slane %v2263_v11, %v7860_v32  ;;  %v8890_v0 = vperm.slane %v1627_v49, %v7890_v33  ;;  %v13852_v49 = vld [vmem:[#allocation46_spill] sm:$0xff] }
 0x628   :  { %v2335_v48 = vsel %vm1578_vm0, %v2334_v50, %v8872_v39  ;;  %v2356_v37 = vrot.slane %v2317_v10, 4  ;;  %v8895_v58 = vperm.slane %v2489_v34, %v7860_v32  ;;  %v8898_v41 = vperm.slane %v1829_v19, %v7860_v32  ;;  %1509 = vperm.xlu1 %6850, %v13798_v56  }
 0x629   :  { %13849 = vst [vmem:[#allocation8_spill] sm:$0xff] %v8886_v28  ;;  %1515 = vperm.xlu2 %6851, %v13798_v56   ;;  %v1762_v12 = vrot.slane %v8644_v5, 4  ;;  %v2341_v11 = vperm.slane %v2335_v48, %v7890_v33  ;;  %v8904_v57 = vperm.slane %v1927_v36, %v7860_v32  ;;  %v13853_v1 = vrot.slane %v13852_v49, 4  ;;  %v1401_v28 = vpop.permute.xlu1 %1400 }
 0x62a   :  { %13850 = vst [vmem:[#allocation134_spill] sm:$0xff] %v8890_v0  ;;  %v1840_v34 = vrot.slane %v13854_v22, 4  ;;  %v1826_v39 = vrot.slane %v13848_v35, 4  ;;  %v2151_v19 = vsel %vm1578_vm0, %v2150_v40, %v13852_v49  ;;  %v1717_v5 = vsel %vm1578_vm0, %v13631_v59, %v1716_v4 }
 0x62b   :  { %13851 = vst [vmem:[#allocation90_spill] sm:$0xff] %v8895_v58  ;;  %v2153_v50 = vsel %vm1578_vm0, %v13843_v29, %v13853_v1  ;;  %v1774_v48 = vrot.slane %v8879_v24, 4  ;;  %v1687_v36 = vsel %vm1578_vm0, %v1686_v45, %v8786_v6  ;;  %v1838_v8 = vrot.slane %v1401_v28, 4 }
 0x62c   :  { %v1841_v20 = vsel %vm1578_vm0, %v1401_v28, %v1840_v34  ;;  %v8921_v29 = vsel %vm1578_vm0, %v2341_v11, %v2356_v37  ;;  %v2354_v1 = vrot.slane %v2341_v11, 4  ;;  %v2534_v35 = vrot.slane %v8895_v58, 4 }
 0x62d   :  { %13855 = vst [vmem:[#allocation192_spill] sm:$0xff] %v8921_v29  ;;  %v1888_v40 = vrot.slane %v8898_v41, 4  ;;  %v8926_v49 = vperm.slane %v1841_v20, %v7860_v32  ;;  %5183 = vrot.lane.b32.xlu0 %v1687_v36, %s13243_s11  ;;  %v1763_v59 = vsel %vm1578_vm0, %v1762_v12, %v8594_v26  ;;  %v8932_v4 = vperm.slane %v1717_v5, %v7860_v32 }
 0x62e   :  { %v1827_v45 = vsel %vm1578_vm0, %v1826_v39, %v13841_v62  ;;  %v1839_v28 = vsel %vm1578_vm0, %v1838_v8, %v13854_v22  ;;  %v8939_v37 = vsel %vm1578_vm0, %v2354_v1, %v2317_v10  ;;  %v1962_v20 = vrot.slane %v8904_v57, 4  ;;  %v13858_v8 = vld [vmem:[#allocation11_spill] sm:$0xff]  ;;  %v13860_v1 = vld [vmem:[#allocation12_spill] sm:$0xff] }
 0x62f   :  { %13856 = vst [vmem:[#allocation46_spill] sm:$0xff] %v8939_v37  ;;  %v8943_v11 = vperm.slane %v1839_v28, %v7860_v32  ;;  %v13857_v34 = vrot.slane %v8236_v7, 4  ;;  %v1889_v12 = vsel %vm1578_vm0, %v8926_v49, %v1888_v40  ;;  %v8952_v39 = vperm.slane %v2153_v50, %v7860_v32  ;;  %v13861_v40 = vld [vmem:[#allocation128_spill] sm:$0xff]  ;;  %v13863_v28 = vld [vmem:[#allocation109_spill] sm:$0xff] }
 0x630   :  { %v8956_v10 = vperm.slane %v1763_v59, %v7890_v33  ;;  %v1775_v62 = vsel %vm1578_vm0, %v1774_v48, %v8932_v4  ;;  %v1897_v22 = vperm.slane %v1889_v12, %v7890_v33  ;;  %v8962_v7 = vperm.slane %v2151_v19, %v7860_v32  ;;  %6852 = vset.pattern.permute.xlu1 %v13860_v1  ;;  %v8974_v48 = vpop.permute.xlu2 %1436  ;;  %v13867_v37 = vld [vmem:[#allocation225_spill] sm:$0xff] }
 0x631   :  { %v1977_v26 = vsel %vm1578_vm0, %v8658_v54, %v13857_v34  ;;  %6853 = vset.pattern.permute.xlu2 %v13858_v8  ;;  %v13859_v54 = vld [vmem:[#allocation127_spill] sm:$0xff]  ;;  %v8966_v36 = vperm.slane %v1827_v45, %v7860_v32  ;;  %v1874_v50 = vrot.slane %v8943_v11, 4  ;;  %v13862_v59 = vrot.slane %v13861_v40, 4  ;;  %13864 = vst [vmem:[#allocation171_spill] sm:$0xff] %v8974_v48 }
 0x632   :  { %v2500_v5 = vrot.slane %v13859_v54, 4  ;;  %v13865_v12 = vrot.slane %v8322_v52, 4  ;;  %v1910_v8 = vrot.slane %v1897_v22, 4  ;;  %v2535_v45 = vsel %vm1578_vm0, %v2534_v35, %v8441_v30 }
 0x633   :  { %v2825_v34 = vsel %vm1578_vm0, %v13863_v28, %v13862_v59  ;;  %v13868_v1 = vrot.slane %v8168_v14, 4  ;;  %v8990_v59 = vperm.slane %v1775_v62, %v7890_v33  ;;  %v1875_v28 = vsel %vm1578_vm0, %v1874_v50, %v8966_v36 }
 0x634   :  { %v8979_v19 = vsel %vm1578_vm0, %v1897_v22, %v13865_v12  ;;  %v2501_v29 = vsel %vm1578_vm0, %v13867_v37, %v2500_v5  ;;  %v13870_v12 = vrot.slane %v8315_v44, 4  ;;  %v13872_v5 = vrot.slane %v8633_v17, 4 }
 0x635   :  { %13866 = vst [vmem:[#allocation11_spill] sm:$0xff] %v8979_v19  ;;  %v2513_v40 = vsel %vm1578_vm0, %v8974_v48, %v13868_v1  ;;  %v1881_v1 = vperm.slane %v1875_v28, %v7890_v33  ;;  %v2186_v62 = vrot.slane %v8962_v7, 4  ;;  %v9008_v30 = vperm.slane %v2825_v34, %v7860_v32  ;;  %v13878_v28 = vld [vmem:[#allocation220_spill] sm:$0xff] }
 0x636   :  { %13869 = vst [vmem:[#allocation12_spill] sm:$0xff] %v8990_v59  ;;  %v2201_v22 = vsel %vm1578_vm0, %v8952_v39, %v13870_v12  ;;  %v8999_v35 = vperm.slane %v2513_v40, %v7860_v32  ;;  %v1789_v58 = vsel %vm1578_vm0, %v8956_v10, %v13872_v5  ;;  %v13874_v50 = vrot.slane %v8233_v27, 4  ;;  %v13876_v5 = vld [vmem:[#allocation156_spill] sm:$0xff] }
 0x637   :  { %13873 = vst [vmem:[#allocation273_spill] sm:$0xff] %v9008_v30  ;;  %5195 = vrot.lane.b32.xlu0 %v1789_v58, %s13251_s12  ;;  %v9017_v12 = vsel %vm1578_vm0, %v1910_v8, %v8322_v52  ;;  %v13877_v14 = vrot.slane %v13876_v5, 4  ;;  %v9024_v34 = vperm.slane %v2501_v29, %v7860_v32  ;;  %v2541_v58 = vperm.slane %v2535_v45, %v7890_v33  ;;  %v13883_v45 = vld [vmem:[#allocation173_spill] sm:$0xff] }
 0x638   :  { %13871 = vst [vmem:[#allocation272_spill] sm:$0xff] %v8999_v35  ;;  %v1965_v40 = vsel %vm1578_vm0, %v8904_v57, %v13874_v50  ;;  %v2558_v48 = vrot.slane %v8999_v35, 4  ;;  %v1794_v37 = vrot.slane %v8990_v59, 4  ;;  %v13880_v57 = vrot.slane %v8312_v13, 4  ;;  %1521 = vperm.xlu1 %6852, %v13798_v56   ;;  %v1419_v19 = vpop.permute.xlu1 %1418 }
 0x639   :  { %13875 = vst [vmem:[#allocation274_spill] sm:$0xff] %v9017_v12  ;;  %v2165_v54 = vsel %vm1578_vm0, %v13878_v28, %v13877_v14  ;;  %v1898_v52 = vrot.slane %v1881_v1, 4  ;;  %v9035_v8 = vperm.slane %v2201_v22, %v7890_v33  ;;  %1527 = vperm.xlu2 %6853, %v13798_v56   ;;  %v9039_v14 = vperm.slane %v1965_v40, %v7890_v33 }
 0x63a   :  { %13879 = vst [vmem:[#allocation156_spill] sm:$0xff] %v9024_v34  ;;  %v9032_v50 = vsel %vm1578_vm0, %v1881_v1, %v13880_v57  ;;  %v9042_v29 = vperm.slane %v1977_v26, %v7890_v33  ;;  %v2559_v35 = vsel %vm1578_vm0, %v2558_v48, %v9024_v34  ;;  %v9048_v57 = vperm.slane %v2165_v54, %v7860_v32 }
 0x63b   :  { %13881 = vst [vmem:[#allocation220_spill] sm:$0xff] %v9032_v50  ;;  %v9053_v22 = vsel %vm1578_vm0, %v1898_v52, %v8312_v13  ;;  %v2187_v1 = vsel %vm1578_vm0, %v2186_v62, %v8327_v9  ;;  %v2565_v26 = vperm.slane %v2559_v35, %v7890_v33  ;;  %v2870_v40 = vrot.slane %v9008_v30, 4 }
 0x63c   :  { %13882 = vst [vmem:[#allocation275_spill] sm:$0xff] %v9053_v22  ;;  %v2176_v12 = vrot.slane %v13883_v45, 4  ;;  %v2162_v48 = vrot.slane %v13878_v28, 4  ;;  %v2580_v34 = vrot.slane %v2541_v58, 4  ;;  %v1776_v54 = vrot.slane %v8932_v4, 4 }
 0x63d   :  { %v1795_v50 = vsel %vm1578_vm0, %v1794_v37, %v8621_v18  ;;  %v9066_v13 = vsel %vm1578_vm0, %v1962_v20, %v8233_v27  ;;  %v2248_v62 = vrot.slane %v9035_v8, 4  ;;  %v2174_v35 = vrot.slane %v1419_v19, 4 }
 0x63e   :  { %v2177_v52 = vsel %vm1578_vm0, %v1419_v19, %v2176_v12  ;;  %v2578_v30 = vrot.slane %v2565_v26, 4  ;;  %v9071_v22 = vsel %vm1578_vm0, %v2565_v26, %v2580_v34  ;;  %v2224_v28 = vrot.slane %v9048_v57, 4  ;;  %v13886_v26 = vld [vmem:[#allocation130_spill] sm:$0xff] }
 0x63f   :  { %13884 = vst [vmem:[#allocation173_spill] sm:$0xff] %v9071_v22  ;;  %v9075_v4 = vperm.slane %v2177_v52, %v7860_v32  ;;  %5207 = vrot.lane.b32.xlu0 %v1795_v50, %s13256_s13  ;;  %v1777_v27 = vsel %vm1578_vm0, %v8879_v24, %v1776_v54  ;;  %v2193_v37 = vperm.slane %v2187_v1, %v7890_v33  ;;  %v2836_v52 = vrot.slane %v13886_v26, 4  ;;  %v13888_v54 = vld [vmem:[#allocation98_spill] sm:$0xff]  ;;  %v13891_v22 = vld [vmem:[#allocation52_spill] sm:$0xff] }
 0x640   :  { %v2163_v20 = vsel %vm1578_vm0, %v2162_v48, %v13876_v5  ;;  %v2175_v19 = vsel %vm1578_vm0, %v2174_v35, %v13883_v45  ;;  %v9086_v12 = vsel %vm1578_vm0, %v2578_v30, %v2541_v58  ;;  %v2871_v34 = vsel %vm1578_vm0, %v2870_v40, %v8385_v2  ;;  %v13887_v5 = vld [vmem:[#allocation96_spill] sm:$0xff]  ;;  %v13889_v40 = vld [vmem:[#allocation166_spill] sm:$0xff] }
 0x641   :  { %13885 = vst [vmem:[#allocation276_spill] sm:$0xff] %v9086_v12  ;;  %v1876_v50 = vrot.slane %v8966_v36, 4  ;;  %v9093_v24 = vperm.slane %v2175_v19, %v7860_v32  ;;  %v2225_v1 = vsel %vm1578_vm0, %v9075_v4, %v2224_v28  ;;  %v2710_v48 = vrot.slane %v13887_v5, 4  ;;  %6856 = vset.pattern.permute.xlu2 %v13705_v60  ;;  %v13890_v12 = vld [vmem:[#allocation14_spill] sm:$0xff] }
 0x642   :  { %v3046_v45 = vrot.slane %v13888_v54, 4  ;;  %v9101_v30 = vperm.slane %v1777_v27, %v7890_v33  ;;  %v2233_v58 = vperm.slane %v2225_v1, %v7890_v33  ;;  %v2848_v35 = vrot.slane %v13889_v40, 4  ;;  %6855 = vset.pattern.permute.xlu1 %v13890_v12  ;;  %v9117_v1 = vpop.permute.xlu2 %1454  ;;  %v13895_v40 = vld [vmem:[#allocation135_spill] sm:$0xff] }
 0x643   :  { %v9106_v36 = vperm.slane %v2163_v20, %v7860_v32  ;;  %v2210_v19 = vrot.slane %v9093_v24, 4  ;;  %v1877_v28 = vsel %vm1578_vm0, %v8943_v11, %v1876_v50  ;;  %v13892_v2 = vrot.slane %v13891_v22, 4  ;;  %13893 = vst [vmem:[#allocation96_spill] sm:$0xff] %v9117_v1  ;;  %v13896_v12 = vld [vmem:[#allocation207_spill] sm:$0xff] }
 0x644   :  { %v1950_v27 = vrot.slane %v8725_v25, 4  ;;  %v9120_v26 = vsel %vm1578_vm0, %v2233_v58, %v2248_v62  ;;  %v2246_v20 = vrot.slane %v2233_v58, 4  ;;  %v2837_v59 = vsel %vm1578_vm0, %v13895_v40, %v2836_v52  ;;  %v13899_v58 = vld [vmem:[#allocation50_spill] sm:$0xff] }
 0x645   :  { %v3049_v60 = vsel %vm1578_vm0, %v13888_v54, %v13892_v2  ;;  %13894 = vst [vmem:[#allocation98_spill] sm:$0xff] %v9120_v26  ;;  %v2386_v18 = vrot.slane %v13896_v12, 4  ;;  %v2849_v11 = vsel %vm1578_vm0, %v9117_v1, %v2848_v35  ;;  %v2211_v50 = vsel %vm1578_vm0, %v2210_v19, %v9106_v36 }
 0x646   :  { %v9130_v2 = vperm.slane %v2849_v11, %v7860_v32  ;;  %v13898_v25 = vrot.slane %v8601_v55, 4  ;;  %v9137_v54 = vperm.slane %v1877_v28, %v7890_v33  ;;  %v2217_v52 = vperm.slane %v2211_v50, %v7890_v33 }
 0x647   :  { %v2711_v40 = vsel %vm1578_vm0, %v2710_v48, %v13899_v58  ;;  %v2236_v35 = vrot.slane %v2193_v37, 4  ;;  %v9145_v19 = vsel %vm1578_vm0, %v2246_v20, %v9035_v8  ;;  %v2877_v11 = vperm.slane %v2871_v34, %v7890_v33  ;;  %v13904_v20 = vld [vmem:[#allocation133_spill] sm:$0xff] }
 0x648   :  { %13897 = vst [vmem:[#allocation14_spill] sm:$0xff] %v9130_v2  ;;  %v1801_v62 = vsel %vm1578_vm0, %v9101_v30, %v13898_v25  ;;  %v9149_v25 = vperm.slane %v3049_v60, %v7860_v32  ;;  %v9152_v28 = vperm.slane %v2837_v59, %v7860_v32  ;;  %v1951_v50 = vsel %vm1578_vm0, %v1950_v27, %v8014_v51 }
 0x649   :  { %5219 = vrot.lane.b32.xlu0 %v1801_v62, %s13260_s14  ;;  %13900 = vst [vmem:[#allocation52_spill] sm:$0xff] %v9145_v19  ;;  %v2894_v48 = vrot.slane %v9130_v2, 4  ;;  %v3047_v62 = vsel %vm1578_vm0, %v3046_v45, %v13891_v22  ;;  %v1938_v1 = vrot.slane %v13818_v23, 4  ;;  %v9161_v8 = vsel %vm1578_vm0, %v2217_v52, %v2236_v35  ;;  %v13905_v19 = vld [vmem:[#allocation140_spill] sm:$0xff]  ;;  %1545 = vperm.xlu2 %6856, %v13798_v56   ;;  %v13908_v2 = vld [vmem:[#allocation142_spill] sm:$0xff] }
 0x64a   :  { %13901 = vst [vmem:[#allocation50_spill] sm:$0xff] %v9149_v25  ;;  %v2234_v34 = vrot.slane %v2217_v52, 4  ;;  %v3060_v60 = vrot.slane %v13904_v20, 4  ;;  %v2387_v59 = vsel %vm1578_vm0, %v2386_v18, %v13905_v19  ;;  %v1902_v51 = vrot.slane %v9137_v54, 4  ;;  %1539 = vperm.xlu1 %6855, %v13798_v56   ;;  %v13935_v19 = vld [vmem:[#allocation249_spill] sm:$0xff] }
 0x64b   :  { %13902 = vst [vmem:[#allocation277_spill] sm:$0xff] %v9152_v28  ;;  %v2895_v27 = vsel %vm1578_vm0, %v2894_v48, %v9152_v28  ;;  %v9171_v22 = vperm.slane %v1951_v50, %v7860_v32  ;;  %v1886_v23 = vrot.slane %v8926_v49, 4  ;;  %v13907_v18 = vrot.slane %v13899_v58, 4  ;;  %v13910_v48 = vld [vmem:[#allocation115_spill] sm:$0xff] }
 0x64c   :  { %13903 = vst [vmem:[#allocation278_spill] sm:$0xff] %v9161_v8  ;;  %v9176_v45 = vsel %vm1578_vm0, %v2234_v34, %v2193_v37  ;;  %v2901_v52 = vperm.slane %v2895_v27, %v7890_v33  ;;  %v13909_v26 = vrot.slane %v13908_v2, 4  ;;  %v9188_v28 = vperm.slane %v3047_v62, %v7860_v32  ;;  %v13914_v34 = vld [vmem:[#allocation233_spill] sm:$0xff]  ;;  %v9200_v27 = vpop.permute.xlu1 %1430 }
 0x64d   :  { %13906 = vst [vmem:[#allocation133_spill] sm:$0xff] %v9176_v45  ;;  %v2713_v35 = vsel %vm1578_vm0, %v13887_v5, %v13907_v18  ;;  %v2916_v49 = vrot.slane %v2877_v11, 4  ;;  %v9191_v8 = vperm.slane %v2711_v40, %v7860_v32  ;;  %v1939_v37 = vsel %vm1578_vm0, %v1938_v1, %v13813_v38  ;;  %v13928_v45 = vld [vmem:[#allocation167_spill] sm:$0xff] }
 0x64e   :  { %v3385_v50 = vsel %vm1578_vm0, %v13910_v48, %v13909_v26  ;;  %13911 = vst [vmem:[#allocation279_spill] sm:$0xff] %v9188_v28  ;;  %v9196_v58 = vperm.slane %v2387_v59, %v7860_v32  ;;  %v3061_v5 = vsel %vm1578_vm0, %v13914_v34, %v3060_v60  ;;  %v2398_v26 = vrot.slane %v9200_v27, 4 }
 0x64f   :  { %13912 = vst [vmem:[#allocation280_spill] sm:$0xff] %v9191_v8  ;;  %v1903_v62 = vsel %vm1578_vm0, %v1902_v51, %v8319_v46  ;;  %v9206_v18 = vsel %vm1578_vm0, %v2901_v52, %v2916_v49  ;;  %v2914_v40 = vrot.slane %v2901_v52, 4  ;;  %v9209_v2 = vperm.slane %v3385_v50, %v7860_v32  ;;  %v13919_v49 = vld [vmem:[#allocation258_spill] sm:$0xff] }
 0x650   :  { %13913 = vst [vmem:[#allocation281_spill] sm:$0xff] %v9196_v58  ;;  %v1986_v38 = vrot.slane %v9171_v22, 4  ;;  %v1887_v1 = vsel %vm1578_vm0, %v1886_v23, %v8898_v41  ;;  %v13918_v60 = vrot.slane %v8522_v3, 4  ;;  %v3082_v51 = vrot.slane %v9188_v28, 4  ;;  %v13925_v28 = vld [vmem:[#allocation15_spill] sm:$0xff] }
 0x651   :  { %13915 = vst [vmem:[#allocation233_spill] sm:$0xff] %v9200_v27  ;;  %5231 = vrot.lane.b32.xlu0 %v1903_v62, %s13266_s15  ;;  %v3072_v52 = vrot.slane %v13919_v49, 4  ;;  %v9224_v48 = vsel %vm1578_vm0, %v2914_v40, %v2877_v11  ;;  %v9227_v62 = vperm.slane %v1939_v37, %v7860_v32  ;;  %v2436_v41 = vrot.slane %v9196_v58, 4  ;;  %6858 = vset.pattern.permute.xlu2 %v13925_v28  ;;  %v13930_v58 = vld [vmem:[#allocation229_spill] sm:$0xff] }
 0x652   :  { %13916 = vst [vmem:[#allocation282_spill] sm:$0xff] %v9206_v18  ;;  %v3097_v59 = vsel %vm1578_vm0, %v9149_v25, %v13918_v60  ;;  %v13920_v18 = vld [vmem:[#allocation176_spill] sm:$0xff]  ;;  %v9231_v23 = vperm.slane %v3061_v5, %v7860_v32  ;;  %v9237_v3 = vperm.slane %v2713_v35, %v7860_v32  ;;  %v9245_v11 = vperm.slane %v9066_v13, %v7890_v33 }
 0x653   :  { %13917 = vst [vmem:[#allocation283_spill] sm:$0xff] %v9209_v2  ;;  %v2399_v50 = vsel %vm1578_vm0, %v2398_v26, %v13920_v18  ;;  %v9241_v26 = vperm.slane %v1887_v1, %v7890_v33  ;;  %v2746_v5 = vrot.slane %v9191_v8, 4  ;;  %v3058_v40 = vrot.slane %v13914_v34, 4  ;;  %v13927_v25 = vld [vmem:[#allocation264_spill] sm:$0xff] }
 0x654   :  { %13921 = vst [vmem:[#allocation258_spill] sm:$0xff] %v9224_v48  ;;  %v9234_v60 = vperm.slane %v2399_v50, %v7860_v32  ;;  %v13926_v50 = vld [vmem:[#allocation16_spill] sm:$0xff]  ;;  %v1987_v35 = vsel %vm1578_vm0, %v1986_v38, %v9227_v62  ;;  %v3430_v1 = vrot.slane %v9209_v2, 4  ;;  %v1467_v48 = vpop.permute.xlu2 %1466  ;;  %v3083_v37 = vsel %vm1578_vm0, %v3082_v51, %v13927_v25 }
 0x655   :  { %13922 = vst [vmem:[#allocation176_spill] sm:$0xff] %v9231_v23  ;;  %6857 = vset.pattern.permute.xlu1 %v13926_v50  ;;  %v3105_v8 = vperm.slane %v3097_v59, %v7890_v33  ;;  %v13929_v34 = vrot.slane %v13928_v45, 4  ;;  %v3120_v38 = vrot.slane %v9231_v23, 4  ;;  %v3070_v12 = vrot.slane %v1467_v48, 4 }
 0x656   :  { %13923 = vst [vmem:[#allocation284_spill] sm:$0xff] %v9234_v60  ;;  %v2437_v28 = vsel %vm1578_vm0, %v9234_v60, %v2436_v41  ;;  %v3073_v41 = vsel %vm1578_vm0, %v1467_v48, %v3072_v52  ;;  %v13932_v60 = vld [vmem:[#allocation238_spill] sm:$0xff]  ;;  %v9274_v59 = vperm.slane %v1987_v35, %v7890_v33  ;;  %v13936_v27 = vrot.slane %v13935_v19, 4  ;;  %v13941_v19 = vld [vmem:[#allocation252_spill] sm:$0xff] }
 0x657   :  { %13924 = vst [vmem:[#allocation285_spill] sm:$0xff] %v9237_v3  ;;  %v2445_v13 = vperm.slane %v2437_v28, %v7890_v33  ;;  %v2725_v50 = vsel %vm1578_vm0, %v13930_v58, %v13929_v34  ;;  %v9267_v2 = vperm.slane %v3073_v41, %v7860_v32  ;;  %v13933_v28 = vrot.slane %v13932_v60, 4  ;;  %v13937_v41 = vld [vmem:[#allocation248_spill] sm:$0xff] }
 0x658   :  { %13934 = vst [vmem:[#allocation16_spill] sm:$0xff] %v9274_v59  ;;  %v2761_v34 = vsel %vm1578_vm0, %v9237_v3, %v13936_v27  ;;  %v3059_v48 = vsel %vm1578_vm0, %v3058_v40, %v13904_v20  ;;  %v3071_v52 = vsel %vm1578_vm0, %v3070_v12, %v13919_v49  ;;  %v2747_v20 = vsel %vm1578_vm0, %v2746_v5, %v13941_v19  ;;  %v13942_v40 = vld [vmem:[#allocation254_spill] sm:$0xff] }
 0x659   :  { %13931 = vst [vmem:[#allocation15_spill] sm:$0xff] %v9267_v2  ;;  %v1909_v51 = vsel %vm1578_vm0, %v9241_v26, %v13933_v28  ;;  %v2462_v25 = vrot.slane %v2445_v13, 4  ;;  %v13938_v28 = vrot.slane %v13937_v41, 4  ;;  %v9291_v23 = vperm.slane %v3071_v52, %v7860_v32  ;;  %1557 = vperm.xlu2 %6858, %v13798_v56  }
 0x65a   :  { %5243 = vrot.lane.b32.xlu0 %v1909_v51, %s13341_s16  ;;  %v3121_v27 = vsel %vm1578_vm0, %v9267_v2, %v3120_v38  ;;  %v3431_v12 = vsel %vm1578_vm0, %v3430_v1, %v13942_v40  ;;  %v9300_v49 = vperm.slane %v2725_v50, %v7860_v32  ;;  %v2010_v5 = vrot.slane %v9274_v59, 4 }
 0x65b   :  { %v9288_v35 = vsel %vm1578_vm0, %v2445_v13, %v13938_v28  ;;  %13940 = vst [vmem:[#allocation229_spill] sm:$0xff] %v9291_v23  ;;  %v9304_v51 = vsel %vm1578_vm0, %v2462_v25, %v13937_v41  ;;  %v3089_v13 = vperm.slane %v3083_v37, %v7890_v33  ;;  %v3129_v52 = vperm.slane %v3121_v27, %v7890_v33 }
 0x65c   :  { %13939 = vst [vmem:[#allocation167_spill] sm:$0xff] %v9288_v35  ;;  %v9309_v28 = vperm.slane %v3059_v48, %v7860_v32  ;;  %v3106_v38 = vrot.slane %v9291_v23, 4  ;;  %v3144_v1 = vrot.slane %v3105_v8, 4  ;;  %v9316_v50 = vperm.slane %v2747_v20, %v7890_v33  ;;  %v13946_v48 = vld [vmem:[#allocation179_spill] sm:$0xff]  ;;  %v1449_v35 = vpop.permute.xlu1 %1448 }
 0x65d   :  { %13943 = vst [vmem:[#allocation238_spill] sm:$0xff] %v9300_v49  ;;  %1551 = vperm.xlu1 %6857, %v13798_v56   ;;  %v2769_v25 = vperm.slane %v2761_v34, %v7890_v33  ;;  %v3142_v37 = vrot.slane %v3129_v52, 4  ;;  %v9320_v41 = vperm.slane %v3431_v12, %v7890_v33  ;;  %v2736_v27 = vrot.slane %v13946_v48, 4 }
 0x65e   :  { %13944 = vst [vmem:[#allocation248_spill] sm:$0xff] %v9304_v51  ;;  %v2722_v40 = vrot.slane %v13930_v58, 4  ;;  %v3107_v2 = vsel %vm1578_vm0, %v3106_v38, %v9309_v28  ;;  %v9327_v23 = vsel %vm1578_vm0, %v3129_v52, %v3144_v1  ;;  %v1988_v51 = vrot.slane %v9227_v62, 4 }
 0x65f   :  { %13945 = vst [vmem:[#allocation286_spill] sm:$0xff] %v9309_v28  ;;  %v2784_v20 = vrot.slane %v9300_v49, 4  ;;  %v3113_v34 = vperm.slane %v3107_v2, %v7890_v33  ;;  %v3132_v3 = vrot.slane %v3089_v13, 4  ;;  %v2734_v12 = vrot.slane %v1449_v35, 4  ;;  %v13967_v28 = vld [vmem:[#allocation137_spill] sm:$0xff]  ;;  %v13969_v49 = vld [vmem:[#allocation191_spill] sm:$0xff] }
 0x660   :  { %13947 = vst [vmem:[#allocation179_spill] sm:$0xff] %v9327_v23  ;;  %v2737_v19 = vsel %vm1578_vm0, %v1449_v35, %v2736_v27  ;;  %v2011_v58 = vsel %vm1578_vm0, %v2010_v5, %v9245_v11  ;;  %v9336_v59 = vsel %vm1578_vm0, %v3142_v37, %v3105_v8  ;;  %v1989_v62 = vsel %vm1578_vm0, %v9171_v22, %v1988_v51  ;;  %v13950_v35 = vld [vmem:[#allocation136_spill] sm:$0xff]  ;;  %v13959_v23 = vld [vmem:[#allocation158_spill] sm:$0xff] }
 0x661   :  { %13948 = vst [vmem:[#allocation287_spill] sm:$0xff] %v9336_v59  ;;  %v9339_v52 = vperm.slane %v2737_v19, %v7860_v32  ;;  %v3130_v2 = vrot.slane %v3113_v34, 4  ;;  %v9345_v38 = vsel %vm1578_vm0, %v3113_v34, %v3132_v3  ;;  %v3396_v1 = vrot.slane %v13950_v35, 4  ;;  %v13953_v34 = vld [vmem:[#allocation172_spill] sm:$0xff] }
 0x662   :  { %5255 = vrot.lane.b32.xlu0 %v2011_v58, %s13274_s17  ;;  %13949 = vst [vmem:[#allocation288_spill] sm:$0xff] %v9345_v38  ;;  %v2000_v5 = vrot.slane %v8753_v16, 4  ;;  %v2723_v8 = vsel %vm1578_vm0, %v2722_v40, %v13928_v45  ;;  %v2735_v19 = vsel %vm1578_vm0, %v2734_v12, %v13946_v48  ;;  %v2808_v51 = vrot.slane %v2769_v25, 4  ;;  %v13952_v16 = vld [vmem:[#allocation17_spill] sm:$0xff]  ;;  %v13954_v58 = vld [vmem:[#allocation18_spill] sm:$0xff] }
 0x663   :  { %v9354_v37 = vperm.slane %v2735_v19, %v7860_v32  ;;  %v2785_v22 = vsel %vm1578_vm0, %v9339_v52, %v2784_v20  ;;  %v9359_v3 = vsel %vm1578_vm0, %v3130_v2, %v3089_v13  ;;  %6860 = vset.pattern.permute.xlu2 %v13952_v16  ;;  %v9365_v45 = vperm.slane %v1989_v62, %v7890_v33  ;;  %v13955_v2 = vld [vmem:[#allocation104_spill] sm:$0xff]  ;;  %v13956_v19 = vld [vmem:[#allocation149_spill] sm:$0xff]  ;;  %v9379_v16 = vpop.permute.xlu2 %1485 }
 0x664   :  { %13951 = vst [vmem:[#allocation289_spill] sm:$0xff] %v9359_v3  ;;  %v2001_v27 = vsel %vm1578_vm0, %v8739_v43, %v2000_v5  ;;  %v2796_v40 = vrot.slane %v9316_v50, 4  ;;  %v2793_v48 = vperm.slane %v2785_v22, %v7890_v33  ;;  %v3408_v12 = vrot.slane %v13953_v34, 4  ;;  %v13960_v34 = vld [vmem:[#allocation223_spill] sm:$0xff] }
 0x665   :  { %v9371_v20 = vperm.slane %v2723_v8, %v7860_v32  ;;  %v2770_v13 = vrot.slane %v9354_v37, 4  ;;  %6859 = vset.pattern.permute.xlu1 %v13954_v58  ;;  %v3476_v43 = vrot.slane %v9320_v41, 4  ;;  %v3606_v5 = vrot.slane %v13955_v2, 4  ;;  %13957 = vst [vmem:[#allocation17_spill] sm:$0xff] %v9379_v16 }
 0x666   :  { %v3397_v62 = vsel %vm1578_vm0, %v13956_v19, %v3396_v1  ;;  %v9382_v22 = vsel %vm1578_vm0, %v2793_v48, %v2808_v51  ;;  %v2806_v59 = vrot.slane %v2793_v48, 4  ;;  %v2064_v8 = vrot.slane %v13959_v23, 4  ;;  %v13963_v19 = vld [vmem:[#allocation101_spill] sm:$0xff] }
 0x667   :  { %13958 = vst [vmem:[#allocation18_spill] sm:$0xff] %v9382_v22  ;;  %v3409_v3 = vsel %vm1578_vm0, %v9379_v16, %v3408_v12  ;;  %v9388_v58 = vperm.slane %v2001_v27, %v7890_v33  ;;  %v2771_v38 = vsel %vm1578_vm0, %v2770_v13, %v9371_v20  ;;  %v2946_v35 = vrot.slane %v13960_v34, 4  ;;  %v13964_v16 = vld [vmem:[#allocation56_spill] sm:$0xff] }
 0x668   :  { %v9394_v1 = vperm.slane %v3409_v3, %v7860_v32  ;;  %v13962_v51 = vrot.slane %v9039_v14, 4  ;;  %v2777_v23 = vperm.slane %v2771_v38, %v7890_v33  ;;  %v3270_v12 = vrot.slane %v13963_v19, 4 }
 0x669   :  { %v13965_v27 = vrot.slane %v13964_v16, 4  ;;  %v1650_v13 = vrot.slane %v8822_v61, 4  ;;  %v9409_v3 = vsel %vm1578_vm0, %v2806_v59, %v2769_v25  ;;  %v2052_v38 = vrot.slane %v13967_v28, 4  ;;  %v13971_v25 = vld [vmem:[#allocation120_spill] sm:$0xff]  ;;  %v13973_v28 = vld [vmem:[#allocation145_spill] sm:$0xff] }
 0x66a   :  { %13961 = vst [vmem:[#allocation104_spill] sm:$0xff] %v9394_v1  ;;  %v2017_v48 = vsel %vm1578_vm0, %v9365_v45, %v13962_v51  ;;  %v3607_v51 = vsel %vm1578_vm0, %v3606_v5, %v13964_v16  ;;  %v9415_v19 = vperm.slane %v3397_v62, %v7860_v32  ;;  %v3454_v34 = vrot.slane %v9394_v1, 4 }
 0x66b   :  { %v3609_v22 = vsel %vm1578_vm0, %v13955_v2, %v13965_v27  ;;  %5267 = vrot.lane.b32.xlu0 %v2017_v48, %s13276_s18  ;;  %13966 = vst [vmem:[#allocation158_spill] sm:$0xff] %v9409_v3  ;;  %v2065_v2 = vsel %vm1578_vm0, %v13969_v49, %v2064_v8  ;;  %v2022_v61 = vrot.slane %v9388_v58, 4  ;;  %v9422_v48 = vsel %vm1578_vm0, %v2777_v23, %v2796_v40  ;;  %v13972_v3 = vld [vmem:[#allocation197_spill] sm:$0xff] }
 0x66c   :  { %13968 = vst [vmem:[#allocation56_spill] sm:$0xff] %v9415_v19  ;;  %v2794_v59 = vrot.slane %v2777_v23, 4  ;;  %v3942_v27 = vrot.slane %v13971_v25, 4  ;;  %v2053_v5 = vsel %vm1578_vm0, %v13972_v3, %v2052_v38  ;;  %v2947_v62 = vsel %vm1578_vm0, %v2946_v35, %v13973_v28  ;;  %1575 = vperm.xlu2 %6860, %v13798_v56   ;;  %v13977_v3 = vld [vmem:[#allocation138_spill] sm:$0xff] }
 0x66d   :  { %13970 = vst [vmem:[#allocation137_spill] sm:$0xff] %v9422_v48  ;;  %v3455_v16 = vsel %vm1578_vm0, %v3454_v34, %v9415_v19  ;;  %v9433_v49 = vperm.slane %v3609_v22, %v7860_v32  ;;  %1569 = vperm.xlu1 %6859, %v13798_v56   ;;  %v1651_v40 = vsel %vm1578_vm0, %v1650_v13, %v8798_v21  ;;  %v3620_v38 = vrot.slane %v13977_v3, 4  ;;  %v13978_v22 = vld [vmem:[#allocation200_spill] sm:$0xff]  ;;  %v13982_v19 = vld [vmem:[#allocation153_spill] sm:$0xff] }
 0x66e   :  { %v9440_v8 = vsel %vm1578_vm0, %v2794_v59, %v9316_v50  ;;  %v3461_v23 = vperm.slane %v3455_v16, %v7890_v33  ;;  %v9444_v35 = vperm.slane %v3607_v51, %v7860_v32  ;;  %v9448_v34 = vperm.slane %v2065_v2, %v7860_v32  ;;  %v9457_v50 = vpop.permute.xlu1 %1460  ;;  %v13983_v48 = vld [vmem:[#allocation100_spill] sm:$0xff] }
 0x66f   :  { %13974 = vst [vmem:[#allocation191_spill] sm:$0xff] %v9433_v49  ;;  %v2098_v1 = vrot.slane %v13978_v22, 4  ;;  %v9452_v56 = vperm.slane %v2053_v5, %v7860_v32  ;;  %v9455_v21 = vperm.slane %v2947_v62, %v7860_v32  ;;  %v2023_v13 = vsel %vm1578_vm0, %v2022_v61, %v9042_v29  ;;  %v13981_v22 = vld [vmem:[#allocation54_spill] sm:$0xff] }
 0x670   :  { %13975 = vst [vmem:[#allocation120_spill] sm:$0xff] %v9440_v8  ;;  %v1678_v51 = vrot.slane %v8841_v47, 4  ;;  %v2958_v59 = vrot.slane %v9457_v50, 4  ;;  %v9464_v2 = vperm.slane %v1651_v40, %v7890_v33  ;;  %v9467_v16 = vsel %vm1578_vm0, %v3461_v23, %v3476_v43  ;;  %v13985_v61 = vld [vmem:[#allocation198_spill] sm:$0xff] }
 0x671   :  { %13976 = vst [vmem:[#allocation197_spill] sm:$0xff] %v9444_v35  ;;  %v3474_v5 = vrot.slane %v3461_v23, 4  ;;  %v3271_v62 = vsel %vm1578_vm0, %v3270_v12, %v13981_v22  ;;  %v3943_v8 = vsel %vm1578_vm0, %v3942_v27, %v13982_v19  ;;  %v13984_v28 = vrot.slane %v13983_v48, 4  ;;  %v13986_v23 = vld [vmem:[#allocation42_spill] sm:$0xff] }
 0x672   :  { %13979 = vst [vmem:[#allocation138_spill] sm:$0xff] %v9464_v2  ;;  %v2099_v40 = vsel %vm1578_vm0, %v2098_v1, %v13985_v61  ;;  %v2110_v43 = vrot.slane %v9448_v34, 4  ;;  %v13987_v12 = vld [vmem:[#allocation182_spill] sm:$0xff]  ;;  %v2996_v48 = vrot.slane %v9455_v21, 4  ;;  %v1679_v1 = vsel %vm1578_vm0, %v1678_v51, %v8801_v63 }
 0x673   :  { %13980 = vst [vmem:[#allocation200_spill] sm:$0xff] %v9467_v16  ;;  %v3657_v47 = vsel %vm1578_vm0, %v9433_v49, %v13984_v28  ;;  %5279 = vrot.lane.b32.xlu0 %v2023_v13, %s13323_s19  ;;  %v3621_v16 = vsel %vm1578_vm0, %v13986_v23, %v3620_v38  ;;  %v2959_v22 = vsel %vm1578_vm0, %v2958_v59, %v13987_v12  ;;  %v3642_v28 = vrot.slane %v9444_v35, 4 }
 0x674   :  { %v9487_v27 = vsel %vm1578_vm0, %v3474_v5, %v9320_v41  ;;  %v9492_v13 = vperm.slane %v2959_v22, %v7860_v32  ;;  %v2198_v61 = vrot.slane %v8952_v39, 4  ;;  %v2111_v38 = vsel %vm1578_vm0, %v2110_v43, %v9452_v56  ;;  %5167 = vrot.lane.b32.xlu2 %v1679_v1, %s13319_s20 }
 0x675   :  { %13988 = vst [vmem:[#allocation153_spill] sm:$0xff] %v9487_v27  ;;  %v13989_v41 = vrot.slane %v8890_v0, 4  ;;  %v9505_v5 = vperm.slane %v2099_v40, %v7890_v33  ;;  %v3618_v22 = vrot.slane %v13986_v23, 4  ;;  %v9509_v63 = vperm.slane %v3621_v16, %v7860_v32  ;;  %v1498_v16 = vpop.permute.xlu2 %1497 }
 0x676   :  { %v13991_v39 = vrot.slane %v8327_v9, 4  ;;  %v2997_v43 = vsel %vm1578_vm0, %v9492_v13, %v2996_v48  ;;  %v9521_v40 = vperm.slane %v3271_v62, %v7860_v32  ;;  %v9524_v23 = vperm.slane %v3943_v8, %v7860_v32  ;;  %v13993_v9 = vld [vmem:[#allocation21_spill] sm:$0xff] }
 0x677   :  { %v1677_v59 = vsel %vm1578_vm0, %v9464_v2, %v13989_v41  ;;  %13990 = vst [vmem:[#allocation198_spill] sm:$0xff] %v9509_v63  ;;  %v3005_v1 = vperm.slane %v2997_v43, %v7890_v33  ;;  %v3665_v41 = vperm.slane %v3657_v47, %v7890_v33  ;;  %v13994_v0 = vrot.slane %v13993_v9, 4  ;;  %v13995_v48 = vld [vmem:[#allocation257_spill] sm:$0xff]  ;;  %v13996_v2 = vld [vmem:[#allocation236_spill] sm:$0xff] }
 0x678   :  { %5163 = vrot.lane.b32.xlu1 %v1677_v59, %s13315_s21  ;;  %v9516_v51 = vsel %vm1578_vm0, %v8962_v7, %v13991_v39  ;;  %13992 = vst [vmem:[#allocation42_spill] sm:$0xff] %v9524_v23  ;;  %v3630_v59 = vrot.slane %v1498_v16, 4  ;;  %v9532_v39 = vperm.slane %v2111_v38, %v7890_v33  ;;  %v3643_v62 = vsel %vm1578_vm0, %v3642_v28, %v13995_v48  ;;  %v13999_v28 = vld [vmem:[#allocation255_spill] sm:$0xff] }
 0x679   :  { %v3633_v7 = vsel %vm1578_vm0, %v1498_v16, %v13994_v0  ;;  %v3282_v27 = vrot.slane %v13996_v2, 4  ;;  %v13998_v43 = vrot.slane %v8789_v31, 4  ;;  %v3022_v35 = vrot.slane %v3005_v1, 4 }
 0x67a   :  { %v9538_v8 = vperm.slane %v3633_v7, %v7860_v32  ;;  %v3619_v0 = vsel %vm1578_vm0, %v3618_v22, %v13977_v3  ;;  %v3680_v38 = vrot.slane %v9509_v63, 4  ;;  %v3631_v16 = vsel %vm1578_vm0, %v3630_v59, %v13993_v9  ;;  %v9603_v63 = vpop.permute.xlu1 %1478 }
 0x67b   :  { %v2125_v47 = vsel %vm1578_vm0, %v9505_v5, %v13998_v43  ;;  %v14000_v7 = vrot.slane %v13999_v28, 4  ;;  %v14002_v48 = vrot.slane %v13982_v19, 4  ;;  %v9560_v3 = vperm.slane %v3631_v16, %v7860_v32 }
 0x67c   :  { %13997 = vst [vmem:[#allocation182_spill] sm:$0xff] %v9538_v8  ;;  %5291 = vrot.lane.b32.xlu0 %v2125_v47, %s13311_s22  ;;  %v9564_v22 = vsel %vm1578_vm0, %v2198_v61, %v8315_v44  ;;  %v3704_v59 = vrot.slane %v3665_v41, 4  ;;  %v2130_v9 = vrot.slane %v9532_v39, 4  ;;  %v9569_v47 = vsel %vm1578_vm0, %v3022_v35, %v13999_v28  ;;  %5179 = vrot.lane.b32.xlu2 %v8865_v15, %s13309_s23 }
 0x67d   :  { %v9553_v49 = vsel %vm1578_vm0, %v3005_v1, %v14000_v7  ;;  %v3945_v43 = vsel %vm1578_vm0, %v13971_v25, %v14002_v48  ;;  %14003 = vst [vmem:[#allocation255_spill] sm:$0xff] %v9560_v3  ;;  %v3649_v1 = vperm.slane %v3643_v62, %v7890_v33  ;;  %v3681_v19 = vsel %vm1578_vm0, %v9538_v8, %v3680_v38  ;;  %v14005_v25 = vld [vmem:[#allocation177_spill] sm:$0xff] }
 0x67e   :  { %14001 = vst [vmem:[#allocation21_spill] sm:$0xff] %v9553_v49  ;;  %v3283_v48 = vsel %vm1578_vm0, %v3282_v27, %v14005_v25  ;;  %v9577_v16 = vperm.slane %v3619_v0, %v7860_v32  ;;  %v3666_v44 = vrot.slane %v9560_v3, 4  ;;  %v3689_v35 = vperm.slane %v3681_v19, %v7890_v33  ;;  %v14008_v27 = vld [vmem:[#allocation86_spill] sm:$0xff]  ;;  %v14010_v7 = vld [vmem:[#allocation141_spill] sm:$0xff] }
 0x67f   :  { %14004 = vst [vmem:[#allocation290_spill] sm:$0xff] %v9569_v47  ;;  %v9584_v61 = vperm.slane %v3945_v43, %v7860_v32  ;;  %v3978_v62 = vrot.slane %v9524_v23, 4  ;;  %v2112_v38 = vrot.slane %v9452_v56, 4  ;;  %v14009_v0 = vrot.slane %v14008_v27, 4 }
 0x680   :  { %14006 = vst [vmem:[#allocation291_spill] sm:$0xff] %v9577_v16  ;;  %5175 = vrot.lane.b32.xlu1 %v8883_v42, %s13307_s24  ;;  %v3956_v15 = vrot.slane %v14010_v7, 4  ;;  %v3667_v19 = vsel %vm1578_vm0, %v3666_v44, %v9577_v16  ;;  %v9598_v43 = vsel %vm1578_vm0, %v3689_v35, %v3704_v59  ;;  %v3702_v23 = vrot.slane %v3689_v35, 4  ;;  %v14014_v35 = vld [vmem:[#allocation260_spill] sm:$0xff] }
 0x681   :  { %14007 = vst [vmem:[#allocation292_spill] sm:$0xff] %v9584_v61  ;;  %v3309_v28 = vsel %vm1578_vm0, %v9521_v40, %v14009_v0  ;;  %v9601_v56 = vperm.slane %v3283_v48, %v7860_v32  ;;  %v1786_v42 = vrot.slane %v8956_v10, 4  ;;  %v3673_v8 = vperm.slane %v3667_v19, %v7890_v33  ;;  %v14017_v16 = vld [vmem:[#allocation160_spill] sm:$0xff] }
 0x682   :  { %14011 = vst [vmem:[#allocation141_spill] sm:$0xff] %v9598_v43  ;;  %v3692_v3 = vrot.slane %v3649_v1, 4  ;;  %v3294_v0 = vrot.slane %v9603_v63, 4  ;;  %v2131_v47 = vsel %vm1578_vm0, %v2130_v9, %v8747_v53  ;;  %v3317_v44 = vperm.slane %v3309_v28, %v7890_v33 }
 0x683   :  { %14012 = vst [vmem:[#allocation293_spill] sm:$0xff] %v9601_v56  ;;  %v9612_v59 = vsel %vm1578_vm0, %v3702_v23, %v3665_v41  ;;  %v14015_v48 = vrot.slane %v14014_v35, 4  ;;  %v2113_v10 = vsel %vm1578_vm0, %v9448_v34, %v2112_v38  ;;  %v3690_v9 = vrot.slane %v3673_v8, 4  ;;  %v14018_v41 = vld [vmem:[#allocation185_spill] sm:$0xff] }
 0x684   :  { %14013 = vst [vmem:[#allocation294_spill] sm:$0xff] %v9612_v59  ;;  %5303 = vrot.lane.b32.xlu0 %v2131_v47, %s13305_s25  ;;  %v9622_v19 = vsel %vm1578_vm0, %v3673_v8, %v3692_v3  ;;  %v3957_v28 = vsel %vm1578_vm0, %v14017_v16, %v3956_v15  ;;  %v2212_v23 = vrot.slane %v9106_v36, 4  ;;  %v3295_v59 = vsel %vm1578_vm0, %v3294_v0, %v14018_v41  ;;  %v14019_v35 = vld [vmem:[#allocation129_spill] sm:$0xff]  ;;  %v14023_v3 = vld [vmem:[#allocation146_spill] sm:$0xff] }
 0x685   :  { %v3993_v43 = vsel %vm1578_vm0, %v9584_v61, %v14015_v48  ;;  %14016 = vst [vmem:[#allocation295_spill] sm:$0xff] %v9622_v19  ;;  %v3979_v48 = vsel %vm1578_vm0, %v3978_v62, %v14019_v35  ;;  %v3332_v47 = vrot.slane %v9601_v56, 4  ;;  %v9633_v61 = vperm.slane %v3295_v59, %v7860_v32  ;;  %v14028_v19 = vld [vmem:[#allocation237_spill] sm:$0xff]  ;;  %v14050_v56 = vld [vmem:[#allocation126_spill] sm:$0xff] }
 0x686   :  { %v1787_v34 = vsel %vm1578_vm0, %v1786_v42, %v8633_v17  ;;  %v9638_v8 = vsel %vm1578_vm0, %v3690_v9, %v3649_v1  ;;  %v14022_v36 = vrot.slane %v8786_v6, 4  ;;  %v9646_v62 = vperm.slane %v2113_v10, %v7890_v33  ;;  %v14025_v1 = vld [vmem:[#allocation178_spill] sm:$0xff]  ;;  %v14026_v10 = vld [vmem:[#allocation193_spill] sm:$0xff] }
 0x687   :  { %14020 = vst [vmem:[#allocation160_spill] sm:$0xff] %v9633_v61  ;;  %5191 = vrot.lane.b32.xlu2 %v1787_v34, %s13303_s26  ;;  %v9650_v15 = vperm.slane %v9516_v51, %v7890_v33  ;;  %v3360_v0 = vrot.slane %v3317_v44, 4  ;;  %v9653_v17 = vperm.slane %v3957_v28, %v7860_v32  ;;  %v3968_v42 = vrot.slane %v14025_v1, 4  ;;  %v1516_v34 = vpop.permute.xlu2 %1515 }
 0x688   :  { %14021 = vst [vmem:[#allocation185_spill] sm:$0xff] %v9638_v8  ;;  %v1689_v38 = vsel %vm1578_vm0, %v14023_v3, %v14022_v36  ;;  %v2213_v6 = vsel %vm1578_vm0, %v9093_v24, %v2212_v23  ;;  %v3333_v59 = vsel %vm1578_vm0, %v9633_v61, %v3332_v47  ;;  %v2286_v9 = vrot.slane %v14026_v10, 4  ;;  %v14027_v3 = vld [vmem:[#allocation108_spill] sm:$0xff]  ;;  %v14030_v47 = vld [vmem:[#allocation195_spill] sm:$0xff] }
 0x689   :  { %14024 = vst [vmem:[#allocation146_spill] sm:$0xff] %v9653_v17  ;;  %5187 = vrot.lane.b32.xlu1 %v1689_v38, %s13300_s27  ;;  %v3341_v51 = vperm.slane %v3333_v59, %v7890_v33  ;;  %v9664_v36 = vperm.slane %v3979_v48, %v7890_v33  ;;  %v4001_v28 = vperm.slane %v3993_v43, %v7890_v33  ;;  %v4166_v8 = vrot.slane %v14027_v3, 4 }
 0x68a   :  { %v3506_v38 = vrot.slane %v14028_v19, 4  ;;  %v3966_v35 = vrot.slane %v1516_v34, 4  ;;  %v3969_v24 = vsel %vm1578_vm0, %v1516_v34, %v3968_v42  ;;  %v14031_v10 = vrot.slane %v14030_v47, 4 }
 0x68b   :  { %v9671_v23 = vperm.slane %v3969_v24, %v7860_v32  ;;  %v9678_v48 = vperm.slane %v2213_v6, %v7890_v33  ;;  %v3358_v49 = vrot.slane %v3341_v51, 4  ;;  %v14032_v43 = vrot.slane %v14017_v16, 4  ;;  %v14034_v24 = vld [vmem:[#allocation161_spill] sm:$0xff] }
 0x68c   :  { %v2137_v59 = vsel %vm1578_vm0, %v9646_v62, %v14031_v10  ;;  %v4016_v19 = vrot.slane %v9653_v17, 4  ;;  %v3967_v42 = vsel %vm1578_vm0, %v3966_v35, %v14025_v1  ;;  %v9689_v34 = vsel %vm1578_vm0, %v3341_v51, %v3360_v0 }
 0x68d   :  { %14029 = vst [vmem:[#allocation178_spill] sm:$0xff] %v9671_v23  ;;  %v3955_v3 = vsel %vm1578_vm0, %v14032_v43, %v14010_v7  ;;  %5315 = vrot.lane.b32.xlu0 %v2137_v59, %s13298_s28  ;;  %v2287_v6 = vsel %vm1578_vm0, %v2286_v9, %v14034_v24  ;;  %v9694_v10 = vperm.slane %v3967_v42, %v7860_v32  ;;  %v4040_v7 = vrot.slane %v4001_v28, 4  ;;  %v14036_v43 = vld [vmem:[#allocation151_spill] sm:$0xff]  ;;  %v14041_v24 = vld [vmem:[#allocation60_spill] sm:$0xff] }
 0x68e   :  { %14033 = vst [vmem:[#allocation193_spill] sm:$0xff] %v9689_v34  ;;  %v9698_v16 = vperm.slane %v9564_v22, %v7890_v33  ;;  %v3507_v35 = vsel %vm1578_vm0, %v3506_v38, %v14036_v43  ;;  %v9703_v1 = vsel %vm1578_vm0, %v3358_v49, %v3317_v44  ;;  %v4028_v0 = vrot.slane %v9664_v36, 4  ;;  %v14039_v22 = vld [vmem:[#allocation186_spill] sm:$0xff]  ;;  %v9738_v43 = vpop.permute.xlu1 %1491 }
 0x68f   :  { %14035 = vst [vmem:[#allocation195_spill] sm:$0xff] %v9694_v10  ;;  %v4017_v51 = vsel %vm1578_vm0, %v9671_v23, %v4016_v19  ;;  %v9709_v9 = vperm.slane %v3955_v3, %v7860_v32  ;;  %v4002_v59 = vrot.slane %v9694_v10, 4  ;;  %5203 = vrot.lane.b32.xlu2 %v14039_v22, %s13296_s29  ;;  %v2238_v42 = vrot.slane %v9678_v48, 4  ;;  %v14040_v49 = vld [vmem:[#allocation106_spill] sm:$0xff]  ;;  %v14042_v23 = vld [vmem:[#allocation85_spill] sm:$0xff] }
 0x690   :  { %14037 = vst [vmem:[#allocation161_spill] sm:$0xff] %v9703_v1  ;;  %v4025_v38 = vperm.slane %v4017_v51, %v7890_v33  ;;  %v3830_v44 = vrot.slane %v14040_v49, 4  ;;  %v4167_v17 = vsel %vm1578_vm0, %v4166_v8, %v14041_v24  ;;  %v9720_v19 = vperm.slane %v2287_v6, %v7860_v32  ;;  %v14045_v8 = vld [vmem:[#allocation124_spill] sm:$0xff]  ;;  %v14046_v24 = vld [vmem:[#allocation125_spill] sm:$0xff] }
 0x691   :  { %14038 = vst [vmem:[#allocation296_spill] sm:$0xff] %v9709_v9  ;;  %v2222_v3 = vrot.slane %v9075_v4, 4  ;;  %5199 = vrot.lane.b32.xlu1 %v14042_v23, %s13294_s30  ;;  %v9726_v22 = vperm.slane %v3507_v35, %v7860_v32  ;;  %v4003_v51 = vsel %vm1578_vm0, %v4002_v59, %v9709_v9  ;;  %v14047_v6 = vrot.slane %v14046_v24, 4  ;;  %v14048_v4 = vld [vmem:[#allocation67_spill] sm:$0xff]  ;;  %v14072_v9 = vld [vmem:[#allocation8_spill] sm:$0xff] }
 0x692   :  { %v9731_v10 = vsel %vm1578_vm0, %v4025_v38, %v4040_v7  ;;  %v4038_v49 = vrot.slane %v4025_v38, 4  ;;  %v4178_v34 = vrot.slane %v14048_v4, 4  ;;  %14049 = vst [vmem:[#allocation124_spill] sm:$0xff] %v9738_v43  ;;  %v1798_v23 = vrot.slane %v9101_v30, 4  ;;  %v14062_v4 = vld [vmem:[#allocation271_spill] sm:$0xff] }
 0x693   :  { %14043 = vst [vmem:[#allocation186_spill] sm:$0xff] %v9726_v22  ;;  %v2275_v1 = vsel %vm1578_vm0, %v14047_v6, %v14045_v8  ;;  %v4009_v35 = vperm.slane %v4003_v51, %v7890_v33  ;;  %v4502_v2 = vrot.slane %v14050_v56, 4  ;;  %v3518_v59 = vrot.slane %v9738_v43, 4 }
 0x694   :  { %14044 = vst [vmem:[#allocation85_spill] sm:$0xff] %v9731_v10  ;;  %v2239_v7 = vsel %vm1578_vm0, %v2238_v42, %v9650_v15  ;;  %v9747_v38 = vsel %vm1578_vm0, %v4038_v49, %v4001_v28  ;;  %v2322_v24 = vrot.slane %v9720_v19, 4  ;;  %v2223_v30 = vsel %vm1578_vm0, %v2222_v3, %v9048_v57  ;;  %v14054_v49 = vld [vmem:[#allocation188_spill] sm:$0xff] }
 0x695   :  { %14051 = vst [vmem:[#allocation125_spill] sm:$0xff] %v9747_v38  ;;  %5327 = vrot.lane.b32.xlu0 %v2239_v7, %s13292_s2  ;;  %v9754_v51 = vsel %vm1578_vm0, %v4009_v35, %v4028_v0  ;;  %v4026_v8 = vrot.slane %v4009_v35, 4  ;;  %v9757_v6 = vperm.slane %v4167_v17, %v7860_v32  ;;  %v9760_v42 = vperm.slane %v2275_v1, %v7860_v32  ;;  %v14055_v10 = vld [vmem:[#allocation144_spill] sm:$0xff]  ;;  %v14058_v1 = vld [vmem:[#allocation269_spill] sm:$0xff]  ;;  %v14059_v35 = vld [vmem:[#allocation270_spill] sm:$0xff] }
 0x696   :  { %14052 = vst [vmem:[#allocation126_spill] sm:$0xff] %v9754_v51  ;;  %v3556_v28 = vrot.slane %v9726_v22, 4  ;;  %v3519_v38 = vsel %vm1578_vm0, %v3518_v59, %v14054_v49  ;;  %v4179_v7 = vsel %vm1578_vm0, %v4178_v34, %v14055_v10  ;;  %v1799_v0 = vsel %vm1578_vm0, %v1798_v23, %v8601_v55  ;;  %v14061_v51 = vld [vmem:[#allocation12_spill] sm:$0xff]  ;;  %v14063_v23 = vld [vmem:[#allocation95_spill] sm:$0xff] }
 0x697   :  { %14053 = vst [vmem:[#allocation297_spill] sm:$0xff] %v9757_v6  ;;  %v9768_v57 = vperm.slane %v3519_v38, %v7860_v32  ;;  %v9774_v17 = vsel %vm1578_vm0, %v4026_v8, %v9664_v36  ;;  %5215 = vrot.lane.b32.xlu2 %v1799_v0, %s13290_s3  ;;  %v14060_v59 = vrot.slane %v14059_v35, 4  ;;  %v9783_v38 = vperm.slane %v2223_v30, %v7890_v33  ;;  %v14064_v36 = vld [vmem:[#allocation94_spill] sm:$0xff]  ;;  %v14071_v10 = vld [vmem:[#allocation80_spill] sm:$0xff] }
 0x698   :  { %14057 = vst [vmem:[#allocation299_spill] sm:$0xff] %v9774_v17  ;;  %v9787_v55 = vperm.slane %v14062_v4, %v7890_v33  ;;  %v14065_v8 = vrot.slane %v14064_v36, 4  ;;  %v2244_v0 = vrot.slane %v9698_v16, 4  ;;  %v14066_v35 = vld [vmem:[#allocation58_spill] sm:$0xff]  ;;  %v9804_v36 = vpop.permute.xlu2 %1527  ;;  %v2298_v22 = vrot.slane %v14072_v9, 4 }
 0x699   :  { %14056 = vst [vmem:[#allocation298_spill] sm:$0xff] %v9768_v57  ;;  %v1797_v34 = vsel %vm1578_vm0, %v14061_v51, %v14060_v59  ;;  %v2323_v51 = vsel %vm1578_vm0, %v2322_v24, %v9760_v42  ;;  %v3557_v30 = vsel %vm1578_vm0, %v9768_v57, %v3556_v28  ;;  %v3831_v4 = vsel %vm1578_vm0, %v3830_v44, %v14066_v35  ;;  %v14073_v28 = vld [vmem:[#allocation163_spill] sm:$0xff] }
 0x69a   :  { %v4715_v3 = vsel %vm1578_vm0, %v14065_v8, %v14063_v23  ;;  %5211 = vrot.lane.b32.xlu1 %v1797_v34, %s13288_s4  ;;  %v9802_v59 = vperm.slane %v4179_v7, %v7860_v32  ;;  %14068 = vst [vmem:[#allocation12_spill] sm:$0xff] %v9804_v36  ;;  %v3565_v8 = vperm.slane %v3557_v30, %v7890_v33  ;;  %v14069_v23 = vld [vmem:[#allocation265_spill] sm:$0xff]  ;;  %v4378_v24 = vrot.slane %v14071_v10, 4  ;;  %v14074_v7 = vld [vmem:[#allocation63_spill] sm:$0xff] }
 0x69b   :  { %v14070_v34 = vrot.slane %v14069_v23, 4  ;;  %v4503_v57 = vsel %vm1578_vm0, %v4502_v2, %v14073_v28  ;;  %v4190_v44 = vrot.slane %v9804_v36, 4  ;;  %v3842_v35 = vrot.slane %v14074_v7, 4  ;;  %v14075_v23 = vld [vmem:[#allocation263_spill] sm:$0xff] }
 0x69c   :  { %14067 = vst [vmem:[#allocation270_spill] sm:$0xff] %v9802_v59  ;;  %v2245_v43 = vsel %vm1578_vm0, %v9783_v38, %v2244_v0  ;;  %v9820_v30 = vperm.slane %v2323_v51, %v7890_v33  ;;  %v14076_v49 = vrot.slane %v14075_v23, 4  ;;  %v9828_v10 = vperm.slane %v3831_v4, %v7860_v32 }
 0x69d   :  { %v4205_v17 = vsel %vm1578_vm0, %v9757_v6, %v14070_v34  ;;  %v14079_v6 = vld [vmem:[#allocation92_spill] sm:$0xff]  ;;  %5339 = vrot.lane.b32.xlu0 %v2245_v43, %s13286_s5  ;;  %v3582_v36 = vrot.slane %v3565_v8, 4  ;;  %v14080_v51 = vrot.slane %v14073_v28, 4  ;;  %v4228_v4 = vrot.slane %v9802_v59, 4  ;;  %v14084_v43 = vld [vmem:[#allocation37_spill] sm:$0xff] }
 0x69e   :  { %v9825_v34 = vsel %vm1578_vm0, %v3565_v8, %v14076_v49  ;;  %14078 = vst [vmem:[#allocation8_spill] sm:$0xff] %v9828_v10  ;;  %v4191_v2 = vsel %vm1578_vm0, %v4190_v44, %v14079_v6  ;;  %v4213_v0 = vperm.slane %v4205_v17, %v7890_v33  ;;  %v9839_v49 = vperm.slane %v4503_v57, %v7860_v32  ;;  %v9852_v17 = vpop.permute.xlu0 %5171  ;;  %v14086_v28 = vld [vmem:[#allocation65_spill] sm:$0xff] }
 0x69f   :  { %14077 = vst [vmem:[#allocation271_spill] sm:$0xff] %v9825_v34  ;;  %v4505_v7 = vsel %vm1578_vm0, %v14050_v56, %v14080_v51  ;;  %v9843_v34 = vperm.slane %v4191_v2, %v7860_v32  ;;  %v9846_v44 = vperm.slane %v4715_v3, %v7860_v32  ;;  %v9850_v8 = vsel %vm1578_vm0, %v4378_v24, %v14084_v43  ;;  %v14088_v51 = vld [vmem:[#allocation187_spill] sm:$0xff]  ;;  %v14089_v3 = vld [vmem:[#allocation220_spill] sm:$0xff] }
 0x6a0   :  { %14081 = vst [vmem:[#allocation163_spill] sm:$0xff] %v9839_v49  ;;  %v2299_v56 = vsel %vm1578_vm0, %v2298_v22, %v14086_v28  ;;  %v9858_v57 = vsel %vm1578_vm0, %v3582_v36, %v14075_v23  ;;  %v3843_v2 = vsel %vm1578_vm0, %v3842_v35, %v14088_v51  ;;  %5227 = vrot.lane.b32.xlu2 %v14089_v3, %s13284_s6  ;;  %v2346_v59 = vrot.slane %v9820_v30, 4  ;;  %v14092_v36 = vld [vmem:[#allocation275_spill] sm:$0xff]  ;;  %v14093_v35 = vld [vmem:[#allocation266_spill] sm:$0xff] }
 0x6a1   :  { %14082 = vst [vmem:[#allocation263_spill] sm:$0xff] %v9843_v34  ;;  %v14090_v24 = vrot.slane %v14086_v28, 4  ;;  %v4229_v22 = vsel %vm1578_vm0, %v9843_v34, %v4228_v4  ;;  %v9872_v23 = vperm.slane %v4505_v7, %v7860_v32  ;;  %v14094_v43 = vrot.slane %v14093_v35, 4  ;;  %v14095_v4 = vld [vmem:[#allocation147_spill] sm:$0xff]  ;;  %v14105_v51 = vld [vmem:[#allocation190_spill] sm:$0xff] }
 0x6a2   :  { %14083 = vst [vmem:[#allocation300_spill] sm:$0xff] %v9846_v44  ;;  %5223 = vrot.lane.b32.xlu1 %v14092_v36, %s13280_s7  ;;  %v4237_v28 = vperm.slane %v4229_v22, %v7890_v33  ;;  %v4256_v6 = vrot.slane %v4213_v0, 4  ;;  %v4516_v34 = vrot.slane %v14095_v4, 4  ;;  %v9885_v7 = vperm.slane %v2299_v56, %v7890_v33  ;;  %v9890_v36 = vpop.permute.xlu1 %1509 }
 0x6a3   :  { %14085 = vst [vmem:[#allocation301_spill] sm:$0xff] %v9852_v17  ;;  %v2301_v17 = vsel %vm1578_vm0, %v14072_v9, %v14090_v24  ;;  %v3869_v3 = vsel %vm1578_vm0, %v9828_v10, %v14094_v43  ;;  %v4538_v9 = vrot.slane %v9839_v49, 4  ;;  %v2324_v24 = vrot.slane %v9760_v42, 4 }
 0x6a4   :  { %14087 = vst [vmem:[#allocation65_spill] sm:$0xff] %v9858_v57  ;;  %v9888_v57 = vperm.slane %v3843_v2, %v7860_v32  ;;  %v1906_v35 = vrot.slane %v9241_v26, 4  ;;  %v9894_v43 = vsel %vm1578_vm0, %v4237_v28, %v4256_v6  ;;  %v4254_v22 = vrot.slane %v4237_v28, 4  ;;  %v14099_v2 = vld [vmem:[#allocation97_spill] sm:$0xff]  ;;  %v14101_v28 = vld [vmem:[#allocation59_spill] sm:$0xff] }
 0x6a5   :  { %14091 = vst [vmem:[#allocation220_spill] sm:$0xff] %v9872_v23  ;;  %v3854_v49 = vrot.slane %v9890_v36, 4  ;;  %v2347_v42 = vsel %vm1578_vm0, %v2346_v59, %v9885_v7  ;;  %v9900_v10 = vperm.slane %v2301_v17, %v7890_v33  ;;  %v3877_v56 = vperm.slane %v3869_v3, %v7890_v33 }
 0x6a6   :  { %14096 = vst [vmem:[#allocation275_spill] sm:$0xff] %v9888_v57  ;;  %v14100_v27 = vrot.slane %v14058_v1, 4  ;;  %5351 = vrot.lane.b32.xlu0 %v2347_v42, %s13282_s8  ;;  %v2325_v6 = vsel %vm1578_vm0, %v9720_v19, %v2324_v24  ;;  %v14102_v59 = vrot.slane %v14101_v28, 4  ;;  %v9920_v61 = vsel %vm1578_vm0, %v4254_v22, %v4213_v0  ;;  %v14113_v28 = vld [vmem:[#allocation183_spill] sm:$0xff] }
 0x6a7   :  { %14097 = vst [vmem:[#allocation147_spill] sm:$0xff] %v9890_v36  ;;  %v14104_v36 = vld [vmem:[#allocation170_spill] sm:$0xff]  ;;  %v3855_v1 = vsel %vm1578_vm0, %v3854_v49, %v14105_v51  ;;  %v3892_v19 = vrot.slane %v9888_v57, 4  ;;  %v14111_v0 = vrot.slane %v8319_v46, 4 }
 0x6a8   :  { %14098 = vst [vmem:[#allocation302_spill] sm:$0xff] %v9894_v43  ;;  %v4553_v26 = vsel %vm1578_vm0, %v9872_v23, %v14100_v27  ;;  %v14103_v43 = vld [vmem:[#allocation19_spill] sm:$0xff]  ;;  %v4517_v3 = vsel %vm1578_vm0, %v14104_v36, %v4516_v34  ;;  %v14107_v27 = vld [vmem:[#allocation268_spill] sm:$0xff]  ;;  %v14108_v23 = vld [vmem:[#allocation10_spill] sm:$0xff]  ;;  %v9927_v24 = vperm.slane %v3855_v1, %v7860_v32  ;;  %v1907_v34 = vsel %vm1578_vm0, %v1906_v35, %v13932_v60 }
 0x6a9   :  { %v2313_v17 = vsel %vm1578_vm0, %v14103_v43, %v14102_v59  ;;  %14106 = vst [vmem:[#allocation59_spill] sm:$0xff] %v9920_v61  ;;  %v4539_v42 = vsel %vm1578_vm0, %v4538_v9, %v14107_v27  ;;  %v2336_v25 = vrot.slane %v14108_v23, 4  ;;  %v9929_v43 = vpop.permute.xlu0 %5183  ;;  %5239 = vrot.lane.b32.xlu2 %v1907_v34, %s13187_s9  ;;  %v1905_v49 = vsel %vm1578_vm0, %v9137_v54, %v14111_v0  ;;  %v14114_v60 = vld [vmem:[#allocation168_spill] sm:$0xff]  ;;  %v14115_v54 = vld [vmem:[#allocation113_spill] sm:$0xff]  ;;  %v1546_v34 = vpop.permute.xlu2 %1545  ;;  %v14128_v27 = vld [vmem:[#allocation194_spill] sm:$0xff]  ;;  %s13192_s9 = smov 44  }
 0x6aa   :  { %14109 = vst [vmem:[#allocation19_spill] sm:$0xff] %v9927_v24  ;;  %v9939_v23 = vperm.slane %v2325_v6, %v7890_v33  ;;  %v2352_v9 = vrot.slane %v9900_v10, 4  ;;  %v3920_v1 = vrot.slane %v3877_v56, 4  ;;  %v9943_v22 = vperm.slane %v4517_v3, %v7860_v32  ;;  %5235 = vrot.lane.b32.xlu1 %v1905_v49, %s13181_s10  ;;  %s13184_s10 = smov 102  }
 0x6ab   :  { %14110 = vst [vmem:[#allocation170_spill] sm:$0xff] %v9929_v43  ;;  %v4528_v59 = vrot.slane %v14113_v28, 4  ;;  %v2337_v35 = vsel %vm1578_vm0, %v14114_v60, %v2336_v25  ;;  %v3893_v46 = vsel %vm1578_vm0, %v9927_v24, %v3892_v19  ;;  %v4726_v6 = vrot.slane %v14115_v54, 4 }
 0x6ac   :  { %14112 = vst [vmem:[#allocation190_spill] sm:$0xff] %v9943_v22  ;;  %v3901_v0 = vperm.slane %v3893_v46, %v7890_v33  ;;  %v9954_v61 = vperm.slane %v4539_v42, %v7890_v33  ;;  %v4561_v3 = vperm.slane %v4553_v26, %v7890_v33  ;;  %v14116_v43 = vrot.slane %v14104_v36, 4 }
 0x6ad   :  { %v2400_v49 = vrot.slane %v13920_v18, 4  ;;  %v4526_v60 = vrot.slane %v1546_v34, 4  ;;  %v4529_v19 = vsel %vm1578_vm0, %v1546_v34, %v4528_v59  ;;  %v2353_v46 = vsel %vm1578_vm0, %v9939_v23, %v2352_v9 }
 0x6ae   :  { %v4515_v25 = vsel %vm1578_vm0, %v14116_v43, %v14095_v4  ;;  %v9964_v54 = vperm.slane %v4529_v19, %v7860_v32  ;;  %v9969_v42 = vperm.slane %v2337_v35, %v7890_v33  ;;  %v9972_v26 = vsel %vm1578_vm0, %v3901_v0, %v3920_v1  ;;  %v14119_v4 = vld [vmem:[#allocation233_spill] sm:$0xff]  ;;  %5363 = vrot.lane.b32.xlu0 %v2353_v46, %s13184_s10  ;;  %v14121_v19 = vld [vmem:[#allocation140_spill] sm:$0xff]  ;;  %s13197_s10 = smov 46   ;;  %v14125_v46 = vld [vmem:[#allocation11_spill] sm:$0xff] }
 0x6af   :  { %14118 = vst [vmem:[#allocation183_spill] sm:$0xff] %v9972_v26  ;;  %v4576_v36 = vrot.slane %v9943_v22, 4  ;;  %v2401_v18 = vsel %vm1578_vm0, %v14119_v4, %v2400_v49  ;;  %v4527_v43 = vsel %vm1578_vm0, %v4526_v60, %v14113_v28  ;;  %v3918_v59 = vrot.slane %v3901_v0, 4 }
 0x6b0   :  { %14117 = vst [vmem:[#allocation10_spill] sm:$0xff] %v9964_v54  ;;  %v9981_v9 = vperm.slane %v4527_v43, %v7860_v32  ;;  %v9984_v35 = vperm.slane %v2313_v17, %v7890_v33  ;;  %v4588_v1 = vrot.slane %v9954_v61, 4  ;;  %v4600_v34 = vrot.slane %v4561_v3, 4 }
 0x6b1   :  { %v2388_v22 = vrot.slane %v14121_v19, 4  ;;  %v9989_v49 = vperm.slane %v4515_v25, %v7860_v32  ;;  %v9991_v4 = vpop.permute.xlu0 %5195  ;;  %v9994_v28 = vsel %vm1578_vm0, %v3918_v59, %v3877_v56  ;;  %v4577_v0 = vsel %vm1578_vm0, %v9964_v54, %v4576_v36  ;;  %5251 = vrot.lane.b32.xlu2 %v14125_v46, %s13197_s10  ;;  %v14126_v19 = vld [vmem:[#allocation64_spill] sm:$0xff]  ;;  %v14127_v59 = vld [vmem:[#allocation157_spill] sm:$0xff]  ;;  %s13202_s10 = smov 50  }
 0x6b2   :  { %14120 = vst [vmem:[#allocation168_spill] sm:$0xff] %v9981_v9  ;;  %v9999_v60 = vperm.slane %v2401_v18, %v7860_v32  ;;  %v4562_v17 = vrot.slane %v9981_v9, 4  ;;  %v2358_v25 = vrot.slane %v9969_v42, 4  ;;  %v4585_v43 = vperm.slane %v4577_v0, %v7890_v33  ;;  %v14129_v54 = vld [vmem:[#allocation284_spill] sm:$0xff]  ;;  %v14130_v9 = vld [vmem:[#allocation274_spill] sm:$0xff] }
 0x6b3   :  { %14122 = vst [vmem:[#allocation233_spill] sm:$0xff] %v9989_v49  ;;  %v4727_v56 = vsel %vm1578_vm0, %v4726_v6, %v14126_v19  ;;  %v4080_v36 = vrot.slane %v14128_v27, 4  ;;  %v2434_v18 = vrot.slane %v14129_v54, 4  ;;  %5247 = vrot.lane.b32.xlu1 %v14130_v9, %s13192_s9  ;;  %v14133_v19 = vld [vmem:[#allocation13_spill] sm:$0xff]  ;;  %v14134_v27 = vld [vmem:[#allocation250_spill] sm:$0xff]  ;;  %v10023_v54 = vpop.permute.xlu1 %1521  ;;  %v2014_v24 = vrot.slane %v9365_v45, 4 }
 0x6b4   :  { %14123 = vst [vmem:[#allocation140_spill] sm:$0xff] %v9991_v4  ;;  %v4068_v4 = vrot.slane %v14127_v59, 4  ;;  %v4563_v26 = vsel %vm1578_vm0, %v4562_v17, %v9989_v49  ;;  %v10018_v0 = vsel %vm1578_vm0, %v4585_v43, %v4600_v34  ;;  %v4598_v6 = vrot.slane %v4585_v43, 4  ;;  %s13194_s9 = smov 108   ;;  %v14137_v45 = vld [vmem:[#allocation281_spill] sm:$0xff]  ;;  %v14161_v49 = vld [vmem:[#allocation102_spill] sm:$0xff] }
 0x6b5   :  { %14124 = vst [vmem:[#allocation303_spill] sm:$0xff] %v9994_v28  ;;  %v14131_v28 = vld [vmem:[#allocation207_spill] sm:$0xff]  ;;  %v4738_v57 = vrot.slane %v14134_v27, 4  ;;  %v4569_v9 = vperm.slane %v4563_v26, %v7890_v33  ;;  %v2359_v34 = vsel %vm1578_vm0, %v2358_v25, %v9984_v35  ;;  %v2435_v26 = vsel %vm1578_vm0, %v2434_v18, %v14137_v45 }
 0x6b6   :  { %v2389_v46 = vsel %vm1578_vm0, %v14131_v28, %v2388_v22  ;;  %14132 = vst [vmem:[#allocation11_spill] sm:$0xff] %v10018_v0  ;;  %v4069_v59 = vsel %vm1578_vm0, %v14133_v19, %v4068_v4  ;;  %v2446_v22 = vrot.slane %v9999_v60, 4  ;;  %v4081_v28 = vsel %vm1578_vm0, %v10023_v54, %v4080_v36  ;;  %5375 = vrot.lane.b32.xlu0 %v2359_v34, %s13194_s9  ;;  %v14139_v36 = vld [vmem:[#allocation110_spill] sm:$0xff]  ;;  %s13208_s9 = smov 52  }
 0x6b7   :  { %v10033_v17 = vsel %vm1578_vm0, %v4598_v6, %v4561_v3  ;;  %v10036_v4 = vperm.slane %v4081_v28, %v7860_v32  ;;  %v10042_v43 = vsel %vm1578_vm0, %v4569_v9, %v4588_v1  ;;  %v4586_v0 = vrot.slane %v4569_v9, 4 }
 0x6b8   :  { %14135 = vst [vmem:[#allocation284_spill] sm:$0xff] %v10033_v17  ;;  %v4390_v27 = vrot.slane %v14139_v36, 4  ;;  %v10046_v25 = vperm.slane %v4727_v56, %v7860_v32  ;;  %v10049_v3 = vperm.slane %v2389_v46, %v7860_v32  ;;  %v2012_v6 = vrot.slane %v9245_v11, 4  ;;  %v14144_v56 = vld [vmem:[#allocation36_spill] sm:$0xff]  ;;  %v14146_v11 = vld [vmem:[#allocation150_spill] sm:$0xff] }
 0x6b9   :  { %14136 = vst [vmem:[#allocation274_spill] sm:$0xff] %v10036_v4  ;;  %v10053_v28 = vperm.slane %v4069_v59, %v7860_v32  ;;  %v4126_v34 = vrot.slane %v10036_v4, 4  ;;  %v10056_v18 = vpop.permute.xlu0 %5207  ;;  %v2015_v1 = vsel %vm1578_vm0, %v2014_v24, %v9039_v14  ;;  %v10062_v9 = vsel %vm1578_vm0, %v4586_v0, %v9954_v61  ;;  %v14147_v17 = vld [vmem:[#allocation16_spill] sm:$0xff]  ;;  %v14148_v24 = vld [vmem:[#allocation234_spill] sm:$0xff]  ;;  %v14149_v61 = vld [vmem:[#allocation75_spill] sm:$0xff] }
 0x6ba   :  { %14138 = vst [vmem:[#allocation207_spill] sm:$0xff] %v10042_v43  ;;  %v14145_v46 = vrot.slane %v14099_v2, 4  ;;  %v4739_v59 = vsel %vm1578_vm0, %v4738_v57, %v14146_v11  ;;  %5263 = vrot.lane.b32.xlu2 %v2015_v1, %s13208_s9  ;;  %v2013_v43 = vsel %vm1578_vm0, %v14147_v17, %v2012_v6  ;;  %v10074_v14 = vperm.slane %v2435_v26, %v7890_v33  ;;  %v14152_v26 = vld [vmem:[#allocation62_spill] sm:$0xff]  ;;  %v14158_v11 = vld [vmem:[#allocation245_spill] sm:$0xff]  ;;  %s13214_s9 = smov 56  }
 0x6bb   :  { %14140 = vst [vmem:[#allocation13_spill] sm:$0xff] %v10046_v25  ;;  %v14150_v0 = vrot.slane %v14149_v61, 4  ;;  %v4764_v2 = vrot.slane %v9846_v44, 4  ;;  %5259 = vrot.lane.b32.xlu1 %v2013_v43, %s13202_s10  ;;  %v2447_v57 = vsel %vm1578_vm0, %v2446_v22, %v10049_v3  ;;  %v4127_v1 = vsel %vm1578_vm0, %v4126_v34, %v10053_v28  ;;  %s13205_s10 = smov 114  }
 0x6bc   :  { %14141 = vst [vmem:[#allocation281_spill] sm:$0xff] %v10053_v28  ;;  %v5051_v45 = vsel %vm1578_vm0, %v14145_v46, %v14144_v56  ;;  %v10088_v17 = vperm.slane %v9850_v8, %v7860_v32  ;;  %v4391_v6 = vsel %vm1578_vm0, %v4390_v27, %v14152_v26  ;;  %v10092_v46 = vpop.permute.xlu2 %1557  ;;  %v4148_v61 = vrot.slane %v9787_v55, 4  ;;  %v14157_v27 = vld [vmem:[#allocation240_spill] sm:$0xff]  ;;  %v14225_v28 = vld [vmem:[#allocation205_spill] sm:$0xff] }
 0x6bd   :  { %14142 = vst [vmem:[#allocation304_spill] sm:$0xff] %v10056_v18  ;;  %v10097_v43 = vperm.slane %v5051_v45, %v7860_v32  ;;  %v10100_v22 = vperm.slane %v4739_v59, %v7860_v32  ;;  %v4750_v34 = vrot.slane %v10092_v46, 4  ;;  %v4765_v8 = vsel %vm1578_vm0, %v10046_v25, %v4764_v2  ;;  %v14163_v25 = vld [vmem:[#allocation131_spill] sm:$0xff] }
 0x6be   :  { %14143 = vst [vmem:[#allocation305_spill] sm:$0xff] %v10062_v9  ;;  %v2475_v9 = vsel %vm1578_vm0, %v14150_v0, %v14148_v24  ;;  %v4133_v24 = vperm.slane %v4127_v1, %v7890_v33  ;;  %v14156_v0 = vld [vmem:[#allocation93_spill] sm:$0xff]  ;;  %v4402_v44 = vrot.slane %v14157_v27, 4  ;;  %v14159_v18 = vrot.slane %v14158_v11, 4 }
 0x6bf   :  { %14151 = vst [vmem:[#allocation16_spill] sm:$0xff] %v10088_v17  ;;  %v2486_v56 = vrot.slane %v14156_v0, 4  ;;  %v10112_v45 = vperm.slane %v2447_v57, %v7890_v33  ;;  %v10115_v59 = vperm.slane %v4391_v6, %v7860_v32  ;;  %v5062_v27 = vrot.slane %v14163_v25, 4  ;;  %v14165_v57 = vld [vmem:[#allocation79_spill] sm:$0xff]  ;;  %v14169_v25 = vld [vmem:[#allocation201_spill] sm:$0xff] }
 0x6c0   :  { %14153 = vst [vmem:[#allocation234_spill] sm:$0xff] %v10092_v46  ;;  %v2461_v1 = vsel %vm1578_vm0, %v10074_v14, %v14159_v18  ;;  %v4751_v46 = vsel %vm1578_vm0, %v4750_v34, %v14161_v49  ;;  %v10121_v2 = vsel %vm1578_vm0, %v4133_v24, %v4148_v61  ;;  %v4146_v0 = vrot.slane %v4133_v24, 4  ;;  %v14166_v49 = vld [vmem:[#allocation225_spill] sm:$0xff] }
 0x6c1   :  { %14154 = vst [vmem:[#allocation75_spill] sm:$0xff] %v10097_v43  ;;  %5387 = vrot.lane.b32.xlu0 %v2461_v1, %s13205_s10  ;;  %v10125_v18 = vperm.slane %v4751_v46, %v7860_v32  ;;  %v10129_v36 = vperm.slane %v14165_v57, %v7890_v33  ;;  %v4773_v6 = vperm.slane %v4765_v8, %v7890_v33  ;;  %v4428_v34 = vrot.slane %v10088_v17, 4  ;;  %v10135_v61 = vpop.permute.xlu0 %5219  ;;  %s13220_s10 = smov 58  }
 0x6c2   :  { %14155 = vst [vmem:[#allocation306_spill] sm:$0xff] %v10100_v22  ;;  %v2498_v26 = vrot.slane %v14166_v49, 4  ;;  %v4788_v1 = vrot.slane %v10100_v22, 4  ;;  %v10139_v24 = vsel %vm1578_vm0, %v4146_v0, %v9787_v55  ;;  %v10142_v46 = vperm.slane %v2475_v9, %v7860_v32  ;;  %v14171_v22 = vld [vmem:[#allocation48_spill] sm:$0xff] }
 0x6c3   :  { %14160 = vst [vmem:[#allocation93_spill] sm:$0xff] %v10115_v59  ;;  %v5100_v57 = vrot.slane %v10097_v43, 4  ;;  %v4403_v8 = vsel %vm1578_vm0, %v4402_v44, %v14169_v25  ;;  %v2466_v49 = vrot.slane %v10112_v45, 4  ;;  %v14172_v55 = vld [vmem:[#allocation212_spill] sm:$0xff]  ;;  %v2024_v9 = vrot.slane %v9042_v29, 4  ;;  %v14173_v43 = vld [vmem:[#allocation174_spill] sm:$0xff] }
 0x6c4   :  { %14162 = vst [vmem:[#allocation245_spill] sm:$0xff] %v10121_v2  ;;  %v14170_v2 = vld [vmem:[#allocation216_spill] sm:$0xff]  ;;  %5271 = vrot.lane.b32.xlu1 %v14172_v55, %s13214_s9  ;;  %v4429_v0 = vsel %vm1578_vm0, %v10115_v59, %v4428_v34  ;;  %v4789_v44 = vsel %vm1578_vm0, %v10125_v18, %v4788_v1  ;;  %v2448_v55 = vrot.slane %v10049_v3, 4  ;;  %v10167_v29 = vperm.slane %v4403_v8, %v7860_v32  ;;  %v10169_v34 = vpop.permute.xlu1 %1539  ;;  %s13218_s9 = smov 120  }
 0x6c5   :  { %14164 = vst [vmem:[#allocation307_spill] sm:$0xff] %v10125_v18  ;;  %5275 = vrot.lane.b32.xlu2 %v14170_v2, %s13220_s10  ;;  %v5063_v2 = vsel %vm1578_vm0, %v5062_v27, %v14173_v43  ;;  %v4797_v25 = vperm.slane %v4789_v44, %v7890_v33  ;;  %v2122_v1 = vrot.slane %v9505_v5, 4  ;;  %v4414_v18 = vrot.slane %v10169_v34, 4  ;;  %v14178_v27 = vld [vmem:[#allocation246_spill] sm:$0xff]  ;;  %s13223_s10 = smov 62  }
 0x6c6   :  { %14167 = vst [vmem:[#allocation79_spill] sm:$0xff] %v10135_v61  ;;  %v2487_v61 = vsel %vm1578_vm0, %v2486_v56, %v14171_v22  ;;  %v4816_v56 = vrot.slane %v4773_v6, 4  ;;  %v14175_v22 = vld [vmem:[#allocation127_spill] sm:$0xff]  ;;  %v10182_v3 = vperm.slane %v5063_v2, %v7860_v32  ;;  %v2449_v5 = vsel %vm1578_vm0, %v9999_v60, %v2448_v55 }
 0x6c7   :  { %14168 = vst [vmem:[#allocation225_spill] sm:$0xff] %v10139_v24  ;;  %v14174_v24 = vld [vmem:[#allocation171_spill] sm:$0xff]  ;;  %v2499_v4 = vsel %vm1578_vm0, %v2498_v26, %v14175_v22  ;;  %v4814_v43 = vrot.slane %v4797_v25, 4  ;;  %v10179_v26 = vperm.slane %v2487_v61, %v7860_v32  ;;  %v4437_v8 = vperm.slane %v4429_v0, %v7890_v33  ;;  %v14181_v22 = vld [vmem:[#allocation152_spill] sm:$0xff] }
 0x6c8   :  { %v2510_v17 = vrot.slane %v14174_v24, 4  ;;  %14176 = vst [vmem:[#allocation216_spill] sm:$0xff] %v10167_v29  ;;  %v2467_v24 = vsel %vm1578_vm0, %v2466_v49, %v14178_v27  ;;  %v10176_v44 = vsel %vm1578_vm0, %v4797_v25, %v4816_v56  ;;  %v14182_v49 = vld [vmem:[#allocation181_spill] sm:$0xff]  ;;  %v14184_v25 = vld [vmem:[#allocation44_spill] sm:$0xff]  ;;  %v4452_v60 = vrot.slane %v10167_v29, 4 }
 0x6c9   :  { %14177 = vst [vmem:[#allocation48_spill] sm:$0xff] %v10169_v34  ;;  %5399 = vrot.lane.b32.xlu0 %v2467_v24, %s13218_s9  ;;  %v14183_v59 = vrot.slane %v14182_v49, 4  ;;  %v10197_v34 = vsel %vm1578_vm0, %v4814_v43, %v4773_v6  ;;  %v10200_v24 = vperm.slane %v2499_v4, %v7860_v32  ;;  %v10206_v55 = vpop.permute.xlu0 %5231  ;;  %s13229_s9 = smov 64   ;;  %v2025_v4 = vsel %vm1578_vm0, %v9388_v58, %v2024_v9  ;;  %v14190_v6 = vld [vmem:[#allocation57_spill] sm:$0xff]  ;;  %v14193_v9 = vld [vmem:[#allocation82_spill] sm:$0xff] }
 0x6ca   :  { %14179 = vst [vmem:[#allocation212_spill] sm:$0xff] %v10176_v44  ;;  %v2511_v61 = vsel %vm1578_vm0, %v2510_v17, %v14184_v25  ;;  %v14185_v44 = vld [vmem:[#allocation199_spill] sm:$0xff]  ;;  %v14189_v17 = vld [vmem:[#allocation38_spill] sm:$0xff]  ;;  %v10216_v43 = vperm.slane %v2449_v5, %v7890_v33  ;;  %v5101_v58 = vsel %vm1578_vm0, %v10182_v3, %v5100_v57  ;;  %v4480_v57 = vrot.slane %v4437_v8, 4 }
 0x6cb   :  { %14180 = vst [vmem:[#allocation171_spill] sm:$0xff] %v10182_v3  ;;  %v5075_v56 = vsel %vm1578_vm0, %v14183_v59, %v14181_v22  ;;  %v4415_v2 = vsel %vm1578_vm0, %v4414_v18, %v14185_v44  ;;  %v2123_v59 = vsel %vm1578_vm0, %v2122_v1, %v8789_v31  ;;  %v4604_v25 = vrot.slane %v14189_v17, 4  ;;  %v10235_v22 = vpop.permute.xlu2 %1575  ;;  %v14197_v17 = vld [vmem:[#allocation189_spill] sm:$0xff] }
 0x6cc   :  { %14186 = vst [vmem:[#allocation127_spill] sm:$0xff] %v10197_v34  ;;  %v10204_v0 = vperm.slane %v4415_v2, %v7860_v32  ;;  %v2524_v18 = vrot.slane %v10142_v46, 4  ;;  %v14191_v2 = vrot.slane %v14190_v6, 4  ;;  %v14192_v34 = vld [vmem:[#allocation132_spill] sm:$0xff]  ;;  %v10223_v31 = vperm.slane %v2511_v61, %v7860_v32  ;;  %5283 = vrot.lane.b32.xlu1 %v2025_v4, %s13223_s10  ;;  %s13226_s10 = smov 126  }
 0x6cd   :  { %14188 = vst [vmem:[#allocation44_spill] sm:$0xff] %v10206_v55  ;;  %5287 = vrot.lane.b32.xlu2 %v2123_v59, %s13229_s9  ;;  %v4605_v5 = vsel %vm1578_vm0, %v14193_v9, %v4604_v25  ;;  %v10233_v59 = vperm.slane %v5075_v56, %v7860_v32  ;;  %v2472_v61 = vrot.slane %v10129_v36, 4  ;;  %v2548_v4 = vrot.slane %v10200_v24, 4  ;;  %s13240_s9 = smov 68  }
 0x6ce   :  { %14187 = vst [vmem:[#allocation246_spill] sm:$0xff] %v10204_v0  ;;  %v4617_v49 = vsel %vm1578_vm0, %v14192_v34, %v14191_v2  ;;  %v4453_v1 = vsel %vm1578_vm0, %v10204_v0, %v4452_v60  ;;  %v2525_v2 = vsel %vm1578_vm0, %v10179_v26, %v2524_v18  ;;  %v5086_v60 = vrot.slane %v10235_v22, 4 }
 0x6cf   :  { %14194 = vst [vmem:[#allocation308_spill] sm:$0xff] %v10233_v59  ;;  %v4461_v55 = vperm.slane %v4453_v1, %v7890_v33  ;;  %v10244_v3 = vperm.slane %v4617_v49, %v7860_v32  ;;  %v2473_v56 = vsel %vm1578_vm0, %v10216_v43, %v2472_v61  ;;  %v5109_v25 = vperm.slane %v5101_v58, %v7890_v33 }
 0x6d0   :  { %14195 = vst [vmem:[#allocation309_spill] sm:$0xff] %v10235_v22  ;;  %v5087_v6 = vsel %vm1578_vm0, %v5086_v60, %v14197_v17  ;;  %v2549_v18 = vsel %vm1578_vm0, %v10223_v31, %v2548_v4  ;;  %v10258_v49 = vperm.slane %v4605_v5, %v7860_v32  ;;  %v5124_v61 = vrot.slane %v10233_v59, 4  ;;  %v14201_v17 = vld [vmem:[#allocation156_spill] sm:$0xff]  ;;  %v14204_v5 = vld [vmem:[#allocation202_spill] sm:$0xff] }
 0x6d1   :  { %14196 = vst [vmem:[#allocation310_spill] sm:$0xff] %v10244_v3  ;;  %5411 = vrot.lane.b32.xlu0 %v2473_v56, %s13226_s10  ;;  %v10255_v1 = vsel %vm1578_vm0, %v4461_v55, %v4480_v57  ;;  %v4478_v22 = vrot.slane %v4461_v55, 4  ;;  %v10262_v58 = vperm.slane %v5087_v6, %v7860_v32  ;;  %v10265_v60 = vperm.slane %v2525_v2, %v7890_v33  ;;  %v10268_v9 = vpop.permute.xlu0 %5243  ;;  %s13313_s10 = smov 70   ;;  %v14205_v2 = vld [vmem:[#allocation162_spill] sm:$0xff] }
 0x6d2   :  { %14198 = vst [vmem:[#allocation311_spill] sm:$0xff] %v10255_v1  ;;  %v2560_v56 = vrot.slane %v14201_v17, 4  ;;  %v4662_v55 = vrot.slane %v10244_v3, 4  ;;  %v10277_v57 = vperm.slane %v2549_v18, %v7890_v33  ;;  %v4628_v59 = vrot.slane %v14205_v2, 4  ;;  %v14206_v17 = vld [vmem:[#allocation272_spill] sm:$0xff]  ;;  %v14209_v3 = vld [vmem:[#allocation203_spill] sm:$0xff] }
 0x6d3   :  { %14199 = vst [vmem:[#allocation312_spill] sm:$0xff] %v10258_v49  ;;  %v10271_v4 = vsel %vm1578_vm0, %v4478_v22, %v4437_v8  ;;  %v5125_v6 = vsel %vm1578_vm0, %v10262_v58, %v5124_v61  ;;  %v14207_v8 = vld [vmem:[#allocation204_spill] sm:$0xff]  ;;  %v4640_v34 = vrot.slane %v14209_v3, 4  ;;  %v10291_v61 = vpop.permute.xlu2 %5167 }
 0x6d4   :  { %14200 = vst [vmem:[#allocation313_spill] sm:$0xff] %v10262_v58  ;;  %v2561_v1 = vsel %vm1578_vm0, %v14206_v17, %v2560_v56  ;;  %5295 = vrot.lane.b32.xlu1 %v14207_v8, %s13240_s9  ;;  %v5133_v22 = vperm.slane %v5125_v6, %v7890_v33  ;;  %v4663_v18 = vsel %vm1578_vm0, %v4662_v55, %v10258_v49  ;;  %v2576_v58 = vrot.slane %v10265_v60, 4  ;;  %v14211_v2 = vld [vmem:[#allocation164_spill] sm:$0xff]  ;;  %v14212_v17 = vld [vmem:[#allocation267_spill] sm:$0xff]  ;;  %v10297_v8 = vpop.permute.xlu1 %1551  ;;  %s13245_s9 = smov 74  }
 0x6d5   :  { %14202 = vst [vmem:[#allocation156_spill] sm:$0xff] %v10268_v9  ;;  %5299 = vrot.lane.b32.xlu2 %v14204_v5, %s13313_s10  ;;  %v14208_v9 = vld [vmem:[#allocation251_spill] sm:$0xff]  ;;  %v2624_v56 = vrot.slane %v14211_v2, 4  ;;  %v4629_v29 = vsel %vm1578_vm0, %v14212_v17, %v4628_v59  ;;  %v2134_v6 = vrot.slane %v9646_v62, 4  ;;  %v4641_v55 = vsel %vm1578_vm0, %v10297_v8, %v4640_v34  ;;  %v14216_v59 = vld [vmem:[#allocation66_spill] sm:$0xff] }
 0x6d6   :  { %14203 = vst [vmem:[#allocation314_spill] sm:$0xff] %v10271_v4  ;;  %v5152_v4 = vrot.slane %v5109_v25, 4  ;;  %v2536_v5 = vrot.slane %v14208_v9, 4  ;;  %v2577_v49 = vsel %vm1578_vm0, %v10277_v57, %v2576_v58  ;;  %v10308_v3 = vperm.slane %v2561_v1, %v7890_v33  ;;  %v14219_v58 = vld [vmem:[#allocation90_spill] sm:$0xff] }
 0x6d7   :  { %14210 = vst [vmem:[#allocation202_spill] sm:$0xff] %v10291_v61  ;;  %v5150_v2 = vrot.slane %v5133_v22, 4  ;;  %v14215_v61 = vld [vmem:[#allocation43_spill] sm:$0xff]  ;;  %v4952_v17 = vrot.slane %v14216_v59, 4  ;;  %v10313_v44 = vperm.slane %v4641_v55, %v7860_v32  ;;  %v4669_v62 = vperm.slane %v4663_v18, %v7890_v33 }
 0x6d8   :  { %14213 = vst [vmem:[#allocation272_spill] sm:$0xff] %v10297_v8  ;;  %v10301_v9 = vsel %vm1578_vm0, %v5133_v22, %v5152_v4  ;;  %v2600_v0 = vrot.slane %v14215_v61, 4  ;;  %v14218_v4 = vld [vmem:[#allocation210_spill] sm:$0xff]  ;;  %v2537_v1 = vsel %vm1578_vm0, %v14219_v58, %v2536_v5  ;;  %v14221_v61 = vld [vmem:[#allocation116_spill] sm:$0xff]  ;;  %v10327_v55 = vperm.slane %v4629_v29, %v7860_v32  ;;  %v14227_v58 = vld [vmem:[#allocation211_spill] sm:$0xff] }
 0x6d9   :  { %14214 = vst [vmem:[#allocation204_spill] sm:$0xff] %v10301_v9  ;;  %5423 = vrot.lane.b32.xlu0 %v2577_v49, %s13238_s0  ;;  %v2634_v34 = vrot.slane %v14218_v4, 4  ;;  %v2132_v9 = vrot.slane %v8747_v53, 4  ;;  %v10322_v22 = vsel %vm1578_vm0, %v5150_v2, %v5109_v25  ;;  %v4953_v59 = vsel %vm1578_vm0, %v14221_v61, %v4952_v17  ;;  %v10330_v8 = vpop.permute.xlu0 %5255  ;;  %v14224_v53 = vld [vmem:[#allocation143_spill] sm:$0xff]  ;;  %s13317_s0 = smov 76   ;;  %v14235_v61 = vld [vmem:[#allocation22_spill] sm:$0xff] }
 0x6da   :  { %14217 = vst [vmem:[#allocation251_spill] sm:$0xff] %v10313_v44  ;;  %v4686_v49 = vrot.slane %v10313_v44, 4  ;;  %v2135_v18 = vsel %vm1578_vm0, %v2134_v6, %v14030_v47  ;;  %v2612_v4 = vrot.slane %v14224_v53, 4  ;;  %v2625_v5 = vsel %vm1578_vm0, %v14225_v28, %v2624_v56  ;;  %v14226_v6 = vld [vmem:[#allocation107_spill] sm:$0xff] }
 0x6db   :  { %14220 = vst [vmem:[#allocation164_spill] sm:$0xff] %v10322_v22  ;;  %v2133_v25 = vsel %vm1578_vm0, %v9532_v39, %v2132_v9  ;;  %v2582_v29 = vrot.slane %v10308_v3, 4  ;;  %v4708_v47 = vrot.slane %v4669_v62, 4  ;;  %v2601_v2 = vsel %vm1578_vm0, %v14226_v6, %v2600_v0  ;;  %v10348_v56 = vpop.permute.xlu2 %5179  ;;  %v14229_v39 = vld [vmem:[#allocation209_spill] sm:$0xff]  ;;  %v14232_v6 = vld [vmem:[#allocation40_spill] sm:$0xff] }
 0x6dc   :  { %14222 = vst [vmem:[#allocation43_spill] sm:$0xff] %v10327_v55  ;;  %5307 = vrot.lane.b32.xlu1 %v2133_v25, %s13245_s9  ;;  %v4687_v17 = vsel %vm1578_vm0, %v4686_v49, %v10327_v55  ;;  %v2613_v28 = vsel %vm1578_vm0, %v14227_v58, %v2612_v4  ;;  %v2635_v9 = vsel %vm1578_vm0, %v2634_v34, %v14229_v39  ;;  %v14231_v25 = vld [vmem:[#allocation215_spill] sm:$0xff]  ;;  %v4940_v4 = vrot.slane %v14232_v6, 4  ;;  %v14233_v34 = vld [vmem:[#allocation214_spill] sm:$0xff]  ;;  %s13249_s9 = smov 80  }
 0x6dd   :  { %14223 = vst [vmem:[#allocation210_spill] sm:$0xff] %v10330_v8  ;;  %5311 = vrot.lane.b32.xlu2 %v2135_v18, %s13317_s0  ;;  %v10351_v18 = vperm.slane %v2537_v1, %v7890_v33  ;;  %v10356_v53 = vperm.slane %v4953_v59, %v7860_v32  ;;  %v10359_v49 = vperm.slane %v2625_v5, %v7860_v32  ;;  %v2658_v22 = vrot.slane %v14231_v25, 4  ;;  %v14236_v8 = vld [vmem:[#allocation84_spill] sm:$0xff]  ;;  %v14384_v55 = vld [vmem:[#allocation142_spill] sm:$0xff] }
 0x6de   :  { %14228 = vst [vmem:[#allocation90_spill] sm:$0xff] %v10348_v56  ;;  %v4693_v0 = vperm.slane %v4687_v17, %v7890_v33  ;;  %v2621_v1 = vperm.slane %v2613_v28, %v7860_v32  ;;  %v2588_v25 = vrot.slane %v14235_v61, 4  ;;  %v4941_v17 = vsel %vm1578_vm0, %v14236_v8, %v4940_v4  ;;  %v14434_v56 = vld [vmem:[#allocation257_spill] sm:$0xff] }
 0x6df   :  { %14230 = vst [vmem:[#allocation143_spill] sm:$0xff] %v10356_v53  ;;  %v2583_v58 = vsel %vm1578_vm0, %v2582_v29, %v10351_v18  ;;  %v2659_v59 = vsel %vm1578_vm0, %v2658_v22, %v14233_v34  ;;  %v2609_v6 = vperm.slane %v2601_v2, %v7860_v32  ;;  %v10378_v29 = vperm.slane %v2635_v9, %v7890_v33  ;;  %v14241_v2 = vld [vmem:[#allocation278_spill] sm:$0xff] }
 0x6e0   :  { %v10371_v39 = vsel %vm1578_vm0, %v4693_v0, %v4708_v47  ;;  %v4706_v5 = vrot.slane %v4693_v0, 4  ;;  %v4998_v28 = vrot.slane %v10356_v53, 4  ;;  %v14239_v47 = vld [vmem:[#allocation196_spill] sm:$0xff]  ;;  %v14240_v0 = vld [vmem:[#allocation213_spill] sm:$0xff]  ;;  %v10393_v9 = vperm.slane %v2659_v59, %v7890_v33  ;;  %v10406_v59 = vpop.permute.xlu1 %1569 }
 0x6e1   :  { %5435 = vrot.lane.b32.xlu0 %v2583_v58, %s13243_s11  ;;  %14234 = vst [vmem:[#allocation205_spill] sm:$0xff] %v10371_v39  ;;  %v2670_v58 = vrot.slane %v10359_v49, 4  ;;  %v10382_v44 = vpop.permute.xlu0 %5267  ;;  %v2589_v61 = vsel %vm1578_vm0, %v14239_v47, %v2588_v25  ;;  %v4964_v34 = vrot.slane %v14240_v0, 4  ;;  %s13321_s11 = smov 82   ;;  %v10396_v4 = vperm.slane %v4941_v17, %v7860_v32  ;;  %v14244_v25 = vld [vmem:[#allocation206_spill] sm:$0xff]  ;;  %v14247_v0 = vld [vmem:[#allocation259_spill] sm:$0xff] }
 0x6e2   :  { %14237 = vst [vmem:[#allocation107_spill] sm:$0xff] %v10382_v44  ;;  %v10385_v22 = vsel %vm1578_vm0, %v4706_v5, %v4669_v62  ;;  %v14243_v62 = vld [vmem:[#allocation133_spill] sm:$0xff]  ;;  %v2646_v5 = vrot.slane %v2609_v6, 4  ;;  %v4976_v47 = vrot.slane %v14244_v25, 4  ;;  %v2684_v53 = vrot.slane %v10378_v29, 4 }
 0x6e3   :  { %14238 = vst [vmem:[#allocation211_spill] sm:$0xff] %v10385_v22  ;;  %v2671_v39 = vsel %vm1578_vm0, %v2670_v58, %v2621_v1  ;;  %v10402_v22 = vpop.permute.xlu2 %5191  ;;  %v2242_v17 = vrot.slane %v9783_v38, 4  ;;  %v4999_v58 = vsel %vm1578_vm0, %v4998_v28, %v10396_v4  ;;  %v4965_v8 = vsel %vm1578_vm0, %v14247_v0, %v4964_v34  ;;  %v14266_v0 = vld [vmem:[#allocation135_spill] sm:$0xff] }
 0x6e4   :  { %14242 = vst [vmem:[#allocation209_spill] sm:$0xff] %v10396_v4  ;;  %5319 = vrot.lane.b32.xlu1 %v14243_v62, %s13249_s9  ;;  %v4977_v62 = vsel %vm1578_vm0, %v10406_v59, %v4976_v47  ;;  %v2685_v25 = vsel %vm1578_vm0, %v10393_v9, %v2684_v53  ;;  %v10418_v44 = vperm.slane %v2671_v39, %v7890_v33  ;;  %v2240_v38 = vrot.slane %v9650_v15, 4  ;;  %s13327_s9 = smov 88  }
 0x6e5   :  { %5323 = vrot.lane.b32.xlu2 %v14241_v2, %s13321_s11  ;;  %14245 = vst [vmem:[#allocation215_spill] sm:$0xff] %v10402_v22  ;;  %v2597_v2 = vperm.slane %v2589_v61, %v7860_v32  ;;  %v10421_v61 = vperm.slane %v4977_v62, %v7860_v32  ;;  %v10427_v34 = vperm.slane %v4965_v8, %v7860_v32  ;;  %v2672_v8 = vrot.slane %v2621_v1, 4 }
 0x6e6   :  { %14246 = vst [vmem:[#allocation214_spill] sm:$0xff] %v10406_v59  ;;  %v2243_v53 = vsel %vm1578_vm0, %v2242_v17, %v9698_v16  ;;  %v5005_v39 = vperm.slane %v4999_v58, %v7890_v33  ;;  %v2241_v15 = vsel %vm1578_vm0, %v9678_v48, %v2240_v38 }
 0x6e7   :  { %14248 = vst [vmem:[#allocation22_spill] sm:$0xff] %v10421_v61  ;;  %v2647_v28 = vsel %vm1578_vm0, %v2646_v5, %v2597_v2  ;;  %v5022_v47 = vrot.slane %v10421_v61, 4  ;;  %v2690_v5 = vrot.slane %v10418_v44, 4 }
 0x6e8   :  { %14249 = vst [vmem:[#allocation196_spill] sm:$0xff] %v10427_v34  ;;  %v10445_v16 = vperm.slane %v2647_v28, %v7890_v33  ;;  %v5044_v38 = vrot.slane %v5005_v39, 4 }
 0x6e9   :  { %5447 = vrot.lane.b32.xlu0 %v2685_v25, %s13251_s12  ;;  %v10430_v4 = vpop.permute.xlu0 %5279  ;;  %v2648_v25 = vrot.slane %v2597_v2, 4  ;;  %s13254_s12 = smov 86   ;;  %v5023_v62 = vsel %vm1578_vm0, %v5022_v47, %v10427_v34  ;;  %v2673_v2 = vsel %vm1578_vm0, %v10359_v49, %v2672_v8  ;;  %v14257_v8 = vld [vmem:[#allocation52_spill] sm:$0xff] }
 0x6ea   :  { %14250 = vst [vmem:[#allocation278_spill] sm:$0xff] %v10430_v4  ;;  %v10448_v58 = vpop.permute.xlu1 %5163  ;;  %v5029_v48 = vperm.slane %v5023_v62, %v7890_v33  ;;  %v2691_v1 = vsel %vm1578_vm0, %v2690_v5, %v10445_v16  ;;  %v14256_v5 = vld [vmem:[#allocation98_spill] sm:$0xff]  ;;  %v10471_v49 = vperm.slane %v2673_v2, %v7890_v33 }
 0x6eb   :  { %v10442_v61 = vpop.permute.xlu2 %5203  ;;  %v2649_v17 = vsel %vm1578_vm0, %v2609_v6, %v2648_v25  ;;  %14252 = vst [vmem:[#allocation315_spill] sm:$0xff] %v10448_v58  ;;  %v2772_v6 = vrot.slane %v9371_v20, 4  ;;  %v14258_v20 = vld [vmem:[#allocation96_spill] sm:$0xff]  ;;  %v14437_v58 = vld [vmem:[#allocation191_spill] sm:$0xff] }
 0x6ec   :  { %5331 = vrot.lane.b32.xlu1 %v2241_v15, %s13254_s12  ;;  %14251 = vst [vmem:[#allocation133_spill] sm:$0xff] %v10442_v61  ;;  %v10457_v47 = vsel %vm1578_vm0, %v5029_v48, %v5044_v38  ;;  %v5042_v28 = vrot.slane %v5029_v48, 4  ;;  %s13329_s12 = smov 94   ;;  %v14414_v61 = vld [vmem:[#allocation31_spill] sm:$0xff] }
 0x6ed   :  { %5335 = vrot.lane.b32.xlu2 %v2243_v53, %s13327_s9  ;;  %14253 = vst [vmem:[#allocation316_spill] sm:$0xff] %v10457_v47  ;;  %v10460_v53 = vperm.slane %v2649_v17, %v7890_v33  ;;  %v2773_v62 = vsel %vm1578_vm0, %v9354_v37, %v2772_v6  ;;  %v2846_v17 = vrot.slane %v14258_v20, 4  ;;  %v14262_v37 = vld [vmem:[#allocation166_spill] sm:$0xff]  ;;  %v2348_v20 = vrot.slane %v9885_v7, 4 }
 0x6ee   :  { %v10466_v25 = vsel %vm1578_vm0, %v5042_v28, %v5005_v39  ;;  %v10487_v28 = vperm.slane %v2773_v62, %v7890_v33 }
 0x6ef   :  { %14255 = vst [vmem:[#allocation318_spill] sm:$0xff] %v10466_v25  ;;  %v2696_v39 = vrot.slane %v10460_v53, 4  ;;  %v2847_v6 = vsel %vm1578_vm0, %v2846_v17, %v14262_v37  ;;  %v14263_v25 = vld [vmem:[#allocation285_spill] sm:$0xff]  ;;  %v2349_v7 = vsel %vm1578_vm0, %v9820_v30, %v2348_v20  ;;  %v14271_v30 = vld [vmem:[#allocation128_spill] sm:$0xff] }
 0x6f0   :  { %v2758_v47 = vrot.slane %v14263_v25, 4  ;;  %v2798_v25 = vrot.slane %v10487_v28, 4  ;;  %v2853_v17 = vperm.slane %v2847_v6, %v7860_v32 }
 0x6f1   :  { %5459 = vrot.lane.b32.xlu0 %v2691_v1, %s13256_s13  ;;  %v10463_v15 = vpop.permute.xlu0 %5291  ;;  %s13262_s13 = smov 92   ;;  %v2350_v1 = vrot.slane %v9939_v23, 4  ;;  %v2697_v2 = vsel %vm1578_vm0, %v10471_v49, %v2696_v39  ;;  %v14265_v39 = vld [vmem:[#allocation280_spill] sm:$0xff] }
 0x6f2   :  { %14254 = vst [vmem:[#allocation317_spill] sm:$0xff] %v10463_v15  ;;  %v10481_v38 = vpop.permute.xlu1 %5175  ;;  %v2834_v15 = vrot.slane %v14266_v0, 4 }
 0x6f3   :  { %v10478_v48 = vpop.permute.xlu2 %5215  ;;  %14260 = vst [vmem:[#allocation52_spill] sm:$0xff] %v10481_v38  ;;  %v2351_v23 = vsel %vm1578_vm0, %v2350_v1, %v9900_v10 }
 0x6f4   :  { %5343 = vrot.lane.b32.xlu1 %v14257_v8, %s13262_s13  ;;  %14259 = vst [vmem:[#allocation98_spill] sm:$0xff] %v10478_v48  ;;  %s13264_s13 = smov 98   ;;  %v14407_v48 = vld [vmem:[#allocation49_spill] sm:$0xff] }
 0x6f5   :  { %5347 = vrot.lane.b32.xlu2 %v14256_v5, %s13329_s12  ;;  %v14261_v5 = vld [vmem:[#allocation252_spill] sm:$0xff] }
 0x6f6   :  { %v2748_v8 = vrot.slane %v14261_v5, 4  ;;  %v14267_v5 = vld [vmem:[#allocation109_spill] sm:$0xff] }
 0x6f7   :  { %v2822_v59 = vrot.slane %v14267_v5, 4  ;;  %v14273_v5 = vld [vmem:[#allocation238_spill] sm:$0xff] }
 0x6f8   :  { %v2749_v62 = vsel %vm1578_vm0, %v14265_v39, %v2748_v8  ;;  %v14270_v8 = vld [vmem:[#allocation249_spill] sm:$0xff]  ;;  %v2882_v39 = vrot.slane %v2853_v17, 4 }
 0x6f9   :  { %5471 = vrot.lane.b32.xlu0 %v2697_v2, %s13260_s14  ;;  %v10495_v34 = vpop.permute.xlu0 %5303  ;;  %s13335_s14 = smov 100   ;;  %v2782_v2 = vrot.slane %v9339_v52, 4  ;;  %v10513_v0 = vperm.slane %v2749_v62, %v7890_v33  ;;  %v2759_v37 = vsel %vm1578_vm0, %v2758_v47, %v14270_v8  ;;  %v2823_v20 = vsel %vm1578_vm0, %v2822_v59, %v14271_v30  ;;  %v14278_v30 = vld [vmem:[#allocation23_spill] sm:$0xff] }
 0x6fa   :  { %14264 = vst [vmem:[#allocation96_spill] sm:$0xff] %v10495_v34  ;;  %v10530_v4 = vperm.slane %v2759_v37, %v7890_v33  ;;  %v2829_v47 = vperm.slane %v2823_v20, %v7860_v32 }
 0x6fb   :  { %v10510_v10 = vpop.permute.xlu2 %5227  ;;  %v10515_v1 = vpop.permute.xlu1 %5187  ;;  %v2799_v52 = vsel %vm1578_vm0, %v2798_v25, %v10513_v0  ;;  %v2783_v62 = vsel %vm1578_vm0, %v2782_v2, %v14273_v5  ;;  %v14277_v2 = vld [vmem:[#allocation46_spill] sm:$0xff] }
 0x6fc   :  { %5355 = vrot.lane.b32.xlu1 %v2349_v7, %s13264_s13  ;;  %14268 = vst [vmem:[#allocation252_spill] sm:$0xff] %v10510_v10  ;;  %v14274_v7 = vld [vmem:[#allocation77_spill] sm:$0xff]  ;;  %s13270_s13 = smov 106   ;;  %v10539_v25 = vperm.slane %v2783_v62, %v7890_v33 }
 0x6fd   :  { %5359 = vrot.lane.b32.xlu2 %v2351_v23, %s13335_s14  ;;  %14269 = vst [vmem:[#allocation166_spill] sm:$0xff] %v10515_v1  ;;  %v14272_v23 = vld [vmem:[#allocation130_spill] sm:$0xff]  ;;  %v2810_v34 = vrot.slane %v14274_v7, 4  ;;  %v2458_v7 = vrot.slane %v10074_v14, 4 }
 0x6fe   :  { %v2835_v6 = vsel %vm1578_vm0, %v2834_v15, %v14272_v23  ;;  %v14276_v15 = vld [vmem:[#allocation192_spill] sm:$0xff] }
 0x6ff   :  { %v2841_v59 = vperm.slane %v2835_v6, %v7860_v32  ;;  %v2811_v20 = vsel %vm1578_vm0, %v2810_v34, %v14278_v30  ;;  %v2804_v6 = vrot.slane %v10530_v4, 4  ;;  %v2360_v34 = vrot.slane %v9984_v35, 4 }
 0x700   :  { %v2459_v30 = vsel %vm1578_vm0, %v2458_v7, %v14158_v11 }
 0x701   :  { %5483 = vrot.lane.b32.xlu0 %v2799_v52, %s13266_s15  ;;  %v10534_v8 = vpop.permute.xlu0 %5315  ;;  %s13268_s15 = smov 104   ;;  %v2883_v37 = vsel %vm1578_vm0, %v2882_v39, %v2841_v59  ;;  %v2858_v52 = vrot.slane %v2829_v47, 4  ;;  %v2805_v62 = vsel %vm1578_vm0, %v10539_v25, %v2804_v6  ;;  %v2817_v39 = vperm.slane %v2811_v20, %v7860_v32 }
 0x702   :  { %14275 = vst [vmem:[#allocation285_spill] sm:$0xff] %v10534_v8  ;;  %v2361_v14 = vsel %vm1578_vm0, %v9969_v42, %v2360_v34  ;;  %v2884_v11 = vrot.slane %v2841_v59, 4  ;;  %v14284_v34 = vld [vmem:[#allocation277_spill] sm:$0xff]  ;;  %v14286_v59 = vld [vmem:[#allocation167_spill] sm:$0xff] }
 0x703   :  { %v10546_v23 = vpop.permute.xlu2 %5239  ;;  %v10549_v5 = vpop.permute.xlu1 %5199  ;;  %v2859_v8 = vsel %vm1578_vm0, %v2858_v52, %v2817_v39  ;;  %v2860_v20 = vrot.slane %v2817_v39, 4 }
 0x704   :  { %5367 = vrot.lane.b32.xlu1 %v14277_v2, %s13268_s15  ;;  %14279 = vst [vmem:[#allocation280_spill] sm:$0xff] %v10546_v23  ;;  %s13339_s15 = smov 112   ;;  %v10573_v6 = vperm.slane %v2859_v8, %v7890_v33  ;;  %v14287_v8 = vld [vmem:[#allocation14_spill] sm:$0xff]  ;;  %v14381_v23 = vld [vmem:[#allocation17_spill] sm:$0xff] }
 0x705   :  { %5371 = vrot.lane.b32.xlu2 %v14276_v15, %s13270_s13  ;;  %14280 = vst [vmem:[#allocation135_spill] sm:$0xff] %v10549_v5  ;;  %v10555_v15 = vperm.slane %v2883_v37, %v7890_v33  ;;  %s13272_s13 = smov 110   ;;  %v2861_v52 = vsel %vm1578_vm0, %v2829_v47, %v2860_v20  ;;  %v14415_v5 = vld [vmem:[#allocation111_spill] sm:$0xff] }
 0x706   :  { %v10583_v39 = vperm.slane %v2861_v52, %v7890_v33  ;;  %v2522_v52 = vrot.slane %v10179_v26, 4 }
 0x707   :  { %v2906_v37 = vrot.slane %v10555_v15, 4 }
 0x709   :  { %5495 = vrot.lane.b32.xlu0 %v2805_v62, %s13341_s16  ;;  %v10560_v2 = vpop.permute.xlu0 %5327  ;;  %v2907_v42 = vsel %vm1578_vm0, %v2906_v37, %v10573_v6  ;;  %v2885_v62 = vsel %vm1578_vm0, %v2853_v17, %v2884_v11  ;;  %v14288_v17 = vld [vmem:[#allocation248_spill] sm:$0xff]  ;;  %v2912_v11 = vrot.slane %v10583_v39, 4 }
 0x70a   :  { %14281 = vst [vmem:[#allocation109_spill] sm:$0xff] %v10560_v2  ;;  %v10591_v47 = vperm.slane %v2885_v62, %v7890_v33  ;;  %v2960_v62 = vrot.slane %v13987_v12, 4  ;;  %v2468_v2 = vrot.slane %v14178_v27, 4  ;;  %v14294_v27 = vld [vmem:[#allocation39_spill] sm:$0xff] }
 0x70b   :  { %v10570_v35 = vpop.permute.xlu2 %5251 }
 0x70c   :  { %5379 = vrot.lane.b32.xlu1 %v2361_v14, %s13272_s13  ;;  %14282 = vst [vmem:[#allocation249_spill] sm:$0xff] %v10570_v35  ;;  %v10575_v7 = vpop.permute.xlu1 %5211  ;;  %s13337_s13 = smov 118   ;;  %v2961_v26 = vsel %vm1578_vm0, %v9457_v50, %v2960_v62  ;;  %v2970_v62 = vrot.slane %v14294_v27, 4 }
 0x70d   :  { %5383 = vrot.lane.b32.xlu2 %v2459_v30, %s13339_s15  ;;  %14283 = vst [vmem:[#allocation128_spill] sm:$0xff] %v10575_v7  ;;  %v2896_v30 = vrot.slane %v14284_v34, 4  ;;  %v2470_v34 = vrot.slane %v10216_v43, 4  ;;  %s14452_s15 = smov 104  }
 0x70f   :  { %v2897_v37 = vsel %vm1578_vm0, %v14287_v8, %v2896_v30  ;;  %v14291_v8 = vld [vmem:[#allocation243_spill] sm:$0xff]  ;;  %v2471_v12 = vsel %vm1578_vm0, %v2470_v34, %v10129_v36  ;;  %v2994_v36 = vrot.slane %v9492_v13, 4  ;;  %v2574_v13 = vrot.slane %v10277_v57, 4 }
 0x710   :  { %v10608_v30 = vperm.slane %v2897_v37, %v7890_v33 }
 0x711   :  { %5507 = vrot.lane.b32.xlu0 %v2907_v42, %s13274_s17  ;;  %v10586_v14 = vpop.permute.xlu0 %5339  ;;  %s13278_s17 = smov 116  }
 0x712   :  { %14285 = vst [vmem:[#allocation130_spill] sm:$0xff] %v10586_v14  ;;  %v2546_v14 = vrot.slane %v10223_v31, 4  ;;  %v2469_v31 = vsel %vm1578_vm0, %v10112_v45, %v2468_v2  ;;  %v2918_v50 = vrot.slane %v10608_v30, 4  ;;  %v14296_v45 = vld [vmem:[#allocation145_spill] sm:$0xff] }
 0x713   :  { %v2948_v2 = vrot.slane %v14296_v45, 4 }
 0x714   :  { %5391 = vrot.lane.b32.xlu1 %v14288_v17, %s13278_s17  ;;  %v10597_v20 = vpop.permute.xlu2 %5263  ;;  %v10601_v42 = vpop.permute.xlu1 %5223  ;;  %v2872_v17 = vrot.slane %v14291_v8, 4  ;;  %v2523_v8 = vsel %vm1578_vm0, %v2522_v52, %v10142_v46  ;;  %s13325_s17 = smov 122   ;;  %v2547_v46 = vsel %vm1578_vm0, %v2546_v14, %v10200_v24  ;;  %v14295_v52 = vld [vmem:[#allocation45_spill] sm:$0xff]  ;;  %v14300_v24 = vld [vmem:[#allocation223_spill] sm:$0xff] }
 0x715   :  { %5395 = vrot.lane.b32.xlu2 %v14286_v59, %s13337_s13  ;;  %14289 = vst [vmem:[#allocation238_spill] sm:$0xff] %v10597_v20  ;;  %v2913_v59 = vsel %vm1578_vm0, %v10591_v47, %v2912_v11  ;;  %v14293_v11 = vld [vmem:[#allocation273_spill] sm:$0xff]  ;;  %v2936_v34 = vrot.slane %v14295_v52, 4  ;;  %v2949_v14 = vsel %vm1578_vm0, %v14300_v24, %v2948_v2  ;;  %v10654_v45 = vperm.slane %v2547_v46, %v7890_v33  ;;  %s14450_s13 = smov 106  }
 0x716   :  { %14290 = vst [vmem:[#allocation77_spill] sm:$0xff] %v10601_v42  ;;  %v2873_v37 = vsel %vm1578_vm0, %v14293_v11, %v2872_v17  ;;  %v10642_v11 = vperm.slane %v2523_v8, %v7890_v33  ;;  %v2995_v8 = vsel %vm1578_vm0, %v2994_v36, %v9455_v21  ;;  %v2575_v24 = vsel %vm1578_vm0, %v2574_v13, %v10265_v60  ;;  %v14324_v20 = vld [vmem:[#allocation169_spill] sm:$0xff]  ;;  %v14385_v42 = vld [vmem:[#allocation136_spill] sm:$0xff] }
 0x717   :  { %v10677_v36 = vperm.slane %v2995_v8, %v7890_v33 }
 0x719   :  { %5519 = vrot.lane.b32.xlu0 %v2913_v59, %s13276_s18  ;;  %v10616_v43 = vpop.permute.xlu0 %5351  ;;  %s13333_s18 = smov 124   ;;  %v2969_v59 = vperm.slane %v2961_v26, %v7860_v32 }
 0x71a   :  { %14292 = vst [vmem:[#allocation192_spill] sm:$0xff] %v10616_v43  ;;  %v14301_v43 = vld [vmem:[#allocation27_spill] sm:$0xff] }
 0x71b   :  { %v2924_v57 = vrot.slane %v14301_v43, 4 }
 0x71c   :  { %5403 = vrot.lane.b32.xlu1 %v2469_v31, %s13325_s17  ;;  %v10644_v26 = vpop.permute.xlu1 %5235  ;;  %v14299_v31 = vld [vmem:[#allocation68_spill] sm:$0xff]  ;;  %s14425_s17 = smov 24  }
 0x71d   :  { %5407 = vrot.lane.b32.xlu2 %v2471_v12, %s13333_s18  ;;  %v10639_v12 = vperm.slane %v2873_v37, %v7890_v33  ;;  %14298 = vst [vmem:[#allocation23_spill] sm:$0xff] %v10644_v26  ;;  %v2971_v27 = vsel %vm1578_vm0, %v2970_v62, %v14299_v31  ;;  %v3006_v37 = vrot.slane %v2969_v59, 4  ;;  %v2572_v31 = vrot.slane %v10642_v11, 4  ;;  %s14443_s18 = smov 98  }
 0x71e   :  { %v10664_v2 = vperm.slane %v2971_v27, %v7890_v33  ;;  %v3406_v26 = vrot.slane %v14381_v23, 4 }
 0x71f   :  { %v10636_v17 = vpop.permute.xlu2 %5275  ;;  %v2919_v52 = vsel %vm1578_vm0, %v2918_v50, %v10639_v12  ;;  %v2957_v50 = vperm.slane %v2949_v14, %v7860_v32  ;;  %v2573_v43 = vsel %vm1578_vm0, %v10654_v45, %v2572_v31 }
 0x720   :  { %14297 = vst [vmem:[#allocation46_spill] sm:$0xff] %v10636_v17  ;;  %v14302_v17 = vld [vmem:[#allocation99_spill] sm:$0xff]  ;;  %v3020_v60 = vrot.slane %v10664_v2, 4 }
 0x721   :  { %5531 = vrot.lane.b32.xlu0 %v2919_v52, %s13323_s19  ;;  %v2937_v62 = vsel %vm1578_vm0, %v14302_v17, %v2936_v34  ;;  %v10667_v46 = vpop.permute.xlu0 %5363  ;;  %v14304_v52 = vld [vmem:[#allocation70_spill] sm:$0xff]  ;;  %v3007_v17 = vsel %vm1578_vm0, %v3006_v37, %v2957_v50  ;;  %s14424_s19 = smov 86  }
 0x722   :  { %14303 = vst [vmem:[#allocation277_spill] sm:$0xff] %v10667_v46  ;;  %v2925_v21 = vsel %vm1578_vm0, %v14304_v52, %v2924_v57  ;;  %v2945_v34 = vperm.slane %v2937_v62, %v7860_v32  ;;  %v3021_v57 = vsel %vm1578_vm0, %v10677_v36, %v3020_v60  ;;  %v10691_v8 = vperm.slane %v3007_v17, %v7890_v33  ;;  %v14308_v52 = vld [vmem:[#allocation173_spill] sm:$0xff] }
 0x723   :  { %v2933_v13 = vperm.slane %v2925_v21, %v7860_v32  ;;  %v3008_v46 = vrot.slane %v2957_v50, 4 }
 0x724   :  { %5415 = vrot.lane.b32.xlu1 %v2573_v43, %s13315_s21  ;;  %v2982_v31 = vrot.slane %v2945_v34, 4  ;;  %v3026_v21 = vrot.slane %v10691_v8, 4  ;;  %v14309_v43 = vld [vmem:[#allocation276_spill] sm:$0xff]  ;;  %s14406_s21 = smov 74  }
 0x725   :  { %5419 = vrot.lane.b32.xlu2 %v2575_v24, %s13319_s20  ;;  %v10686_v14 = vpop.permute.xlu1 %5247  ;;  %v2984_v62 = vrot.slane %v2933_v13, 4  ;;  %s14418_s20 = smov 80  }
 0x726   :  { %14306 = vst [vmem:[#allocation14_spill] sm:$0xff] %v10686_v14  ;;  %v2983_v37 = vsel %vm1578_vm0, %v2982_v31, %v2933_v13 }
 0x727   :  { %v10682_v27 = vpop.permute.xlu2 %5287  ;;  %v10705_v17 = vperm.slane %v2983_v37, %v7890_v33  ;;  %v2985_v13 = vsel %vm1578_vm0, %v2945_v34, %v2984_v62  ;;  %v14312_v37 = vld [vmem:[#allocation286_spill] sm:$0xff] }
 0x728   :  { %14305 = vst [vmem:[#allocation167_spill] sm:$0xff] %v10682_v27  ;;  %v3108_v50 = vrot.slane %v14312_v37, 4  ;;  %v14319_v37 = vld [vmem:[#allocation227_spill] sm:$0xff] }
 0x729   :  { %5543 = vrot.lane.b32.xlu0 %v3021_v57, %s13311_s22  ;;  %v10694_v24 = vpop.permute.xlu0 %5375  ;;  %v3027_v31 = vsel %vm1578_vm0, %v3026_v21, %v10705_v17  ;;  %s14396_s22 = smov 68  }
 0x72a   :  { %14307 = vst [vmem:[#allocation248_spill] sm:$0xff] %v10694_v24  ;;  %v2682_v24 = vrot.slane %v10393_v9, 4 }
 0x72c   :  { %5427 = vrot.lane.b32.xlu1 %v14309_v43, %s13307_s24  ;;  %v2584_v43 = vrot.slane %v10351_v18, 4  ;;  %v2683_v9 = vsel %vm1578_vm0, %v2682_v24, %v10378_v29  ;;  %v14314_v18 = vld [vmem:[#allocation229_spill] sm:$0xff]  ;;  %v14317_v29 = vld [vmem:[#allocation218_spill] sm:$0xff]  ;;  %s14389_s24 = smov 62  }
 0x72d   :  { %5431 = vrot.lane.b32.xlu2 %v14308_v52, %s13309_s23  ;;  %v10707_v57 = vpop.permute.xlu1 %5259  ;;  %v3009_v52 = vsel %vm1578_vm0, %v2969_v59, %v3008_v46  ;;  %v3109_v59 = vsel %vm1578_vm0, %v14314_v18, %v3108_v50  ;;  %v3182_v24 = vrot.slane %v14317_v29, 4  ;;  %v3170_v50 = vrot.slane %v14319_v37, 4  ;;  %v14323_v29 = vld [vmem:[#allocation112_spill] sm:$0xff]  ;;  %v14327_v37 = vld [vmem:[#allocation219_spill] sm:$0xff]  ;;  %s14392_s23 = smov 126  }
 0x72e   :  { %14311 = vst [vmem:[#allocation273_spill] sm:$0xff] %v10707_v57  ;;  %v2585_v34 = vsel %vm1578_vm0, %v10308_v3, %v2584_v43  ;;  %v10728_v62 = vperm.slane %v3009_v52, %v7890_v33  ;;  %v14318_v52 = vld [vmem:[#allocation264_spill] sm:$0xff] }
 0x72f   :  { %v10702_v60 = vpop.permute.xlu2 %5299  ;;  %v3084_v43 = vrot.slane %v14318_v52, 4 }
 0x730   :  { %14310 = vst [vmem:[#allocation243_spill] sm:$0xff] %v10702_v60  ;;  %v10717_v60 = vperm.slane %v2985_v13, %v7890_v33 }
 0x731   :  { %5555 = vrot.lane.b32.xlu0 %v3027_v31, %s13305_s25  ;;  %v10742_v31 = vperm.slane %v3109_v59, %v7890_v33  ;;  %v14325_v59 = vld [vmem:[#allocation217_spill] sm:$0xff]  ;;  %s14388_s25 = smov 64  }
 0x732   :  { %v3032_v21 = vrot.slane %v10717_v60, 4 }
 0x733   :  { %v10720_v27 = vpop.permute.xlu0 %5387  ;;  %v3134_v52 = vrot.slane %v10742_v31, 4 }
 0x734   :  { %14313 = vst [vmem:[#allocation39_spill] sm:$0xff] %v10720_v27  ;;  %5439 = vrot.lane.b32.xlu1 %v2585_v34, %s13300_s27  ;;  %v3033_v3 = vsel %vm1578_vm0, %v10728_v62, %v3032_v21  ;;  %v14322_v27 = vld [vmem:[#allocation279_spill] sm:$0xff]  ;;  %v3183_v21 = vsel %vm1578_vm0, %v3182_v24, %v14324_v20  ;;  %s14378_s27 = smov 56  }
 0x735   :  { %5443 = vrot.lane.b32.xlu2 %v2683_v9, %s13303_s26  ;;  %v14320_v9 = vld [vmem:[#allocation50_spill] sm:$0xff]  ;;  %v3189_v20 = vperm.slane %v3183_v21, %v7860_v32  ;;  %s14386_s26 = smov 120  }
 0x736   :  { %v10736_v13 = vpop.permute.xlu1 %5271  ;;  %v3094_v34 = vrot.slane %v14320_v9, 4  ;;  %v14328_v9 = vld [vmem:[#allocation148_spill] sm:$0xff] }
 0x737   :  { %v10733_v46 = vpop.permute.xlu2 %5311  ;;  %14316 = vst [vmem:[#allocation145_spill] sm:$0xff] %v10736_v13  ;;  %v3158_v13 = vrot.slane %v14323_v29, 4  ;;  %v14331_v29 = vld [vmem:[#allocation261_spill] sm:$0xff] }
 0x738   :  { %14315 = vst [vmem:[#allocation45_spill] sm:$0xff] %v10733_v46  ;;  %v3085_v46 = vsel %vm1578_vm0, %v14322_v27, %v3084_v43  ;;  %v2694_v43 = vrot.slane %v10471_v49, 4  ;;  %v2692_v49 = vrot.slane %v10445_v16, 4 }
 0x739   :  { %5567 = vrot.lane.b32.xlu0 %v3033_v3, %s13298_s28  ;;  %v14326_v3 = vld [vmem:[#allocation15_spill] sm:$0xff]  ;;  %v10766_v27 = vperm.slane %v3085_v46, %v7890_v33  ;;  %v14333_v46 = vld [vmem:[#allocation176_spill] sm:$0xff]  ;;  %s14376_s28 = smov 58  }
 0x73a   :  { %v3118_v57 = vrot.slane %v14326_v3, 4  ;;  %v14332_v3 = vld [vmem:[#allocation47_spill] sm:$0xff] }
 0x73b   :  { %v10748_v18 = vpop.permute.xlu0 %5399 }
 0x73c   :  { %14321 = vst [vmem:[#allocation68_spill] sm:$0xff] %v10748_v18  ;;  %5451 = vrot.lane.b32.xlu1 %v14327_v37, %s13294_s30  ;;  %v3171_v18 = vsel %vm1578_vm0, %v3170_v50, %v14328_v9  ;;  %v3159_v37 = vsel %vm1578_vm0, %v3158_v13, %v14332_v3  ;;  %v3135_v50 = vsel %vm1578_vm0, %v3134_v52, %v10766_v27  ;;  %v3218_v13 = vrot.slane %v3189_v20, 4  ;;  %s14368_s30 = smov 50  }
 0x73d   :  { %5455 = vrot.lane.b32.xlu2 %v14325_v59, %s13296_s29  ;;  %v3095_v59 = vsel %vm1578_vm0, %v3094_v34, %v14331_v29  ;;  %v3177_v9 = vperm.slane %v3171_v18, %v7860_v32  ;;  %v3119_v21 = vsel %vm1578_vm0, %v3118_v57, %v14333_v46  ;;  %v3165_v34 = vperm.slane %v3159_v37, %v7860_v32  ;;  %v14336_v57 = vld [vmem:[#allocation24_spill] sm:$0xff]  ;;  %s14372_s29 = smov 114  }
 0x73e   :  { %v10769_v24 = vpop.permute.xlu1 %5283  ;;  %v10785_v14 = vperm.slane %v3095_v59, %v7890_v33  ;;  %v2695_v18 = vsel %vm1578_vm0, %v2694_v43, %v10460_v53  ;;  %v2693_v52 = vsel %vm1578_vm0, %v10418_v44, %v2692_v49  ;;  %v14339_v49 = vld [vmem:[#allocation137_spill] sm:$0xff] }
 0x73f   :  { %v10763_v35 = vpop.permute.xlu2 %5323  ;;  %14330 = vst [vmem:[#allocation27_spill] sm:$0xff] %v10769_v24  ;;  %v3219_v16 = vsel %vm1578_vm0, %v3218_v13, %v3177_v9  ;;  %v3194_v53 = vrot.slane %v3165_v34, 4 }
 0x740   :  { %14329 = vst [vmem:[#allocation223_spill] sm:$0xff] %v10763_v35  ;;  %v14334_v35 = vld [vmem:[#allocation208_spill] sm:$0xff]  ;;  %v3140_v37 = vrot.slane %v10785_v14, 4 }
 0x741   :  { %5579 = vrot.lane.b32.xlu0 %v3135_v50, %s13292_s2  ;;  %v3146_v24 = vrot.slane %v14334_v35, 4  ;;  %v10796_v35 = vperm.slane %v3119_v21, %v7890_v33  ;;  %v10810_v50 = vperm.slane %v3219_v16, %v7890_v33  ;;  %s14367_s2 = smov 52  }
 0x743   :  { %v10788_v29 = vpop.permute.xlu0 %5411  ;;  %v3147_v59 = vsel %vm1578_vm0, %v3146_v24, %v14336_v57  ;;  %v3141_v44 = vsel %vm1578_vm0, %v10796_v35, %v3140_v37  ;;  %v3242_v13 = vrot.slane %v10810_v50, 4  ;;  %v14340_v57 = vld [vmem:[#allocation120_spill] sm:$0xff] }
 0x744   :  { %14335 = vst [vmem:[#allocation99_spill] sm:$0xff] %v10788_v29  ;;  %5463 = vrot.lane.b32.xlu1 %v2693_v52, %s13288_s4  ;;  %v3153_v46 = vperm.slane %v3147_v59, %v7860_v32  ;;  %v3220_v52 = vrot.slane %v3177_v9, 4  ;;  %v14343_v29 = vld [vmem:[#allocation228_spill] sm:$0xff]  ;;  %s14356_s4 = smov 44  }
 0x745   :  { %5467 = vrot.lane.b32.xlu2 %v2695_v18, %s13290_s3  ;;  %s14364_s3 = smov 108  }
 0x746   :  { %v10805_v43 = vpop.permute.xlu1 %5295  ;;  %v3195_v24 = vsel %vm1578_vm0, %v3194_v53, %v3153_v46  ;;  %v3196_v18 = vrot.slane %v3153_v46, 4  ;;  %v3232_v46 = vrot.slane %v14343_v29, 4  ;;  %v3221_v9 = vsel %vm1578_vm0, %v3189_v20, %v3220_v52  ;;  %v14346_v20 = vld [vmem:[#allocation226_spill] sm:$0xff] }
 0x747   :  { %v10802_v3 = vpop.permute.xlu2 %5335  ;;  %14338 = vst [vmem:[#allocation173_spill] sm:$0xff] %v10805_v43  ;;  %v10825_v59 = vperm.slane %v3195_v24, %v7890_v33  ;;  %v10848_v29 = vperm.slane %v3221_v9, %v7890_v33  ;;  %v3306_v9 = vrot.slane %v9521_v40, 4  ;;  %v14358_v40 = vld [vmem:[#allocation54_spill] sm:$0xff] }
 0x748   :  { %14337 = vst [vmem:[#allocation70_spill] sm:$0xff] %v10802_v3  ;;  %v3197_v53 = vsel %vm1578_vm0, %v3165_v34, %v3196_v18 }
 0x749   :  { %5591 = vrot.lane.b32.xlu0 %v3141_v44, %s13286_s5  ;;  %v2802_v44 = vrot.slane %v10539_v25, 4  ;;  %v10838_v24 = vperm.slane %v3197_v53, %v7890_v33  ;;  %v14349_v53 = vld [vmem:[#allocation224_spill] sm:$0xff]  ;;  %s14353_s5 = smov 46   ;;  %v3244_v38 = vrot.slane %v10825_v59, 4 }
 0x74b   :  { %v10814_v21 = vpop.permute.xlu0 %5423  ;;  %v2803_v25 = vsel %vm1578_vm0, %v2802_v44, %v10530_v4  ;;  %v3248_v18 = vrot.slane %v10838_v24, 4  ;;  %v3296_v4 = vrot.slane %v14018_v41, 4 }
 0x74c   :  { %5475 = vrot.lane.b32.xlu1 %v14340_v57, %s13280_s7  ;;  %v2800_v57 = vrot.slane %v10513_v0, 4  ;;  %s14344_s7 = smov 40   ;;  %v3233_v0 = vsel %vm1578_vm0, %v14346_v20, %v3232_v46 }
 0x74d   :  { %5479 = vrot.lane.b32.xlu2 %v14339_v49, %s13284_s6  ;;  %v3243_v49 = vsel %vm1578_vm0, %v3242_v13, %v10825_v59  ;;  %v3249_v44 = vsel %vm1578_vm0, %v10848_v29, %v3248_v18  ;;  %s14350_s6 = smov 102   ;;  %v3297_v46 = vsel %vm1578_vm0, %v9603_v63, %v3296_v4  ;;  %v14354_v18 = vld [vmem:[#allocation18_spill] sm:$0xff]  ;;  %v3272_v4 = vrot.slane %v14358_v40, 4 }
 0x74e   :  { %v10827_v37 = vpop.permute.xlu1 %5307  ;;  %v2801_v34 = vsel %vm1578_vm0, %v10487_v28, %v2800_v57  ;;  %v10862_v28 = vperm.slane %v3233_v0, %v7890_v33  ;;  %v14357_v63 = vld [vmem:[#allocation158_spill] sm:$0xff] }
 0x74f   :  { %v10822_v16 = vpop.permute.xlu2 %5347  ;;  %14342 = vst [vmem:[#allocation286_spill] sm:$0xff] %v10827_v37  ;;  %v14363_v37 = vld [vmem:[#allocation236_spill] sm:$0xff]  ;;  %v14442_v59 = vld [vmem:[#allocation182_spill] sm:$0xff] }
 0x750   :  { %14341 = vst [vmem:[#allocation276_spill] sm:$0xff] %v10822_v16  ;;  %v3254_v0 = vrot.slane %v10862_v28, 4 }
 0x751   :  { %5603 = vrot.lane.b32.xlu0 %v3243_v49, %s13282_s8  ;;  %s14345_s8 = smov 38   ;;  %v3208_v49 = vrot.slane %v14349_v53, 4  ;;  %v3305_v53 = vperm.slane %v3297_v46, %v7860_v32  ;;  %v14362_v46 = vld [vmem:[#allocation101_spill] sm:$0xff] }
 0x753   :  { %v10840_v16 = vpop.permute.xlu0 %5435 }
 0x754   :  { %5487 = vrot.lane.b32.xlu1 %v2801_v34, %s14345_s8  ;;  %v14352_v34 = vld [vmem:[#allocation177_spill] sm:$0xff] }
 0x755   :  { %5491 = vrot.lane.b32.xlu2 %v2803_v25, %s14344_s7  ;;  %v14351_v25 = vld [vmem:[#allocation221_spill] sm:$0xff]  ;;  %v3284_v20 = vrot.slane %v14352_v34, 4  ;;  %v2910_v34 = vrot.slane %v10591_v47, 4  ;;  %v2908_v47 = vrot.slane %v10573_v6, 4 }
 0x756   :  { %v10856_v52 = vpop.permute.xlu1 %5319  ;;  %v3209_v41 = vsel %vm1578_vm0, %v14351_v25, %v3208_v49 }
 0x757   :  { %v10853_v13 = vpop.permute.xlu2 %5359  ;;  %14348 = vst [vmem:[#allocation218_spill] sm:$0xff] %v10856_v52  ;;  %v10885_v49 = vperm.slane %v3209_v41, %v7890_v33  ;;  %v14365_v41 = vld [vmem:[#allocation293_spill] sm:$0xff] }
 0x758   :  { %14347 = vst [vmem:[#allocation229_spill] sm:$0xff] %v10853_v13 }
 0x759   :  { %5615 = vrot.lane.b32.xlu0 %v3249_v44, %s14350_s6  ;;  %v14355_v44 = vld [vmem:[#allocation160_spill] sm:$0xff]  ;;  %v3255_v40 = vsel %vm1578_vm0, %v3254_v0, %v10885_v49 }
 0x75a   :  { %v3330_v13 = vrot.slane %v14355_v44, 4  ;;  %v3273_v44 = vsel %vm1578_vm0, %v14362_v46, %v3272_v4  ;;  %v14369_v46 = vld [vmem:[#allocation72_spill] sm:$0xff] }
 0x75b   :  { %v10869_v57 = vpop.permute.xlu0 %5447 }
 0x75c   :  { %5499 = vrot.lane.b32.xlu1 %v14357_v63, %s14356_s4  ;;  %v3285_v63 = vsel %vm1578_vm0, %v14363_v37, %v3284_v20  ;;  %v2911_v37 = vsel %vm1578_vm0, %v2910_v34, %v10583_v39  ;;  %v14366_v20 = vld [vmem:[#allocation29_spill] sm:$0xff] }
 0x75d   :  { %5503 = vrot.lane.b32.xlu2 %v14354_v18, %s14353_s5  ;;  %v14361_v18 = vld [vmem:[#allocation86_spill] sm:$0xff]  ;;  %v3293_v4 = vperm.slane %v3285_v63, %v7860_v32  ;;  %v3260_v0 = vrot.slane %v14366_v20, 4 }
 0x75e   :  { %v10887_v25 = vpop.permute.xlu1 %5331  ;;  %v3307_v52 = vsel %vm1578_vm0, %v3306_v9, %v14361_v18  ;;  %v3281_v9 = vperm.slane %v3273_v44, %v7860_v32 }
 0x75f   :  { %v10882_v3 = vpop.permute.xlu2 %5371  ;;  %14360 = vst [vmem:[#allocation227_spill] sm:$0xff] %v10887_v25  ;;  %v3331_v25 = vsel %vm1578_vm0, %v3330_v13, %v14365_v41  ;;  %v10903_v43 = vperm.slane %v3307_v52, %v7890_v33  ;;  %v2909_v13 = vsel %vm1578_vm0, %v10555_v15, %v2908_v47  ;;  %v3261_v44 = vsel %vm1578_vm0, %v14369_v46, %v3260_v0  ;;  %v14374_v0 = vld [vmem:[#allocation149_spill] sm:$0xff]  ;;  %v14375_v46 = vld [vmem:[#allocation115_spill] sm:$0xff] }
 0x760   :  { %14359 = vst [vmem:[#allocation264_spill] sm:$0xff] %v10882_v3  ;;  %v3342_v3 = vrot.slane %v3305_v53, 4  ;;  %v10916_v6 = vperm.slane %v3331_v25, %v7890_v33  ;;  %v3318_v34 = vrot.slane %v3281_v9, 4  ;;  %v3269_v41 = vperm.slane %v3261_v44, %v7860_v32  ;;  %v14379_v44 = vld [vmem:[#allocation258_spill] sm:$0xff] }
 0x761   :  { %5627 = vrot.lane.b32.xlu0 %v3255_v40, %s14364_s3  ;;  %v3356_v39 = vrot.slane %v10903_v43, 4 }
 0x762   :  { %v3343_v52 = vsel %vm1578_vm0, %v3342_v3, %v3293_v4  ;;  %v14373_v3 = vld [vmem:[#allocation81_spill] sm:$0xff]  ;;  %v3319_v20 = vsel %vm1578_vm0, %v3318_v34, %v3269_v41 }
 0x763   :  { %v10907_v18 = vpop.permute.xlu0 %5459  ;;  %v3357_v15 = vsel %vm1578_vm0, %v10916_v6, %v3356_v39  ;;  %v10930_v25 = vperm.slane %v3343_v52, %v7890_v33  ;;  %v3370_v47 = vrot.slane %v14373_v3, 4  ;;  %v3320_v39 = vrot.slane %v3269_v41, 4 }
 0x764   :  { %5511 = vrot.lane.b32.xlu1 %v2909_v13, %s14368_s30  ;;  %v3394_v13 = vrot.slane %v14374_v0, 4  ;;  %v10951_v34 = vperm.slane %v3319_v20, %v7890_v33  ;;  %v3018_v41 = vrot.slane %v10677_v36, 4  ;;  %v2920_v36 = vrot.slane %v10639_v12, 4 }
 0x765   :  { %5515 = vrot.lane.b32.xlu2 %v2911_v37, %s14367_s2  ;;  %v3362_v52 = vrot.slane %v10930_v25, 4  ;;  %v3321_v0 = vsel %vm1578_vm0, %v3281_v9, %v3320_v39 }
 0x766   :  { %v10925_v40 = vpop.permute.xlu1 %5343 }
 0x767   :  { %v10922_v63 = vpop.permute.xlu2 %5383  ;;  %14371 = vst [vmem:[#allocation279_spill] sm:$0xff] %v10925_v40  ;;  %v14377_v40 = vld [vmem:[#allocation282_spill] sm:$0xff]  ;;  %v3363_v23 = vsel %vm1578_vm0, %v3362_v52, %v10951_v34  ;;  %v3019_v52 = vsel %vm1578_vm0, %v3018_v41, %v10664_v2 }
 0x768   :  { %14370 = vst [vmem:[#allocation50_spill] sm:$0xff] %v10922_v63  ;;  %v3382_v63 = vrot.slane %v14375_v46, 4  ;;  %v3344_v46 = vrot.slane %v3293_v4, 4  ;;  %v14387_v4 = vld [vmem:[#allocation172_spill] sm:$0xff] }
 0x769   :  { %5639 = vrot.lane.b32.xlu0 %v3357_v15, %s14372_s29  ;;  %v14380_v15 = vld [vmem:[#allocation25_spill] sm:$0xff]  ;;  %v3407_v20 = vsel %vm1578_vm0, %v3406_v26, %v14387_v4 }
 0x76a   :  { %v3371_v3 = vsel %vm1578_vm0, %v3370_v47, %v14380_v15  ;;  %v3395_v47 = vsel %vm1578_vm0, %v3394_v13, %v14385_v42  ;;  %v3345_v9 = vsel %vm1578_vm0, %v3305_v53, %v3344_v46  ;;  %v2921_v53 = vsel %vm1578_vm0, %v10608_v30, %v2920_v36 }
 0x76b   :  { %v10935_v37 = vpop.permute.xlu0 %5471  ;;  %v10964_v15 = vperm.slane %v3371_v3, %v7860_v32  ;;  %v10988_v12 = vperm.slane %v3345_v9, %v7890_v33  ;;  %v10992_v39 = vperm.slane %v3407_v20, %v7860_v32  ;;  %v14394_v20 = vld [vmem:[#allocation21_spill] sm:$0xff] }
 0x76c   :  { %5523 = vrot.lane.b32.xlu1 %v14379_v44, %s14378_s27  ;;  %v3383_v44 = vsel %vm1578_vm0, %v3382_v63, %v14384_v55  ;;  %v10972_v55 = vperm.slane %v3321_v0, %v7890_v33  ;;  %v10978_v63 = vperm.slane %v3395_v47, %v7860_v32 }
 0x76d   :  { %5527 = vrot.lane.b32.xlu2 %v14377_v40, %s14376_s28  ;;  %v10975_v42 = vperm.slane %v3383_v44, %v7860_v32  ;;  %v3420_v26 = vrot.slane %v10964_v15, 4 }
 0x76e   :  { %v10954_v40 = vpop.permute.xlu1 %5355  ;;  %v3368_v0 = vrot.slane %v10972_v55, 4  ;;  %v3444_v2 = vrot.slane %v10978_v63, 4 }
 0x76f   :  { %v10948_v10 = vpop.permute.xlu2 %5395  ;;  %14383 = vst [vmem:[#allocation169_spill] sm:$0xff] %v10954_v40  ;;  %v3421_v30 = vsel %vm1578_vm0, %v10975_v42, %v3420_v26  ;;  %v14397_v26 = vld [vmem:[#allocation290_spill] sm:$0xff] }
 0x770   :  { %14382 = vst [vmem:[#allocation112_spill] sm:$0xff] %v10948_v10  ;;  %v3369_v41 = vsel %vm1578_vm0, %v10988_v12, %v3368_v0  ;;  %v3445_v44 = vsel %vm1578_vm0, %v10992_v39, %v3444_v2  ;;  %v11009_v47 = vperm.slane %v3421_v30, %v7890_v33 }
 0x771   :  { %5651 = vrot.lane.b32.xlu0 %v3363_v23, %s14386_s26  ;;  %v14393_v23 = vld [vmem:[#allocation56_spill] sm:$0xff]  ;;  %v11017_v36 = vperm.slane %v3445_v44, %v7890_v33 }
 0x772   :  { %v3456_v9 = vrot.slane %v14393_v23, 4  ;;  %v3472_v2 = vrot.slane %v11009_v47, 4  ;;  %v14399_v23 = vld [vmem:[#allocation188_spill] sm:$0xff] }
 0x773   :  { %v10980_v13 = vpop.permute.xlu0 %5483 }
 0x774   :  { %5535 = vrot.lane.b32.xlu1 %v2921_v53, %s14389_s24  ;;  %v3473_v44 = vsel %vm1578_vm0, %v11017_v36, %v3472_v2 }
 0x775   :  { %5539 = vrot.lane.b32.xlu2 %v3019_v52, %s14388_s25  ;;  %v14395_v52 = vld [vmem:[#allocation104_spill] sm:$0xff] }
 0x776   :  { %v10999_v46 = vpop.permute.xlu1 %5367  ;;  %v3457_v53 = vsel %vm1578_vm0, %v14395_v52, %v3456_v9  ;;  %v14400_v9 = vld [vmem:[#allocation254_spill] sm:$0xff] }
 0x777   :  { %v10995_v3 = vpop.permute.xlu2 %5407  ;;  %14391 = vst [vmem:[#allocation15_spill] sm:$0xff] %v10999_v46  ;;  %v3432_v52 = vrot.slane %v14400_v9, 4  ;;  %v3028_v46 = vrot.slane %v10705_v17, 4  ;;  %v14404_v9 = vld [vmem:[#allocation61_spill] sm:$0xff]  ;;  %v14405_v17 = vld [vmem:[#allocation298_spill] sm:$0xff] }
 0x778   :  { %14390 = vst [vmem:[#allocation217_spill] sm:$0xff] %v10995_v3  ;;  %v3520_v3 = vrot.slane %v14399_v23, 4  ;;  %v14403_v23 = vld [vmem:[#allocation283_spill] sm:$0xff]  ;;  %v3530_v40 = vrot.slane %v14404_v9, 4  ;;  %v14411_v9 = vld [vmem:[#allocation237_spill] sm:$0xff] }
 0x779   :  { %5663 = vrot.lane.b32.xlu0 %v3369_v41, %s14392_s23  ;;  %v3030_v41 = vrot.slane %v10728_v62, 4  ;;  %v3433_v2 = vsel %vm1578_vm0, %v14403_v23, %v3432_v52 }
 0x77b   :  { %v11012_v4 = vpop.permute.xlu0 %5495  ;;  %v3031_v62 = vsel %vm1578_vm0, %v3030_v41, %v10717_v60  ;;  %v3496_v60 = vrot.slane %v14407_v48, 4  ;;  %v14408_v41 = vld [vmem:[#allocation151_spill] sm:$0xff]  ;;  %v14413_v48 = vld [vmem:[#allocation186_spill] sm:$0xff] }
 0x77c   :  { %5547 = vrot.lane.b32.xlu1 %v14397_v26, %s14396_s22  ;;  %v14402_v26 = vld [vmem:[#allocation124_spill] sm:$0xff]  ;;  %v3508_v7 = vrot.slane %v14408_v41, 4 }
 0x77d   :  { %5551 = vrot.lane.b32.xlu2 %v14394_v20, %s13313_s10  ;;  %v11033_v20 = vperm.slane %v3457_v53, %v7890_v33  ;;  %s14401_s10 = smov 6   ;;  %v3521_v10 = vsel %vm1578_vm0, %v14402_v26, %v3520_v3  ;;  %v3029_v53 = vsel %vm1578_vm0, %v10691_v8, %v3028_v46  ;;  %v3554_v26 = vrot.slane %v14405_v17, 4 }
 0x77e   :  { %v11026_v30 = vpop.permute.xlu1 %5379  ;;  %v3529_v3 = vperm.slane %v3521_v10, %v7860_v32  ;;  %v11059_v8 = vperm.slane %v3433_v2, %v7890_v33  ;;  %v3509_v10 = vsel %vm1578_vm0, %v14411_v9, %v3508_v7  ;;  %v3484_v2 = vrot.slane %v14414_v61, 4  ;;  %v14417_v9 = vld [vmem:[#allocation288_spill] sm:$0xff] }
 0x77f   :  { %v11023_v0 = vpop.permute.xlu2 %5419  ;;  %14398 = vst [vmem:[#allocation219_spill] sm:$0xff] %v11026_v30  ;;  %v3555_v41 = vsel %vm1578_vm0, %v3554_v26, %v14413_v48 }
 0x780   :  { %v3566_v17 = vrot.slane %v3529_v3, 4  ;;  %v11086_v26 = vperm.slane %v3555_v41, %v7890_v33 }
 0x781   :  { %5675 = vrot.lane.b32.xlu0 %v3473_v44, %s14401_s10  ;;  %v3478_v44 = vrot.slane %v11033_v20, 4 }
 0x783   :  { %v11040_v30 = vpop.permute.xlu0 %5507 }
 0x784   :  { %5559 = vrot.lane.b32.xlu1 %v3029_v53, %s14406_s21  ;;  %v3479_v53 = vsel %vm1578_vm0, %v3478_v44, %v11059_v8 }
 0x785   :  { %5563 = vrot.lane.b32.xlu2 %v3031_v62, %s13317_s0  ;;  %v14410_v62 = vld [vmem:[#allocation83_spill] sm:$0xff]  ;;  %s14412_s0 = smov 12  }
 0x786   :  { %v11061_v46 = vpop.permute.xlu1 %5391  ;;  %v3531_v23 = vsel %vm1578_vm0, %v3530_v40, %v14410_v62  ;;  %v3517_v40 = vperm.slane %v3509_v10, %v7860_v32  ;;  %v14416_v62 = vld [vmem:[#allocation74_spill] sm:$0xff] }
 0x787   :  { %v11056_v52 = vpop.permute.xlu2 %5431  ;;  %14409 = vst [vmem:[#allocation148_spill] sm:$0xff] %v11061_v46  ;;  %v3497_v46 = vsel %vm1578_vm0, %v14415_v5, %v3496_v60  ;;  %v11076_v22 = vperm.slane %v3531_v23, %v7890_v33  ;;  %v3485_v44 = vsel %vm1578_vm0, %v14416_v62, %v3484_v2  ;;  %v14419_v5 = vld [vmem:[#allocation289_spill] sm:$0xff]  ;;  %v3138_v2 = vrot.slane %v10796_v35, 4 }
 0x788   :  { %v3505_v61 = vperm.slane %v3497_v46, %v7860_v32  ;;  %v3567_v60 = vsel %vm1578_vm0, %v3566_v17, %v3517_v40  ;;  %v3136_v17 = vrot.slane %v10766_v27, 4 }
 0x789   :  { %5687 = vrot.lane.b32.xlu0 %v3479_v53, %s14412_s0  ;;  %v3580_v10 = vrot.slane %v11076_v22, 4  ;;  %v3493_v53 = vperm.slane %v3485_v44, %v7860_v32  ;;  %v11102_v46 = vperm.slane %v3567_v60, %v7890_v33  ;;  %v3139_v44 = vsel %vm1578_vm0, %v3138_v2, %v10785_v14 }
 0x78a   :  { %v3542_v62 = vrot.slane %v3505_v61, 4  ;;  %v3137_v35 = vsel %vm1578_vm0, %v10742_v31, %v3136_v17 }
 0x78b   :  { %v11079_v7 = vpop.permute.xlu0 %5519  ;;  %v3581_v41 = vsel %vm1578_vm0, %v11086_v26, %v3580_v10  ;;  %14421 = vst [vmem:[#allocation47_spill] sm:$0xff] %v11102_v46  ;;  %v3586_v60 = vrot.slane %v11102_v46, 4 }
 0x78c   :  { %5571 = vrot.lane.b32.xlu1 %v14419_v5, %s14418_s20 }
 0x78d   :  { %5575 = vrot.lane.b32.xlu2 %v14417_v9, %s13321_s11  ;;  %s14422_s11 = smov 18   ;;  %v3544_v9 = vrot.slane %v3493_v53, 4 }
 0x78e   :  { %v11096_v48 = vpop.permute.xlu1 %5403 }
 0x78f   :  { %v11092_v23 = vpop.permute.xlu2 %5443  ;;  %14420 = vst [vmem:[#allocation261_spill] sm:$0xff] %v11096_v48  ;;  %v3543_v48 = vsel %vm1578_vm0, %v3542_v62, %v3493_v53  ;;  %v3545_v14 = vsel %vm1578_vm0, %v3505_v61, %v3544_v9  ;;  %v14427_v62 = vld [vmem:[#allocation291_spill] sm:$0xff] }
 0x790   :  { %v11119_v27 = vperm.slane %v3543_v48, %v7890_v33  ;;  %v11127_v2 = vperm.slane %v3545_v14, %v7890_v33  ;;  %v3668_v17 = vrot.slane %v14427_v62, 4  ;;  %v14429_v48 = vld [vmem:[#allocation179_spill] sm:$0xff]  ;;  %v3246_v14 = vrot.slane %v10848_v29, 4 }
 0x791   :  { %5699 = vrot.lane.b32.xlu0 %v3581_v41, %s14422_s11  ;;  %v3568_v41 = vrot.slane %v3517_v40, 4  ;;  %v14431_v61 = vld [vmem:[#allocation287_spill] sm:$0xff] }
 0x792   :  { %v3587_v53 = vsel %vm1578_vm0, %v3586_v60, %v11119_v27  ;;  %14426 = vst [vmem:[#allocation208_spill] sm:$0xff] %v11127_v2  ;;  %v14432_v9 = vld [vmem:[#allocation255_spill] sm:$0xff]  ;;  %v3592_v60 = vrot.slane %v11127_v2, 4  ;;  %v3247_v29 = vsel %vm1578_vm0, %v3246_v14, %v10838_v24  ;;  %v14444_v24 = vld [vmem:[#allocation154_spill] sm:$0xff] }
 0x793   :  { %v11106_v5 = vpop.permute.xlu0 %5531  ;;  %v3569_v31 = vsel %vm1578_vm0, %v3529_v3, %v3568_v41  ;;  %v14441_v2 = vld [vmem:[#allocation175_spill] sm:$0xff] }
 0x794   :  { %14423 = vst [vmem:[#allocation176_spill] sm:$0xff] %v11106_v5  ;;  %5583 = vrot.lane.b32.xlu1 %v3137_v35, %s14424_s19  ;;  %v11135_v40 = vperm.slane %v3569_v31, %v7890_v33  ;;  %v3669_v35 = vsel %vm1578_vm0, %v14432_v9, %v3668_v17  ;;  %v14436_v17 = vld [vmem:[#allocation32_spill] sm:$0xff] }
 0x795   :  { %5587 = vrot.lane.b32.xlu2 %v3139_v44, %s13327_s9  ;;  %s14430_s9 = smov 92   ;;  %v11149_v31 = vperm.slane %v3669_v35, %v7890_v33  ;;  %v3730_v9 = vrot.slane %v14436_v17, 4  ;;  %v14440_v35 = vld [vmem:[#allocation117_spill] sm:$0xff]  ;;  %v3678_v17 = vrot.slane %v14442_v59, 4  ;;  %v14449_v59 = vld [vmem:[#allocation222_spill] sm:$0xff] }
 0x796   :  { %v5416_v1 = vpop.permute.xlu1 %5415  ;;  %v3718_v46 = vrot.slane %v14440_v35, 4 }
 0x797   :  { %v11116_v10 = vpop.permute.xlu2 %5455  ;;  %v3731_v14 = vsel %vm1578_vm0, %v3730_v9, %v14444_v24  ;;  %v3706_v24 = vrot.slane %v14449_v59, 4 }
 0x799   :  { %5711 = vrot.lane.b32.xlu0 %v3587_v53, %s14425_s17  ;;  %v14433_v53 = vld [vmem:[#allocation231_spill] sm:$0xff] }
 0x79a   :  { %v3742_v62 = vrot.slane %v14433_v53, 4  ;;  %v14439_v53 = vld [vmem:[#allocation197_spill] sm:$0xff] }
 0x79b   :  { %v11130_v44 = vpop.permute.xlu0 %5543 }
 0x79c   :  { %14428 = vst [vmem:[#allocation24_spill] sm:$0xff] %v11130_v44  ;;  %5595 = vrot.lane.b32.xlu1 %v14431_v61, %s14430_s9  ;;  %v3644_v61 = vrot.slane %v14434_v56, 4  ;;  %v3654_v44 = vrot.slane %v14437_v58, 4  ;;  %v3743_v56 = vsel %vm1578_vm0, %v3742_v62, %v14441_v2  ;;  %v3694_v58 = vrot.slane %v11149_v31, 4  ;;  %v14445_v62 = vld [vmem:[#allocation100_spill] sm:$0xff] }
 0x79d   :  { %5599 = vrot.lane.b32.xlu2 %v14429_v48, %s13329_s12  ;;  %v3593_v48 = vsel %vm1578_vm0, %v11135_v40, %v3592_v60  ;;  %s14435_s12 = smov 30  }
 0x79e   :  { %v5428_v41 = vpop.permute.xlu1 %5427  ;;  %v3645_v60 = vsel %vm1578_vm0, %v14439_v53, %v3644_v61  ;;  %v14446_v53 = vld [vmem:[#allocation51_spill] sm:$0xff] }
 0x79f   :  { %v11141_v3 = vpop.permute.xlu2 %5467  ;;  %v11177_v2 = vperm.slane %v3645_v60, %v7890_v33  ;;  %v3719_v35 = vsel %vm1578_vm0, %v3718_v46, %v14446_v53  ;;  %v14448_v60 = vld [vmem:[#allocation198_spill] sm:$0xff] }
 0x7a0   :  { %v14454_v53 = vld [vmem:[#allocation26_spill] sm:$0xff] }
 0x7a1   :  { %5723 = vrot.lane.b32.xlu0 %v3593_v48, %s14435_s12  ;;  %v3245_v48 = vsel %vm1578_vm0, %v10810_v50, %v3244_v38  ;;  %v3749_v38 = vperm.slane %v3743_v56, %v7860_v32  ;;  %v3679_v56 = vsel %vm1578_vm0, %v3678_v17, %v14448_v60 }
 0x7a3   :  { %v11156_v5 = vpop.permute.xlu0 %5555 }
 0x7a4   :  { %14438 = vst [vmem:[#allocation137_spill] sm:$0xff] %v11156_v5  ;;  %v2570_v5 = vrot.slane %v10654_v45, 4  ;;  %5607 = vrot.lane.b32.xlu1 %v3245_v48, %s14443_s18  ;;  %v3695_v45 = vsel %vm1578_vm0, %v3694_v58, %v11177_v2  ;;  %v3737_v48 = vperm.slane %v3731_v14, %v7860_v32  ;;  %v3725_v58 = vperm.slane %v3719_v35, %v7860_v32 }
 0x7a5   :  { %5611 = vrot.lane.b32.xlu2 %v3247_v29, %s13335_s14  ;;  %v3655_v29 = vsel %vm1578_vm0, %v3654_v44, %v14445_v62  ;;  %s14447_s14 = smov 36   ;;  %v3778_v62 = vrot.slane %v3749_v38, 4  ;;  %v3707_v35 = vsel %vm1578_vm0, %v3706_v24, %v14454_v53 }
 0x7a6   :  { %v5440_v50 = vpop.permute.xlu1 %5439  ;;  %v2571_v9 = vsel %vm1578_vm0, %v2570_v5, %v10642_v11  ;;  %v11195_v46 = vperm.slane %v3655_v29, %v7890_v33  ;;  %v14451_v11 = vld [vmem:[#allocation230_spill] sm:$0xff]  ;;  %v11203_v5 = vperm.slane %v3679_v56, %v7890_v33  ;;  %v3754_v60 = vrot.slane %v3725_v58, 4 }
 0x7a7   :  { %v11174_v61 = vpop.permute.xlu2 %5479  ;;  %v6296_v44 = vsel %vm6170_vm1, %v2571_v9, %v5416_v1  ;;  %v14453_v1 = vld [vmem:[#allocation232_spill] sm:$0xff]  ;;  %v3779_v29 = vsel %vm1578_vm0, %v3778_v62, %v3737_v48  ;;  %v3354_v56 = vrot.slane %v10916_v6, 4  ;;  %v3713_v24 = vperm.slane %v3707_v35, %v7860_v32 }
 0x7a8   :  { %v6297_v17 = vsel %vm6172_vm2, %v6296_v44, %v11023_v0  ;;  %v3700_v9 = vrot.slane %v11195_v46, 4  ;;  %v11221_v62 = vperm.slane %v3779_v29, %v7890_v33 }
 0x7a9   :  { %5735 = vrot.lane.b32.xlu0 %v3695_v45, %s14447_s14  ;;  %v6298_v0 = vsel %vm6174_vm3, %v6297_v17, %v10814_v21  ;;  %v3355_v21 = vsel %vm1578_vm0, %v3354_v56, %v10903_v43  ;;  %v3755_v17 = vsel %vm1578_vm0, %v3754_v60, %v3713_v24  ;;  %v3756_v35 = vrot.slane %v3713_v24, 4 }
 0x7aa   :  { %v3701_v44 = vsel %vm1578_vm0, %v11203_v5, %v3700_v9  ;;  %v11242_v43 = vperm.slane %v3755_v17, %v7890_v33 }
 0x7ab   :  { %v11198_v14 = vpop.permute.xlu0 %5567 }
 0x7ac   :  { %5619 = vrot.lane.b32.xlu1 %v14453_v1, %s14452_s15  ;;  %v3256_v1 = vrot.slane %v10885_v49, 4  ;;  %v3780_v49 = vrot.slane %v3737_v48, 4  ;;  %s14461_s15 = smov 116  }
 0x7ad   :  { %5623 = vrot.lane.b32.xlu2 %v14451_v11, %s14450_s13  ;;  %v6299_v11 = vsel %vm6176_vm4, %v6298_v0, %v5428_v41  ;;  %v3802_v41 = vrot.slane %v11221_v62, 4  ;;  %v14457_v0 = vld [vmem:[#allocation34_spill] sm:$0xff] }
 0x7ae   :  { %v5452_v59 = vpop.permute.xlu1 %5451  ;;  %v6300_v29 = vsel %vm6178_vm5, %v6299_v11, %v11056_v52  ;;  %v3257_v53 = vsel %vm1578_vm0, %v10862_v28, %v3256_v1  ;;  %v3757_v28 = vsel %vm1578_vm0, %v3725_v58, %v3756_v35  ;;  %v3781_v24 = vsel %vm1578_vm0, %v3749_v38, %v3780_v49  ;;  %v14463_v38 = vld [vmem:[#allocation41_spill] sm:$0xff] }
 0x7af   :  { %v11212_v45 = vpop.permute.xlu2 %5491  ;;  %v6301_v52 = vsel %vm6180_vm6, %v6300_v29, %v10840_v16  ;;  %v3803_v48 = vsel %vm1578_vm0, %v3802_v41, %v11242_v43  ;;  %v11254_v11 = vperm.slane %v3757_v28, %v7890_v33  ;;  %v11263_v58 = vperm.slane %v3781_v24, %v7890_v33  ;;  %v14465_v24 = vld [vmem:[#allocation28_spill] sm:$0xff] }
 0x7b0   :  { %v6302_v56 = vsel %vm6182_vm7, %v6301_v52, %v5440_v50  ;;  %v14460_v50 = vld [vmem:[#allocation193_spill] sm:$0xff]  ;;  %v3418_v41 = vrot.slane %v10975_v42, 4  ;;  %v3366_v52 = vrot.slane %v10988_v12, 4  ;;  %v3856_v28 = vrot.slane %v14105_v51, 4  ;;  %v14467_v42 = vld [vmem:[#allocation187_spill] sm:$0xff] }
 0x7b1   :  { %5747 = vrot.lane.b32.xlu0 %v3701_v44, %s13341_s16  ;;  %s14456_s16 = smov 110   ;;  %v3792_v44 = vrot.slane %v14457_v0, 4  ;;  %v6303_v16 = vsel %vm13394_vm8, %v6302_v56, %v11092_v23  ;;  %v3442_v56 = vrot.slane %v10992_v39, 4  ;;  %v14464_v0 = vld [vmem:[#allocation58_spill] sm:$0xff]  ;;  %v14468_v12 = vld [vmem:[#allocation147_spill] sm:$0xff] }
 0x7b2   :  { %v6304_v29 = vsel %vm13391_vm9, %v6303_v16, %v10869_v57  ;;  %v3768_v16 = vrot.slane %v14465_v24, 4  ;;  %v3857_v51 = vsel %vm1578_vm0, %v14468_v12, %v3856_v28  ;;  %v3470_v12 = vrot.slane %v11017_v36, 4  ;;  %v14478_v36 = vld [vmem:[#allocation275_spill] sm:$0xff] }
 0x7b3   :  { %v11227_v6 = vpop.permute.xlu0 %5579  ;;  %v3793_v17 = vsel %vm1578_vm0, %v14463_v38, %v3792_v44  ;;  %v6305_v35 = vsel %vm13393_vm10, %v6304_v29, %v5452_v59  ;;  %v3832_v44 = vrot.slane %v14464_v0, 4  ;;  %v3844_v59 = vrot.slane %v14467_v42, 4 }
 0x7b4   :  { %5631 = vrot.lane.b32.xlu1 %v3257_v53, %s14456_s16  ;;  %s14458_s16 = smov 48   ;;  %v3808_v53 = vrot.slane %v11254_v11, 4  ;;  %v11282_v57 = vperm.slane %v3793_v17, %v7890_v33  ;;  %v6306_v39 = vsel %vm13392_vm11, %v6305_v35, %v11116_v10  ;;  %v3367_v29 = vsel %vm1578_vm0, %v3366_v52, %v10972_v55  ;;  %v14472_v55 = vld [vmem:[#allocation19_spill] sm:$0xff] }
 0x7b5   :  { %5635 = vrot.lane.b32.xlu2 %v3355_v21, %s14455_s1  ;;  %s14459_s1 = smov 118   ;;  %v14462_v21 = vld [vmem:[#allocation161_spill] sm:$0xff]  ;;  %v3419_v0 = vsel %vm1578_vm0, %v3418_v41, %v10964_v15  ;;  %v3443_v10 = vsel %vm1578_vm0, %v3442_v56, %v10978_v63  ;;  %v11309_v35 = vperm.slane %v3857_v51, %v7860_v32  ;;  %v3890_v52 = vrot.slane %v14472_v55, 4  ;;  %v14474_v56 = vld [vmem:[#allocation106_spill] sm:$0xff] }
 0x7b6   :  { %v5464_v60 = vpop.permute.xlu1 %5463  ;;  %v6307_v15 = vsel %vm13395_vm12, %v6306_v39, %v10907_v18  ;;  %v11322_v63 = vperm.slane %v3419_v0, %v7890_v33  ;;  %v14475_v51 = vld [vmem:[#allocation266_spill] sm:$0xff]  ;;  %v14476_v39 = vld [vmem:[#allocation63_spill] sm:$0xff] }
 0x7b7   :  { %v11239_v9 = vpop.permute.xlu2 %5503 }
 0x7b9   :  { %5759 = vrot.lane.b32.xlu0 %v3803_v48, %s14458_s16  ;;  %v3809_v48 = vsel %vm1578_vm0, %v11263_v58, %v3808_v53  ;;  %v14470_v53 = vld [vmem:[#allocation235_spill] sm:$0xff]  ;;  %s14486_s16 = smov 8  }
 0x7bb   :  { %v11258_v1 = vpop.permute.xlu0 %5591 }
 0x7bc   :  { %5643 = vrot.lane.b32.xlu1 %v14462_v21, %s14461_s15  ;;  %s14466_s15 = smov 54   ;;  %v14469_v21 = vld [vmem:[#allocation8_spill] sm:$0xff] }
 0x7bd   :  { %5647 = vrot.lane.b32.xlu2 %v14460_v50, %s14459_s1  ;;  %v3364_v50 = vrot.slane %v10951_v34, 4  ;;  %v3866_v38 = vrot.slane %v14469_v21, 4  ;;  %v3814_v34 = vrot.slane %v11282_v57, 4  ;;  %s14473_s1 = smov 122   ;;  %v11334_v21 = vperm.slane %v3443_v10, %v7890_v33 }
 0x7be   :  { %v5476_v49 = vpop.permute.xlu1 %5475 }
 0x7bf   :  { %v11271_v23 = vpop.permute.xlu2 %5515  ;;  %v3365_v28 = vsel %vm1578_vm0, %v10930_v25, %v3364_v50  ;;  %v6308_v25 = vsel %vm13345_vm13, %v6307_v15, %v5464_v60  ;;  %v3867_v18 = vsel %vm1578_vm0, %v3866_v38, %v14475_v51  ;;  %v3845_v60 = vsel %vm1578_vm0, %v14476_v39, %v3844_v59 }
 0x7c0   :  { %v3891_v38 = vsel %vm1578_vm0, %v3890_v52, %v14478_v36  ;;  %v3468_v59 = vrot.slane %v11322_v63, 4  ;;  %v11345_v0 = vperm.slane %v3867_v18, %v7890_v33  ;;  %vm13347_vm13 = vcmask 310272  }
 0x7c1   :  { %5771 = vrot.lane.b32.xlu0 %v3809_v48, %s14466_s15  ;;  %v3769_v48 = vsel %vm1578_vm0, %v14470_v53, %v3768_v16  ;;  %s14471_s15 = smov 124   ;;  %v3833_v16 = vsel %vm1578_vm0, %v14474_v56, %v3832_v44  ;;  %v6309_v44 = vsel %vm13342_vm14, %v6308_v25, %v11141_v3  ;;  %v14479_v53 = vld [vmem:[#allocation33_spill] sm:$0xff]  ;;  %v3471_v3 = vsel %vm1578_vm0, %v3470_v12, %v11009_v47 }
 0x7c2   :  { %v11319_v24 = vperm.slane %v3769_v48, %v7890_v33  ;;  %v3820_v48 = vrot.slane %v14479_v53, 4  ;;  %vm13344_vm14 = vcmask 261120   ;;  %v6310_v55 = vsel %vm13343_vm15, %v6309_v44, %v10935_v37 }
 0x7c3   :  { %v11294_v17 = vpop.permute.xlu0 %5603  ;;  %v3469_v52 = vsel %vm1578_vm0, %v11334_v21, %v3468_v59  ;;  %v11359_v15 = vperm.slane %v3891_v38, %v7890_v33  ;;  %v6311_v25 = vsel %vm13344_vm14, %v6310_v55, %v5476_v49  ;;  %v3916_v37 = vrot.slane %v11345_v0, 4  ;;  %v14485_v38 = vld [vmem:[#allocation200_spill] sm:$0xff]  ;;  %v14487_v59 = vld [vmem:[#allocation153_spill] sm:$0xff] }
 0x7c4   :  { %5655 = vrot.lane.b32.xlu1 %v3365_v28, %s14473_s1  ;;  %v3815_v50 = vsel %vm1578_vm0, %v3814_v34, %v11319_v24  ;;  %s14477_s1 = smov 60   ;;  %v3841_v28 = vperm.slane %v3833_v16, %v7860_v32  ;;  %v3853_v34 = vperm.slane %v3845_v60, %v7860_v32  ;;  %v14482_v16 = vld [vmem:[#allocation76_spill] sm:$0xff]  ;;  %vm13346_vm15 = vcmask 277504  }
 0x7c5   :  { %5659 = vrot.lane.b32.xlu2 %v3367_v29, %s14471_s15  ;;  %v3902_v29 = vrot.slane %v11309_v35, 4  ;;  %s14481_s15 = smov 2   ;;  %v3821_v47 = vsel %vm1578_vm0, %v14482_v16, %v3820_v48  ;;  %v6312_v39 = vsel %vm13346_vm15, %v6311_v25, %v11174_v61  ;;  %v3917_v49 = vsel %vm1578_vm0, %v11359_v15, %v3916_v37  ;;  %v14489_v37 = vld [vmem:[#allocation296_spill] sm:$0xff] }
 0x7c6   :  { %v5488_v42 = vpop.permute.xlu1 %5487  ;;  %v3878_v51 = vrot.slane %v3841_v28, 4  ;;  %vm13348_vm14 = vcmask 293888   ;;  %vm13351_vm15 = vcmask 326656  }
 0x7c7   :  { %v11316_v41 = vpop.permute.xlu2 %5527  ;;  %v3903_v56 = vsel %vm1578_vm0, %v3902_v29, %v3853_v34  ;;  %v6313_v29 = vsel %vm13348_vm14, %v6312_v39, %v10980_v13  ;;  %vm13350_vm14 = vcmask 359424  }
 0x7c8   :  { %v11374_v60 = vperm.slane %v3903_v56, %v7890_v33  ;;  %v6314_v61 = vsel %vm13347_vm13, %v6313_v29, %v5488_v42  ;;  %v3578_v56 = vrot.slane %v11086_v26, 4  ;;  %vm13349_vm13 = vcmask 343040  }
 0x7c9   :  { %5783 = vrot.lane.b32.xlu0 %v3815_v50, %s14477_s1  ;;  %s14480_s1 = smov 4   ;;  %v3829_v50 = vperm.slane %v3821_v47, %v7860_v32  ;;  %v6315_v42 = vsel %vm13351_vm15, %v6314_v61, %v11212_v45  ;;  %v4004_v26 = vrot.slane %v14489_v37, 4  ;;  %vm13353_vm15 = vcmask 408576   ;;  %v14500_v37 = vld [vmem:[#allocation178_spill] sm:$0xff] }
 0x7ca   :  { %v3922_v53 = vrot.slane %v11374_v60, 4 }
 0x7cb   :  { %v11349_v10 = vpop.permute.xlu0 %5615  ;;  %v3879_v36 = vsel %vm1578_vm0, %v3878_v51, %v3829_v50  ;;  %v3880_v48 = vrot.slane %v3829_v50, 4 }
 0x7cc   :  { %5667 = vrot.lane.b32.xlu1 %v3469_v52, %s14481_s15  ;;  %s14483_s15 = smov 66   ;;  %v11392_v13 = vperm.slane %v3879_v36, %v7890_v33  ;;  %v3904_v52 = vrot.slane %v3853_v34, 4  ;;  %v3480_v34 = vrot.slane %v11059_v8, 4  ;;  %v14492_v8 = vld [vmem:[#allocation195_spill] sm:$0xff] }
 0x7cd   :  { %5671 = vrot.lane.b32.xlu2 %v3471_v3, %s14480_s1  ;;  %s14484_s1 = smov 10   ;;  %v3881_v55 = vsel %vm1578_vm0, %v3841_v28, %v3880_v48  ;;  %v6316_v28 = vsel %vm13349_vm13, %v6315_v42, %v11012_v4  ;;  %vm13352_vm13 = vcmask 375808   ;;  %v4005_v50 = vsel %vm1578_vm0, %v14492_v8, %v4004_v26 }
 0x7ce   :  { %v5500_v18 = vpop.permute.xlu1 %5499  ;;  %v3923_v16 = vsel %vm1578_vm0, %v3922_v53, %v11392_v13  ;;  %v3905_v47 = vsel %vm1578_vm0, %v11309_v35, %v3904_v52  ;;  %v11407_v45 = vperm.slane %v3881_v55, %v7890_v33  ;;  %v3481_v35 = vsel %vm1578_vm0, %v11033_v20, %v3480_v34  ;;  %v14493_v53 = vld [vmem:[#allocation129_spill] sm:$0xff]  ;;  %v14496_v52 = vld [vmem:[#allocation292_spill] sm:$0xff]  ;;  %v14499_v34 = vld [vmem:[#allocation271_spill] sm:$0xff] }
 0x7cf   :  { %v11366_v12 = vpop.permute.xlu2 %5539  ;;  %v6317_v51 = vsel %vm13350_vm14, %v6316_v28, %v5500_v18  ;;  %v11419_v4 = vperm.slane %v3905_v47, %v7890_v33  ;;  %v4078_v18 = vrot.slane %v10023_v54, 4  ;;  %vm13358_vm14 = vcmask 392192  }
 0x7d0   :  { %v6318_v29 = vsel %vm13352_vm13, %v6317_v51, %v11239_v9  ;;  %v3928_v36 = vrot.slane %v11407_v45, 4  ;;  %v3980_v48 = vrot.slane %v14493_v53, 4  ;;  %v14495_v9 = vld [vmem:[#allocation194_spill] sm:$0xff]  ;;  %v3990_v42 = vrot.slane %v14496_v52, 4  ;;  %v14505_v53 = vld [vmem:[#allocation260_spill] sm:$0xff] }
 0x7d1   :  { %5795 = vrot.lane.b32.xlu0 %v3917_v49, %s14483_s15  ;;  %v3579_v49 = vsel %vm1578_vm0, %v3578_v56, %v11076_v22  ;;  %v6319_v54 = vsel %vm13358_vm14, %v6318_v29, %v11040_v30  ;;  %v4066_v28 = vrot.slane %v14133_v19, 4  ;;  %vm13354_vm13 = vcmask 424960   ;;  %s14519_s15 = smov 32  }
 0x7d2   :  { %v3929_v20 = vsel %vm1578_vm0, %v11419_v4, %v3928_v36  ;;  %v4014_v26 = vrot.slane %v14500_v37, 4  ;;  %v14510_v37 = vld [vmem:[#allocation208_spill] sm:$0xff]  ;;  %vm13361_vm14 = vcmask 523264  }
 0x7d3   :  { %v11380_v44 = vpop.permute.xlu0 %5627 }
 0x7d4   :  { %5679 = vrot.lane.b32.xlu1 %v14487_v59, %s14486_s16  ;;  %s14488_s16 = smov 72   ;;  %v4079_v59 = vsel %vm1578_vm0, %v4078_v18, %v14495_v9  ;;  %v14504_v18 = vld [vmem:[#allocation78_spill] sm:$0xff] }
 0x7d5   :  { %5683 = vrot.lane.b32.xlu2 %v14485_v38, %s14484_s1  ;;  %s14491_s1 = smov 14   ;;  %v11433_v38 = vperm.slane %v4005_v50, %v7890_v33  ;;  %v11453_v51 = vperm.slane %v4079_v59, %v7860_v32  ;;  %v4042_v29 = vrot.slane %v14504_v18, 4 }
 0x7d6   :  { %v5512_v25 = vpop.permute.xlu1 %5511 }
 0x7d7   :  { %v11389_v3 = vpop.permute.xlu2 %5551  ;;  %v6320_v55 = vsel %vm13353_vm15, %v6319_v54, %v5512_v25  ;;  %v4030_v30 = vrot.slane %v11433_v38, 4  ;;  %vm13355_vm15 = vcmask 441344  }
 0x7d8   :  { %v6321_v25 = vsel %vm13354_vm13, %v6320_v55, %v11271_v23  ;;  %v14506_v23 = vld [vmem:[#allocation157_spill] sm:$0xff]  ;;  %vm13356_vm13 = vcmask 457728   ;;  %v4114_v55 = vrot.slane %v11453_v51, 4 }
 0x7d9   :  { %5807 = vrot.lane.b32.xlu0 %v3923_v16, %s14488_s16  ;;  %s14490_s16 = smov 16   ;;  %v14497_v16 = vld [vmem:[#allocation42_spill] sm:$0xff]  ;;  %v4067_v54 = vsel %vm1578_vm0, %v4066_v28, %v14506_v23  ;;  %v6322_v9 = vsel %vm13355_vm15, %v6321_v25, %v11079_v7  ;;  %v3588_v28 = vrot.slane %v11119_v27, 4  ;;  %vm13357_vm15 = vcmask 474112   ;;  %v14511_v25 = vld [vmem:[#allocation35_spill] sm:$0xff] }
 0x7da   :  { %v3981_v47 = vsel %vm1578_vm0, %v14497_v16, %v3980_v48  ;;  %v3991_v48 = vsel %vm1578_vm0, %v3990_v42, %v14505_v53  ;;  %v14509_v42 = vld [vmem:[#allocation53_spill] sm:$0xff]  ;;  %v4073_v7 = vperm.slane %v4067_v54, %v7860_v32  ;;  %v14513_v27 = vld [vmem:[#allocation47_spill] sm:$0xff] }
 0x7db   :  { %v11411_v39 = vpop.permute.xlu0 %5639  ;;  %v11463_v50 = vperm.slane %v3981_v47, %v7890_v33 }
 0x7dc   :  { %5691 = vrot.lane.b32.xlu1 %v3481_v35, %s14491_s1  ;;  %s14494_s1 = smov 78   ;;  %v14503_v35 = vld [vmem:[#allocation121_spill] sm:$0xff] }
 0x7dd   :  { %5695 = vrot.lane.b32.xlu2 %v3579_v49, %s14490_s16  ;;  %s14498_s16 = smov 22   ;;  %v14502_v49 = vld [vmem:[#allocation65_spill] sm:$0xff]  ;;  %v4054_v8 = vrot.slane %v14503_v35, 4  ;;  %v4031_v59 = vsel %vm1578_vm0, %v4030_v30, %v11463_v50  ;;  %v3589_v35 = vsel %vm1578_vm0, %v14513_v27, %v3588_v28 }
 0x7de   :  { %v5524_v61 = vpop.permute.xlu1 %5523 }
 0x7df   :  { %v11427_v22 = vpop.permute.xlu2 %5563  ;;  %v6323_v52 = vsel %vm13356_vm13, %v6322_v9, %v5524_v61  ;;  %v4055_v47 = vsel %vm1578_vm0, %v4054_v8, %v14509_v42  ;;  %vm13360_vm13 = vcmask 490496  }
 0x7e0   :  { %v4061_v18 = vperm.slane %v4055_v47, %v7860_v32 }
 0x7e1   :  { %5819 = vrot.lane.b32.xlu0 %v3929_v20, %s14494_s1  ;;  %s14501_s1 = smov 20   ;;  %v3590_v20 = vrot.slane %v11135_v40, 4  ;;  %v14508_v40 = vld [vmem:[#allocation146_spill] sm:$0xff] }
 0x7e2   :  { %v4015_v16 = vsel %vm1578_vm0, %v4014_v26, %v14508_v40  ;;  %v6324_v26 = vsel %vm13357_vm15, %v6323_v52, %v11316_v41  ;;  %vm13359_vm15 = vcmask 506880  }
 0x7e3   :  { %v11443_v56 = vpop.permute.xlu0 %5651  ;;  %v3591_v61 = vsel %vm1578_vm0, %v3590_v20, %v14510_v37  ;;  %v11499_v8 = vperm.slane %v4015_v16, %v7890_v33  ;;  %v4115_v20 = vsel %vm1578_vm0, %v4114_v55, %v4073_v7  ;;  %v4090_v55 = vrot.slane %v4061_v18, 4  ;;  %v14520_v37 = vld [vmem:[#allocation185_spill] sm:$0xff] }
 0x7e4   :  { %5703 = vrot.lane.b32.xlu1 %v14502_v49, %s14501_s1  ;;  %s14507_s1 = smov 84   ;;  %v4043_v49 = vsel %vm1578_vm0, %v4042_v29, %v14511_v25  ;;  %v11514_v52 = vperm.slane %v4115_v20, %v7890_v33  ;;  %v3698_v20 = vrot.slane %v11203_v5, 4  ;;  %v14523_v5 = vld [vmem:[#allocation281_spill] sm:$0xff] }
 0x7e5   :  { %5707 = vrot.lane.b32.xlu2 %v14499_v34, %s14498_s16  ;;  %v11484_v34 = vperm.slane %v3991_v48, %v7890_v33  ;;  %s14514_s16 = smov 26   ;;  %v4049_v41 = vperm.slane %v4043_v49, %v7860_v32  ;;  %v14515_v48 = vld [vmem:[#allocation176_spill] sm:$0xff] }
 0x7e6   :  { %v5536_v36 = vpop.permute.xlu1 %5535  ;;  %v6325_v23 = vsel %vm13360_vm13, %v6324_v26, %v14515_v48  ;;  %v4138_v28 = vrot.slane %v11514_v52, 4  ;;  %vm13362_vm13 = vcmask 556032   ;;  %v4116_v26 = vrot.slane %v4073_v7, 4 }
 0x7e7   :  { %v11460_v19 = vpop.permute.xlu2 %5575  ;;  %v4036_v29 = vrot.slane %v11484_v34, 4  ;;  %v6326_v9 = vsel %vm13359_vm15, %v6325_v23, %v5536_v36  ;;  %v4092_v40 = vrot.slane %v4049_v41, 4  ;;  %v4091_v47 = vsel %vm1578_vm0, %v4090_v55, %v4049_v41  ;;  %v14518_v36 = vld [vmem:[#allocation295_spill] sm:$0xff] }
 0x7e8   :  { %v6327_v16 = vsel %vm13361_vm14, %v6326_v9, %v11366_v12  ;;  %vm13364_vm15 = vcmask 539648   ;;  %v11532_v12 = vperm.slane %v4091_v47, %v7890_v33  ;;  %vm13363_vm14 = vcmask 572416  }
 0x7e9   :  { %5831 = vrot.lane.b32.xlu0 %v4031_v59, %s14507_s1  ;;  %s14512_s1 = smov 28   ;;  %v4037_v59 = vsel %vm1578_vm0, %v11499_v8, %v4036_v29  ;;  %v4093_v29 = vsel %vm1578_vm0, %v4061_v18, %v4092_v40  ;;  %v4117_v48 = vsel %vm1578_vm0, %v11453_v51, %v4116_v26  ;;  %v3696_v7 = vrot.slane %v11177_v2, 4  ;;  %v14524_v2 = vld [vmem:[#allocation274_spill] sm:$0xff]  ;;  %v14525_v40 = vld [vmem:[#allocation137_spill] sm:$0xff] }
 0x7ea   :  { %v4139_v41 = vsel %vm1578_vm0, %v4138_v28, %v11532_v12  ;;  %v4128_v9 = vrot.slane %v14523_v5, 4  ;;  %v14526_v28 = vld [vmem:[#allocation119_spill] sm:$0xff] }
 0x7eb   :  { %v11487_v30 = vpop.permute.xlu0 %5663  ;;  %v3697_v51 = vsel %vm1578_vm0, %v11149_v31, %v3696_v7  ;;  %v4104_v31 = vrot.slane %v14526_v28, 4  ;;  %v14530_v7 = vld [vmem:[#allocation69_spill] sm:$0xff]  ;;  %v14535_v28 = vld [vmem:[#allocation144_spill] sm:$0xff] }
 0x7ec   :  { %5715 = vrot.lane.b32.xlu1 %v3589_v35, %s14514_s16  ;;  %s14516_s16 = smov 90   ;;  %v4129_v55 = vsel %vm1578_vm0, %v14524_v2, %v4128_v9 }
 0x7ed   :  { %5719 = vrot.lane.b32.xlu2 %v3591_v61, %s14512_s1  ;;  %s14517_s1 = smov 34   ;;  %v14521_v61 = vld [vmem:[#allocation24_spill] sm:$0xff]  ;;  %v4105_v5 = vsel %vm1578_vm0, %v14530_v7, %v4104_v31  ;;  %v4180_v31 = vrot.slane %v14535_v28, 4 }
 0x7ee   :  { %v5548_v54 = vpop.permute.xlu1 %5547  ;;  %v6328_v25 = vsel %vm13364_vm15, %v6327_v16, %v14521_v61  ;;  %v14527_v61 = vld [vmem:[#allocation92_spill] sm:$0xff]  ;;  %vm13372_vm15 = vcmask 621568  }
 0x7ef   :  { %v11504_v53 = vpop.permute.xlu2 %5587  ;;  %v6329_v27 = vsel %vm13362_vm13, %v6328_v25, %v5548_v54  ;;  %v11546_v54 = vperm.slane %v4093_v29, %v7890_v33  ;;  %vm13366_vm13 = vcmask 588800   ;;  %v4192_v25 = vrot.slane %v14527_v61, 4 }
 0x7f0   :  { %v6330_v23 = vsel %vm13363_vm14, %v6329_v27, %v11389_v3  ;;  %v11557_v3 = vperm.slane %v4117_v48, %v7890_v33  ;;  %vm13365_vm14 = vcmask 605184   ;;  %v11573_v27 = vperm.slane %v4129_v55, %v7890_v33 }
 0x7f1   :  { %5843 = vrot.lane.b32.xlu0 %v4037_v59, %s14516_s16  ;;  %v3699_v59 = vsel %vm1578_vm0, %v3698_v20, %v11195_v46  ;;  %v6331_v16 = vsel %vm13366_vm13, %v6330_v23, %v14525_v40  ;;  %vm13368_vm13 = vcmask 654336   ;;  %v14533_v40 = vld [vmem:[#allocation263_spill] sm:$0xff]  ;;  %v11602_v61 = vperm.slane %v4105_v5, %v7890_v33 }
 0x7f3   :  { %v11519_v42 = vpop.permute.xlu0 %5675 }
 0x7f4   :  { %5727 = vrot.lane.b32.xlu1 %v14520_v37, %s14519_s15  ;;  %s14522_s15 = smov 96  }
 0x7f5   :  { %5731 = vrot.lane.b32.xlu2 %v14518_v36, %s14517_s1  ;;  %v4144_v36 = vrot.slane %v11546_v54, 4 }
 0x7f6   :  { %v5560_v35 = vpop.permute.xlu1 %5559 }
 0x7f7   :  { %v11529_v49 = vpop.permute.xlu2 %5599  ;;  %v6332_v46 = vsel %vm13365_vm14, %v6331_v16, %v5560_v35  ;;  %v4145_v26 = vsel %vm1578_vm0, %v11557_v3, %v4144_v36  ;;  %v14528_v35 = vld [vmem:[#allocation12_spill] sm:$0xff]  ;;  %vm13367_vm14 = vcmask 637952   ;;  %v4226_v16 = vrot.slane %v14533_v40, 4  ;;  %v14534_v36 = vld [vmem:[#allocation294_spill] sm:$0xff] }
 0x7f8   :  { %v6333_v20 = vsel %vm13372_vm15, %v6332_v46, %v11427_v22  ;;  %v4193_v29 = vsel %vm1578_vm0, %v14528_v35, %v4192_v25  ;;  %v4150_v22 = vrot.slane %v11573_v27, 4  ;;  %v14536_v25 = vld [vmem:[#allocation108_spill] sm:$0xff]  ;;  %v3806_v35 = vrot.slane %v11263_v58, 4  ;;  %v14540_v40 = vld [vmem:[#allocation270_spill] sm:$0xff] }
 0x7f9   :  { %5855 = vrot.lane.b32.xlu0 %v4139_v41, %s14522_s15  ;;  %v14529_v41 = vld [vmem:[#allocation297_spill] sm:$0xff]  ;;  %v6334_v9 = vsel %vm13367_vm14, %v6333_v20, %v11198_v14  ;;  %v11592_v55 = vperm.slane %v4193_v29, %v7860_v32  ;;  %vm13369_vm14 = vcmask 670720   ;;  %v4227_v58 = vsel %vm1578_vm0, %v4226_v16, %v14540_v40 }
 0x7fa   :  { %v4202_v48 = vrot.slane %v14529_v41, 4  ;;  %v14537_v29 = vld [vmem:[#allocation265_spill] sm:$0xff]  ;;  %v14538_v41 = vld [vmem:[#allocation67_spill] sm:$0xff]  ;;  %v4151_v5 = vsel %vm1578_vm0, %v4150_v22, %v11602_v61  ;;  %vm13375_vm15 = vcmask 752640  }
 0x7fb   :  { %v11549_v18 = vpop.permute.xlu0 %5687  ;;  %v4181_v7 = vsel %vm1578_vm0, %v14538_v41, %v4180_v31  ;;  %v3807_v31 = vsel %vm1578_vm0, %v3806_v35, %v11254_v11  ;;  %v14542_v41 = vld [vmem:[#allocation114_spill] sm:$0xff] }
 0x7fc   :  { %5739 = vrot.lane.b32.xlu1 %v3697_v51, %s14345_s8  ;;  %v14532_v51 = vld [vmem:[#allocation60_spill] sm:$0xff] }
 0x7fd   :  { %5743 = vrot.lane.b32.xlu2 %v3699_v59, %s14344_s7  ;;  %v14531_v59 = vld [vmem:[#allocation141_spill] sm:$0xff]  ;;  %v4168_v2 = vrot.slane %v14532_v51, 4 }
 0x7fe   :  { %v5572_v37 = vpop.permute.xlu1 %5571 }
 0x7ff   :  { %v11565_v47 = vpop.permute.xlu2 %5611  ;;  %v6335_v46 = vsel %vm13368_vm13, %v6334_v9, %v5572_v37  ;;  %v4203_v37 = vsel %vm1578_vm0, %v4202_v48, %v14537_v29  ;;  %vm13370_vm13 = vcmask 687104  }
 0x800   :  { %v6336_v9 = vsel %vm13369_vm14, %v6335_v46, %v11460_v19  ;;  %v11623_v28 = vperm.slane %v4203_v37, %v7890_v33  ;;  %v4189_v19 = vperm.slane %v4181_v7, %v7860_v32  ;;  %vm13371_vm14 = vcmask 703488  }
 0x801   :  { %5867 = vrot.lane.b32.xlu0 %v4145_v26, %s14350_s6  ;;  %v4169_v26 = vsel %vm1578_vm0, %v14536_v25, %v4168_v2  ;;  %v4238_v2 = vrot.slane %v11592_v55, 4  ;;  %v6337_v22 = vsel %vm13370_vm13, %v6336_v9, %v11227_v6  ;;  %v11637_v25 = vperm.slane %v4227_v58, %v7890_v33  ;;  %v14541_v6 = vld [vmem:[#allocation89_spill] sm:$0xff] }
 0x802   :  { %v4177_v48 = vperm.slane %v4169_v26, %v7860_v32  ;;  %vm13373_vm13 = vcmask 719872   ;;  %v4252_v11 = vrot.slane %v11623_v28, 4  ;;  %v4266_v7 = vrot.slane %v14542_v41, 4 }
 0x803   :  { %v11581_v23 = vpop.permute.xlu0 %5699  ;;  %v4239_v26 = vsel %vm1578_vm0, %v4238_v2, %v4189_v19 }
 0x804   :  { %5751 = vrot.lane.b32.xlu1 %v14534_v36, %s14356_s4  ;;  %v3804_v36 = vrot.slane %v11242_v43, 4  ;;  %v4253_v9 = vsel %vm1578_vm0, %v11637_v25, %v4252_v11  ;;  %v14548_v11 = vld [vmem:[#allocation159_spill] sm:$0xff] }
 0x805   :  { %5755 = vrot.lane.b32.xlu2 %v14531_v59, %s14353_s5  ;;  %v14539_v59 = vld [vmem:[#allocation87_spill] sm:$0xff] }
 0x806   :  { %v5584_v20 = vpop.permute.xlu1 %5583  ;;  %v4156_v51 = vrot.slane %v14539_v59, 4  ;;  %v3805_v43 = vsel %vm1578_vm0, %v11221_v62, %v3804_v36 }
 0x807   :  { %v11599_v14 = vpop.permute.xlu2 %5623  ;;  %v6338_v16 = vsel %vm13371_vm14, %v6337_v22, %v5584_v20  ;;  %v4214_v20 = vrot.slane %v4177_v48, 4  ;;  %vm13378_vm14 = vcmask 736256   ;;  %v14544_v22 = vld [vmem:[#allocation30_spill] sm:$0xff] }
 0x808   :  { %v4157_v29 = vsel %vm1578_vm0, %v14541_v6, %v4156_v51  ;;  %v6339_v35 = vsel %vm13373_vm13, %v6338_v16, %v11504_v53  ;;  %v14543_v51 = vld [vmem:[#allocation244_spill] sm:$0xff]  ;;  %v14545_v16 = vld [vmem:[#allocation123_spill] sm:$0xff]  ;;  %vm13374_vm13 = vcmask 769024  }
 0x809   :  { %5879 = vrot.lane.b32.xlu0 %v4151_v5, %s14364_s3  ;;  %v11652_v5 = vperm.slane %v4239_v26, %v7890_v33  ;;  %v4165_v59 = vperm.slane %v4157_v29, %v7860_v32  ;;  %v4290_v2 = vrot.slane %v14543_v51, 4  ;;  %v6340_v53 = vsel %vm13378_vm14, %v6339_v35, %v11258_v1  ;;  %v14546_v26 = vld [vmem:[#allocation139_spill] sm:$0xff] }
 0x80a   :  { %v14547_v1 = vld [vmem:[#allocation71_spill] sm:$0xff]  ;;  %vm13381_vm14 = vcmask 850944  }
 0x80b   :  { %v11628_v46 = vpop.permute.xlu0 %5711  ;;  %v4215_v36 = vsel %vm1578_vm0, %v4214_v20, %v4165_v59  ;;  %v4258_v6 = vrot.slane %v11652_v5, 4  ;;  %v4216_v29 = vrot.slane %v4165_v59, 4  ;;  %v4291_v35 = vsel %vm1578_vm0, %v4290_v2, %v14548_v11  ;;  %v14550_v2 = vld [vmem:[#allocation55_spill] sm:$0xff] }
 0x80c   :  { %5763 = vrot.lane.b32.xlu1 %v3805_v43, %s14368_s30  ;;  %v4278_v43 = vrot.slane %v14545_v16, 4  ;;  %v11678_v41 = vperm.slane %v4215_v36, %v7890_v33  ;;  %v4240_v59 = vrot.slane %v4189_v19, 4  ;;  %v3816_v36 = vrot.slane %v11319_v24, 4 }
 0x80d   :  { %5767 = vrot.lane.b32.xlu2 %v3807_v31, %s14367_s2  ;;  %v4267_v31 = vsel %vm1578_vm0, %v4266_v7, %v14544_v22  ;;  %v14549_v22 = vld [vmem:[#allocation73_spill] sm:$0xff] }
 0x80e   :  { %v5596_v62 = vpop.permute.xlu1 %5595  ;;  %v11681_v7 = vperm.slane %v4267_v31, %v7860_v32  ;;  %v4302_v16 = vrot.slane %v14549_v22, 4  ;;  %v3817_v24 = vsel %vm1578_vm0, %v11282_v57, %v3816_v36  ;;  %v14552_v22 = vld [vmem:[#allocation247_spill] sm:$0xff] }
 0x80f   :  { %v11643_v37 = vpop.permute.xlu2 %5635  ;;  %v6341_v40 = vsel %vm13375_vm15, %v6340_v53, %v5596_v62  ;;  %v3914_v53 = vrot.slane %v11359_v15, 4  ;;  %vm13377_vm15 = vcmask 801792   ;;  %v4241_v15 = vsel %vm1578_vm0, %v11592_v55, %v4240_v59  ;;  %v14555_v36 = vld [vmem:[#allocation303_spill] sm:$0xff] }
 0x810   :  { %v6342_v20 = vsel %vm13374_vm13, %v6341_v40, %v11529_v49  ;;  %vm13376_vm13 = vcmask 785408   ;;  %v4259_v49 = vsel %vm1578_vm0, %v4258_v6, %v11678_v41  ;;  %v11691_v40 = vperm.slane %v4291_v35, %v7860_v32 }
 0x811   :  { %5891 = vrot.lane.b32.xlu0 %v4253_v9, %s14372_s29  ;;  %v4217_v9 = vsel %vm1578_vm0, %v4177_v48, %v4216_v29  ;;  %v6343_v48 = vsel %vm13376_vm13, %v6342_v20, %v11294_v17  ;;  %v3915_v17 = vsel %vm1578_vm0, %v3914_v53, %v11345_v0  ;;  %v14551_v29 = vld [vmem:[#allocation180_spill] sm:$0xff]  ;;  %vm13379_vm13 = vcmask 818176  }
 0x812   :  { %v11701_v31 = vperm.slane %v4217_v9, %v7890_v33  ;;  %v11716_v55 = vperm.slane %v4241_v15, %v7890_v33  ;;  %v4316_v11 = vrot.slane %v11681_v7, 4  ;;  %v4340_v35 = vrot.slane %v11691_v40, 4  ;;  %v14554_v15 = vld [vmem:[#allocation183_spill] sm:$0xff] }
 0x813   :  { %v11660_v58 = vpop.permute.xlu0 %5723 }
 0x814   :  { %5775 = vrot.lane.b32.xlu1 %v14547_v1, %s14378_s27  ;;  %v4303_v1 = vsel %vm1578_vm0, %v4302_v16, %v14551_v29  ;;  %v4264_v9 = vrot.slane %v11701_v31, 4  ;;  %v4352_v16 = vrot.slane %v14552_v22, 4 }
 0x815   :  { %5779 = vrot.lane.b32.xlu2 %v14546_v26, %s14376_s28  ;;  %v4279_v26 = vsel %vm1578_vm0, %v4278_v43, %v14550_v2  ;;  %v11727_v59 = vperm.slane %v4303_v1, %v7860_v32 }
 0x816   :  { %v5608_v51 = vpop.permute.xlu1 %5607  ;;  %v11704_v43 = vperm.slane %v4279_v26, %v7860_v32 }
 0x817   :  { %v11675_v62 = vpop.permute.xlu2 %5647  ;;  %v6344_v19 = vsel %vm13377_vm15, %v6343_v48, %v5608_v51  ;;  %vm13383_vm15 = vcmask 834560   ;;  %v4341_v26 = vsel %vm1578_vm0, %v11727_v59, %v4340_v35 }
 0x818   :  { %v6345_v20 = vsel %vm13379_vm13, %v6344_v19, %v11565_v47  ;;  %v4317_v51 = vsel %vm1578_vm0, %v11704_v43, %v4316_v11  ;;  %v4265_v47 = vsel %vm1578_vm0, %v11716_v55, %v4264_v9  ;;  %vm13382_vm13 = vcmask 867328   ;;  %v14557_v11 = vld [vmem:[#allocation199_spill] sm:$0xff] }
 0x819   :  { %5903 = vrot.lane.b32.xlu0 %v4259_v49, %s14386_s26  ;;  %v6346_v53 = vsel %vm13383_vm15, %v6345_v20, %v11349_v10  ;;  %v11741_v49 = vperm.slane %v4317_v51, %v7890_v33  ;;  %v11750_v19 = vperm.slane %v4341_v26, %v7890_v33  ;;  %v4416_v35 = vrot.slane %v14557_v11, 4  ;;  %v14560_v26 = vld [vmem:[#allocation93_spill] sm:$0xff] }
 0x81a   :  { %v3926_v9 = vrot.slane %v11419_v4, 4  ;;  %vm13385_vm15 = vcmask 916480   ;;  %v3924_v4 = vrot.slane %v11392_v13, 4  ;;  %v14564_v13 = vld [vmem:[#allocation62_spill] sm:$0xff] }
 0x81b   :  { %v11706_v6 = vpop.permute.xlu0 %5735 }
 0x81c   :  { %5787 = vrot.lane.b32.xlu1 %v3817_v24, %s14389_s24  ;;  %s14553_s24 = smov 70   ;;  %v4368_v24 = vrot.slane %v11741_v49, 4 }
 0x81d   :  { %5791 = vrot.lane.b32.xlu2 %v3915_v17, %s14388_s25  ;;  %v14556_v17 = vld [vmem:[#allocation242_spill] sm:$0xff] }
 0x81e   :  { %v5620_v57 = vpop.permute.xlu1 %5619  ;;  %v4353_v29 = vsel %vm1578_vm0, %v14556_v17, %v4352_v16  ;;  %v4369_v51 = vsel %vm1578_vm0, %v11750_v19, %v4368_v24  ;;  %v14561_v17 = vld [vmem:[#allocation239_spill] sm:$0xff]  ;;  %v14562_v24 = vld [vmem:[#allocation201_spill] sm:$0xff] }
 0x81f   :  { %v11723_v0 = vpop.permute.xlu2 %5659  ;;  %v6347_v2 = vsel %vm13381_vm14, %v6346_v53, %v5620_v57  ;;  %vm13387_vm14 = vcmask 883712   ;;  %v11767_v53 = vperm.slane %v4353_v29, %v7890_v33  ;;  %v4404_v11 = vrot.slane %v14562_v24, 4 }
 0x820   :  { %v6348_v10 = vsel %vm13382_vm13, %v6347_v2, %v11599_v14  ;;  %vm13386_vm13 = vcmask 900096  }
 0x821   :  { %5915 = vrot.lane.b32.xlu0 %v4265_v47, %s14392_s23  ;;  %v6349_v14 = vsel %vm13387_vm14, %v6348_v10, %v11380_v44  ;;  %v14558_v47 = vld [vmem:[#allocation241_spill] sm:$0xff]  ;;  %v14559_v44 = vld [vmem:[#allocation48_spill] sm:$0xff]  ;;  %v4426_v10 = vrot.slane %v14560_v26, 4  ;;  %vm13388_vm14 = vcmask 965632  }
 0x822   :  { %v4328_v22 = vrot.slane %v14558_v47, 4  ;;  %v4417_v2 = vsel %vm1578_vm0, %v14559_v44, %v4416_v35  ;;  %v4374_v35 = vrot.slane %v11767_v53, 4  ;;  %v14566_v47 = vld [vmem:[#allocation110_spill] sm:$0xff]  ;;  %v14568_v26 = vld [vmem:[#allocation240_spill] sm:$0xff] }
 0x823   :  { %v11743_v48 = vpop.permute.xlu0 %5747 }
 0x824   :  { %5799 = vrot.lane.b32.xlu1 %v14555_v36, %s14396_s22  ;;  %v3927_v36 = vsel %vm1578_vm0, %v3926_v9, %v11407_v45  ;;  %v4329_v29 = vsel %vm1578_vm0, %v14561_v17, %v4328_v22  ;;  %s14563_s22 = smov 76  }
 0x825   :  { %5803 = vrot.lane.b32.xlu2 %v14554_v15, %s14553_s24  ;;  %v11797_v9 = vperm.slane %v4329_v29, %v7890_v33 }
 0x826   :  { %v5632_v20 = vpop.permute.xlu1 %5631 }
 0x827   :  { %v11756_v1 = vpop.permute.xlu2 %5671  ;;  %v6350_v57 = vsel %vm13386_vm13, %v6349_v14, %v5632_v20  ;;  %v4392_v14 = vrot.slane %v14564_v13, 4  ;;  %v11790_v20 = vperm.slane %v4417_v2, %v7860_v32  ;;  %vm13389_vm13 = vcmask 949248   ;;  %v14567_v2 = vld [vmem:[#allocation16_spill] sm:$0xff] }
 0x828   :  { %v6351_v16 = vsel %vm13385_vm15, %v6350_v57, %v11643_v37  ;;  %v3925_v37 = vsel %vm1578_vm0, %v11374_v60, %v3924_v4  ;;  %v14565_v57 = vld [vmem:[#allocation246_spill] sm:$0xff]  ;;  %vm13390_vm15 = vcmask 932864   ;;  %v4427_v4 = vsel %vm1578_vm0, %v4426_v10, %v14567_v2 }
 0x829   :  { %5927 = vrot.lane.b32.xlu0 %v4369_v51, %s14401_s10  ;;  %v4450_v51 = vrot.slane %v14565_v57, 4  ;;  %v4393_v60 = vsel %vm1578_vm0, %v14566_v47, %v4392_v14  ;;  %v6352_v22 = vsel %vm13390_vm15, %v6351_v16, %v11411_v39  ;;  %v4375_v29 = vsel %vm1578_vm0, %v4374_v35, %v11797_v9  ;;  %v14569_v39 = vld [vmem:[#allocation216_spill] sm:$0xff]  ;;  %v14570_v35 = vld [vmem:[#allocation37_spill] sm:$0xff]  ;;  %s14571_s10 = smov 82   ;;  %v14572_v47 = vld [vmem:[#allocation126_spill] sm:$0xff] }
 0x82a   :  { %v4462_v24 = vrot.slane %v11790_v20, 4  ;;  %v11817_v10 = vperm.slane %v4427_v4, %v7890_v33  ;;  %v4380_v57 = vrot.slane %v14570_v35, 4  ;;  %vm6292_vm15 = vcmask 1014784  }
 0x82b   :  { %v11777_v15 = vpop.permute.xlu0 %5759  ;;  %v4451_v16 = vsel %vm1578_vm0, %v4450_v51, %v14569_v39 }
 0x82c   :  { %5811 = vrot.lane.b32.xlu1 %v3925_v37, %s14406_s21  ;;  %v4476_v4 = vrot.slane %v11817_v10, 4 }
 0x82d   :  { %5815 = vrot.lane.b32.xlu2 %v3927_v36, %s14563_s22  ;;  %v4405_v36 = vsel %vm1578_vm0, %v14568_v26, %v4404_v11  ;;  %v4401_v11 = vperm.slane %v4393_v60, %v7860_v32 }
 0x82e   :  { %v5644_v44 = vpop.permute.xlu1 %5643  ;;  %v4413_v13 = vperm.slane %v4405_v36, %v7860_v32 }
 0x82f   :  { %v11794_v45 = vpop.permute.xlu2 %5683  ;;  %v6353_v17 = vsel %vm13389_vm13, %v6352_v22, %v5644_v44  ;;  %v14573_v22 = vld [vmem:[#allocation299_spill] sm:$0xff]  ;;  %v14574_v44 = vld [vmem:[#allocation80_spill] sm:$0xff]  ;;  %v4438_v26 = vrot.slane %v4401_v11, 4  ;;  %vm6290_vm13 = vcmask 998400  }
 0x830   :  { %v6354_v37 = vsel %vm13388_vm14, %v6353_v17, %v11675_v62  ;;  %v11827_v62 = vperm.slane %v4451_v16, %v7890_v33  ;;  %v4463_v51 = vsel %vm1578_vm0, %v4462_v24, %v4413_v13  ;;  %v4381_v60 = vsel %vm1578_vm0, %v14574_v44, %v4380_v57  ;;  %v14575_v57 = vld [vmem:[#allocation138_spill] sm:$0xff] }
 0x831   :  { %5939 = vrot.lane.b32.xlu0 %v4375_v29, %s14412_s0  ;;  %vm6288_vm14 = vcmask 982016   ;;  %v4034_v29 = vrot.slane %v11499_v8, 4  ;;  %v11844_v16 = vperm.slane %v4463_v51, %v7890_v33  ;;  %v4389_v35 = vperm.slane %v4381_v60, %v7860_v32  ;;  %s14576_s0 = smov 88  }
 0x832   :  { %v6355_v36 = vsel %vm6288_vm14, %v6354_v37, %v11443_v56  ;;  %v4477_v24 = vsel %vm1578_vm0, %v11827_v62, %v4476_v4  ;;  %v4032_v56 = vrot.slane %v11463_v50, 4  ;;  %v3466_v51 = vrot.slane %v11334_v21, 4 }
 0x833   :  { %v11821_v14 = vpop.permute.xlu0 %5771  ;;  %v4035_v37 = vsel %vm1578_vm0, %v4034_v29, %v11484_v34  ;;  %v4439_v44 = vsel %vm1578_vm0, %v4438_v26, %v4389_v35  ;;  %v4440_v4 = vrot.slane %v4389_v35, 4 }
 0x834   :  { %5823 = vrot.lane.b32.xlu1 %v14573_v22, %s14418_s20  ;;  %v4033_v60 = vsel %vm1578_vm0, %v11433_v38, %v4032_v56  ;;  %v11872_v21 = vperm.slane %v4439_v44, %v7890_v33  ;;  %v3467_v38 = vsel %vm1578_vm0, %v3466_v51, %v11322_v63  ;;  %v14580_v63 = vld [vmem:[#allocation233_spill] sm:$0xff] }
 0x835   :  { %5827 = vrot.lane.b32.xlu2 %v14572_v47, %s14571_s10  ;;  %v1674_v47 = vrot.slane %v14575_v57, 4  ;;  %v4441_v26 = vsel %vm1578_vm0, %v4401_v11, %v4440_v4  ;;  %v4564_v51 = vrot.slane %v14580_v63, 4  ;;  %v14583_v4 = vld [vmem:[#allocation85_spill] sm:$0xff] }
 0x836   :  { %v5656_v17 = vpop.permute.xlu1 %5655 }
 0x837   :  { %v11834_v2 = vpop.permute.xlu2 %5695  ;;  %v6356_v39 = vsel %vm6290_vm13, %v6355_v36, %v5656_v17  ;;  %v14577_v36 = vld [vmem:[#allocation134_spill] sm:$0xff]  ;;  %v14578_v17 = vld [vmem:[#allocation315_spill] sm:$0xff] }
 0x838   :  { %v11850_v22 = vsel %vm6292_vm15, %v6356_v39, %v11723_v0  ;;  %v4482_v0 = vrot.slane %v11844_v16, 4  ;;  %v1675_v50 = vsel %vm1578_vm0, %v1674_v47, %v14577_v36  ;;  %v4464_v39 = vrot.slane %v4413_v13, 4  ;;  %v14579_v47 = vld [vmem:[#allocation202_spill] sm:$0xff]  ;;  %v14584_v36 = vld [vmem:[#allocation52_spill] sm:$0xff] }
 0x839   :  { %5951 = vrot.lane.b32.xlu0 %v4477_v24, %s14422_s11  ;;  %v6171_v34 = vsel %vm6170_vm1, %v1675_v50, %v14578_v17  ;;  %v11888_v13 = vperm.slane %v4441_v26, %v7890_v33  ;;  %s14582_s11 = smov 94   ;;  %v14586_v17 = vld [vmem:[#allocation168_spill] sm:$0xff] }
 0x83a   :  { %v4483_v57 = vsel %vm1578_vm0, %v4482_v0, %v11872_v21  ;;  %v6173_v56 = vsel %vm6172_vm2, %v6171_v34, %v14579_v47  ;;  %v4465_v11 = vsel %vm1578_vm0, %v11790_v20, %v4464_v39  ;;  %v14585_v20 = vld [vmem:[#allocation125_spill] sm:$0xff]  ;;  %v4565_v34 = vsel %vm1578_vm0, %v14586_v17, %v4564_v51  ;;  %v14587_v26 = vld [vmem:[#allocation272_spill] sm:$0xff]  ;;  %v14592_v17 = vld [vmem:[#allocation170_spill] sm:$0xff] }
 0x83b   :  { %v11854_v8 = vpop.permute.xlu0 %5783  ;;  %v4638_v39 = vrot.slane %v14587_v26, 4  ;;  %v4142_v47 = vrot.slane %v11557_v3, 4 }
 0x83c   :  { %5835 = vrot.lane.b32.xlu1 %v4033_v60, %s14424_s19  ;;  %v14581_v60 = vld [vmem:[#allocation301_spill] sm:$0xff] }
 0x83d   :  { %5839 = vrot.lane.b32.xlu2 %v4035_v37, %s14576_s0  ;;  %v6175_v0 = vsel %vm6174_vm3, %v6173_v56, %v14581_v60  ;;  %v14588_v56 = vld [vmem:[#allocation90_spill] sm:$0xff]  ;;  %v11919_v60 = vperm.slane %v4565_v34, %v7890_v33  ;;  %v4143_v34 = vsel %vm1578_vm0, %v4142_v47, %v11546_v54  ;;  %v14598_v54 = vld [vmem:[#allocation132_spill] sm:$0xff] }
 0x83e   :  { %v5668_v24 = vpop.permute.xlu1 %5667  ;;  %v6177_v50 = vsel %vm6176_vm4, %v6175_v0, %v14584_v36  ;;  %v14589_v0 = vld [vmem:[#allocation268_spill] sm:$0xff]  ;;  %v4614_v47 = vrot.slane %v14598_v54, 4 }
 0x83f   :  { %v11869_v29 = vpop.permute.xlu2 %5707  ;;  %v6359_v35 = vsel %vm6170_vm1, %v3467_v38, %v5668_v24  ;;  %v4488_v24 = vrot.slane %v11888_v13, 4 }
 0x840   :  { %v6360_v37 = vsel %vm6172_vm2, %v6359_v35, %v11756_v1  ;;  %v11898_v1 = vperm.slane %v4465_v11, %v7890_v33  ;;  %v6179_v11 = vsel %vm6178_vm5, %v6177_v50, %v14588_v56  ;;  %v14591_v50 = vld [vmem:[#allocation220_spill] sm:$0xff] }
 0x841   :  { %5963 = vrot.lane.b32.xlu0 %v4483_v57, %s14425_s17  ;;  %v6361_v35 = vsel %vm6174_vm3, %v6360_v37, %v11519_v42  ;;  %v14590_v42 = vld [vmem:[#allocation203_spill] sm:$0xff]  ;;  %v4140_v37 = vrot.slane %v11532_v12, 4  ;;  %v6181_v26 = vsel %vm6180_vm6, %v6179_v11, %v14592_v17  ;;  %v4590_v11 = vrot.slane %v11919_v60, 4  ;;  %s14613_s17 = smov 42  }
 0x842   :  { %v4489_v51 = vsel %vm1578_vm0, %v11898_v1, %v4488_v24  ;;  %v4639_v3 = vsel %vm1578_vm0, %v4638_v39, %v14590_v42  ;;  %v14599_v17 = vld [vmem:[#allocation215_spill] sm:$0xff] }
 0x843   :  { %v11891_v44 = vpop.permute.xlu0 %5795  ;;  %v4141_v12 = vsel %vm1578_vm0, %v11514_v52, %v4140_v37  ;;  %v11946_v42 = vperm.slane %v4639_v3, %v7860_v32 }
 0x844   :  { %5847 = vrot.lane.b32.xlu1 %v14585_v20, %s14430_s9  ;;  %v4550_v20 = vrot.slane %v14591_v50, 4 }
 0x845   :  { %5851 = vrot.lane.b32.xlu2 %v14583_v4, %s14582_s11  ;;  %v4540_v4 = vrot.slane %v14589_v0, 4  ;;  %v4674_v54 = vrot.slane %v11946_v42, 4 }
 0x846   :  { %v5680_v57 = vpop.permute.xlu1 %5679 }
 0x847   :  { %v11907_v38 = vpop.permute.xlu2 %5719  ;;  %v6362_v63 = vsel %vm6176_vm4, %v6361_v35, %v5680_v57  ;;  %v14593_v35 = vld [vmem:[#allocation163_spill] sm:$0xff] }
 0x848   :  { %v6363_v36 = vsel %vm6178_vm5, %v6362_v63, %v11794_v45  ;;  %v4541_v45 = vsel %vm1578_vm0, %v14593_v35, %v4540_v4  ;;  %v14594_v57 = vld [vmem:[#allocation267_spill] sm:$0xff]  ;;  %v14595_v63 = vld [vmem:[#allocation166_spill] sm:$0xff] }
 0x849   :  { %5975 = vrot.lane.b32.xlu0 %v4489_v51, %s14435_s12  ;;  %v4626_v56 = vrot.slane %v14594_v57, 4  ;;  %v6183_v39 = vsel %vm6182_vm7, %v6181_v26, %v14595_v63  ;;  %s14596_s12 = smov 100   ;;  %v14597_v51 = vld [vmem:[#allocation10_spill] sm:$0xff]  ;;  %v11953_v50 = vperm.slane %v4541_v45, %v7890_v33  ;;  %v6364_v52 = vsel %vm6180_vm6, %v6363_v36, %v11549_v18 }
 0x84a   :  { %v4574_v0 = vrot.slane %v14597_v51, 4  ;;  %v6185_v26 = vsel %vm13394_vm8, %v6183_v39, %v14599_v17  ;;  %v14601_v35 = vld [vmem:[#allocation82_spill] sm:$0xff] }
 0x84b   :  { %v11931_v24 = vpop.permute.xlu0 %5807  ;;  %v4602_v57 = vrot.slane %v14601_v35, 4  ;;  %v14602_v63 = vld [vmem:[#allocation162_spill] sm:$0xff]  ;;  %v4591_v45 = vsel %vm1578_vm0, %v4590_v11, %v11953_v50 }
 0x84c   :  { %5859 = vrot.lane.b32.xlu1 %v4141_v12, %s14443_s18  ;;  %v4627_v12 = vsel %vm1578_vm0, %v4626_v56, %v14602_v63  ;;  %v14603_v18 = vld [vmem:[#allocation190_spill] sm:$0xff] }
 0x84d   :  { %5863 = vrot.lane.b32.xlu2 %v4143_v34, %s14596_s12  ;;  %v14600_v34 = vld [vmem:[#allocation269_spill] sm:$0xff]  ;;  %v4575_v36 = vsel %vm1578_vm0, %v4574_v0, %v14603_v18  ;;  %v4633_v11 = vperm.slane %v4627_v12, %v7860_v32  ;;  %v14607_v63 = vld [vmem:[#allocation38_spill] sm:$0xff] }
 0x84e   :  { %v5692_v37 = vpop.permute.xlu1 %5691  ;;  %v4551_v3 = vsel %vm1578_vm0, %v4550_v20, %v14600_v34  ;;  %v14604_v20 = vld [vmem:[#allocation57_spill] sm:$0xff]  ;;  %v14605_v34 = vld [vmem:[#allocation140_spill] sm:$0xff] }
 0x84f   :  { %v11950_v4 = vpop.permute.xlu2 %5731  ;;  %v6365_v51 = vsel %vm6182_vm7, %v6364_v52, %v5692_v37  ;;  %v4615_v17 = vsel %vm1578_vm0, %v4614_v47, %v14604_v20  ;;  %v6187_v56 = vsel %vm13391_vm9, %v6185_v26, %v14605_v34  ;;  %v11978_v52 = vperm.slane %v4551_v3, %v7890_v33  ;;  %v14606_v37 = vld [vmem:[#allocation135_spill] sm:$0xff]  ;;  %v14608_v0 = vld [vmem:[#allocation245_spill] sm:$0xff] }
 0x850   :  { %v6366_v39 = vsel %vm13394_vm8, %v6365_v51, %v11834_v2  ;;  %v6189_v35 = vsel %vm13393_vm10, %v6187_v56, %v14606_v37  ;;  %v4603_v51 = vsel %vm1578_vm0, %v4602_v57, %v14607_v63  ;;  %v11990_v47 = vperm.slane %v4575_v36, %v7890_v33  ;;  %v14610_v3 = vld [vmem:[#allocation225_spill] sm:$0xff] }
 0x851   :  { %5987 = vrot.lane.b32.xlu0 %v4591_v45, %s14447_s14  ;;  %v4621_v26 = vperm.slane %v4615_v17, %v7860_v32  ;;  %s14609_s14 = smov 104   ;;  %v4675_v12 = vsel %vm1578_vm0, %v4674_v54, %v4633_v11  ;;  %v14611_v45 = vld [vmem:[#allocation133_spill] sm:$0xff]  ;;  %v4596_v57 = vrot.slane %v11978_v52, 4  ;;  %v4609_v34 = vperm.slane %v4603_v51, %v7860_v32 }
 0x852   :  { %v6191_v18 = vsel %vm13392_vm11, %v6189_v35, %v14611_v45  ;;  %v6367_v36 = vsel %vm13391_vm9, %v6366_v39, %v11581_v23  ;;  %v4250_v17 = vrot.slane %v11637_v25, 4  ;;  %v12009_v63 = vperm.slane %v4675_v12, %v7890_v33  ;;  %v14614_v23 = vld [vmem:[#allocation128_spill] sm:$0xff] }
 0x853   :  { %v11983_v2 = vpop.permute.xlu0 %5819  ;;  %v4597_v54 = vsel %vm1578_vm0, %v11990_v47, %v4596_v57  ;;  %v4650_v35 = vrot.slane %v4621_v26, 4  ;;  %vm14615_vm9 = vcmask 211968   ;;  %v4152_v39 = vrot.slane %v11602_v61, 4 }
 0x854   :  { %5871 = vrot.lane.b32.xlu1 %v14610_v3, %s14609_s14  ;;  %v4652_v45 = vrot.slane %v4609_v34, 4  ;;  %v4251_v12 = vsel %vm1578_vm0, %v4250_v17, %v11623_v28  ;;  %s14616_s14 = smov 112   ;;  %v4676_v28 = vrot.slane %v4633_v11, 4  ;;  %vm14625_vm8 = vcmask 228352  }
 0x855   :  { %5875 = vrot.lane.b32.xlu2 %v14608_v0, %s14450_s13  ;;  %v14612_v0 = vld [vmem:[#allocation304_spill] sm:$0xff]  ;;  %v4651_v57 = vsel %vm1578_vm0, %v4650_v35, %v4609_v34  ;;  %s14687_s13 = smov 8  }
 0x856   :  { %v5704_v56 = vpop.permute.xlu1 %5703  ;;  %v6193_v3 = vsel %vm13395_vm12, %v6191_v18, %v14612_v0  ;;  %v4698_v18 = vrot.slane %v12009_v63, 4  ;;  %v4653_v35 = vsel %vm1578_vm0, %v4621_v26, %v4652_v45 }
 0x857   :  { %v11998_v20 = vpop.permute.xlu2 %5743  ;;  %v6368_v37 = vsel %vm13393_vm10, %v6367_v36, %v5704_v56  ;;  %v6195_v25 = vsel %vm14615_vm9, %v6193_v3, %v14614_v23  ;;  %v14617_v56 = vld [vmem:[#allocation98_spill] sm:$0xff]  ;;  %vm14621_vm9 = vcmask 244736   ;;  %vm14622_vm10 = vcmask 211968  }
 0x858   :  { %v6369_v51 = vsel %vm13392_vm11, %v6368_v37, %v11869_v29  ;;  %v4153_v29 = vsel %vm1578_vm0, %v11573_v27, %v4152_v39  ;;  %vm14618_vm11 = vcmask 228352   ;;  %v14620_v27 = vld [vmem:[#allocation79_spill] sm:$0xff]  ;;  %v12052_v26 = vperm.slane %v4653_v35, %v7890_v33 }
 0x859   :  { %5999 = vrot.lane.b32.xlu0 %v4597_v54, %s14613_s17  ;;  %v6197_v37 = vsel %vm14618_vm11, %v6195_v25, %v14617_v56  ;;  %s14619_s17 = smov 110   ;;  %v12034_v54 = vperm.slane %v4651_v57, %v7890_v33  ;;  %v6370_v34 = vsel %vm13395_vm12, %v6369_v51, %v11628_v46  ;;  %v14623_v25 = vld [vmem:[#allocation77_spill] sm:$0xff]  ;;  %vm14624_vm11 = vcmask 261120   ;;  %v14627_v51 = vld [vmem:[#allocation43_spill] sm:$0xff]  ;;  %v14628_v57 = vld [vmem:[#allocation252_spill] sm:$0xff] }
 0x85a   :  { %v6199_v0 = vsel %vm14621_vm9, %v6197_v37, %v14620_v27  ;;  %v4677_v46 = vsel %vm1578_vm0, %v11946_v42, %v4676_v28  ;;  %v4688_v45 = vrot.slane %v14627_v51, 4  ;;  %v14632_v56 = vld [vmem:[#allocation251_spill] sm:$0xff]  ;;  %v14635_v28 = vld [vmem:[#allocation312_spill] sm:$0xff]  ;;  %v4704_v27 = vrot.slane %v12052_v26, 4 }
 0x85b   :  { %v12019_v36 = vpop.permute.xlu0 %5831  ;;  %v4699_v23 = vsel %vm1578_vm0, %v4698_v18, %v12034_v54  ;;  %v6201_v39 = vsel %vm14624_vm11, %v6199_v0, %v14623_v25  ;;  %v14631_v18 = vld [vmem:[#allocation302_spill] sm:$0xff]  ;;  %v14634_v42 = vld [vmem:[#allocation59_spill] sm:$0xff]  ;;  %v4262_v51 = vrot.slane %v11716_v55, 4  ;;  %vm14640_vm11 = vcmask 310272  }
 0x85c   :  { %5883 = vrot.lane.b32.xlu1 %v4153_v29, %s14619_s17  ;;  %s14626_s17 = smov 48   ;;  %v4689_v37 = vsel %vm1578_vm0, %v14632_v56, %v4688_v45  ;;  %v14636_v0 = vld [vmem:[#allocation102_spill] sm:$0xff]  ;;  %v14639_v45 = vld [vmem:[#allocation23_spill] sm:$0xff]  ;;  %vm14642_vm12 = vcmask 277504   ;;  %v4260_v55 = vrot.slane %v11678_v41, 4 }
 0x85d   :  { %5887 = vrot.lane.b32.xlu2 %v4251_v12, %s14616_s14  ;;  %s14630_s14 = smov 118   ;;  %v12085_v56 = vperm.slane %v4689_v37, %v7890_v33  ;;  %v4338_v37 = vrot.slane %v11727_v59, 4  ;;  %v14651_v59 = vld [vmem:[#allocation307_spill] sm:$0xff] }
 0x85e   :  { %v5716_v17 = vpop.permute.xlu1 %5715 }
 0x85f   :  { %v12031_v61 = vpop.permute.xlu2 %5755  ;;  %v6371_v3 = vsel %vm14622_vm10, %v6370_v34, %v5716_v17  ;;  %vm14629_vm10 = vcmask 277504   ;;  %v4664_v34 = vrot.slane %v14635_v28, 4  ;;  %v4314_v17 = vrot.slane %v11704_v43, 4 }
 0x860   :  { %v6372_v11 = vsel %vm14625_vm8, %v6371_v3, %v11907_v38  ;;  %v6203_v29 = vsel %vm14629_vm10, %v6201_v39, %v14628_v57  ;;  %v12062_v38 = vperm.slane %v4677_v46, %v7890_v33  ;;  %v4752_v3 = vrot.slane %v14636_v0, 4 }
 0x861   :  { %6011 = vrot.lane.b32.xlu0 %v4699_v23, %s14626_s17  ;;  %s14633_s17 = smov 116   ;;  %v14637_v23 = vld [vmem:[#allocation44_spill] sm:$0xff]  ;;  %vm14638_vm8 = vcmask 293888   ;;  %v6373_v39 = vsel %vm14621_vm9, %v6372_v11, %v11660_v58  ;;  %vm14641_vm10 = vcmask 261120   ;;  %v14644_v58 = vld [vmem:[#allocation234_spill] sm:$0xff]  ;;  %v4315_v0 = vsel %vm1578_vm0, %v4314_v17, %v11681_v7 }
 0x862   :  { %v6205_v25 = vsel %vm14638_vm8, %v6203_v29, %v14637_v23  ;;  %v4753_v11 = vsel %vm1578_vm0, %v14644_v58, %v4752_v3  ;;  %vm14648_vm8 = vcmask 326656   ;;  %v4263_v3 = vsel %vm1578_vm0, %v4262_v51, %v11701_v31  ;;  %v14653_v51 = vld [vmem:[#allocation113_spill] sm:$0xff]  ;;  %v14655_v58 = vld [vmem:[#allocation156_spill] sm:$0xff] }
 0x863   :  { %v12055_v12 = vpop.permute.xlu0 %5843  ;;  %v6207_v57 = vsel %vm14640_vm11, %v6205_v25, %v14639_v45  ;;  %v14647_v25 = vld [vmem:[#allocation280_spill] sm:$0xff]  ;;  %v4710_v7 = vrot.slane %v12085_v56, 4  ;;  %v12111_v17 = vperm.slane %v4753_v11, %v7860_v32  ;;  %v4786_v45 = vrot.slane %v14651_v59, 4 }
 0x864   :  { %5895 = vrot.lane.b32.xlu1 %v14634_v42, %s14633_s17  ;;  %s14643_s17 = smov 54   ;;  %v14645_v42 = vld [vmem:[#allocation310_spill] sm:$0xff]  ;;  %v4339_v31 = vsel %vm1578_vm0, %v4338_v37, %v11691_v40  ;;  %vm14658_vm9 = vcmask 359424   ;;  %vm14659_vm11 = vcmask 293888   ;;  %v4366_v37 = vrot.slane %v11750_v19, 4 }
 0x865   :  { %5899 = vrot.lane.b32.xlu2 %v14631_v18, %s14630_s14  ;;  %v4705_v18 = vsel %vm1578_vm0, %v12062_v38, %v4704_v27  ;;  %v4665_v28 = vsel %vm1578_vm0, %v14645_v42, %v4664_v34  ;;  %v14646_v27 = vld [vmem:[#allocation13_spill] sm:$0xff]  ;;  %v4261_v34 = vsel %vm1578_vm0, %v11652_v5, %v4260_v55  ;;  %s14652_s14 = smov 122   ;;  %v12128_v42 = vperm.slane %v4315_v0, %v7890_v33  ;;  %v14664_v19 = vld [vmem:[#allocation306_spill] sm:$0xff] }
 0x866   :  { %v5728_v46 = vpop.permute.xlu1 %5727  ;;  %v4762_v23 = vrot.slane %v14646_v27, 4  ;;  %v14657_v27 = vld [vmem:[#allocation14_spill] sm:$0xff]  ;;  %v12143_v59 = vperm.slane %v4339_v31, %v7890_v33 }
 0x867   :  { %v12070_v35 = vpop.permute.xlu2 %5767  ;;  %v6374_v43 = vsel %vm14641_vm10, %v6373_v39, %v5728_v46  ;;  %v14649_v46 = vld [vmem:[#allocation64_spill] sm:$0xff]  ;;  %vm14662_vm10 = vcmask 310272  }
 0x868   :  { %v6375_v29 = vsel %vm14642_vm12, %v6374_v43, %v11950_v4  ;;  %v6209_v4 = vsel %vm14648_vm8, %v6207_v57, %v14647_v25  ;;  %v4728_v41 = vrot.slane %v14649_v46, 4  ;;  %v12116_v57 = vperm.slane %v4665_v28, %v7890_v33 }
 0x869   :  { %6023 = vrot.lane.b32.xlu0 %v4705_v18, %s14643_s17  ;;  %s14650_s17 = smov 124   ;;  %v14654_v18 = vld [vmem:[#allocation150_spill] sm:$0xff]  ;;  %vm14656_vm12 = vcmask 343040   ;;  %v6376_v25 = vsel %vm14659_vm11, %v6375_v29, %v11706_v6  ;;  %v4787_v29 = vsel %vm1578_vm0, %v4786_v45, %v14664_v19  ;;  %vm14674_vm11 = vcmask 408576  }
 0x86a   :  { %v4729_v43 = vsel %vm1578_vm0, %v14653_v51, %v4728_v41  ;;  %v4740_v5 = vrot.slane %v14654_v18, 4  ;;  %v6211_v55 = vsel %vm14656_vm12, %v6209_v4, %v14655_v58  ;;  %v14661_v41 = vld [vmem:[#allocation250_spill] sm:$0xff]  ;;  %v4711_v0 = vsel %vm1578_vm0, %v4710_v7, %v12116_v57 }
 0x86b   :  { %v12101_v39 = vpop.permute.xlu0 %5855  ;;  %v6213_v28 = vsel %vm14658_vm9, %v6211_v55, %v14657_v27  ;;  %v4798_v51 = vrot.slane %v12111_v17, 4  ;;  %vm14667_vm12 = vcmask 375808   ;;  %v4364_v7 = vrot.slane %v12128_v42, 4 }
 0x86c   :  { %5907 = vrot.lane.b32.xlu1 %v4261_v34, %s14652_s14  ;;  %v4741_v4 = vsel %vm1578_vm0, %v14661_v41, %v4740_v5  ;;  %s14663_s14 = smov 60   ;;  %v14666_v5 = vld [vmem:[#allocation249_spill] sm:$0xff]  ;;  %v4737_v55 = vperm.slane %v4729_v43, %v7860_v32  ;;  %vm14670_vm9 = vcmask 392192  }
 0x86d   :  { %5911 = vrot.lane.b32.xlu2 %v4263_v3, %s14650_s17  ;;  %v14660_v3 = vld [vmem:[#allocation300_spill] sm:$0xff]  ;;  %v6215_v58 = vsel %vm14667_vm12, %v6213_v28, %v14666_v5  ;;  %v4749_v27 = vperm.slane %v4741_v4, %v7860_v32  ;;  %v4365_v45 = vsel %vm1578_vm0, %v12143_v59, %v4364_v7  ;;  %v12168_v28 = vperm.slane %v4787_v29, %v7890_v33  ;;  %s14671_s17 = smov 2   ;;  %v14673_v4 = vld [vmem:[#allocation273_spill] sm:$0xff] }
 0x86e   :  { %v5740_v40 = vpop.permute.xlu1 %5739  ;;  %v4763_v46 = vsel %vm1578_vm0, %v4762_v23, %v14660_v3  ;;  %v14665_v23 = vld [vmem:[#allocation95_spill] sm:$0xff]  ;;  %vm14678_vm12 = vcmask 424960  }
 0x86f   :  { %v12125_v11 = vpop.permute.xlu2 %5779  ;;  %v6377_v34 = vsel %vm14662_vm10, %v6376_v25, %v5740_v40  ;;  %v4716_v18 = vrot.slane %v14665_v23, 4  ;;  %v12156_v31 = vperm.slane %v4763_v46, %v7890_v33  ;;  %v4367_v25 = vsel %vm1578_vm0, %v4366_v37, %v11741_v49  ;;  %v14669_v40 = vld [vmem:[#allocation210_spill] sm:$0xff] }
 0x870   :  { %v6378_v6 = vsel %vm14648_vm8, %v6377_v34, %v11998_v20  ;;  %v6217_v3 = vsel %vm14670_vm9, %v6215_v58, %v14669_v40  ;;  %v4799_v43 = vsel %vm1578_vm0, %v4798_v51, %v4749_v27  ;;  %v14672_v46 = vld [vmem:[#allocation94_spill] sm:$0xff]  ;;  %vm14675_vm10 = vcmask 343040  }
 0x871   :  { %6035 = vrot.lane.b32.xlu0 %v4711_v0, %s14663_s14  ;;  %s14668_s14 = smov 4   ;;  %v4717_v41 = vsel %vm1578_vm0, %v14672_v46, %v4716_v18  ;;  %v6219_v49 = vsel %vm14674_vm11, %v6217_v3, %v14673_v4  ;;  %v4812_v34 = vrot.slane %v12156_v31, 4  ;;  %v4774_v0 = vrot.slane %v4737_v55, 4  ;;  %v14677_v58 = vld [vmem:[#allocation238_spill] sm:$0xff]  ;;  %v14684_v3 = vld [vmem:[#allocation253_spill] sm:$0xff] }
 0x872   :  { %v6379_v19 = vsel %vm14675_vm10, %v6378_v6, %v11743_v48  ;;  %vm14676_vm8 = vcmask 359424   ;;  %v12187_v5 = vperm.slane %v4799_v43, %v7890_v33  ;;  %v4725_v18 = vperm.slane %v4717_v41, %v7860_v32  ;;  %v14685_v41 = vld [vmem:[#allocation145_spill] sm:$0xff] }
 0x873   :  { %v12160_v20 = vpop.permute.xlu0 %5867  ;;  %v4813_v51 = vsel %vm1578_vm0, %v12168_v28, %v4812_v34  ;;  %v6221_v7 = vsel %vm14678_vm12, %v6219_v49, %v14677_v58  ;;  %vm14679_vm9 = vcmask 375808   ;;  %vm14682_vm11 = vcmask 441344  }
 0x874   :  { %5919 = vrot.lane.b32.xlu1 %v4365_v45, %s14671_s17  ;;  %s14680_s17 = smov 66   ;;  %v4775_v6 = vsel %vm1578_vm0, %v4774_v0, %v4725_v18  ;;  %v14681_v45 = vld [vmem:[#allocation107_spill] sm:$0xff]  ;;  %v4818_v43 = vrot.slane %v12187_v5, 4  ;;  %v4776_v46 = vrot.slane %v4725_v18, 4  ;;  %vm14686_vm10 = vcmask 457728   ;;  %v14690_v18 = vld [vmem:[#allocation46_spill] sm:$0xff] }
 0x875   :  { %5923 = vrot.lane.b32.xlu2 %v4367_v25, %s14668_s14  ;;  %v6223_v40 = vsel %vm14682_vm11, %v6221_v7, %v14681_v45  ;;  %s14683_s14 = smov 10   ;;  %v12210_v34 = vperm.slane %v4775_v6, %v7890_v33  ;;  %vm14691_vm12 = vcmask 474112   ;;  %vm14694_vm11 = vcmask 424960  }
 0x876   :  { %v5752_v29 = vpop.permute.xlu1 %5751  ;;  %v6225_v4 = vsel %vm14686_vm10, %v6223_v40, %v14685_v41  ;;  %v4777_v0 = vsel %vm1578_vm0, %v4737_v55, %v4776_v46  ;;  %v14693_v40 = vld [vmem:[#allocation184_spill] sm:$0xff]  ;;  %vm14697_vm10 = vcmask 490496   ;;  %v14698_v46 = vld [vmem:[#allocation27_spill] sm:$0xff] }
 0x877   :  { %v12178_v37 = vpop.permute.xlu2 %5791  ;;  %v6380_v23 = vsel %vm14676_vm8, %v6379_v19, %v5752_v29  ;;  %v4800_v19 = vrot.slane %v4749_v27, 4  ;;  %vm14689_vm8 = vcmask 392192   ;;  %v6227_v58 = vsel %vm14691_vm12, %v6225_v4, %v14690_v18  ;;  %v14702_v4 = vld [vmem:[#allocation88_spill] sm:$0xff] }
 0x878   :  { %v6381_v25 = vsel %vm14679_vm9, %v6380_v23, %v12031_v61  ;;  %v14688_v61 = vld [vmem:[#allocation256_spill] sm:$0xff]  ;;  %vm14692_vm9 = vcmask 408576   ;;  %v4819_v45 = vsel %vm1578_vm0, %v4818_v43, %v12210_v34  ;;  %v4900_v6 = vrot.slane %v14693_v40, 4  ;;  %v14708_v40 = vld [vmem:[#allocation91_spill] sm:$0xff] }
 0x879   :  { %6047 = vrot.lane.b32.xlu0 %v4813_v51, %s14680_s17  ;;  %v6382_v29 = vsel %vm14689_vm8, %v6381_v25, %v11777_v15  ;;  %v4474_v51 = vrot.slane %v11827_v62, 4  ;;  %v4801_v15 = vsel %vm1578_vm0, %v12111_v17, %v4800_v19  ;;  %v4376_v62 = vrot.slane %v11797_v9, 4  ;;  %v14696_v25 = vld [vmem:[#allocation278_spill] sm:$0xff]  ;;  %s14700_s17 = smov 16  }
 0x87a   :  { %v12229_v27 = vperm.slane %v4777_v0, %v7890_v33  ;;  %vm14699_vm8 = vcmask 506880   ;;  %v12243_v9 = vperm.slane %v4801_v15, %v7890_v33  ;;  %v14703_v0 = vld [vmem:[#allocation214_spill] sm:$0xff]  ;;  %vm14705_vm12 = vcmask 523264  }
 0x87b   :  { %v12195_v48 = vpop.permute.xlu0 %5879  ;;  %v4475_v43 = vsel %vm1578_vm0, %v4474_v51, %v11817_v10  ;;  %v4377_v17 = vsel %vm1578_vm0, %v11767_v53, %v4376_v62  ;;  %v4974_v10 = vrot.slane %v14703_v0, 4  ;;  %v14711_v62 = vld [vmem:[#allocation206_spill] sm:$0xff] }
 0x87c   :  { %5931 = vrot.lane.b32.xlu1 %v14688_v61, %s14687_s13  ;;  %s14695_s13 = smov 72   ;;  %v4901_v61 = vsel %vm1578_vm0, %v14702_v4, %v4900_v6  ;;  %v4876_v6 = vrot.slane %v14708_v40, 4 }
 0x87d   :  { %5935 = vrot.lane.b32.xlu2 %v14684_v3, %s14683_s14  ;;  %v6229_v3 = vsel %vm14697_vm10, %v6227_v58, %v14696_v25  ;;  %s14701_s14 = smov 14   ;;  %vm14709_vm10 = vcmask 474112   ;;  %v4975_v25 = vsel %vm1578_vm0, %v4974_v10, %v14711_v62 }
 0x87e   :  { %v5764_v23 = vpop.permute.xlu1 %5763  ;;  %v6231_v41 = vsel %vm14699_vm8, %v6229_v3, %v14698_v46  ;;  %vm14713_vm8 = vcmask 539648   ;;  %v14714_v3 = vld [vmem:[#allocation155_spill] sm:$0xff]  ;;  %v14715_v46 = vld [vmem:[#allocation173_spill] sm:$0xff] }
 0x87f   :  { %v12207_v49 = vpop.permute.xlu2 %5803  ;;  %v6383_v7 = vsel %vm14692_vm9, %v6382_v29, %v5764_v23  ;;  %v4824_v29 = vrot.slane %v12229_v27, 4  ;;  %v14704_v23 = vld [vmem:[#allocation167_spill] sm:$0xff]  ;;  %vm14706_vm9 = vcmask 441344  }
 0x880   :  { %v6384_v55 = vsel %vm14694_vm11, %v6383_v7, %v12070_v35  ;;  %v6233_v51 = vsel %vm14705_vm12, %v6231_v41, %v14704_v23  ;;  %vm14707_vm11 = vcmask 457728   ;;  %vm14716_vm12 = vcmask 556032   ;;  %v14721_v23 = vld [vmem:[#allocation311_spill] sm:$0xff] }
 0x881   :  { %6059 = vrot.lane.b32.xlu0 %v4819_v45, %s14695_s13  ;;  %v6385_v53 = vsel %vm14706_vm9, %v6384_v55, %v11821_v14  ;;  %v4825_v7 = vsel %vm1578_vm0, %v12243_v9, %v4824_v29  ;;  %v12260_v45 = vperm.slane %v4901_v61, %v7890_v33  ;;  %s14710_s13 = smov 78   ;;  %v14712_v14 = vld [vmem:[#allocation317_spill] sm:$0xff]  ;;  %v14718_v61 = vld [vmem:[#allocation116_spill] sm:$0xff]  ;;  %v14719_v29 = vld [vmem:[#allocation259_spill] sm:$0xff]  ;;  %vm14726_vm9 = vcmask 572416  }
 0x882   :  { %v6235_v55 = vsel %vm14713_vm8, %v6233_v51, %v14712_v14  ;;  %v4950_v0 = vrot.slane %v14718_v61, 4  ;;  %v14723_v51 = vld [vmem:[#allocation314_spill] sm:$0xff]  ;;  %vm14734_vm8 = vcmask 588800  }
 0x883   :  { %v12237_v35 = vpop.permute.xlu0 %5891  ;;  %v6237_v41 = vsel %vm14716_vm12, %v6235_v55, %v14715_v46  ;;  %v4926_v10 = vrot.slane %v12260_v45, 4  ;;  %v14727_v55 = vld [vmem:[#allocation165_spill] sm:$0xff]  ;;  %v14729_v61 = vld [vmem:[#allocation262_spill] sm:$0xff]  ;;  %vm14735_vm12 = vcmask 523264  }
 0x884   :  { %5943 = vrot.lane.b32.xlu1 %v4377_v17, %s14701_s14  ;;  %v14717_v17 = vld [vmem:[#allocation103_spill] sm:$0xff]  ;;  %s14722_s14 = smov 20  }
 0x885   :  { %5947 = vrot.lane.b32.xlu2 %v4475_v43, %s14700_s17  ;;  %v4886_v43 = vrot.slane %v14714_v3, 4  ;;  %v4877_v4 = vsel %vm1578_vm0, %v14717_v17, %v4876_v6  ;;  %s14720_s17 = smov 22   ;;  %v4910_v3 = vrot.slane %v14727_v55, 4  ;;  %v4486_v17 = vrot.slane %v11898_v1, 4 }
 0x886   :  { %v5776_v18 = vpop.permute.xlu1 %5775  ;;  %v12293_v14 = vperm.slane %v4877_v4, %v7890_v33 }
 0x887   :  { %v12249_v19 = vpop.permute.xlu2 %5815  ;;  %v6386_v58 = vsel %vm14707_vm11, %v6385_v53, %v5776_v18  ;;  %v12281_v53 = vperm.slane %v4975_v25, %v7860_v32  ;;  %v14724_v18 = vld [vmem:[#allocation84_spill] sm:$0xff]  ;;  %vm14728_vm11 = vcmask 490496  }
 0x888   :  { %v6387_v15 = vsel %vm14709_vm10, %v6386_v58, %v12125_v11  ;;  %v4962_v11 = vrot.slane %v14719_v29, 4  ;;  %v4938_v58 = vrot.slane %v14724_v18, 4  ;;  %v4887_v29 = vsel %vm1578_vm0, %v4886_v43, %v14729_v61  ;;  %v14737_v43 = vld [vmem:[#allocation20_spill] sm:$0xff]  ;;  %v14738_v61 = vld [vmem:[#allocation286_spill] sm:$0xff] }
 0x889   :  { %6071 = vrot.lane.b32.xlu0 %v4825_v7, %s14710_s13  ;;  %v14725_v7 = vld [vmem:[#allocation243_spill] sm:$0xff]  ;;  %v6388_v25 = vsel %vm14728_vm11, %v6387_v15, %v11854_v8  ;;  %vm14732_vm10 = vcmask 506880   ;;  %v5010_v55 = vrot.slane %v12281_v53, 4  ;;  %v14733_v8 = vld [vmem:[#allocation96_spill] sm:$0xff]  ;;  %s14736_s13 = smov 84   ;;  %vm14743_vm11 = vcmask 621568  }
 0x88a   :  { %v6239_v40 = vsel %vm14726_vm9, %v6237_v41, %v14725_v7  ;;  %v4927_v7 = vsel %vm1578_vm0, %v4926_v10, %v12293_v14  ;;  %vm14739_vm9 = vcmask 605184   ;;  %v12320_v10 = vperm.slane %v4887_v29, %v7890_v33  ;;  %v14742_v29 = vld [vmem:[#allocation45_spill] sm:$0xff] }
 0x88b   :  { %v12288_v6 = vpop.permute.xlu0 %5903  ;;  %v6241_v15 = vsel %vm14734_vm8, %v6239_v40, %v14733_v8  ;;  %v14746_v8 = vld [vmem:[#allocation285_spill] sm:$0xff]  ;;  %vm14747_vm8 = vcmask 637952  }
 0x88c   :  { %5955 = vrot.lane.b32.xlu1 %v14723_v51, %s14722_s14  ;;  %v14731_v51 = vld [vmem:[#allocation213_spill] sm:$0xff]  ;;  %s14744_s14 = smov 26  }
 0x88d   :  { %5959 = vrot.lane.b32.xlu2 %v14721_v23, %s14720_s17  ;;  %v14730_v23 = vld [vmem:[#allocation66_spill] sm:$0xff]  ;;  %v4963_v18 = vsel %vm1578_vm0, %v4962_v11, %v14731_v51  ;;  %v6243_v11 = vsel %vm14739_vm9, %v6241_v15, %v14738_v61  ;;  %s14741_s17 = smov 28   ;;  %vm14750_vm9 = vcmask 654336  }
 0x88e   :  { %v5788_v46 = vpop.permute.xlu1 %5787  ;;  %v4951_v41 = vsel %vm1578_vm0, %v4950_v0, %v14730_v23  ;;  %v4911_v0 = vsel %vm1578_vm0, %v4910_v3, %v14737_v43  ;;  %v4969_v40 = vperm.slane %v4963_v18, %v7860_v32  ;;  %v14740_v23 = vld [vmem:[#allocation40_spill] sm:$0xff] }
 0x88f   :  { %v12290_v62 = vpop.permute.xlu2 %5827  ;;  %v6389_v4 = vsel %vm14732_vm10, %v6388_v25, %v5788_v46  ;;  %v4484_v25 = vrot.slane %v11872_v21, 4  ;;  %v4957_v46 = vperm.slane %v4951_v41, %v7860_v32  ;;  %v4939_v51 = vsel %vm1578_vm0, %v4938_v58, %v14740_v23  ;;  %v14752_v23 = vld [vmem:[#allocation223_spill] sm:$0xff] }
 0x890   :  { %v6390_v1 = vsel %vm14735_vm12, %v6389_v4, %v12178_v37  ;;  %v4487_v37 = vsel %vm1578_vm0, %v4486_v17, %v11888_v13  ;;  %v12332_v21 = vperm.slane %v4911_v0, %v7890_v33  ;;  %v6245_v4 = vsel %vm14743_vm11, %v6243_v11, %v14742_v29  ;;  %v14749_v11 = vld [vmem:[#allocation218_spill] sm:$0xff] }
 0x891   :  { %6083 = vrot.lane.b32.xlu0 %v4927_v7, %s14736_s13  ;;  %v4485_v3 = vsel %vm1578_vm0, %v11844_v16, %v4484_v25  ;;  %v5011_v41 = vsel %vm1578_vm0, %v5010_v55, %v4969_v40  ;;  %v4932_v13 = vrot.slane %v12320_v10, 4  ;;  %v4945_v58 = vperm.slane %v4939_v51, %v7860_v32  ;;  %s14755_s13 = smov 32  }
 0x892   :  { %v4986_v17 = vrot.slane %v4957_v46, 4  ;;  %vm14745_vm10 = vcmask 539648   ;;  %v6247_v15 = vsel %vm14747_vm8, %v6245_v4, %v14746_v8  ;;  %vm14748_vm12 = vcmask 556032   ;;  %v14756_v4 = vld [vmem:[#allocation305_spill] sm:$0xff] }
 0x893   :  { %v6391_v16 = vsel %vm14745_vm10, %v6390_v1, %v11891_v44  ;;  %v12346_v43 = vpop.permute.xlu0 %5915  ;;  %v4933_v55 = vsel %vm1578_vm0, %v12332_v21, %v4932_v13  ;;  %v12352_v61 = vperm.slane %v5011_v41, %v7890_v33  ;;  %v6249_v25 = vsel %vm14750_vm9, %v6247_v15, %v14749_v11 }
 0x894   :  { %5967 = vrot.lane.b32.xlu1 %v4485_v3, %s14744_s14  ;;  %vm14751_vm11 = vcmask 572416   ;;  %v4987_v1 = vsel %vm1578_vm0, %v4986_v17, %v4945_v58  ;;  %vm14753_vm10 = vcmask 670720   ;;  %v14754_v3 = vld [vmem:[#allocation207_spill] sm:$0xff]  ;;  %v5012_v17 = vrot.slane %v4969_v40, 4 }
 0x895   :  { %5971 = vrot.lane.b32.xlu2 %v4487_v37, %s14741_s17  ;;  %v4988_v37 = vrot.slane %v4945_v58, 4  ;;  %v6251_v51 = vsel %vm14753_vm10, %v6249_v25, %v14752_v23  ;;  %v5034_v29 = vrot.slane %v12352_v61, 4  ;;  %v14757_v58 = vld [vmem:[#allocation109_spill] sm:$0xff]  ;;  %vm14758_vm8 = vcmask 687104  }
 0x896   :  { %v5800_v7 = vpop.permute.xlu1 %5799  ;;  %v4594_v15 = vrot.slane %v11990_v47, 4  ;;  %vm14761_vm9 = vcmask 703488   ;;  %vm14763_vm10 = vcmask 621568   ;;  %v5013_v40 = vsel %vm1578_vm0, %v12281_v53, %v5012_v17 }
 0x897   :  { %v12338_v18 = vpop.permute.xlu2 %5839  ;;  %v6392_v0 = vsel %vm14748_vm12, %v6391_v16, %v5800_v7  ;;  %v4989_v13 = vsel %vm1578_vm0, %v4957_v46, %v4988_v37  ;;  %v6253_v16 = vsel %vm14758_vm8, %v6251_v51, %v14757_v58  ;;  %vm14759_vm12 = vcmask 588800   ;;  %v14765_v37 = vld [vmem:[#allocation196_spill] sm:$0xff]  ;;  %v14766_v51 = vld [vmem:[#allocation70_spill] sm:$0xff]  ;;  %v14771_v58 = vld [vmem:[#allocation279_spill] sm:$0xff] }
 0x898   :  { %v6393_v44 = vsel %vm14751_vm11, %v6392_v0, %v12207_v49  ;;  %v12370_v49 = vperm.slane %v4987_v1, %v7890_v33  ;;  %v14760_v0 = vld [vmem:[#allocation227_spill] sm:$0xff]  ;;  %vm14762_vm11 = vcmask 605184   ;;  %v4592_v47 = vrot.slane %v11953_v50, 4 }
 0x899   :  { %6095 = vrot.lane.b32.xlu0 %v4933_v55, %s14516_s16  ;;  %v6394_v7 = vsel %vm14759_vm12, %v6393_v44, %v11931_v24  ;;  %v6255_v55 = vsel %vm14761_vm9, %v6253_v16, %v14760_v0  ;;  %vm14764_vm8 = vcmask 637952   ;;  %v12394_v1 = vperm.slane %v4989_v13, %v7890_v33  ;;  %s14835_s16 = smov 68  }
 0x89a   :  { %v5035_v25 = vsel %vm1578_vm0, %v5034_v29, %v12370_v49  ;;  %v5024_v23 = vrot.slane %v14765_v37, 4  ;;  %vm14767_vm12 = vcmask 719872   ;;  %v4593_v53 = vsel %vm1578_vm0, %v11919_v60, %v4592_v47  ;;  %v14773_v60 = vld [vmem:[#allocation189_spill] sm:$0xff]  ;;  %v14778_v37 = vld [vmem:[#allocation171_spill] sm:$0xff] }
 0x89b   :  { %v12388_v24 = vpop.permute.xlu0 %5927  ;;  %v12405_v50 = vperm.slane %v5013_v40, %v7890_v33  ;;  %vm14770_vm9 = vcmask 736256   ;;  %v14776_v40 = vld [vmem:[#allocation276_spill] sm:$0xff] }
 0x89c   :  { %5979 = vrot.lane.b32.xlu1 %v14756_v4, %s14755_s13  ;;  %v14769_v4 = vld [vmem:[#allocation130_spill] sm:$0xff] }
 0x89d   :  { %5983 = vrot.lane.b32.xlu2 %v14754_v3, %s14517_s1  ;;  %v4595_v3 = vsel %vm1578_vm0, %v4594_v15, %v11978_v52  ;;  %v5040_v52 = vrot.slane %v12394_v1, 4  ;;  %s14825_s1 = smov 62  }
 0x89e   :  { %v5812_v8 = vpop.permute.xlu1 %5811 }
 0x89f   :  { %v12367_v41 = vpop.permute.xlu2 %5851  ;;  %v6395_v11 = vsel %vm14762_vm11, %v6394_v7, %v5812_v8  ;;  %vm14772_vm11 = vcmask 752640   ;;  %v5088_v8 = vrot.slane %v14773_v60, 4  ;;  %v5041_v15 = vsel %vm1578_vm0, %v12405_v50, %v5040_v52 }
 0x8a0   :  { %v6396_v46 = vsel %vm14763_vm10, %v6395_v11, %v12249_v19  ;;  %v6257_v19 = vsel %vm14767_vm12, %v6255_v55, %v14766_v51  ;;  %v14774_v55 = vld [vmem:[#allocation209_spill] sm:$0xff]  ;;  %vm14777_vm10 = vcmask 769024   ;;  %v14779_v51 = vld [vmem:[#allocation143_spill] sm:$0xff]  ;;  %vm14788_vm12 = vcmask 801792  }
 0x8a1   :  { %6107 = vrot.lane.b32.xlu0 %v5035_v25, %s14522_s15  ;;  %v6397_v44 = vsel %vm14764_vm8, %v6396_v46, %v11983_v2  ;;  %v14768_v2 = vld [vmem:[#allocation22_spill] sm:$0xff]  ;;  %v6259_v13 = vsel %vm14770_vm9, %v6257_v19, %v14769_v4  ;;  %v5000_v11 = vrot.slane %v14774_v55, 4  ;;  %v14775_v25 = vld [vmem:[#allocation309_spill] sm:$0xff]  ;;  %vm14785_vm8 = vcmask 785408   ;;  %v14786_v55 = vld [vmem:[#allocation284_spill] sm:$0xff] }
 0x8a2   :  { %v5025_v29 = vsel %vm1578_vm0, %v14768_v2, %v5024_v23  ;;  %v6261_v16 = vsel %vm14772_vm11, %v6259_v13, %v14771_v58  ;;  %v5089_v46 = vsel %vm1578_vm0, %v14775_v25, %v5088_v8  ;;  %v5098_v23 = vrot.slane %v14778_v37, 4  ;;  %v14781_v2 = vld [vmem:[#allocation152_spill] sm:$0xff]  ;;  %v14782_v13 = vld [vmem:[#allocation11_spill] sm:$0xff] }
 0x8a3   :  { %v12421_v0 = vperm.slane %v5025_v29, %v7890_v33  ;;  %v6263_v47 = vsel %vm14777_vm10, %v6261_v16, %v14776_v40  ;;  %v5001_v19 = vsel %vm1578_vm0, %v14779_v51, %v5000_v11  ;;  %v5076_v29 = vrot.slane %v14781_v2, 4  ;;  %v12434_v4 = vpop.permute.xlu0 %5939  ;;  %v14783_v16 = vld [vmem:[#allocation313_spill] sm:$0xff]  ;;  %v14784_v8 = vld [vmem:[#allocation192_spill] sm:$0xff]  ;;  %v14790_v2 = vld [vmem:[#allocation75_spill] sm:$0xff] }
 0x8a4   :  { %5991 = vrot.lane.b32.xlu1 %v4593_v53, %s14345_s8  ;;  %v12440_v58 = vperm.slane %v5089_v46, %v7860_v32  ;;  %v5122_v60 = vrot.slane %v14783_v16, 4  ;;  %v14787_v11 = vld [vmem:[#allocation169_spill] sm:$0xff]  ;;  %v12452_v37 = vperm.slane %v5001_v19, %v7890_v33  ;;  %vm14789_vm9 = vcmask 654336  }
 0x8a5   :  { %5995 = vrot.lane.b32.xlu2 %v4595_v3, %s14344_s7  ;;  %v14780_v3 = vld [vmem:[#allocation174_spill] sm:$0xff]  ;;  %v5046_v52 = vrot.slane %v12421_v0, 4  ;;  %vm14794_vm11 = vcmask 818176   ;;  %vm14796_vm10 = vcmask 670720  }
 0x8a6   :  { %v5824_v7 = vpop.permute.xlu1 %5823  ;;  %v5064_v53 = vrot.slane %v14780_v3, 4  ;;  %v4702_v3 = vrot.slane %v12062_v38, 4  ;;  %v5134_v19 = vrot.slane %v12440_v58, 4  ;;  %v14795_v38 = vld [vmem:[#allocation308_spill] sm:$0xff] }
 0x8a7   :  { %v12412_v17 = vpop.permute.xlu2 %5863  ;;  %v6398_v51 = vsel %vm14789_vm9, %v6397_v44, %v5824_v7  ;;  %v5123_v7 = vsel %vm1578_vm0, %v5122_v60, %v14795_v38  ;;  %vm14802_vm9 = vcmask 687104  }
 0x8a9   :  { %6119 = vrot.lane.b32.xlu0 %v5041_v15, %s14350_s6  ;;  %v6265_v15 = vsel %vm14785_vm8, %v6263_v47, %v14784_v8  ;;  %v14791_v47 = vld [vmem:[#allocation131_spill] sm:$0xff]  ;;  %v14792_v8 = vld [vmem:[#allocation181_spill] sm:$0xff]  ;;  %vm14799_vm8 = vcmask 834560  }
 0x8aa   :  { %v6267_v25 = vsel %vm14788_vm12, %v6265_v15, %v14787_v11  ;;  %v5065_v16 = vsel %vm1578_vm0, %v14791_v47, %v5064_v53  ;;  %v5047_v15 = vsel %vm1578_vm0, %v5046_v52, %v12452_v37  ;;  %v14793_v11 = vld [vmem:[#allocation229_spill] sm:$0xff]  ;;  %v4700_v53 = vrot.slane %v12034_v54, 4  ;;  %v14797_v47 = vld [vmem:[#allocation36_spill] sm:$0xff] }
 0x8ab   :  { %v6269_v44 = vsel %vm14794_vm11, %v6267_v25, %v14793_v11  ;;  %v5073_v52 = vperm.slane %v5065_v16, %v7860_v32  ;;  %v4703_v25 = vsel %vm1578_vm0, %v4702_v3, %v12052_v26  ;;  %vm14801_vm12 = vcmask 850944   ;;  %v14803_v3 = vld [vmem:[#allocation97_spill] sm:$0xff]  ;;  %v12497_v11 = vpop.permute.xlu0 %5951 }
 0x8ac   :  { %6003 = vrot.lane.b32.xlu1 %v14786_v55, %s14356_s4  ;;  %v5077_v55 = vsel %vm1578_vm0, %v14792_v8, %v5076_v29  ;;  %v5052_v8 = vrot.slane %v14797_v47, 4  ;;  %v4701_v54 = vsel %vm1578_vm0, %v12009_v63, %v4700_v53  ;;  %vm14804_vm11 = vcmask 703488  }
 0x8ad   :  { %6007 = vrot.lane.b32.xlu2 %v14782_v13, %s14353_s5  ;;  %v5099_v13 = vsel %vm1578_vm0, %v5098_v23, %v14790_v2  ;;  %v6399_v23 = vsel %vm14796_vm10, %v6398_v51, %v12290_v62  ;;  %v5085_v2 = vperm.slane %v5077_v55, %v7860_v32  ;;  %v12487_v62 = vperm.slane %v5123_v7, %v7890_v33  ;;  %v14800_v51 = vld [vmem:[#allocation15_spill] sm:$0xff] }
 0x8ae   :  { %v5836_v46 = vpop.permute.xlu1 %5835  ;;  %v12474_v29 = vperm.slane %v5099_v13, %v7890_v33  ;;  %v6400_v16 = vsel %vm14802_vm9, %v6399_v23, %v12019_v36  ;;  %v5053_v55 = vsel %vm1578_vm0, %v14803_v3, %v5052_v8  ;;  %v5110_v7 = vrot.slane %v5073_v52, 4  ;;  %v14808_v8 = vld [vmem:[#allocation248_spill] sm:$0xff]  ;;  %v14815_v3 = vld [vmem:[#allocation211_spill] sm:$0xff] }
 0x8af   :  { %v12449_v40 = vpop.permute.xlu2 %5875  ;;  %v5135_v26 = vsel %vm1578_vm0, %v5134_v19, %v5085_v2  ;;  %v6401_v63 = vsel %vm14804_vm11, %v6400_v16, %v5836_v46  ;;  %vm14806_vm10 = vcmask 867328   ;;  %v5061_v47 = vperm.slane %v5053_v55, %v7860_v32  ;;  %v14813_v16 = vld [vmem:[#allocation205_spill] sm:$0xff] }
 0x8b0   :  { %v5148_v38 = vrot.slane %v12474_v29, 4  ;;  %v12508_v19 = vperm.slane %v5135_v26, %v7890_v33  ;;  %vm14811_vm9 = vcmask 900096   ;;  %vm14812_vm11 = vcmask 736256  }
 0x8b1   :  { %6131 = vrot.lane.b32.xlu0 %v5047_v15, %s14364_s3  ;;  %v14798_v15 = vld [vmem:[#allocation277_spill] sm:$0xff]  ;;  %v5112_v26 = vrot.slane %v5061_v47, 4 }
 0x8b2   :  { %v6271_v60 = vsel %vm14799_vm8, %v6269_v44, %v14798_v15  ;;  %v5149_v23 = vsel %vm1578_vm0, %v12487_v62, %v5148_v38  ;;  %vm14807_vm8 = vcmask 719872   ;;  %v5154_v32 = vrot.slane %v12508_v19, 4 }
 0x8b3   :  { %v6273_v13 = vsel %vm14801_vm12, %v6271_v60, %v14800_v51  ;;  %v6402_v46 = vsel %vm14807_vm8, %v6401_v63, %v12338_v18  ;;  %vm14809_vm12 = vcmask 883712   ;;  %v5111_v60 = vsel %vm1578_vm0, %v5110_v7, %v5061_v47 }
 0x8b4   :  { %6015 = vrot.lane.b32.xlu1 %v4701_v54, %s14368_s30  ;;  %v14810_v54 = vld [vmem:[#allocation219_spill] sm:$0xff]  ;;  %v12528_v63 = vperm.slane %v5111_v60, %v7890_v33  ;;  %v5113_v38 = vsel %vm1578_vm0, %v5073_v52, %v5112_v26  ;;  %v5136_v7 = vrot.slane %v5085_v2, 4  ;;  %vm14817_vm8 = vcmask 916480   ;;  %v14821_v60 = vld [vmem:[#allocation148_spill] sm:$0xff] }
 0x8b5   :  { %6019 = vrot.lane.b32.xlu2 %v4703_v25, %s14367_s2  ;;  %v14805_v25 = vld [vmem:[#allocation264_spill] sm:$0xff]  ;;  %v14819_v2 = vld [vmem:[#allocation39_spill] sm:$0xff] }
 0x8b6   :  { %v5848_v53 = vpop.permute.xlu1 %5847  ;;  %v6275_v36 = vsel %vm14806_vm10, %v6273_v13, %v14805_v25  ;;  %v6403_v13 = vsel %vm14812_vm11, %v6402_v46, %v12055_v12  ;;  %vm14814_vm10 = vcmask 752640   ;;  %v14816_v25 = vld [vmem:[#allocation50_spill] sm:$0xff]  ;;  %v12534_v46 = vpop.permute.xlu0 %5963  ;;  %v5155_v47 = vsel %vm1578_vm0, %v5154_v32, %v12528_v63 }
 0x8b7   :  { %v12500_v44 = vpop.permute.xlu2 %5887  ;;  %v6277_v15 = vsel %vm14809_vm12, %v6275_v36, %v14808_v8  ;;  %v6404_v18 = vsel %vm14814_vm10, %v6403_v13, %v5848_v53  ;;  %vm14818_vm12 = vcmask 769024   ;;  %v5137_v52 = vsel %vm1578_vm0, %v12440_v58, %v5136_v7 }
 0x8b8   :  { %v6279_v51 = vsel %vm14811_vm9, %v6277_v15, %v14810_v54  ;;  %v6405_v53 = vsel %vm14818_vm12, %v6404_v18, %v12367_v41  ;;  %vm14820_vm9 = vcmask 932864   ;;  %v4712_v15 = vrot.slane %v12116_v57, 4 }
 0x8b9   :  { %6143 = vrot.lane.b32.xlu0 %v5149_v23, %s14372_s29  ;;  %v6281_v12 = vsel %vm14817_vm8, %v6279_v51, %v14816_v25  ;;  %v4810_v23 = vrot.slane %v12168_v28, 4  ;;  %v12547_v28 = vperm.slane %v5113_v38, %v7890_v33  ;;  %vm14822_vm11 = vcmask 949248   ;;  %v14829_v38 = vld [vmem:[#allocation68_spill] sm:$0xff]  ;;  %s14929_s29 = sld [smem:[#allocation319_spill]] }
 0x8ba   :  { %v6283_v8 = vsel %vm14820_vm9, %v6281_v12, %v14819_v2  ;;  %vm14823_vm10 = vcmask 785408   ;;  %vm14824_vm8 = vcmask 801792   ;;  %v4713_v58 = vsel %vm1578_vm0, %v12085_v56, %v4712_v15 }
 0x8bb   :  { %v6285_v54 = vsel %vm14822_vm11, %v6283_v8, %v14821_v60  ;;  %v6406_v41 = vsel %vm14823_vm10, %v6405_v53, %v12101_v39  ;;  %v4811_v51 = vsel %vm1578_vm0, %v4810_v23, %v12156_v31  ;;  %v12560_v57 = vperm.slane %v5137_v52, %v7890_v33  ;;  %v14830_v33 = vld [vmem:[#allocation261_spill] sm:$0xff] }
 0x8bc   :  { %6027 = vrot.lane.b32.xlu1 %v14815_v3, %s14378_s27  ;;  %vm14827_vm12 = vcmask 965632   ;;  %v5160_v39 = vrot.slane %v12547_v28, 4  ;;  %vm14828_vm9 = vcmask 818176   ;;  %vm14831_vm11 = vcmask 834560   ;;  %v14834_v23 = vld [vmem:[#allocation217_spill] sm:$0xff] }
 0x8bd   :  { %6031 = vrot.lane.b32.xlu2 %v14813_v16, %s14376_s28  ;;  %v14826_v16 = vld [vmem:[#allocation112_spill] sm:$0xff]  ;;  %vm14832_vm10 = vcmask 850944   ;;  %v4822_v15 = vrot.slane %v12243_v9, 4 }
 0x8be   :  { %v5860_v36 = vpop.permute.xlu1 %5859  ;;  %v6287_v32 = vsel %vm14827_vm12, %v6285_v54, %v14826_v16  ;;  %v5161_v3 = vsel %vm1578_vm0, %v12560_v57, %v5160_v39  ;;  %v12575_v25 = vpop.permute.xlu0 %5975  ;;  %vm14837_vm12 = vcmask 867328   ;;  %v14846_v39 = vld [vmem:[#allocation118_spill] sm:$0xff] }
 0x8bf   :  { %v5900_v55 = vpop.permute.xlu2 %5899  ;;  %v6407_v13 = vsel %vm14824_vm8, %v6406_v41, %v5860_v36  ;;  %v6289_v56 = vsel %vm6288_vm14, %v6287_v32, %v14829_v38  ;;  %vm6294_vm8 = vcmask 1031168   ;;  %s6564_s30 = sshll.u32 %s14929_s29, 4  ;;  %s6565_s30 = int_to_ptr.hbm [resolvable:$true] %s6564_s30 }
 0x8c0   :  { %v6408_v31 = vsel %vm14828_vm9, %v6407_v13, %v12412_v17  ;;  %v6291_v7 = vsel %vm6290_vm13, %v6289_v56, %v14830_v33  ;;  %v14833_v17 = vld [vmem:[#allocation212_spill] sm:$0xff]  ;;  %vm14839_vm9 = vcmask 883712   ;;  %v4928_v56 = vrot.slane %v12293_v14, 4 }
 0x8c1   :  { %6155 = vrot.lane.b32.xlu0 %v5155_v47, %s14386_s26  ;;  %v6409_v12 = vsel %vm14831_vm11, %v6408_v31, %v12160_v20  ;;  %v6293_v53 = vsel %vm6292_vm15, %v6291_v7, %v14834_v23  ;;  %v14836_v47 = vld [vmem:[#allocation127_spill] sm:$0xff]  ;;  %vm14840_vm11 = vcmask 900096   ;;  %s14870_s26 = smov 122  }
 0x8c2   :  { %v14838_v20 = vld [vmem:[#allocation99_spill] sm:$0xff] }
 0x8c3   :  { %v12591_v60 = vsel %vm6294_vm8, %v6293_v53, %v14838_v20 }
 0x8c4   :  { %6039 = vrot.lane.b32.xlu1 %v4713_v58, %s14825_s1 }
 0x8c5   :  { %6043 = vrot.lane.b32.xlu2 %v4811_v51, %s14388_s25  ;;  %v4820_v51 = vrot.slane %v12210_v34, 4 }
 0x8c6   :  { %v5872_v18 = vpop.permute.xlu1 %5871  ;;  %v12601_v13 = vpop.permute.xlu0 %5987 }
 0x8c7   :  { %v5912_v26 = vpop.permute.xlu2 %5911  ;;  %v6410_v36 = vsel %vm14832_vm10, %v6409_v12, %v5872_v18  ;;  %v4821_v9 = vsel %vm1578_vm0, %v12187_v5, %v4820_v51  ;;  %vm14841_vm10 = vcmask 916480   ;;  %v4930_v18 = vrot.slane %v12332_v21, 4  ;;  %v14853_v51 = vld [vmem:[#allocation318_spill] sm:$0xff] }
 0x8c8   :  { %v6411_v52 = vsel %vm14837_vm12, %v6410_v36, %v12449_v40  ;;  %v4823_v40 = vsel %vm1578_vm0, %v4822_v15, %v12229_v27  ;;  %vm14842_vm12 = vcmask 932864   ;;  %v12614_v27 = vsel %vm6294_vm8, %v11850_v22, %v11487_v30  ;;  %v14848_v36 = vld [vmem:[#allocation105_spill] sm:$0xff] }
 0x8c9   :  { %6167 = vrot.lane.b32.xlu0 %v5161_v3, %s14392_s23  ;;  %v6412_v54 = vsel %vm14839_vm9, %v6411_v52, %v12195_v48  ;;  %vm14843_vm9 = vcmask 949248   ;;  %v4931_v33 = vsel %vm1578_vm0, %v4930_v18, %v12320_v10  ;;  %v4929_v21 = vsel %vm1578_vm0, %v12260_v45, %v4928_v56  ;;  %s14864_s23 = smov 116  }
 0x8ca   :  { %v5158_v18 = vrot.slane %v12560_v57, 4  ;;  %v5156_v56 = vrot.slane %v12528_v63, 4 }
 0x8cc   :  { %6051 = vrot.lane.b32.xlu1 %v14836_v47, %s14835_s16 }
 0x8cd   :  { %6055 = vrot.lane.b32.xlu2 %v14833_v17, %s14553_s24  ;;  %s14869_s24 = smov 124  }
 0x8ce   :  { %v5884_v8 = vpop.permute.xlu1 %5883  ;;  %v12624_v31 = vpop.permute.xlu0 %5999 }
 0x8cf   :  { %v5924_v2 = vpop.permute.xlu2 %5923  ;;  %v6413_v41 = vsel %vm14840_vm11, %v6412_v54, %v5884_v8  ;;  %vm14844_vm11 = vcmask 965632  }
 0x8d0   :  { %v6414_v48 = vsel %vm14841_vm10, %v6413_v41, %v12500_v44  ;;  %v14845_v44 = vld [vmem:[#allocation9_spill] sm:$0xff]  ;;  %vm14866_vm10 = vcmask 244736  }
 0x8d1   :  { %6492 = vrot.lane.b32.xlu0 %v12591_v60, %s14522_s15  ;;  %v6415_v34 = vsel %vm14842_vm12, %v6414_v48, %v12237_v35  ;;  %vm14867_vm12 = vcmask 261120  }
 0x8d4   :  { %6063 = vrot.lane.b32.xlu1 %v4821_v9, %s14406_s21  ;;  %s14858_s21 = smov 110  }
 0x8d5   :  { %6067 = vrot.lane.b32.xlu2 %v4823_v40, %s14563_s22  ;;  %s14862_s22 = smov 118  }
 0x8d6   :  { %v5896_v16 = vpop.permute.xlu1 %5895  ;;  %v12647_v7 = vpop.permute.xlu0 %6011 }
 0x8d7   :  { %v5936_v58 = vpop.permute.xlu2 %5935  ;;  %v6416_v32 = vsel %vm14843_vm9, %v6415_v34, %v5896_v16  ;;  %v5048_v16 = vrot.slane %v12452_v37, 4  ;;  %vm14868_vm9 = vcmask 277504  }
 0x8d8   :  { %v6417_v5 = vsel %vm14844_vm11, %v6416_v32, %v5900_v55  ;;  %vm14871_vm11 = vcmask 293888  }
 0x8d9   :  { %6502 = vrot.lane.b32.xlu0 %v12614_v27, %s14522_s15  ;;  %v6418_v30 = vsel %vm6288_vm14, %v6417_v5, %v12288_v6  ;;  %v4362_v6 = vrot.slane %v12143_v59, 4  ;;  %v14847_v59 = vld [vmem:[#allocation122_spill] sm:$0xff]  ;;  %v5049_v32 = vsel %vm1578_vm0, %v12421_v0, %v5048_v16 }
 0x8dc   :  { %6075 = vrot.lane.b32.xlu1 %v14846_v39, %s14418_s20  ;;  %s14852_s20 = smov 104  }
 0x8dd   :  { %6079 = vrot.lane.b32.xlu2 %v14845_v44, %s14571_s10 }
 0x8de   :  { %v5908_v22 = vpop.permute.xlu1 %5907  ;;  %v12660_v52 = vpop.permute.xlu0 %6023 }
 0x8df   :  { %v5948_v35 = vpop.permute.xlu2 %5947  ;;  %v6419_v3 = vsel %vm6290_vm13, %v6418_v30, %v5908_v22 }
 0x8e0   :  { %v6420_v38 = vsel %vm6292_vm15, %v6419_v3, %v5912_v26 }
 0x8e1   :  { %v12633_v55 = vsel %vm6294_vm8, %v6420_v38, %v12346_v43  ;;  %v4363_v43 = vsel %vm1578_vm0, %v4362_v6, %v12128_v42  ;;  %v5038_v42 = vrot.slane %v12405_v50, 4  ;;  %v5157_v6 = vsel %vm1578_vm0, %v12508_v19, %v5156_v56 }
 0x8e2   :  { %6524 = vrot.lane.b32.xlu0 %v12633_v55, %s14522_s15 }
 0x8e3   :  { %v5039_v8 = vsel %vm1578_vm0, %v5038_v42, %v12394_v1  ;;  %v14851_v1 = vld [vmem:[#allocation316_spill] sm:$0xff] }
 0x8e4   :  { %6087 = vrot.lane.b32.xlu1 %v4929_v21, %s14424_s19  ;;  %s14850_s19 = smov 106  }
 0x8e5   :  { %6091 = vrot.lane.b32.xlu2 %v4931_v33, %s14576_s0  ;;  %v5159_v33 = vsel %vm1578_vm0, %v5158_v18, %v12547_v28 }
 0x8e6   :  { %v5920_v14 = vpop.permute.xlu1 %5919 }
 0x8e7   :  { %v5960_v26 = vpop.permute.xlu2 %5959  ;;  %v6422_v12 = vsel %vm6170_vm1, %v4363_v43, %v5920_v14  ;;  %vm14849_vm1 = vcmask 130048  }
 0x8e8   :  { %v6423_v10 = vsel %vm6172_vm2, %v6422_v12, %v5924_v2  ;;  %v5036_v2 = vrot.slane %v12370_v49, 4  ;;  %v12673_v49 = vpop.permute.xlu0 %6035  ;;  %vm14854_vm2 = vcmask 146432  }
 0x8e9   :  { %v6424_v17 = vsel %vm6174_vm3, %v6423_v10, %v12388_v24  ;;  %vm14855_vm3 = vcmask 162816  }
 0x8ea   :  { %v5037_v15 = vsel %vm1578_vm0, %v12352_v61, %v5036_v2 }
 0x8ec   :  { %6099 = vrot.lane.b32.xlu1 %v14848_v36, %s14430_s9 }
 0x8ed   :  { %6103 = vrot.lane.b32.xlu2 %v14847_v59, %s14582_s11 }
 0x8ee   :  { %v5932_v23 = vpop.permute.xlu1 %5931 }
 0x8ef   :  { %v5972_v45 = vpop.permute.xlu2 %5971  ;;  %v6425_v53 = vsel %vm6176_vm4, %v6424_v17, %v5932_v23  ;;  %vm14856_vm4 = vcmask 179200  }
 0x8f0   :  { %v6426_v47 = vsel %vm6178_vm5, %v6425_v53, %v5936_v58  ;;  %vm14859_vm5 = vcmask 195584  }
 0x8f1   :  { %v6427_v50 = vsel %vm6180_vm6, %v6426_v47, %v12434_v4  ;;  %v5146_v4 = vrot.slane %v12487_v62, 4  ;;  %vm14860_vm6 = vcmask 211968  }
 0x8f3   :  { %v5147_v34 = vsel %vm1578_vm0, %v5146_v4, %v12474_v29  ;;  %v14865_v29 = vld [vmem:[#allocation164_spill] sm:$0xff]  ;;  %vm14874_vm0 = vcmask 343040  }
 0x8f4   :  { %6111 = vrot.lane.b32.xlu1 %v5037_v15, %s14443_s18  ;;  %s14857_s18 = smov 112  }
 0x8f5   :  { %6115 = vrot.lane.b32.xlu2 %v5039_v8, %s14596_s12 }
 0x8f6   :  { %v5944_v20 = vpop.permute.xlu1 %5943 }
 0x8f7   :  { %v5984_v24 = vpop.permute.xlu2 %5983  ;;  %v6428_v54 = vsel %vm6182_vm7, %v6427_v50, %v5944_v20  ;;  %vm14861_vm7 = vcmask 228352  }
 0x8f8   :  { %v6429_v41 = vsel %vm14849_vm1, %v6428_v54, %v5948_v35  ;;  %v14863_v35 = vld [vmem:[#allocation204_spill] sm:$0xff]  ;;  %vm14872_vm1 = vcmask 310272  }
 0x8f9   :  { %v6430_v40 = vsel %vm14854_vm2, %v6429_v41, %v12497_v11  ;;  %v6048_v11 = vpop.permute.xlu0 %6047  ;;  %vm14873_vm2 = vcmask 326656  }
 0x8fc   :  { %6123 = vrot.lane.b32.xlu1 %v14853_v51, %s14852_s20 }
 0x8fd   :  { %6127 = vrot.lane.b32.xlu2 %v14851_v1, %s14850_s19 }
 0x8fe   :  { %v5956_v9 = vpop.permute.xlu1 %5955 }
 0x8ff   :  { %v5996_v61 = vpop.permute.xlu2 %5995  ;;  %v6431_v48 = vsel %vm14855_vm3, %v6430_v40, %v5956_v9  ;;  %vm14875_vm3 = vcmask 359424  }
 0x900   :  { %v6432_v58 = vsel %vm14856_vm4, %v6431_v48, %v5960_v26  ;;  %vm14876_vm4 = vcmask 375808  }
 0x901   :  { %v6433_v62 = vsel %vm14859_vm5, %v6432_v58, %v12534_v46  ;;  %v6060_v3 = vpop.permute.xlu0 %6059  ;;  %vm14877_vm5 = vcmask 392192  }
 0x904   :  { %6135 = vrot.lane.b32.xlu1 %v5049_v32, %s14858_s21 }
 0x905   :  { %6139 = vrot.lane.b32.xlu2 %v5147_v34, %s14857_s18 }
 0x906   :  { %v5968_v44 = vpop.permute.xlu1 %5967 }
 0x907   :  { %v6008_v5 = vpop.permute.xlu2 %6007  ;;  %v6434_v39 = vsel %vm14860_vm6, %v6433_v62, %v5968_v44  ;;  %vm14878_vm6 = vcmask 408576  }
 0x908   :  { %v6435_v37 = vsel %vm14861_vm7, %v6434_v39, %v5972_v45  ;;  %vm14879_vm7 = vcmask 424960  }
 0x909   :  { %v6436_v0 = vsel %vm14866_vm10, %v6435_v37, %v12575_v25  ;;  %v6072_v63 = vpop.permute.xlu0 %6071  ;;  %vm14880_vm10 = vcmask 441344  }
 0x90c   :  { %6147 = vrot.lane.b32.xlu1 %v14865_v29, %s14864_s23 }
 0x90d   :  { %6151 = vrot.lane.b32.xlu2 %v14863_v35, %s14862_s22 }
 0x90e   :  { %v5980_v22 = vpop.permute.xlu1 %5979 }
 0x90f   :  { %v6020_v30 = vpop.permute.xlu2 %6019  ;;  %v6437_v46 = vsel %vm14867_vm12, %v6436_v0, %v5980_v22  ;;  %vm14881_vm12 = vcmask 457728  }
 0x910   :  { %v6438_v38 = vsel %vm14868_vm9, %v6437_v46, %v5984_v24  ;;  %vm14882_vm9 = vcmask 474112  }
 0x911   :  { %v6439_v57 = vsel %vm14871_vm11, %v6438_v38, %v12601_v13  ;;  %v6084_v10 = vpop.permute.xlu0 %6083  ;;  %vm14883_vm11 = vcmask 490496  }
 0x914   :  { %6159 = vrot.lane.b32.xlu1 %v5157_v6, %s14870_s26 }
 0x915   :  { %6163 = vrot.lane.b32.xlu2 %v5159_v33, %s14869_s24 }
 0x916   :  { %v5992_v21 = vpop.permute.xlu1 %5991 }
 0x917   :  { %v6032_v25 = vpop.permute.xlu2 %6031  ;;  %v6440_v26 = vsel %vm14872_vm1, %v6439_v57, %v5992_v21  ;;  %vm14884_vm1 = vcmask 506880  }
 0x918   :  { %v6441_v43 = vsel %vm14873_vm2, %v6440_v26, %v5996_v61  ;;  %vm14885_vm2 = vcmask 523264  }
 0x919   :  { %v6442_v19 = vsel %vm14874_vm0, %v6441_v43, %v12624_v31  ;;  %v6096_v23 = vpop.permute.xlu0 %6095  ;;  %vm14886_vm0 = vcmask 539648  }
 0x91c   :  { %6486 = vrot.lane.b32.xlu1 %v12591_v60, %s14755_s13 }
 0x91d   :  { %6489 = vrot.lane.b32.xlu2 %v12591_v60, %s14388_s25 }
 0x91e   :  { %v6004_v14 = vpop.permute.xlu1 %6003 }
 0x91f   :  { %v6044_v28 = vpop.permute.xlu2 %6043  ;;  %v6443_v12 = vsel %vm14875_vm3, %v6442_v19, %v6004_v14  ;;  %vm14887_vm3 = vcmask 556032  }
 0x920   :  { %v6444_v13 = vsel %vm14876_vm4, %v6443_v12, %v6008_v5  ;;  %vm14888_vm4 = vcmask 572416  }
 0x921   :  { %v6445_v36 = vsel %vm14877_vm5, %v6444_v13, %v12647_v7  ;;  %v6108_v50 = vpop.permute.xlu0 %6107  ;;  %vm14889_vm5 = vcmask 588800  }
 0x924   :  { %6496 = vrot.lane.b32.xlu1 %v12614_v27, %s14755_s13 }
 0x925   :  { %6499 = vrot.lane.b32.xlu2 %v12614_v27, %s14388_s25 }
 0x926   :  { %v6016_v45 = vpop.permute.xlu1 %6015 }
 0x927   :  { %v6056_v59 = vpop.permute.xlu2 %6055  ;;  %v6446_v17 = vsel %vm14878_vm6, %v6445_v36, %v6016_v45  ;;  %vm14890_vm6 = vcmask 605184  }
 0x928   :  { %v6447_v31 = vsel %vm14879_vm7, %v6446_v17, %v6020_v30  ;;  %vm14891_vm7 = vcmask 621568  }
 0x929   :  { %v6448_v53 = vsel %vm14880_vm10, %v6447_v31, %v12660_v52  ;;  %v6120_v40 = vpop.permute.xlu0 %6119  ;;  %vm14892_vm10 = vcmask 637952  }
 0x92c   :  { %6518 = vrot.lane.b32.xlu1 %v12633_v55, %s14755_s13 }
 0x92d   :  { %6521 = vrot.lane.b32.xlu2 %v12633_v55, %s14388_s25 }
 0x92e   :  { %v6028_v47 = vpop.permute.xlu1 %6027 }
 0x92f   :  { %v6068_v42 = vpop.permute.xlu2 %6067  ;;  %v6449_v2 = vsel %vm14881_vm12, %v6448_v53, %v6028_v47  ;;  %vm14893_vm12 = vcmask 654336  }
 0x930   :  { %v6450_v7 = vsel %vm14882_vm9, %v6449_v2, %v6032_v25  ;;  %vm14894_vm9 = vcmask 670720  }
 0x931   :  { %v6451_v15 = vsel %vm14883_vm11, %v6450_v7, %v12673_v49  ;;  %v6132_v34 = vpop.permute.xlu0 %6131  ;;  %vm14895_vm11 = vcmask 687104  }
 0x936   :  { %v6040_v24 = vpop.permute.xlu1 %6039 }
 0x937   :  { %v6080_v8 = vpop.permute.xlu2 %6079  ;;  %v6452_v20 = vsel %vm14884_vm1, %v6451_v15, %v6040_v24  ;;  %vm14896_vm1 = vcmask 703488  }
 0x938   :  { %v6453_v54 = vsel %vm14885_vm2, %v6452_v20, %v6044_v28  ;;  %vm14897_vm2 = vcmask 719872  }
 0x939   :  { %v6454_v1 = vsel %vm14886_vm0, %v6453_v54, %v6048_v11  ;;  %v6144_v11 = vpop.permute.xlu0 %6143  ;;  %vm14898_vm0 = vcmask 736256  }
 0x93e   :  { %v6052_v51 = vpop.permute.xlu1 %6051 }
 0x93f   :  { %v6092_v41 = vpop.permute.xlu2 %6091  ;;  %v6455_v52 = vsel %vm14887_vm3, %v6454_v1, %v6052_v51  ;;  %vm14899_vm3 = vcmask 752640  }
 0x940   :  { %v6456_v61 = vsel %vm14888_vm4, %v6455_v52, %v6056_v59  ;;  %vm14900_vm4 = vcmask 769024  }
 0x941   :  { %v6457_v4 = vsel %vm14889_vm5, %v6456_v61, %v6060_v3  ;;  %v6156_v22 = vpop.permute.xlu0 %6155  ;;  %vm14901_vm5 = vcmask 785408  }
 0x946   :  { %v6064_v48 = vpop.permute.xlu1 %6063 }
 0x947   :  { %v6104_v9 = vpop.permute.xlu2 %6103  ;;  %v6458_v49 = vsel %vm14890_vm6, %v6457_v4, %v6064_v48  ;;  %vm14902_vm6 = vcmask 801792  }
 0x948   :  { %v6459_v58 = vsel %vm14891_vm7, %v6458_v49, %v6068_v42  ;;  %vm14903_vm7 = vcmask 818176  }
 0x949   :  { %v6460_v16 = vsel %vm14892_vm10, %v6459_v58, %v6072_v63  ;;  %v6168_v6 = vpop.permute.xlu0 %6167  ;;  %vm14904_vm10 = vcmask 834560  }
 0x94e   :  { %v6076_v5 = vpop.permute.xlu1 %6075 }
 0x94f   :  { %v6116_v32 = vpop.permute.xlu2 %6115  ;;  %v6461_v44 = vsel %vm14893_vm12, %v6460_v16, %v6076_v5  ;;  %vm14905_vm12 = vcmask 850944  }
 0x950   :  { %v6462_v37 = vsel %vm14894_vm9, %v6461_v44, %v6080_v8  ;;  %vm14906_vm9 = vcmask 867328  }
 0x951   :  { %v6463_v35 = vsel %vm14895_vm11, %v6462_v37, %v6084_v10  ;;  %v6493_v19 = vpop.permute.xlu0 %6492  ;;  %vm14907_vm11 = vcmask 261120  }
 0x956   :  { %v6088_v39 = vpop.permute.xlu1 %6087 }
 0x957   :  { %v6128_v62 = vpop.permute.xlu2 %6127  ;;  %v6464_v29 = vsel %vm14896_vm1, %v6463_v35, %v6088_v39  ;;  %vm14908_vm1 = vcmask 523264  }
 0x958   :  { %v6465_v18 = vsel %vm14897_vm2, %v6464_v29, %v6092_v41  ;;  %vm14909_vm2 = vmmov %vm14901_vm5 }
 0x959   :  { %v6466_v3 = vsel %vm14898_vm0, %v6465_v18, %v6096_v23  ;;  %vm14910_vm0 = vcmask 883712   ;;  %v6503_v23 = vpop.permute.xlu0 %6502 }
 0x95e   :  { %v6100_v0 = vpop.permute.xlu1 %6099 }
 0x95f   :  { %v6140_v30 = vpop.permute.xlu2 %6139  ;;  %v6467_v46 = vsel %vm14899_vm3, %v6466_v3, %v6100_v0  ;;  %vm14911_vm3 = vcmask 900096  }
 0x960   :  { %v6468_v33 = vsel %vm14900_vm4, %v6467_v46, %v6104_v9  ;;  %vm14912_vm4 = vcmask 916480  }
 0x961   :  { %v6469_v25 = vsel %vm14901_vm5, %v6468_v33, %v6108_v50  ;;  %vm14913_vm5 = vmmov %vm14907_vm11  ;;  %v6525_v50 = vpop.permute.xlu0 %6524 }
 0x966   :  { %v6112_v56 = vpop.permute.xlu1 %6111 }
 0x967   :  { %v6152_v38 = vpop.permute.xlu2 %6151  ;;  %v6470_v57 = vsel %vm14902_vm6, %v6469_v25, %v6112_v56  ;;  %vm14914_vm6 = vmmov %vm14908_vm1 }
 0x968   :  { %v6471_v26 = vsel %vm14903_vm7, %v6470_v57, %v6116_v32  ;;  %vm14915_vm7 = vcmask 932864  }
 0x969   :  { %v6472_v63 = vsel %vm14904_vm10, %v6471_v26, %v6120_v40  ;;  %vm14916_vm10 = vmmov %vm14909_vm2 }
 0x96e   :  { %v6124_v43 = vpop.permute.xlu1 %6123 }
 0x96f   :  { %v6164_v21 = vpop.permute.xlu2 %6163  ;;  %v6473_v28 = vsel %vm14905_vm12, %v6472_v63, %v6124_v43  ;;  %vm14917_vm12 = vcmask 949248  }
 0x970   :  { %v6474_v14 = vsel %vm14906_vm9, %v6473_v28, %v6128_v62  ;;  %vm14918_vm9 = vcmask 965632  }
 0x971   :  { %v6475_v45 = vsel %vm14910_vm0, %v6474_v14, %v6132_v34  ;;  %vm14921_vm0 = vmmov %vm14908_vm1 }
 0x976   :  { %v6136_v10 = vpop.permute.xlu1 %6135 }
 0x977   :  { %v6490_v12 = vpop.permute.xlu2 %6489  ;;  %v6476_v17 = vsel %vm14911_vm3, %v6475_v45, %v6136_v10  ;;  %vm14925_vm3 = vmmov %vm14909_vm2 }
 0x978   :  { %v6508_v13 = vsel %vm14907_vm11, %v6490_v12, %v6493_v19  ;;  %v6477_v31 = vsel %vm14912_vm4, %v6476_v17, %v6140_v30  ;;  %vm14919_vm11 = vmmov %vm14913_vm5 }
 0x979   :  { %v6509_v59 = vsel %vm14908_vm1, %v6508_v13, %v6493_v19  ;;  %v6478_v7 = vsel %vm14915_vm7, %v6477_v31, %v6144_v11  ;;  %vm14926_vm4 = vmmov %vm14913_vm5 }
 0x97a   :  { %v6510_v36 = vsel %vm14909_vm2, %v6509_v59, %v12591_v60  ;;  %vm14930_vm7 = vmmov %vm14926_vm4 }
 0x97b   :  { %6550 = vst [vmem:[#allocation5 + $0x8] sm:$0xff] %v6510_v36 }
 0x97e   :  { %v6148_v47 = vpop.permute.xlu1 %6147 }
 0x97f   :  { %v6500_v42 = vpop.permute.xlu2 %6499  ;;  %v6479_v15 = vsel %vm14917_vm12, %v6478_v7, %v6148_v47  ;;  %vm14932_vm12 = vmmov %vm14926_vm4 }
 0x980   :  { %v6514_v53 = vsel %vm14913_vm5, %v6500_v42, %v6503_v23  ;;  %v6480_v24 = vsel %vm14918_vm9, %v6479_v15, %v6152_v38  ;;  %vm14933_vm9 = vmmov %vm14909_vm2 }
 0x981   :  { %v6515_v2 = vsel %vm14914_vm6, %v6514_v53, %v6503_v23  ;;  %v6481_v41 = vsel %vm6288_vm14, %v6480_v24, %v6156_v22  ;;  %vm14920_vm14 = vmmov %vm14913_vm5 }
 0x982   :  { %v6516_v8 = vsel %vm14916_vm10, %v6515_v2, %v12614_v27  ;;  %vm14928_vm6 = vmmov %vm14909_vm2 }
 0x983   :  { %6552 = vst [vmem:[#allocation5 + $0x18] sm:$0xff] %v6516_v8  ;;  %vm14931_vm10 = vmmov %vm14921_vm0 }
 0x986   :  { %v6160_v1 = vpop.permute.xlu1 %6159 }
 0x987   :  { %v6522_v20 = vpop.permute.xlu2 %6521  ;;  %v6482_v52 = vsel %vm6290_vm13, %v6481_v41, %v6160_v1  ;;  %vm14922_vm13 = vmmov %vm14909_vm2 }
 0x988   :  { %v6540_v54 = vsel %vm14919_vm11, %v6522_v20, %v6525_v50  ;;  %v6483_v40 = vsel %vm6292_vm15, %v6482_v52, %v6164_v21  ;;  %vm14923_vm15 = vmmov %vm14913_vm5 }
 0x989   :  { %v6541_v51 = vsel %vm14908_vm1, %v6540_v54, %v6525_v50  ;;  %v6484_v9 = vsel %vm6294_vm8, %v6483_v40, %v6168_v6  ;;  %vm14924_vm8 = vmmov %vm14921_vm0 }
 0x98a   :  { %v6542_v61 = vsel %vm14909_vm2, %v6541_v51, %v12633_v55  ;;  %6534 = vrot.lane.b32.xlu0 %v6484_v9, %s14522_s15  ;;  %6531 = vrot.lane.b32.xlu2 %v6484_v9, %s14388_s25  ;;  %vm14927_vm5 = vmmov %vm14921_vm0  ;;  %s6980_s15 = smov [#allocation5]  }
 0x98b   :  { %6554 = vst [vmem:[#allocation5 + $0x28] sm:$0xff] %v6542_v61  ;;  %6528 = vrot.lane.b32.xlu1 %v6484_v9, %s14755_s13  ;;  %s6562_s25 = sshll.u32 %s6980_s15, 4  ;;  %vm14934_vm11 = vmmov %vm14921_vm0  ;;  %s6563_s25 = int_to_ptr.vmem [resolvable:$true] %s6562_s25 }
 0x98c   :  { %vm14935_vm1 = vmmov %vm14909_vm2 }
 0x98e   :  { %v6487_v4 = vpop.permute.xlu1 %6486 }
 0x98f   :  { %v6505_v48 = vsel %vm14920_vm14, %v12591_v60, %v6487_v4 }
 0x990   :  { %v6506_v49 = vsel %vm14921_vm0, %v6505_v48, %v6487_v4 }
 0x991   :  { %v6507_v58 = vsel %vm14922_vm13, %v6506_v49, %v6490_v12 }
 0x992   :  { %6549 = vst [vmem:[#allocation5] sm:$0xff] %v6507_v58 }
 0x996   :  { %v6497_v16 = vpop.permute.xlu1 %6496 }
 0x997   :  { %v6511_v34 = vsel %vm14923_vm15, %v12614_v27, %v6497_v16 }
 0x998   :  { %v6512_v32 = vsel %vm14924_vm8, %v6511_v34, %v6497_v16 }
 0x999   :  { %v6513_v5 = vsel %vm14925_vm3, %v6512_v32, %v6500_v42 }
 0x99a   :  { %6551 = vst [vmem:[#allocation5 + $0x10] sm:$0xff] %v6513_v5 }
 0x99e   :  { %v6519_v11 = vpop.permute.xlu1 %6518 }
 0x99f   :  { %v6537_v62 = vsel %vm14926_vm4, %v12633_v55, %v6519_v11 }
 0x9a0   :  { %v6538_v60 = vsel %vm14927_vm5, %v6537_v62, %v6519_v11 }
 0x9a1   :  { %v6539_v44 = vsel %vm14928_vm6, %v6538_v60, %v6522_v20 }
 0x9a2   :  { %6553 = vst [vmem:[#allocation5 + $0x20] sm:$0xff] %v6539_v44 }
 0x9e4   :  { %v6532_v39 = vpop.permute.xlu2 %6531 }
 0x9fc   :  { %v6535_v37 = vpop.permute.xlu0 %6534 }
 0x9fd   :  { %v6546_v27 = vsel %vm14930_vm7, %v6532_v39, %v6535_v37  ;;  %v6529_v35 = vpop.permute.xlu1 %6528 }
 0x9fe   :  { %v6547_v29 = vsel %vm14931_vm10, %v6546_v27, %v6535_v37  ;;  %v6543_v55 = vsel %vm14932_vm12, %v6484_v9, %v6529_v35 }
 0x9ff   :  { %v6548_v30 = vsel %vm14933_vm9, %v6547_v29, %v6484_v9  ;;  %v6544_v0 = vsel %vm14934_vm11, %v6543_v55, %v6529_v35 }
 0xa00   :  { %6556 = vst [vmem:[#allocation5 + $0x38] sm:$0xff] %v6548_v30  ;;  %v6545_v22 = vsel %vm14935_vm1, %v6544_v0, %v6532_v39 }
 0xa01   :  { %6555 = vst [vmem:[#allocation5 + $0x30] sm:$0xff] %v6545_v22 }
 0xa02   :  { %6567 = dma.vmem_to_hbm [thread:$0]  %s6563_s25, 1024, %s6565_s30, [#allocation4]  }
 0xa03   :  { %6912 = dma.done.wait [#allocation4], 1024  }
 0xa04   :  { %6913 = vsyncadd [#allocation4], 4294966272 }
 0xa05   :  { %6572 = vsyncpa [#allocation3], 1 }
 0xa06   :  { %6573 = vsyncpa [#allocation4], 1 }

</bundles_post_ra>
